<compile_context>
chip_gen: v7x
topology: tpu7x:2x2x1
jax: 0.10.0
libtpu: 0.0.40
codegen_flags: <defaults>
</compile_context>

<pallas_src>
import functools

import jax
import jax.numpy as jnp
from jax.experimental import pallas as pl
from jax.experimental.pallas import tpu as pltpu


# ----------------------------------------------------------------------------
# Tiling helper
# ----------------------------------------------------------------------------
def _pick_tile(M, max_tile=1024):
    """Lane-axis tile for the M (=N*Hout*Wout) dimension.

    Returns a multiple of 128 that divides M, preferring >= 2 grid steps so
    both v7x TensorCores get work; falls back to a single full block for
    small / non-128-divisible M.
    """
    if M % 128 != 0:
        return M
    for c in (max_tile, 512, 256, 128):
        if M % c == 0 and M // c >= 2:
            return c
    return M


# ----------------------------------------------------------------------------
# Pallas kernel
# ----------------------------------------------------------------------------
def _conv_kernel(*refs, act, with_stats, fuse_bn):
    """out[Cout, tm] = epilogue( W[Cout,K] @ pre(A[K,tm]) ).

    pre():  optional fused BatchNorm (per-K-row scale/shift) + LeakyReLU(0.2)
            of the PREVIOUS layer, applied in f32 to the raw patch matrix
            before casting to bf16 for the MXU.
    epilogue(): optional LeakyReLU / Sigmoid on the f32 accumulator.
    with_stats: accumulate per-output-channel sum / sum-of-squares of the raw
            conv output into grid-resident [Cout, 1] outputs (for this
            layer's BatchNorm).
    """
    idx = 0
    if fuse_bn:
        scale_ref, shift_ref = refs[0], refs[1]
        idx = 2
    w_ref, a_ref = refs[idx], refs[idx + 1]
    rest = refs[idx + 2:]
    if with_stats:
        o_ref, sum_ref, ssq_ref = rest
    else:
        (o_ref,) = rest

    if fuse_bn:
        a = a_ref[...].astype(jnp.float32) * scale_ref[...] + shift_ref[...]
        a = jnp.where(a >= 0.0, a, 0.2 * a).astype(jnp.bfloat16)
    else:
        a = a_ref[...]

    acc = jnp.dot(w_ref[...], a, preferred_element_type=jnp.float32)

    if act == "lrelu":
        y = jnp.where(acc >= 0.0, acc, 0.2 * acc)
    elif act == "sigmoid":
        y = jax.nn.sigmoid(acc)
    else:
        y = acc
    o_ref[...] = y.astype(o_ref.dtype)

    if with_stats:
        @pl.when(pl.program_id(0) == 0)
        def _():
            sum_ref[...] = jnp.zeros_like(sum_ref)
            ssq_ref[...] = jnp.zeros_like(ssq_ref)

        sum_ref[...] += jnp.sum(acc, axis=1, keepdims=True)
        ssq_ref[...] += jnp.sum(acc * acc, axis=1, keepdims=True)


# ----------------------------------------------------------------------------
# im2col (K-major, channel-first) — pure strided-slice layout pass in XLA
# ----------------------------------------------------------------------------
def im2col_km(x_cnhw, k, stride, pad, pad_value=None):
    """x: [C, N, H, W] -> A: [K, M] bf16, K=(kh,kw,c) rows, M=(n,ho,wo) cols.

    pad_value (optional, [C] f32): per-channel fill for the conv padding
    region.  Used when the consumer kernel fuses BatchNorm of the previous
    layer: filling with -shift/scale makes padded positions normalize back
    to ~0 (matching zero-padding applied *after* BN+LeakyReLU).
    """
    C, N, H, W = x_cnhw.shape
    if pad:
        if pad_value is None:
            x_cnhw = jnp.pad(x_cnhw, ((0, 0), (0, 0), (pad, pad), (pad, pad)))
        else:
            fill = jnp.broadcast_to(
                pad_value.astype(x_cnhw.dtype).reshape(C, 1, 1, 1),
                (C, N, H + 2 * pad, W + 2 * pad))
            x_cnhw = fill.at[:, :, pad:pad + H, pad:pad + W].set(x_cnhw)
    Hout = (H + 2 * pad - k) // stride + 1
    Wout = (W + 2 * pad - k) // stride + 1
    cols = [
        x_cnhw[:, :, kh:kh + stride * Hout:stride, kw:kw + stride * Wout:stride]
        for kh in range(k) for kw in range(k)
    ]
    a = jnp.stack(cols, axis=0).reshape(k * k * C, N * Hout * Wout)
    return a.astype(jnp.bfloat16), N, Hout, Wout


# ----------------------------------------------------------------------------
# Layer wrapper
# ----------------------------------------------------------------------------
def conv_layer(x_cnhw, w_oihw, stride, pad, act="none", with_stats=False,
               bn=None):
    """Conv2d (no bias) as a lane-dense Pallas GEMM.

    bn = (scale[Cin], shift[Cin]) fuses the previous layer's BatchNorm +
    LeakyReLU(0.2) onto the input patches inside the kernel.

    Returns (out[Cout, M], (N, Hout, Wout)) or, with_stats=True,
    ((out, sum, sumsq), (N, Hout, Wout)).
    """
    Cout, Cin, k, _ = w_oihw.shape

    pad_val = None
    if bn is not None and pad:
        scale_c, shift_c = bn
        pad_val = -(shift_c / scale_c)          # normalizes back to ~0 in-kernel

    a, N, Hout, Wout = im2col_km(x_cnhw, k, stride, pad, pad_value=pad_val)
    K, M = a.shape
    # Weight reordered to match A's K ordering (kh, kw, cin).
    wm = w_oihw.transpose(0, 2, 3, 1).reshape(Cout, K).astype(jnp.bfloat16)

    tm = _pick_tile(M)
    grid = (M // tm,)

    in_specs = []
    operands = []
    if bn is not None:
        scale_c, shift_c = bn
        scale_row = jnp.tile(scale_c.astype(jnp.float32), k * k).reshape(K, 1)
        shift_row = jnp.tile(shift_c.astype(jnp.float32), k * k).reshape(K, 1)
        in_specs += [pl.BlockSpec((K, 1), lambda i: (0, 0)),
                     pl.BlockSpec((K, 1), lambda i: (0, 0))]
        operands += [scale_row, shift_row]
    in_specs += [pl.BlockSpec((Cout, K), lambda i: (0, 0)),
                 pl.BlockSpec((K, tm), lambda i: (0, i))]
    operands += [wm, a]

    out_dtype = jnp.float32 if act == "sigmoid" else jnp.bfloat16
    o_spec = pl.BlockSpec((Cout, tm), lambda i: (0, i))

    kernel = functools.partial(_conv_kernel, act=act, with_stats=with_stats,
                               fuse_bn=bn is not None)

    if with_stats:
        out_shape = (jax.ShapeDtypeStruct((Cout, M), out_dtype),
                     jax.ShapeDtypeStruct((Cout, 1), jnp.float32),
                     jax.ShapeDtypeStruct((Cout, 1), jnp.float32))
        out_specs = (o_spec,
                     pl.BlockSpec((Cout, 1), lambda i: (0, 0)),
                     pl.BlockSpec((Cout, 1), lambda i: (0, 0)))
        sem = ("arbitrary",)        # stat accumulators live across the M grid
    else:
        out_shape = jax.ShapeDtypeStruct((Cout, M), out_dtype)
        out_specs = o_spec
        sem = ("parallel",)

    result = pl.pallas_call(
        kernel,
        out_shape=out_shape,
        grid_spec=pltpu.PrefetchScalarGridSpec(
            num_scalar_prefetch=0,
            grid=grid,
            in_specs=in_specs,
            out_specs=out_specs),
        compiler_params=pltpu.CompilerParams(dimension_semantics=sem),
    )(*operands)

    if with_stats:
        out, ssum, ssq = result
        return (out, ssum, ssq), (N, Hout, Wout)
    return result, (N, Hout, Wout)


# ----------------------------------------------------------------------------
# Discriminator forward
# ----------------------------------------------------------------------------
def init_params(key, ndf=8, nc=3):
    ks = jax.random.split(key, 5)
    std = 0.02
    return {
        "w1": jax.random.normal(ks[0], (ndf, nc, 4, 4), jnp.float32) * std,
        "w2": jax.random.normal(ks[1], (ndf * 2, ndf, 4, 4), jnp.float32) * std,
        "w3": jax.random.normal(ks[2], (ndf * 4, ndf * 2, 4, 4), jnp.float32) * std,
        "w4": jax.random.normal(ks[3], (ndf * 8, ndf * 4, 4, 4), jnp.float32) * std,
        "w5": jax.random.normal(ks[4], (1, ndf * 8, 4, 4), jnp.float32) * std,
        "g2": jnp.ones((ndf * 2,), jnp.float32), "b2": jnp.zeros((ndf * 2,), jnp.float32),
        "g3": jnp.ones((ndf * 4,), jnp.float32), "b3": jnp.zeros((ndf * 4,), jnp.float32),
        "g4": jnp.ones((ndf * 8,), jnp.float32), "b4": jnp.zeros((ndf * 8,), jnp.float32),
    }


def discriminator_forward(x_nchw, p, eps=1e-5):
    # Single layout change at the module boundary: NCHW -> channel-first CNHW.
    x = jnp.transpose(x_nchw, (1, 0, 2, 3))

    # Layer 1: Conv(nc->ndf, 4, 2, 1) + LeakyReLU(0.2) fused in the GEMM kernel.
    h, (N, Ho, Wo) = conv_layer(x, p["w1"], stride=2, pad=1, act="lrelu")
    x = h.reshape(h.shape[0], N, Ho, Wo)

    # Layers 2-4: Conv (raw output + fused batch stats).  The BatchNorm
    # normalize + LeakyReLU of layer l is applied inside layer l+1's conv
    # kernel (per-K-row scale/shift on the patch matrix), so there is no
    # separate BN-apply pass over the slab.
    bn_prev = None
    for w, g, b in ((p["w2"], p["g2"], p["b2"]),
                    (p["w3"], p["g3"], p["b3"]),
                    (p["w4"], p["g4"], p["b4"])):
        (h, ssum, ssq), (N, Ho, Wo) = conv_layer(
            x, w, stride=2, pad=1, act="none", with_stats=True, bn=bn_prev)
        # Tiny per-channel math ([C]-sized) in plain JAX: training-mode
        # (biased) batch statistics, like torch.
        M = h.shape[1]
        mean = ssum[:, 0] / M
        var = ssq[:, 0] / M - mean * mean
        inv = jax.lax.rsqrt(var + eps)
        scale = g * inv
        shift = b - mean * scale
        bn_prev = (scale, shift)
        x = h.reshape(h.shape[0], N, Ho, Wo)

    # Layer 5: Conv(ndf*8 -> 1, 4, 1, 0); BN4+LeakyReLU fused on the input
    # patches, Sigmoid fused in the epilogue, f32 output.
    h, _ = conv_layer(x, p["w5"], stride=1, pad=0, act="sigmoid", bn=bn_prev)
    return h.reshape(1, N, 1, 1).transpose(1, 0, 2, 3)   # [N, 1, 1, 1]


# ----------------------------------------------------------------------------
# Pure-JAX f32 reference (for self-check)
# ----------------------------------------------------------------------------
def reference_forward(x, p):
    def conv(x, w, s, pad):
        return jax.lax.conv_general_dilated(
            x, w, (s, s), ((pad, pad), (pad, pad)),
            dimension_numbers=("NCHW", "OIHW", "NCHW"))

    def bn(x, g, b):
        m = x.mean(axis=(0, 2, 3), keepdims=True)
        v = ((x - m) ** 2).mean(axis=(0, 2, 3), keepdims=True)
        return (x - m) / jnp.sqrt(v + 1e-5) * g.reshape(1, -1, 1, 1) + b.reshape(1, -1, 1, 1)

    def lrelu(x):
        return jnp.where(x >= 0, x, 0.2 * x)

    x = lrelu(conv(x, p["w1"], 2, 1))
    x = lrelu(bn(conv(x, p["w2"], 2, 1), p["g2"], p["b2"]))
    x = lrelu(bn(conv(x, p["w3"], 2, 1), p["g3"], p["b3"]))
    x = lrelu(bn(conv(x, p["w4"], 2, 1), p["g4"], p["b4"]))
    x = jax.nn.sigmoid(conv(x, p["w5"], 1, 0))
    return x


# ----------------------------------------------------------------------------
if __name__ == "__main__":
    key = jax.random.PRNGKey(0)
    kx, kp = jax.random.split(key)

    ndf, nc = 8, 3
    # DCGAN discriminator architecture requires 64x64 spatial input.
    x = jax.random.normal(kx, (2, nc, 64, 64), jnp.float32)
    params = init_params(kp, ndf=ndf, nc=nc)

    fwd = jax.jit(discriminator_forward)
    out = jax.block_until_ready(fwd(x, params))
    assert out.shape == (2, 1, 1, 1), out.shape

    ref = jax.block_until_ready(reference_forward(x, params))
    # Tolerance accounts for bf16 operands / activations on the MXU path
    # (f32 accumulation); f32 reference.
    err = jnp.max(jnp.abs(out.astype(jnp.float32) - ref))
    assert jnp.allclose(out.astype(jnp.float32), ref, atol=3e-2, rtol=3e-2), \
        f"max abs diff {err}"

    print("KERNEL_OK")
</pallas_src>

<mosaic_0001>
module attributes {stable_mosaic.version = 11 : i64} {
  func.func @_conv_kernel(%arg0: i32, %arg1: memref<8x48xbf16, #tpu.memory_space<vmem>>, %arg2: memref<48x1024xbf16, #tpu.memory_space<vmem>>, %arg3: memref<8x1024xbf16, #tpu.memory_space<vmem>>) attributes {dimension_semantics = [#tpu.dimension_semantics<parallel>], iteration_bounds = array<i64: 2>, scalar_prefetch = 0 : i64, scratch_operands = 0 : i64, tpu.core_type = #tpu.core_type<tc>, window_params = [{pipeline_mode = #tpu.pipeline_mode<synchronous>, transform_indices = @transform_0, window_bounds = array<i64: 8, 48>}, {transform_indices = @transform_1, window_bounds = array<i64: 48, 1024>}, {transform_indices = @transform_2, window_bounds = array<i64: 8, 1024>}]} {
    %c0 = arith.constant 0 : index
    %c0_0 = arith.constant 0 : index
    %0 = vector.load %arg2[%c0, %c0_0] : memref<48x1024xbf16, #tpu.memory_space<vmem>>, vector<48x1024xbf16>
    %c0_1 = arith.constant 0 : index
    %c0_2 = arith.constant 0 : index
    %1 = vector.load %arg1[%c0_1, %c0_2] : memref<8x48xbf16, #tpu.memory_space<vmem>>, vector<8x48xbf16>
    %cst = arith.constant dense<0.000000e+00> : vector<8x1024xf32>
    %2 = tpu.matmul %1, %0, %cst {dimension_numbers = #tpu.dot_dimension_numbers<[1], [0], [0], [1], [0, 0, 1, 1], [], []>} : vector<8x48xbf16>, vector<48x1024xbf16>, vector<8x1024xf32> -> vector<8x1024xf32>
    %cst_3 = arith.constant 0.000000e+00 : f32
    %3 = vector.broadcast %cst_3 : f32 to vector<8x1024xf32>
    %4 = arith.cmpf oge, %2, %3 : vector<8x1024xf32>
    %cst_4 = arith.constant 2.000000e-01 : f32
    %5 = vector.broadcast %cst_4 : f32 to vector<8x1024xf32>
    %6 = arith.mulf %5, %2 : vector<8x1024xf32>
    %7 = arith.select %4, %2, %6 : vector<8x1024xi1>, vector<8x1024xf32>
    %8 = arith.truncf %7 : vector<8x1024xf32> to vector<8x1024xbf16>
    %c0_5 = arith.constant 0 : index
    %c0_6 = arith.constant 0 : index
    %9 = vector.load %arg3[%c0_5, %c0_6] : memref<8x1024xbf16, #tpu.memory_space<vmem>>, vector<8x1024xbf16>
    tpu.vector_store %arg3[%c0_5, %c0_6], %8 {strides = array<i32>} : memref<8x1024xbf16, #tpu.memory_space<vmem>>, vector<8x1024xbf16>,
    return
  }
  func.func @transform_0(%arg0: i32) -> (i32, i32) {
    %c0_i32 = arith.constant 0 : i32
    %c0_i32_0 = arith.constant 0 : i32
    %c0_i32_1 = arith.constant 0 : i32
    return %c0_i32, %c0_i32_0 : i32, i32
  }
  func.func @transform_1(%arg0: i32) -> (i32, i32) {
    %c0_i32 = arith.constant 0 : i32
    %c0_i32_0 = arith.constant 0 : i32
    return %c0_i32, %arg0 : i32, i32
  }
  func.func @transform_2(%arg0: i32) -> (i32, i32) {
    %c0_i32 = arith.constant 0 : i32
    %c0_i32_0 = arith.constant 0 : i32
    return %c0_i32, %arg0 : i32, i32
  }
}

module attributes {stable_mosaic.version = 11 : i64} {
  func.func @_conv_kernel(%arg0: i32, %arg1: memref<16x128xbf16, #tpu.memory_space<vmem>>, %arg2: memref<128x256xbf16, #tpu.memory_space<vmem>>, %arg3: memref<16x256xbf16, #tpu.memory_space<vmem>>, %arg4: memref<16x1xf32, #tpu.memory_space<vmem>>, %arg5: memref<16x1xf32, #tpu.memory_space<vmem>>) attributes {dimension_semantics = [#tpu.dimension_semantics<arbitrary>], iteration_bounds = array<i64: 2>, scalar_prefetch = 0 : i64, scratch_operands = 0 : i64, tpu.core_type = #tpu.core_type<tc>, window_params = [{pipeline_mode = #tpu.pipeline_mode<synchronous>, transform_indices = @transform_0, window_bounds = array<i64: 16, 128>}, {transform_indices = @transform_1, window_bounds = array<i64: 128, 256>}, {transform_indices = @transform_2, window_bounds = array<i64: 16, 256>}, {pipeline_mode = #tpu.pipeline_mode<synchronous>, transform_indices = @transform_3, window_bounds = array<i64: 16, 1>}, {pipeline_mode = #tpu.pipeline_mode<synchronous>, transform_indices = @transform_4, window_bounds = array<i64: 16, 1>}]} {
    %c0 = arith.constant 0 : index
    %c0_0 = arith.constant 0 : index
    %0 = vector.load %arg2[%c0, %c0_0] : memref<128x256xbf16, #tpu.memory_space<vmem>>, vector<128x256xbf16>
    %c0_1 = arith.constant 0 : index
    %c0_2 = arith.constant 0 : index
    %1 = vector.load %arg1[%c0_1, %c0_2] : memref<16x128xbf16, #tpu.memory_space<vmem>>, vector<16x128xbf16>
    %cst = arith.constant dense<0.000000e+00> : vector<16x256xf32>
    %2 = tpu.matmul %1, %0, %cst {dimension_numbers = #tpu.dot_dimension_numbers<[1], [0], [0], [1], [0, 0, 1, 1], [], []>} : vector<16x128xbf16>, vector<128x256xbf16>, vector<16x256xf32> -> vector<16x256xf32>
    %3 = arith.truncf %2 : vector<16x256xf32> to vector<16x256xbf16>
    %c0_3 = arith.constant 0 : index
    %c0_4 = arith.constant 0 : index
    %4 = vector.load %arg3[%c0_3, %c0_4] : memref<16x256xbf16, #tpu.memory_space<vmem>>, vector<16x256xbf16>
    tpu.vector_store %arg3[%c0_3, %c0_4], %3 {strides = array<i32>} : memref<16x256xbf16, #tpu.memory_space<vmem>>, vector<16x256xbf16>,
    %c0_i32 = arith.constant 0 : i32
    %5 = arith.cmpi eq, %arg0, %c0_i32 : i32
    %6 = arith.extui %5 : i1 to i32
    %c0_i32_5 = arith.constant 0 : i32
    %7 = arith.cmpi ne, %6, %c0_i32_5 : i32
    scf.if %7 {
      %cst_16 = arith.constant 0.000000e+00 : f32
      %19 = vector.broadcast %cst_16 : f32 to vector<16x1xf32>
      %c0_17 = arith.constant 0 : index
      %c0_18 = arith.constant 0 : index
      %20 = vector.load %arg4[%c0_17, %c0_18] : memref<16x1xf32, #tpu.memory_space<vmem>>, vector<16x1xf32>
      tpu.vector_store %arg4[%c0_17, %c0_18], %19 {strides = array<i32>} : memref<16x1xf32, #tpu.memory_space<vmem>>, vector<16x1xf32>,
      %cst_19 = arith.constant 0.000000e+00 : f32
      %21 = vector.broadcast %cst_19 : f32 to vector<16x1xf32>
      %c0_20 = arith.constant 0 : index
      %c0_21 = arith.constant 0 : index
      %22 = vector.load %arg5[%c0_20, %c0_21] : memref<16x1xf32, #tpu.memory_space<vmem>>, vector<16x1xf32>
      tpu.vector_store %arg5[%c0_20, %c0_21], %21 {strides = array<i32>} : memref<16x1xf32, #tpu.memory_space<vmem>>, vector<16x1xf32>,
    } else {
    }
    %c0_6 = arith.constant 0 : index
    %c0_7 = arith.constant 0 : index
    %8 = vector.load %arg4[%c0_6, %c0_7] : memref<16x1xf32, #tpu.memory_space<vmem>>, vector<16x1xf32>
    %cst_8 = arith.constant dense<0.000000e+00> : vector<16xf32>
    %9 = vector.multi_reduction <add>, %2, %cst_8 [1] : vector<16x256xf32> to vector<16xf32>
    %10 = vector.shape_cast %9 : vector<16xf32> to vector<16x1xf32>
    %11 = arith.addf %8, %10 : vector<16x1xf32>
    %c0_9 = arith.constant 0 : index
    %c0_10 = arith.constant 0 : index
    %12 = vector.load %arg4[%c0_9, %c0_10] : memref<16x1xf32, #tpu.memory_space<vmem>>, vector<16x1xf32>
    tpu.vector_store %arg4[%c0_9, %c0_10], %11 {strides = array<i32>} : memref<16x1xf32, #tpu.memory_space<vmem>>, vector<16x1xf32>,
    %c0_11 = arith.constant 0 : index
    %c0_12 = arith.constant 0 : index
    %13 = vector.load %arg5[%c0_11, %c0_12] : memref<16x1xf32, #tpu.memory_space<vmem>>, vector<16x1xf32>
    %14 = arith.mulf %2, %2 : vector<16x256xf32>
    %cst_13 = arith.constant dense<0.000000e+00> : vector<16xf32>
    %15 = vector.multi_reduction <add>, %14, %cst_13 [1] : vector<16x256xf32> to vector<16xf32>
    %16 = vector.shape_cast %15 : vector<16xf32> to vector<16x1xf32>
    %17 = arith.addf %13, %16 : vector<16x1xf32>
    %c0_14 = arith.constant 0 : index
    %c0_15 = arith.constant 0 : index
    %18 = vector.load %arg5[%c0_14, %c0_15] : memref<16x1xf32, #tpu.memory_space<vmem>>, vector<16x1xf32>
    tpu.vector_store %arg5[%c0_14, %c0_15], %17 {strides = array<i32>} : memref<16x1xf32, #tpu.memory_space<vmem>>, vector<16x1xf32>,
    return
  }
  func.func @transform_0(%arg0: i32) -> (i32, i32) {
    %c0_i32 = arith.constant 0 : i32
    %c0_i32_0 = arith.constant 0 : i32
    %c0_i32_1 = arith.constant 0 : i32
    return %c0_i32, %c0_i32_0 : i32, i32
  }
  func.func @transform_1(%arg0: i32) -> (i32, i32) {
    %c0_i32 = arith.constant 0 : i32
    %c0_i32_0 = arith.constant 0 : i32
    return %c0_i32, %arg0 : i32, i32
  }
  func.func @transform_2(%arg0: i32) -> (i32, i32) {
    %c0_i32 = arith.constant 0 : i32
    %c0_i32_0 = arith.constant 0 : i32
    return %c0_i32, %arg0 : i32, i32
  }
  func.func @transform_3(%arg0: i32) -> (i32, i32) {
    %c0_i32 = arith.constant 0 : i32
    %c0_i32_0 = arith.constant 0 : i32
    %c0_i32_1 = arith.constant 0 : i32
    return %c0_i32, %c0_i32_0 : i32, i32
  }
  func.func @transform_4(%arg0: i32) -> (i32, i32) {
    %c0_i32 = arith.constant 0 : i32
    %c0_i32_0 = arith.constant 0 : i32
    %c0_i32_1 = arith.constant 0 : i32
    return %c0_i32, %c0_i32_0 : i32, i32
  }
}

module attributes {stable_mosaic.version = 11 : i64} {
  func.func @_conv_kernel(%arg0: i32, %arg1: memref<256x1xf32, #tpu.memory_space<vmem>>, %arg2: memref<256x1xf32, #tpu.memory_space<vmem>>, %arg3: memref<32x256xbf16, #tpu.memory_space<vmem>>, %arg4: memref<256x128xbf16, #tpu.memory_space<vmem>>, %arg5: memref<32x128xbf16, #tpu.memory_space<vmem>>, %arg6: memref<32x1xf32, #tpu.memory_space<vmem>>, %arg7: memref<32x1xf32, #tpu.memory_space<vmem>>) attributes {dimension_semantics = [#tpu.dimension_semantics<arbitrary>], iteration_bounds = array<i64: 1>, scalar_prefetch = 0 : i64, scratch_operands = 0 : i64, tpu.core_type = #tpu.core_type<tc>, window_params = [{pipeline_mode = #tpu.pipeline_mode<synchronous>, transform_indices = @transform_0, window_bounds = array<i64: 256, 1>}, {pipeline_mode = #tpu.pipeline_mode<synchronous>, transform_indices = @transform_1, window_bounds = array<i64: 256, 1>}, {pipeline_mode = #tpu.pipeline_mode<synchronous>, transform_indices = @transform_2, window_bounds = array<i64: 32, 256>}, {transform_indices = @transform_3, window_bounds = array<i64: 256, 128>}, {transform_indices = @transform_4, window_bounds = array<i64: 32, 128>}, {pipeline_mode = #tpu.pipeline_mode<synchronous>, transform_indices = @transform_5, window_bounds = array<i64: 32, 1>}, {pipeline_mode = #tpu.pipeline_mode<synchronous>, transform_indices = @transform_6, window_bounds = array<i64: 32, 1>}]} {
    %c0 = arith.constant 0 : index
    %c0_0 = arith.constant 0 : index
    %0 = vector.load %arg4[%c0, %c0_0] : memref<256x128xbf16, #tpu.memory_space<vmem>>, vector<256x128xbf16>
    %1 = arith.extf %0 : vector<256x128xbf16> to vector<256x128xf32>
    %c0_1 = arith.constant 0 : index
    %c0_2 = arith.constant 0 : index
    %2 = vector.load %arg1[%c0_1, %c0_2] : memref<256x1xf32, #tpu.memory_space<vmem>>, vector<256x1xf32>
    %3 = vector.broadcast %2 : vector<256x1xf32> to vector<256x128xf32>
    %4 = arith.mulf %1, %3 : vector<256x128xf32>
    %c0_3 = arith.constant 0 : index
    %c0_4 = arith.constant 0 : index
    %5 = vector.load %arg2[%c0_3, %c0_4] : memref<256x1xf32, #tpu.memory_space<vmem>>, vector<256x1xf32>
    %6 = vector.broadcast %5 : vector<256x1xf32> to vector<256x128xf32>
    %7 = arith.addf %4, %6 : vector<256x128xf32>
    %cst = arith.constant 0.000000e+00 : f32
    %8 = vector.broadcast %cst : f32 to vector<256x128xf32>
    %9 = arith.cmpf oge, %7, %8 : vector<256x128xf32>
    %cst_5 = arith.constant 2.000000e-01 : f32
    %10 = vector.broadcast %cst_5 : f32 to vector<256x128xf32>
    %11 = arith.mulf %10, %7 : vector<256x128xf32>
    %12 = arith.select %9, %7, %11 : vector<256x128xi1>, vector<256x128xf32>
    %13 = arith.truncf %12 : vector<256x128xf32> to vector<256x128xbf16>
    %c0_6 = arith.constant 0 : index
    %c0_7 = arith.constant 0 : index
    %14 = vector.load %arg3[%c0_6, %c0_7] : memref<32x256xbf16, #tpu.memory_space<vmem>>, vector<32x256xbf16>
    %cst_8 = arith.constant dense<0.000000e+00> : vector<32x128xf32>
    %15 = tpu.matmul %14, %13, %cst_8 {dimension_numbers = #tpu.dot_dimension_numbers<[1], [0], [0], [1], [0, 0, 1, 1], [], []>} : vector<32x256xbf16>, vector<256x128xbf16>, vector<32x128xf32> -> vector<32x128xf32>
    %16 = arith.truncf %15 : vector<32x128xf32> to vector<32x128xbf16>
    %c0_9 = arith.constant 0 : index
    %c0_10 = arith.constant 0 : index
    %17 = vector.load %arg5[%c0_9, %c0_10] : memref<32x128xbf16, #tpu.memory_space<vmem>>, vector<32x128xbf16>
    tpu.vector_store %arg5[%c0_9, %c0_10], %16 {strides = array<i32>} : memref<32x128xbf16, #tpu.memory_space<vmem>>, vector<32x128xbf16>,
    %c0_i32 = arith.constant 0 : i32
    %18 = arith.cmpi eq, %arg0, %c0_i32 : i32
    %19 = arith.extui %18 : i1 to i32
    %c0_i32_11 = arith.constant 0 : i32
    %20 = arith.cmpi ne, %19, %c0_i32_11 : i32
    scf.if %20 {
      %cst_22 = arith.constant 0.000000e+00 : f32
      %32 = vector.broadcast %cst_22 : f32 to vector<32x1xf32>
      %c0_23 = arith.constant 0 : index
      %c0_24 = arith.constant 0 : index
      %33 = vector.load %arg6[%c0_23, %c0_24] : memref<32x1xf32, #tpu.memory_space<vmem>>, vector<32x1xf32>
      tpu.vector_store %arg6[%c0_23, %c0_24], %32 {strides = array<i32>} : memref<32x1xf32, #tpu.memory_space<vmem>>, vector<32x1xf32>,
      %cst_25 = arith.constant 0.000000e+00 : f32
      %34 = vector.broadcast %cst_25 : f32 to vector<32x1xf32>
      %c0_26 = arith.constant 0 : index
      %c0_27 = arith.constant 0 : index
      %35 = vector.load %arg7[%c0_26, %c0_27] : memref<32x1xf32, #tpu.memory_space<vmem>>, vector<32x1xf32>
      tpu.vector_store %arg7[%c0_26, %c0_27], %34 {strides = array<i32>} : memref<32x1xf32, #tpu.memory_space<vmem>>, vector<32x1xf32>,
    } else {
    }
    %c0_12 = arith.constant 0 : index
    %c0_13 = arith.constant 0 : index
    %21 = vector.load %arg6[%c0_12, %c0_13] : memref<32x1xf32, #tpu.memory_space<vmem>>, vector<32x1xf32>
    %cst_14 = arith.constant dense<0.000000e+00> : vector<32xf32>
    %22 = vector.multi_reduction <add>, %15, %cst_14 [1] : vector<32x128xf32> to vector<32xf32>
    %23 = vector.shape_cast %22 : vector<32xf32> to vector<32x1xf32>
    %24 = arith.addf %21, %23 : vector<32x1xf32>
    %c0_15 = arith.constant 0 : index
    %c0_16 = arith.constant 0 : index
    %25 = vector.load %arg6[%c0_15, %c0_16] : memref<32x1xf32, #tpu.memory_space<vmem>>, vector<32x1xf32>
    tpu.vector_store %arg6[%c0_15, %c0_16], %24 {strides = array<i32>} : memref<32x1xf32, #tpu.memory_space<vmem>>, vector<32x1xf32>,
    %c0_17 = arith.constant 0 : index
    %c0_18 = arith.constant 0 : index
    %26 = vector.load %arg7[%c0_17, %c0_18] : memref<32x1xf32, #tpu.memory_space<vmem>>, vector<32x1xf32>
    %27 = arith.mulf %15, %15 : vector<32x128xf32>
    %cst_19 = arith.constant dense<0.000000e+00> : vector<32xf32>
    %28 = vector.multi_reduction <add>, %27, %cst_19 [1] : vector<32x128xf32> to vector<32xf32>
    %29 = vector.shape_cast %28 : vector<32xf32> to vector<32x1xf32>
    %30 = arith.addf %26, %29 : vector<32x1xf32>
    %c0_20 = arith.constant 0 : index
    %c0_21 = arith.constant 0 : index
    %31 = vector.load %arg7[%c0_20, %c0_21] : memref<32x1xf32, #tpu.memory_space<vmem>>, vector<32x1xf32>
    tpu.vector_store %arg7[%c0_20, %c0_21], %30 {strides = array<i32>} : memref<32x1xf32, #tpu.memory_space<vmem>>, vector<32x1xf32>,
    return
  }
  func.func @transform_0(%arg0: i32) -> (i32, i32) {
    %c0_i32 = arith.constant 0 : i32
    %c0_i32_0 = arith.constant 0 : i32
    %c0_i32_1 = arith.constant 0 : i32
    return %c0_i32, %c0_i32_0 : i32, i32
  }
  func.func @transform_1(%arg0: i32) -> (i32, i32) {
    %c0_i32 = arith.constant 0 : i32
    %c0_i32_0 = arith.constant 0 : i32
    %c0_i32_1 = arith.constant 0 : i32
    return %c0_i32, %c0_i32_0 : i32, i32
  }
  func.func @transform_2(%arg0: i32) -> (i32, i32) {
    %c0_i32 = arith.constant 0 : i32
    %c0_i32_0 = arith.constant 0 : i32
    %c0_i32_1 = arith.constant 0 : i32
    return %c0_i32, %c0_i32_0 : i32, i32
  }
  func.func @transform_3(%arg0: i32) -> (i32, i32) {
    %c0_i32 = arith.constant 0 : i32
    %c0_i32_0 = arith.constant 0 : i32
    return %c0_i32, %arg0 : i32, i32
  }
  func.func @transform_4(%arg0: i32) -> (i32, i32) {
    %c0_i32 = arith.constant 0 : i32
    %c0_i32_0 = arith.constant 0 : i32
    return %c0_i32, %arg0 : i32, i32
  }
  func.func @transform_5(%arg0: i32) -> (i32, i32) {
    %c0_i32 = arith.constant 0 : i32
    %c0_i32_0 = arith.constant 0 : i32
    %c0_i32_1 = arith.constant 0 : i32
    return %c0_i32, %c0_i32_0 : i32, i32
  }
  func.func @transform_6(%arg0: i32) -> (i32, i32) {
    %c0_i32 = arith.constant 0 : i32
    %c0_i32_0 = arith.constant 0 : i32
    %c0_i32_1 = arith.constant 0 : i32
    return %c0_i32, %c0_i32_0 : i32, i32
  }
}

module attributes {stable_mosaic.version = 11 : i64} {
  func.func @_conv_kernel(%arg0: i32, %arg1: memref<512x1xf32, #tpu.memory_space<vmem>>, %arg2: memref<512x1xf32, #tpu.memory_space<vmem>>, %arg3: memref<64x512xbf16, #tpu.memory_space<vmem>>, %arg4: memref<512x32xbf16, #tpu.memory_space<vmem>>, %arg5: memref<64x32xbf16, #tpu.memory_space<vmem>>, %arg6: memref<64x1xf32, #tpu.memory_space<vmem>>, %arg7: memref<64x1xf32, #tpu.memory_space<vmem>>) attributes {dimension_semantics = [#tpu.dimension_semantics<arbitrary>], iteration_bounds = array<i64: 1>, scalar_prefetch = 0 : i64, scratch_operands = 0 : i64, tpu.core_type = #tpu.core_type<tc>, window_params = [{pipeline_mode = #tpu.pipeline_mode<synchronous>, transform_indices = @transform_0, window_bounds = array<i64: 512, 1>}, {pipeline_mode = #tpu.pipeline_mode<synchronous>, transform_indices = @transform_1, window_bounds = array<i64: 512, 1>}, {pipeline_mode = #tpu.pipeline_mode<synchronous>, transform_indices = @transform_2, window_bounds = array<i64: 64, 512>}, {transform_indices = @transform_3, window_bounds = array<i64: 512, 32>}, {transform_indices = @transform_4, window_bounds = array<i64: 64, 32>}, {pipeline_mode = #tpu.pipeline_mode<synchronous>, transform_indices = @transform_5, window_bounds = array<i64: 64, 1>}, {pipeline_mode = #tpu.pipeline_mode<synchronous>, transform_indices = @transform_6, window_bounds = array<i64: 64, 1>}]} {
    %c0 = arith.constant 0 : index
    %c0_0 = arith.constant 0 : index
    %0 = vector.load %arg4[%c0, %c0_0] : memref<512x32xbf16, #tpu.memory_space<vmem>>, vector<512x32xbf16>
    %1 = arith.extf %0 : vector<512x32xbf16> to vector<512x32xf32>
    %c0_1 = arith.constant 0 : index
    %c0_2 = arith.constant 0 : index
    %2 = vector.load %arg1[%c0_1, %c0_2] : memref<512x1xf32, #tpu.memory_space<vmem>>, vector<512x1xf32>
    %3 = vector.broadcast %2 : vector<512x1xf32> to vector<512x32xf32>
    %4 = arith.mulf %1, %3 : vector<512x32xf32>
    %c0_3 = arith.constant 0 : index
    %c0_4 = arith.constant 0 : index
    %5 = vector.load %arg2[%c0_3, %c0_4] : memref<512x1xf32, #tpu.memory_space<vmem>>, vector<512x1xf32>
    %6 = vector.broadcast %5 : vector<512x1xf32> to vector<512x32xf32>
    %7 = arith.addf %4, %6 : vector<512x32xf32>
    %cst = arith.constant 0.000000e+00 : f32
    %8 = vector.broadcast %cst : f32 to vector<512x32xf32>
    %9 = arith.cmpf oge, %7, %8 : vector<512x32xf32>
    %cst_5 = arith.constant 2.000000e-01 : f32
    %10 = vector.broadcast %cst_5 : f32 to vector<512x32xf32>
    %11 = arith.mulf %10, %7 : vector<512x32xf32>
    %12 = arith.select %9, %7, %11 : vector<512x32xi1>, vector<512x32xf32>
    %13 = arith.truncf %12 : vector<512x32xf32> to vector<512x32xbf16>
    %c0_6 = arith.constant 0 : index
    %c0_7 = arith.constant 0 : index
    %14 = vector.load %arg3[%c0_6, %c0_7] : memref<64x512xbf16, #tpu.memory_space<vmem>>, vector<64x512xbf16>
    %cst_8 = arith.constant dense<0.000000e+00> : vector<64x32xf32>
    %15 = tpu.matmul %14, %13, %cst_8 {dimension_numbers = #tpu.dot_dimension_numbers<[1], [0], [0], [1], [0, 0, 1, 1], [], []>} : vector<64x512xbf16>, vector<512x32xbf16>, vector<64x32xf32> -> vector<64x32xf32>
    %16 = arith.truncf %15 : vector<64x32xf32> to vector<64x32xbf16>
    %c0_9 = arith.constant 0 : index
    %c0_10 = arith.constant 0 : index
    %17 = vector.load %arg5[%c0_9, %c0_10] : memref<64x32xbf16, #tpu.memory_space<vmem>>, vector<64x32xbf16>
    tpu.vector_store %arg5[%c0_9, %c0_10], %16 {strides = array<i32>} : memref<64x32xbf16, #tpu.memory_space<vmem>>, vector<64x32xbf16>,
    %c0_i32 = arith.constant 0 : i32
    %18 = arith.cmpi eq, %arg0, %c0_i32 : i32
    %19 = arith.extui %18 : i1 to i32
    %c0_i32_11 = arith.constant 0 : i32
    %20 = arith.cmpi ne, %19, %c0_i32_11 : i32
    scf.if %20 {
      %cst_22 = arith.constant 0.000000e+00 : f32
      %32 = vector.broadcast %cst_22 : f32 to vector<64x1xf32>
      %c0_23 = arith.constant 0 : index
      %c0_24 = arith.constant 0 : index
      %33 = vector.load %arg6[%c0_23, %c0_24] : memref<64x1xf32, #tpu.memory_space<vmem>>, vector<64x1xf32>
      tpu.vector_store %arg6[%c0_23, %c0_24], %32 {strides = array<i32>} : memref<64x1xf32, #tpu.memory_space<vmem>>, vector<64x1xf32>,
      %cst_25 = arith.constant 0.000000e+00 : f32
      %34 = vector.broadcast %cst_25 : f32 to vector<64x1xf32>
      %c0_26 = arith.constant 0 : index
      %c0_27 = arith.constant 0 : index
      %35 = vector.load %arg7[%c0_26, %c0_27] : memref<64x1xf32, #tpu.memory_space<vmem>>, vector<64x1xf32>
      tpu.vector_store %arg7[%c0_26, %c0_27], %34 {strides = array<i32>} : memref<64x1xf32, #tpu.memory_space<vmem>>, vector<64x1xf32>,
    } else {
    }
    %c0_12 = arith.constant 0 : index
    %c0_13 = arith.constant 0 : index
    %21 = vector.load %arg6[%c0_12, %c0_13] : memref<64x1xf32, #tpu.memory_space<vmem>>, vector<64x1xf32>
    %cst_14 = arith.constant dense<0.000000e+00> : vector<64xf32>
    %22 = vector.multi_reduction <add>, %15, %cst_14 [1] : vector<64x32xf32> to vector<64xf32>
    %23 = vector.shape_cast %22 : vector<64xf32> to vector<64x1xf32>
    %24 = arith.addf %21, %23 : vector<64x1xf32>
    %c0_15 = arith.constant 0 : index
    %c0_16 = arith.constant 0 : index
    %25 = vector.load %arg6[%c0_15, %c0_16] : memref<64x1xf32, #tpu.memory_space<vmem>>, vector<64x1xf32>
    tpu.vector_store %arg6[%c0_15, %c0_16], %24 {strides = array<i32>} : memref<64x1xf32, #tpu.memory_space<vmem>>, vector<64x1xf32>,
    %c0_17 = arith.constant 0 : index
    %c0_18 = arith.constant 0 : index
    %26 = vector.load %arg7[%c0_17, %c0_18] : memref<64x1xf32, #tpu.memory_space<vmem>>, vector<64x1xf32>
    %27 = arith.mulf %15, %15 : vector<64x32xf32>
    %cst_19 = arith.constant dense<0.000000e+00> : vector<64xf32>
    %28 = vector.multi_reduction <add>, %27, %cst_19 [1] : vector<64x32xf32> to vector<64xf32>
    %29 = vector.shape_cast %28 : vector<64xf32> to vector<64x1xf32>
    %30 = arith.addf %26, %29 : vector<64x1xf32>
    %c0_20 = arith.constant 0 : index
    %c0_21 = arith.constant 0 : index
    %31 = vector.load %arg7[%c0_20, %c0_21] : memref<64x1xf32, #tpu.memory_space<vmem>>, vector<64x1xf32>
    tpu.vector_store %arg7[%c0_20, %c0_21], %30 {strides = array<i32>} : memref<64x1xf32, #tpu.memory_space<vmem>>, vector<64x1xf32>,
    return
  }
  func.func @transform_0(%arg0: i32) -> (i32, i32) {
    %c0_i32 = arith.constant 0 : i32
    %c0_i32_0 = arith.constant 0 : i32
    %c0_i32_1 = arith.constant 0 : i32
    return %c0_i32, %c0_i32_0 : i32, i32
  }
  func.func @transform_1(%arg0: i32) -> (i32, i32) {
    %c0_i32 = arith.constant 0 : i32
    %c0_i32_0 = arith.constant 0 : i32
    %c0_i32_1 = arith.constant 0 : i32
    return %c0_i32, %c0_i32_0 : i32, i32
  }
  func.func @transform_2(%arg0: i32) -> (i32, i32) {
    %c0_i32 = arith.constant 0 : i32
    %c0_i32_0 = arith.constant 0 : i32
    %c0_i32_1 = arith.constant 0 : i32
    return %c0_i32, %c0_i32_0 : i32, i32
  }
  func.func @transform_3(%arg0: i32) -> (i32, i32) {
    %c0_i32 = arith.constant 0 : i32
    %c0_i32_0 = arith.constant 0 : i32
    return %c0_i32, %arg0 : i32, i32
  }
  func.func @transform_4(%arg0: i32) -> (i32, i32) {
    %c0_i32 = arith.constant 0 : i32
    %c0_i32_0 = arith.constant 0 : i32
    return %c0_i32, %arg0 : i32, i32
  }
  func.func @transform_5(%arg0: i32) -> (i32, i32) {
    %c0_i32 = arith.constant 0 : i32
    %c0_i32_0 = arith.constant 0 : i32
    %c0_i32_1 = arith.constant 0 : i32
    return %c0_i32, %c0_i32_0 : i32, i32
  }
  func.func @transform_6(%arg0: i32) -> (i32, i32) {
    %c0_i32 = arith.constant 0 : i32
    %c0_i32_0 = arith.constant 0 : i32
    %c0_i32_1 = arith.constant 0 : i32
    return %c0_i32, %c0_i32_0 : i32, i32
  }
}

module attributes {stable_mosaic.version = 11 : i64} {
  func.func @_conv_kernel(%arg0: i32, %arg1: memref<1024x1xf32, #tpu.memory_space<vmem>>, %arg2: memref<1024x1xf32, #tpu.memory_space<vmem>>, %arg3: memref<1x1024xbf16, #tpu.memory_space<vmem>>, %arg4: memref<1024x2xbf16, #tpu.memory_space<vmem>>, %arg5: memref<1x2xf32, #tpu.memory_space<vmem>>) attributes {dimension_semantics = [#tpu.dimension_semantics<parallel>], iteration_bounds = array<i64: 1>, scalar_prefetch = 0 : i64, scratch_operands = 0 : i64, tpu.core_type = #tpu.core_type<tc>, window_params = [{pipeline_mode = #tpu.pipeline_mode<synchronous>, transform_indices = @transform_0, window_bounds = array<i64: 1024, 1>}, {pipeline_mode = #tpu.pipeline_mode<synchronous>, transform_indices = @transform_1, window_bounds = array<i64: 1024, 1>}, {pipeline_mode = #tpu.pipeline_mode<synchronous>, transform_indices = @transform_2, window_bounds = array<i64: 1, 1024>}, {transform_indices = @transform_3, window_bounds = array<i64: 1024, 2>}, {transform_indices = @transform_4, window_bounds = array<i64: 1, 2>}]} {
    %c0 = arith.constant 0 : index
    %c0_0 = arith.constant 0 : index
    %0 = vector.load %arg4[%c0, %c0_0] : memref<1024x2xbf16, #tpu.memory_space<vmem>>, vector<1024x2xbf16>
    %1 = arith.extf %0 : vector<1024x2xbf16> to vector<1024x2xf32>
    %c0_1 = arith.constant 0 : index
    %c0_2 = arith.constant 0 : index
    %2 = vector.load %arg1[%c0_1, %c0_2] : memref<1024x1xf32, #tpu.memory_space<vmem>>, vector<1024x1xf32>
    %3 = vector.broadcast %2 : vector<1024x1xf32> to vector<1024x2xf32>
    %4 = arith.mulf %1, %3 : vector<1024x2xf32>
    %c0_3 = arith.constant 0 : index
    %c0_4 = arith.constant 0 : index
    %5 = vector.load %arg2[%c0_3, %c0_4] : memref<1024x1xf32, #tpu.memory_space<vmem>>, vector<1024x1xf32>
    %6 = vector.broadcast %5 : vector<1024x1xf32> to vector<1024x2xf32>
    %7 = arith.addf %4, %6 : vector<1024x2xf32>
    %cst = arith.constant 0.000000e+00 : f32
    %8 = vector.broadcast %cst : f32 to vector<1024x2xf32>
    %9 = arith.cmpf oge, %7, %8 : vector<1024x2xf32>
    %cst_5 = arith.constant 2.000000e-01 : f32
    %10 = vector.broadcast %cst_5 : f32 to vector<1024x2xf32>
    %11 = arith.mulf %10, %7 : vector<1024x2xf32>
    %12 = arith.select %9, %7, %11 : vector<1024x2xi1>, vector<1024x2xf32>
    %13 = arith.truncf %12 : vector<1024x2xf32> to vector<1024x2xbf16>
    %c0_6 = arith.constant 0 : index
    %c0_7 = arith.constant 0 : index
    %14 = vector.load %arg3[%c0_6, %c0_7] : memref<1x1024xbf16, #tpu.memory_space<vmem>>, vector<1x1024xbf16>
    %cst_8 = arith.constant dense<0.000000e+00> : vector<1x2xf32>
    %15 = tpu.matmul %14, %13, %cst_8 {dimension_numbers = #tpu.dot_dimension_numbers<[1], [0], [0], [1], [0, 0, 1, 1], [], []>} : vector<1x1024xbf16>, vector<1024x2xbf16>, vector<1x2xf32> -> vector<1x2xf32>
    %16 = arith.negf %15 : vector<1x2xf32>
    %17 = math.exp %16 : vector<1x2xf32>
    %cst_9 = arith.constant 1.000000e+00 : f32
    %18 = vector.broadcast %cst_9 : f32 to vector<1x2xf32>
    %19 = arith.addf %18, %17 : vector<1x2xf32>
    %20 = arith.divf %18, %19 : vector<1x2xf32>
    %c0_10 = arith.constant 0 : index
    %c0_11 = arith.constant 0 : index
    %21 = vector.load %arg5[%c0_10, %c0_11] : memref<1x2xf32, #tpu.memory_space<vmem>>, vector<1x2xf32>
    tpu.vector_store %arg5[%c0_10, %c0_11], %20 {strides = array<i32>} : memref<1x2xf32, #tpu.memory_space<vmem>>, vector<1x2xf32>,
    return
  }
  func.func @transform_0(%arg0: i32) -> (i32, i32) {
    %c0_i32 = arith.constant 0 : i32
    %c0_i32_0 = arith.constant 0 : i32
    %c0_i32_1 = arith.constant 0 : i32
    return %c0_i32, %c0_i32_0 : i32, i32
  }
  func.func @transform_1(%arg0: i32) -> (i32, i32) {
    %c0_i32 = arith.constant 0 : i32
    %c0_i32_0 = arith.constant 0 : i32
    %c0_i32_1 = arith.constant 0 : i32
    return %c0_i32, %c0_i32_0 : i32, i32
  }
  func.func @transform_2(%arg0: i32) -> (i32, i32) {
    %c0_i32 = arith.constant 0 : i32
    %c0_i32_0 = arith.constant 0 : i32
    %c0_i32_1 = arith.constant 0 : i32
    return %c0_i32, %c0_i32_0 : i32, i32
  }
  func.func @transform_3(%arg0: i32) -> (i32, i32) {
    %c0_i32 = arith.constant 0 : i32
    %c0_i32_0 = arith.constant 0 : i32
    return %c0_i32, %arg0 : i32, i32
  }
  func.func @transform_4(%arg0: i32) -> (i32, i32) {
    %c0_i32 = arith.constant 0 : i32
    %c0_i32_0 = arith.constant 0 : i32
    return %c0_i32, %arg0 : i32, i32
  }
}

</mosaic_0001>

<bundles_post_ra>
// kernel: discriminator_forward.5
= control target key start
LH: loop header
LB: loop body
LE: loop exit
PB: predicated region body
PF: predicated region fallthrough
CT: control target
= control target key end

     0   :  { %s763_s9 = smov 0   ;;  %s765_s10 = smov 0   ;;  %s910_s0 = inlined_call_operand.vmem [shape: bf16[8,48], index: 0, kind: input, shape index: {}]   ;;  %s911_s1 = inlined_call_operand.vmem [shape: bf16[48,2048], index: 1, kind: input, shape index: {}]   ;;  %s912_s2 = inlined_call_operand.vmem [shape: bf16[8,2048], index: 2, kind: output, shape index: {}]  }
   0x1   :  { %s767_s11 = smov 0  }
   0x2 LB: > { %s648_s12 = sadd.s32 4294967295, %s745_s11   ;;  %s780_s13 = sadd.s32 1, %s745_s11   ;;  %s745_s11 = sphi %s767_s11, %s915_s11   ;;  %s741_s10 = sphi %s765_s10, %s914_s10   ;;  %s737_s9 = sphi %s763_s9, %s913_s9  }
   0x3   : > { %s37_s14 = ssub.s32 %s745_s11, %s780_s13  ;;  %s40_s15 = sadd.s32 1, %s741_s10 }
   0x4   : > { %p38_p0 = scmp.eq.s32.totalorder %s37_s14, 0  ;;  %p47_p1 = scmp.ne.s32.totalorder %s741_s10, %s737_s9 }
   0x5   : > { %p48_p2 = scmp.eq.s32.totalorder %s745_s11, 0  ;;  %p651_p4 = scmp.ge.s32.totalorder %s745_s11, 2 }
   0x6   : > { %s789_s16 = scalar_select %p38_p0, %s741_s10, %s40_s15  }
   0x7   : > { %p49_p3 = por %p48_p2, %p47_p1  ;;  %102 = sbr.rel (%p651_p4) target bundleno = 31 (0x1f), region = 20 }
   0xe   : > { %105 = sbr.rel (!%p49_p3) target bundleno = 31 (0x1f), region = 24  ;;  %s107_s17 = sand.u32 (%p49_p3), 1, %s741_s10  }
   0xf   : > { %s691_s18 = sshll.u32 (%p49_p3), %s745_s11, 5  ;;  %s696_s19 = smul.u32 (%p49_p3), 192, %s107_s17 }
  0x10   : > { %s797_s22 = scalar_lea.vmem (%p49_p3), %s911_s1, %s691_s18 }
  0x11   : > { %v125_v0 = vld [vmem:[%s797_s22] sm:$0xff] (%p49_p3)  ;;  %v127_v1 = vld [vmem:[%s797_s22 + $0x8] sm:$0xff] (%p49_p3)  ;;  %v129_v2 = vld [vmem:[%s797_s22 + $0x10] sm:$0xff] (%p49_p3)  ;;  %s805_s23 = scalar_lea.vmem (%p49_p3), [#allocation2], %s696_s19 }
  0x12   : > { %v131_v3 = vld [vmem:[%s797_s22 + $0x18] sm:$0xff] (%p49_p3)  ;;  %v133_v4 = vld [vmem:[%s797_s22 + $0x40] sm:$0xff] (%p49_p3)  ;;  %v135_v5 = vld [vmem:[%s797_s22 + $0x48] sm:$0xff] (%p49_p3)  ;;  %126 = vst [vmem:[%s805_s23] sm:$0xff] (%p49_p3), %v125_v0 }
  0x13   : > { %128 = vst [vmem:[%s805_s23 + $0x8] sm:$0xff] (%p49_p3), %v127_v1  ;;  %130 = vst [vmem:[%s805_s23 + $0x10] sm:$0xff] (%p49_p3), %v129_v2  ;;  %v137_v6 = vld [vmem:[%s797_s22 + $0x50] sm:$0xff] (%p49_p3)  ;;  %v139_v7 = vld [vmem:[%s797_s22 + $0x58] sm:$0xff] (%p49_p3) }
  0x14   : > { %132 = vst [vmem:[%s805_s23 + $0x18] sm:$0xff] (%p49_p3), %v131_v3  ;;  %134 = vst [vmem:[%s805_s23 + $0x20] sm:$0xff] (%p49_p3), %v133_v4  ;;  %v141_v8 = vld [vmem:[%s797_s22 + $0x80] sm:$0xff] (%p49_p3)  ;;  %v143_v9 = vld [vmem:[%s797_s22 + $0x88] sm:$0xff] (%p49_p3) }
  0x15   : > { %136 = vst [vmem:[%s805_s23 + $0x28] sm:$0xff] %v135_v5  ;;  %138 = vst [vmem:[%s805_s23 + $0x30] sm:$0xff] %v137_v6  ;;  %v145_v10 = vld [vmem:[%s797_s22 + $0x90] sm:$0xff]  ;;  %v147_v11 = vld [vmem:[%s797_s22 + $0x98] sm:$0xff] }
  0x16   : > { %140 = vst [vmem:[%s805_s23 + $0x38] sm:$0xff] %v139_v7  ;;  %142 = vst [vmem:[%s805_s23 + $0x40] sm:$0xff] %v141_v8  ;;  %v149_v12 = vld [vmem:[%s797_s22 + $0xc0] sm:$0xff]  ;;  %v151_v13 = vld [vmem:[%s797_s22 + $0xc8] sm:$0xff] }
  0x17   : > { %144 = vst [vmem:[%s805_s23 + $0x48] sm:$0xff] %v143_v9  ;;  %146 = vst [vmem:[%s805_s23 + $0x50] sm:$0xff] %v145_v10  ;;  %v153_v14 = vld [vmem:[%s797_s22 + $0xd0] sm:$0xff]  ;;  %v155_v15 = vld [vmem:[%s797_s22 + $0xd8] sm:$0xff] }
  0x18   : > { %148 = vst [vmem:[%s805_s23 + $0x58] sm:$0xff] %v147_v11  ;;  %150 = vst [vmem:[%s805_s23 + $0x60] sm:$0xff] %v149_v12  ;;  %v157_v16 = vld [vmem:[%s797_s22 + $0x100] sm:$0xff]  ;;  %v159_v17 = vld [vmem:[%s797_s22 + $0x108] sm:$0xff] }
  0x19   : > { %152 = vst [vmem:[%s805_s23 + $0x68] sm:$0xff] %v151_v13  ;;  %154 = vst [vmem:[%s805_s23 + $0x70] sm:$0xff] %v153_v14  ;;  %v161_v18 = vld [vmem:[%s797_s22 + $0x110] sm:$0xff]  ;;  %v163_v19 = vld [vmem:[%s797_s22 + $0x118] sm:$0xff] }
  0x1a   : > { %156 = vst [vmem:[%s805_s23 + $0x78] sm:$0xff] %v155_v15  ;;  %158 = vst [vmem:[%s805_s23 + $0x80] sm:$0xff] %v157_v16  ;;  %v165_v20 = vld [vmem:[%s797_s22 + $0x140] sm:$0xff]  ;;  %v167_v21 = vld [vmem:[%s797_s22 + $0x148] sm:$0xff] }
  0x1b   : > { %160 = vst [vmem:[%s805_s23 + $0x88] sm:$0xff] %v159_v17  ;;  %162 = vst [vmem:[%s805_s23 + $0x90] sm:$0xff] %v161_v18  ;;  %v169_v22 = vld [vmem:[%s797_s22 + $0x150] sm:$0xff]  ;;  %v171_v23 = vld [vmem:[%s797_s22 + $0x158] sm:$0xff] }
  0x1c   : > { %164 = vst [vmem:[%s805_s23 + $0x98] sm:$0xff] %v163_v19  ;;  %166 = vst [vmem:[%s805_s23 + $0xa0] sm:$0xff] %v165_v20 }
  0x1d   : > { %168 = vst [vmem:[%s805_s23 + $0xa8] sm:$0xff] %v167_v21  ;;  %170 = vst [vmem:[%s805_s23 + $0xb0] sm:$0xff] %v169_v22 }
  0x1e   : > { %172 = vst [vmem:[%s805_s23 + $0xb8] sm:$0xff] %v171_v23 }
  0x1f PF: > { %p654_p5 = scmp.ge.s32.totalorder %s745_s11, 1  ;;  %p177_p6 = scmp.lt.s32.totalorder %s745_s11, 3 }
  0x21   : > { %p178_p7 = pnand %p654_p5, %p177_p6 }
  0x22   : > { %s184_s24 = sand.u32 (!%p178_p7), 1, %s737_s9   ;;  %v747_v24 = vmov (!%p178_p7), 0   ;;  %v237_v59 = vld [vmem:[%s910_s0] sm:$0xf] (!%p178_p7)  ;;  %vm358_vm0 = vcmask (!%p178_p7), 392192   ;;  %s655_s29 = sshll.u32 (!%p178_p7), %s648_s12, 3 }
  0x23   : > { %181 = sbr.rel (%p178_p7) target bundleno = 287 (0x11f), region = 47  ;;  %394 = vmatprep.mubr.bf16.mxu0 (!%p178_p7), %v747_v24  ;;  %435 = vmatprep.mubr.bf16.mxu1 (!%p178_p7), %v747_v24  ;;  %p207_p8 = scmp.lt.s32.totalorder (!%p178_p7), %s655_s29, 15 }
  0x24   : > { %s697_s25 = smul.u32 (!%p178_p7), 192, %s184_s24 }
  0x26   : > { %s854_s26 = scalar_lea.vmem (!%p178_p7), [#allocation2], %s697_s25 }
  0x27   : > { %v213_v25 = vld [vmem:[%s854_s26] sm:$0xff] (!%p178_p7)  ;;  %v214_v27 = vld [vmem:[%s854_s26 + $0x8] sm:$0xff] (!%p178_p7)  ;;  %v215_v47 = vld [vmem:[%s854_s26 + $0x10] sm:$0xff] (!%p178_p7) }
  0x28   : > { %v217_v26 = vld [vmem:[%s854_s26 + $0x20] sm:$0xff] (!%p178_p7)  ;;  %v218_v29 = vld [vmem:[%s854_s26 + $0x28] sm:$0xff] (!%p178_p7)  ;;  %v219_v48 = vld [vmem:[%s854_s26 + $0x30] sm:$0xff] (!%p178_p7) }
  0x29   : > { %v658_v28 = vcombine.high (!%p178_p7), %v213_v25, %v217_v26  ;;  %v657_v30 = vcombine.low (!%p178_p7), %v213_v25, %v217_v26  ;;  %v221_v31 = vld [vmem:[%s854_s26 + $0x40] sm:$0xff] (!%p178_p7)  ;;  %v660_v33 = vcombine.high (!%p178_p7), %v214_v27, %v218_v29  ;;  %v659_v34 = vcombine.low (!%p178_p7), %v214_v27, %v218_v29  ;;  %v222_v36 = vld [vmem:[%s854_s26 + $0x48] sm:$0xff] (!%p178_p7)  ;;  %v216_v49 = vld [vmem:[%s854_s26 + $0x18] sm:$0xff] (!%p178_p7) }
  0x2a   : > { %v225_v32 = vld [vmem:[%s854_s26 + $0x60] sm:$0xff]  ;;  %v226_v37 = vld [vmem:[%s854_s26 + $0x68] sm:$0xff]  ;;  %v220_v50 = vld [vmem:[%s854_s26 + $0x38] sm:$0xff]  ;;  %v662_v53 = vcombine.high %v215_v47, %v219_v48  ;;  %v661_v60 = vcombine.low %v215_v47, %v219_v48  ;;  %s917_s29 = smov (!%p207_p8, %s655_s29), 15 }
  0x2b   : > { %v666_v35 = vcombine.high %v221_v31, %v225_v32  ;;  %v229_v38 = vld [vmem:[%s854_s26 + $0x80] sm:$0xff]  ;;  %362 = vmatprep.subr.bf16.mxu0 %v658_v28  ;;  %v668_v39 = vcombine.high %v222_v36, %v226_v37  ;;  %v230_v41 = vld [vmem:[%s854_s26 + $0x88] sm:$0xff]  ;;  %403 = vmatprep.subr.bf16.mxu1 %v660_v33  ;;  %v665_v43 = vcombine.low %v221_v31, %v225_v32  ;;  %v223_v55 = vld [vmem:[%s854_s26 + $0x50] sm:$0xff]  ;;  %s656_s30 = sshll.u32 %s917_s29, 2 }
  0x2c   : > { %v233_v40 = vld [vmem:[%s854_s26 + $0xa0] sm:$0xff]  ;;  %v234_v42 = vld [vmem:[%s854_s26 + $0xa8] sm:$0xff]  ;;  %363 = vmatpush1.bf16.msra.mxu0 %v657_v30  ;;  %404 = vmatpush1.bf16.msra.mxu1 %v659_v34  ;;  %v667_v44 = vcombine.low %v222_v36, %v226_v37  ;;  %v664_v54 = vcombine.high %v216_v49, %v220_v50  ;;  %v227_v56 = vld [vmem:[%s854_s26 + $0x70] sm:$0xff]  ;;  %v663_v61 = vcombine.low %v216_v49, %v220_v50  ;;  %s894_s5 = scalar_lea.vmem %s912_s2, %s656_s30 }
  0x2d   : > { %364 = vmatprep.subr.bf16.mxu0 %v666_v35  ;;  %v674_v45 = vcombine.high %v229_v38, %v233_v40  ;;  %405 = vmatprep.subr.bf16.mxu1 %v668_v39  ;;  %v676_v46 = vcombine.high %v230_v41, %v234_v42  ;;  %v673_v51 = vcombine.low %v229_v38, %v233_v40  ;;  %v224_v57 = vld [vmem:[%s854_s26 + $0x58] sm:$0xff]  ;;  %v231_v0 = vld [vmem:[%s854_s26 + $0x90] sm:$0xff] }
  0x2e   : > { %v675_v52 = vcombine.low %v230_v41, %v234_v42  ;;  %v228_v58 = vld [vmem:[%s854_s26 + $0x78] sm:$0xff]  ;;  %v670_v62 = vcombine.high %v223_v55, %v227_v56  ;;  %v235_v1 = vld [vmem:[%s854_s26 + $0xb0] sm:$0xff]  ;;  %v669_v4 = vcombine.low %v223_v55, %v227_v56 }
  0x2f   : > { %v672_v63 = vcombine.high %v224_v57, %v228_v58  ;;  %v232_v2 = vld [vmem:[%s854_s26 + $0x98] sm:$0xff]  ;;  %v671_v5 = vcombine.low %v224_v57, %v228_v58  ;;  %v678_v6 = vcombine.high %v231_v0, %v235_v1  ;;  %v677_v8 = vcombine.low %v231_v0, %v235_v1 }
  0x30   : > { %365 = vmatpush1.bf16.msra.mxu0 %v665_v43  ;;  %406 = vmatpush1.bf16.msra.mxu1 %v667_v44  ;;  %v236_v3 = vld [vmem:[%s854_s26 + $0xb8] sm:$0xff] }
  0x31   : > { %366 = vmatprep.subr.bf16.mxu0 %v674_v45  ;;  %407 = vmatprep.subr.bf16.mxu1 %v676_v46  ;;  %v680_v7 = vcombine.high %v232_v2, %v236_v3  ;;  %v679_v9 = vcombine.low %v232_v2, %v236_v3 }
  0x34   : > { %367 = vmatpush1.bf16.msra.mxu0 %v673_v51  ;;  %408 = vmatpush1.bf16.msra.mxu1 %v675_v52 }
  0x35   : > { %444 = vmatprep.subr.bf16.mxu0 %v662_v53  ;;  %485 = vmatprep.subr.bf16.mxu1 %v664_v54 }
  0x37   : > { %681 = vmatmul.mubr.msk.bf16.vlgmr.msra.gmra.mrb[0].mxu0 %vm358_vm0, %v237_v59  ;;  %682 = vmatmul.mubr.msk.bf16.vlgmr.msra.gmra.mrb[0].mxu1 %vm358_vm0, %v237_v59 }
  0x38   : > { %445 = vmatpush1.bf16.msra.mxu0 %v661_v60  ;;  %486 = vmatpush1.bf16.msra.mxu1 %v663_v61 }
  0x39   : > { %446 = vmatprep.subr.bf16.mxu0 %v670_v62  ;;  %487 = vmatprep.subr.bf16.mxu1 %v672_v63 }
  0x3a   : > { %476 = vmatprep.mubr.bf16.mxu0 %v747_v24  ;;  %517 = vmatprep.mubr.bf16.mxu1 %v747_v24 }
  0x3c   : > { %447 = vmatpush1.bf16.msra.mxu0 %v669_v4  ;;  %488 = vmatpush1.bf16.msra.mxu1 %v671_v5 }
  0x3d   : > { %448 = vmatprep.subr.bf16.mxu0 %v678_v6  ;;  %489 = vmatprep.subr.bf16.mxu1 %v680_v7 }
  0x40   : > { %449 = vmatpush1.bf16.msra.mxu0 %v677_v8  ;;  %490 = vmatpush1.bf16.msra.mxu1 %v679_v9 }
  0x43   : > { %683 = vmatmul.mubr.msk.bf16.vlgmr.msra.gmra.mrb[4].mxu0 %vm358_vm0, %v237_v59  ;;  %684 = vmatmul.mubr.msk.bf16.vlgmr.msra.gmra.mrb[4].mxu1 %vm358_vm0, %v237_v59 }
 0x10a   : > { %v396_v10 = vpop.f32.mrb[0].mxu0  ;;  %v437_v12 = vpop.f32.mrb[0].mxu1 }
 0x10b   : > { %vm526_vm1 = vcmp.ge.f32.partialorder %v396_v10, 0.0  ;;  %v534_v11 = vmul.f32 0.2, %v396_v10  ;;  %v398_v13 = vpop.f32.mrb[1].mxu0  ;;  %vm528_vm2 = vcmp.ge.f32.partialorder %v437_v12, 0.0  ;;  %v439_v17 = vpop.f32.mrb[1].mxu1 }
 0x10c   : > { %v536_v14 = vmul.f32 0.2, %v437_v12  ;;  %vm527_vm3 = vcmp.ge.f32.partialorder %v398_v13, 0.0  ;;  %v535_v15 = vmul.f32 0.2, %v398_v13  ;;  %v400_v18 = vpop.f32.mrb[2].mxu0 }
 0x10d   : > { %v542_v16 = vsel %vm526_vm1, %v396_v10, %v534_v11  ;;  %vm529_vm4 = vcmp.ge.f32.partialorder %v439_v17, 0.0  ;;  %v537_v21 = vmul.f32 0.2, %v439_v17  ;;  %v441_v22 = vpop.f32.mrb[2].mxu1  ;;  %v401_v23 = vpop.f32.mrb[3].mxu0 }
 0x10e   : > { %v544_v19 = vsel %vm528_vm2, %v437_v12, %v536_v14  ;;  %v543_v20 = vsel %vm527_vm3, %v398_v13, %v535_v15  ;;  %v442_v25 = vpop.f32.mrb[3].mxu1 }
 0x10f   : > { %v692_v24 = vpack.c.bf16 %v543_v20, %v542_v16  ;;  %v545_v26 = vsel %vm529_vm4, %v439_v17, %v537_v21 }
 0x110   : > { %v693_v27 = vpack.c.bf16 %v545_v26, %v544_v19 }
 0x111   : > { %582 = vst [vmem:[%s894_s5] sm:$0xff] %v692_v24 }
 0x112   : > { %583 = vst [vmem:[%s894_s5 + $0x8] sm:$0xff] %v693_v27 }
 0x116   : > { %v478_v28 = vpop.f32.mrb[4].mxu0  ;;  %v519_v30 = vpop.f32.mrb[4].mxu1 }
 0x117   : > { %vm530_vm5 = vcmp.ge.f32.partialorder %v478_v28, 0.0  ;;  %v538_v29 = vmul.f32 0.2, %v478_v28  ;;  %v480_v31 = vpop.f32.mrb[5].mxu0  ;;  %vm532_vm6 = vcmp.ge.f32.partialorder %v519_v30, 0.0  ;;  %v521_v35 = vpop.f32.mrb[5].mxu1 }
 0x118   : > { %v540_v32 = vmul.f32 0.2, %v519_v30  ;;  %vm531_vm7 = vcmp.ge.f32.partialorder %v480_v31, 0.0  ;;  %v539_v33 = vmul.f32 0.2, %v480_v31  ;;  %v482_v36 = vpop.f32.mrb[6].mxu0 }
 0x119   : > { %v546_v34 = vsel %vm530_vm5, %v478_v28, %v538_v29  ;;  %vm533_vm8 = vcmp.ge.f32.partialorder %v521_v35, 0.0  ;;  %v541_v39 = vmul.f32 0.2, %v521_v35  ;;  %v523_v40 = vpop.f32.mrb[6].mxu1  ;;  %v483_v41 = vpop.f32.mrb[7].mxu0 }
 0x11a   : > { %v548_v37 = vsel %vm532_vm6, %v519_v30, %v540_v32  ;;  %v547_v38 = vsel %vm531_vm7, %v480_v31, %v539_v33  ;;  %v524_v43 = vpop.f32.mrb[7].mxu1 }
 0x11b   : > { %v694_v42 = vpack.c.bf16 %v547_v38, %v546_v34  ;;  %v549_v44 = vsel %vm533_vm8, %v521_v35, %v541_v39 }
 0x11c   : > { %v695_v45 = vpack.c.bf16 %v549_v44, %v548_v37 }
 0x11d   : > { %584 = vst [vmem:[%s894_s5 + $0x10] sm:$0xff] %v694_v42 }
 0x11e   : > { %585 = vst [vmem:[%s894_s5 + $0x18] sm:$0xff] %v695_v45 }
 0x11f PF: > { %p9_p9 = scmp.ge.s32.totalorder %s780_s13, 4   ;;  %s913_s9 = smov %s741_s10 }
 0x120   : > { %s914_s10 = smov %s789_s16  ;;  %s915_s11 = smov %s780_s13 }
 0x121   :  { %11 = sbr.rel (!%p9_p9) target bundleno = 2 (0x2), region = 86 }

// kernel: discriminator_forward.6
= control target key start
LH: loop header
LB: loop body
LE: loop exit
PB: predicated region body
PF: predicated region fallthrough
CT: control target
= control target key end

     0   :  { %s739_s15 = smov 0   ;;  %s741_s16 = smov 0   ;;  %s867_s0 = inlined_call_operand.vmem [shape: bf16[16,128], index: 0, kind: input, shape index: {}]   ;;  %s868_s1 = inlined_call_operand.vmem [shape: bf16[128,512], index: 1, kind: input, shape index: {}]   ;;  %s869_s2 = inlined_call_operand.vmem [shape: bf16[16,512], index: 2, kind: output, shape index: {0}]   ;;  %s870_s3 = inlined_call_operand.vmem [shape: f32[16,1], index: 3, kind: output, shape index: {1}]   ;;  %s871_s4 = inlined_call_operand.vmem [shape: f32[16,1], index: 4, kind: output, shape index: {2}]  }
   0x1   :  { %s743_s17 = smov 0  }
   0x2 LB: > { %s755_s18 = sadd.s32 4294967295, %s710_s17   ;;  %s758_s19 = sadd.s32 1, %s710_s17   ;;  %s710_s17 = sphi %s743_s17, %s875_s17   ;;  %s706_s16 = sphi %s741_s16, %s874_s16   ;;  %s702_s15 = sphi %s739_s15, %s873_s15  }
   0x3   : > { %s40_s20 = ssub.s32 %s710_s17, %s758_s19  ;;  %s43_s21 = sadd.s32 1, %s706_s16 }
   0x4   : > { %p41_p0 = scmp.eq.s32.totalorder %s40_s20, 0  ;;  %p50_p1 = scmp.ne.s32.totalorder %s706_s16, %s702_s15 }
   0x5   : > { %p51_p2 = scmp.eq.s32.totalorder %s710_s17, 0  ;;  %p80_p3 = scmp.eq.s32.totalorder %s755_s18, 1 }
   0x6   : > { %s768_s22 = scalar_select %p41_p0, %s706_s16, %s43_s21  }
   0x7   : > { %p52_p4 = por %p51_p2, %p50_p1  ;;  %p770_p5 = por %p80_p3, %p50_p1 }
   0x8   : > { %p601_p6 = scmp.ge.s32.totalorder %s710_s17, 2 }
   0xa   : > { %147 = sbr.rel (%p601_p6) target bundleno = 29 (0x1d), region = 20 }
  0x11   : > { %150 = sbr.rel (!%p52_p4) target bundleno = 29 (0x1d), region = 24  ;;  %s152_s24 = sand.u32 (%p52_p4), 1, %s706_s16  }
  0x12   : > { %s633_s25 = sshll.u32 (%p52_p4), %s710_s17, 3  ;;  %s602_s26 = sshll.u32 (%p52_p4), %s152_s24, 7 }
  0x13   : > { %s780_s29 = scalar_lea.vmem (%p52_p4), %s868_s1, %s633_s25  ;;  %s154_s30 = scalar_lea.vmem (%p52_p4), [#allocation2], %s602_s26 }
  0x14   : > { %v215_v0 = vld [vmem:[%s780_s29] sm:$0xff] (%p52_p4)  ;;  %v217_v1 = vld [vmem:[%s780_s29 + $0x10] sm:$0xff] (%p52_p4) }
  0x15   : > { %v219_v2 = vld [vmem:[%s780_s29 + $0x20] sm:$0xff] (%p52_p4)  ;;  %216 = vst [vmem:[%s154_s30] sm:$0xff] (%p52_p4), %v215_v0  ;;  %218 = vst [vmem:[%s154_s30 + $0x8] sm:$0xff] (%p52_p4), %v217_v1  ;;  %v221_v3 = vld [vmem:[%s780_s29 + $0x30] sm:$0xff] (%p52_p4) }
  0x16   : > { %220 = vst [vmem:[%s154_s30 + $0x10] sm:$0xff] (%p52_p4), %v219_v2  ;;  %v223_v4 = vld [vmem:[%s780_s29 + $0x40] sm:$0xff] (%p52_p4)  ;;  %v225_v5 = vld [vmem:[%s780_s29 + $0x50] sm:$0xff] (%p52_p4)  ;;  %222 = vst [vmem:[%s154_s30 + $0x18] sm:$0xff] (%p52_p4), %v221_v3 }
  0x17   : > { %224 = vst [vmem:[%s154_s30 + $0x20] sm:$0xff] (%p52_p4), %v223_v4  ;;  %226 = vst [vmem:[%s154_s30 + $0x28] sm:$0xff] (%p52_p4), %v225_v5  ;;  %v227_v6 = vld [vmem:[%s780_s29 + $0x60] sm:$0xff] (%p52_p4)  ;;  %v229_v7 = vld [vmem:[%s780_s29 + $0x70] sm:$0xff] (%p52_p4) }
  0x18   : > { %v231_v8 = vld [vmem:[%s780_s29 + $0x80] sm:$0xff]  ;;  %228 = vst [vmem:[%s154_s30 + $0x30] sm:$0xff] %v227_v6  ;;  %230 = vst [vmem:[%s154_s30 + $0x38] sm:$0xff] %v229_v7  ;;  %v233_v9 = vld [vmem:[%s780_s29 + $0x90] sm:$0xff] }
  0x19   : > { %232 = vst [vmem:[%s154_s30 + $0x40] sm:$0xff] %v231_v8  ;;  %v235_v10 = vld [vmem:[%s780_s29 + $0xa0] sm:$0xff]  ;;  %v237_v11 = vld [vmem:[%s780_s29 + $0xb0] sm:$0xff]  ;;  %234 = vst [vmem:[%s154_s30 + $0x48] sm:$0xff] %v233_v9 }
  0x1a   : > { %236 = vst [vmem:[%s154_s30 + $0x50] sm:$0xff] %v235_v10  ;;  %238 = vst [vmem:[%s154_s30 + $0x58] sm:$0xff] %v237_v11  ;;  %v239_v12 = vld [vmem:[%s780_s29 + $0xc0] sm:$0xff]  ;;  %v241_v13 = vld [vmem:[%s780_s29 + $0xd0] sm:$0xff] }
  0x1b   : > { %v243_v14 = vld [vmem:[%s780_s29 + $0xe0] sm:$0xff]  ;;  %240 = vst [vmem:[%s154_s30 + $0x60] sm:$0xff] %v239_v12  ;;  %242 = vst [vmem:[%s154_s30 + $0x68] sm:$0xff] %v241_v13  ;;  %v245_v15 = vld [vmem:[%s780_s29 + $0xf0] sm:$0xff] }
  0x1c   : > { %244 = vst [vmem:[%s154_s30 + $0x70] sm:$0xff] %v243_v14  ;;  %246 = vst [vmem:[%s154_s30 + $0x78] sm:$0xff] %v245_v15 }
  0x1d PF: > { %p605_p7 = scmp.ge.s32.totalorder %s710_s17, 1  ;;  %p251_p8 = scmp.lt.s32.totalorder %s710_s17, 3 }
  0x1f   : > { %p252_p9 = pnand %p605_p7, %p251_p8 }
  0x20   : > { %s258_s5 = sand.u32 (!%p252_p9), 1, %s702_s15   ;;  %v712_v16 = vmov (!%p252_p9), 0   ;;  %v687_v33 = vld [vmem:[%s867_s0] sm:$0xff] (!%p252_p9)   ;;  %p627_p10 = scmp.ne.s32.totalorder (!%p252_p9), %s755_s18, 0 }
  0x21   : > { %255 = sbr.rel (%p252_p9) target bundleno = 439 (0x1b7), region = 62  ;;  %s606_s6 = sshll.u32 (!%p252_p9), %s258_s5, 7  ;;  %421 = vmatprep.mubr.bf16.mxu0 (!%p252_p9), %v712_v16 }
  0x22   : > { %s260_s7 = scalar_lea.vmem (!%p252_p9), [#allocation2], %s606_s6  ;;  %s607_s10 = sshll.u32 (!%p252_p9), %s258_s5, 4 }
  0x23   : > { %v663_v17 = vld [vmem:[%s260_s7 + $0x4] ss:$8 sps:$4 sm:$0xff] (!%p252_p9)   ;;  %v665_v18 = vld [vmem:[%s260_s7] ss:$8 sps:$4 sm:$0xff] (!%p252_p9)   ;;  %v666_v19 = vld [vmem:[%s260_s7 + $0x14] ss:$8 sps:$4 sm:$0xff] (!%p252_p9)  }
  0x24   : > { %389 = vmatprep.subr.bf16.mxu0 (!%p252_p9), %v663_v17  ;;  %v668_v20 = vld [vmem:[%s260_s7 + $0x10] ss:$8 sps:$4 sm:$0xff] (!%p252_p9)   ;;  %v669_v21 = vld [vmem:[%s260_s7 + $0x24] ss:$8 sps:$4 sm:$0xff] (!%p252_p9)   ;;  %v671_v22 = vld [vmem:[%s260_s7 + $0x20] ss:$8 sps:$4 sm:$0xff] (!%p252_p9)  }
  0x25   : > { %390 = vmatpush1.bf16.msra.mxu0 (!%p252_p9), %v665_v18  ;;  %v672_v23 = vld [vmem:[%s260_s7 + $0x34] ss:$8 sps:$4 sm:$0xff] (!%p252_p9)   ;;  %v674_v24 = vld [vmem:[%s260_s7 + $0x30] ss:$8 sps:$4 sm:$0xff] (!%p252_p9)   ;;  %v675_v25 = vld [vmem:[%s260_s7 + $0x44] ss:$8 sps:$4 sm:$0xff] (!%p252_p9)  }
  0x26   : > { %391 = vmatprep.subr.bf16.mxu0 (!%p252_p9), %v666_v19  ;;  %v677_v26 = vld [vmem:[%s260_s7 + $0x40] ss:$8 sps:$4 sm:$0xff] (!%p252_p9)   ;;  %v678_v27 = vld [vmem:[%s260_s7 + $0x54] ss:$8 sps:$4 sm:$0xff] (!%p252_p9)   ;;  %v680_v28 = vld [vmem:[%s260_s7 + $0x50] ss:$8 sps:$4 sm:$0xff] (!%p252_p9)  }
  0x27   : > { %v681_v29 = vld [vmem:[%s260_s7 + $0x64] ss:$8 sps:$4 sm:$0xff] (!%p252_p9)   ;;  %v683_v30 = vld [vmem:[%s260_s7 + $0x60] ss:$8 sps:$4 sm:$0xff] (!%p252_p9)   ;;  %v684_v31 = vld [vmem:[%s260_s7 + $0x74] ss:$8 sps:$4 sm:$0xff] (!%p252_p9)  }
  0x28   : > { %v686_v32 = vld [vmem:[%s260_s7 + $0x70] ss:$8 sps:$4 sm:$0xff]   ;;  %s808_s11 = scalar_lea.vmem [#allocation3], %s607_s10  ;;  %vm450_vm0 = vcmask (!%p627_p10), 7168   ;;  %v713_v40 = vmov (!%p627_p10), 0.0  }
  0x29   : > { %392 = vmatpush1.bf16.msra.mxu0 %v668_v20  ;;  %451 = vst.msk [vmem:[%s870_s3] sm:$0xff] (!%p627_p10), %vm450_vm0, %v713_v40  ;;  %452 = vst.msk [vmem:[%s870_s3 + $0x8] sm:$0xff] (!%p627_p10), %vm450_vm0, %v713_v40 }
  0x2a   : > { %393 = vmatprep.subr.bf16.mxu0 %v669_v21  ;;  %453 = vst.msk [vmem:[%s871_s4] sm:$0xff] (!%p627_p10), %vm450_vm0, %v713_v40  ;;  %454 = vst.msk [vmem:[%s871_s4 + $0x8] sm:$0xff] (!%p627_p10), %vm450_vm0, %v713_v40 }
  0x2d   : > { %394 = vmatpush1.bf16.msra.mxu0 %v671_v22 }
  0x2e   : > { %395 = vmatprep.subr.bf16.mxu0 %v672_v23 }
  0x31   : > { %396 = vmatpush1.bf16.msra.mxu0 %v674_v24 }
  0x32   : > { %397 = vmatprep.subr.bf16.mxu0 %v675_v25 }
  0x35   : > { %398 = vmatpush1.bf16.msra.mxu0 %v677_v26 }
  0x36   : > { %399 = vmatprep.subr.bf16.mxu0 %v678_v27 }
  0x39   : > { %400 = vmatpush1.bf16.msra.mxu0 %v680_v28 }
  0x3a   : > { %401 = vmatprep.subr.bf16.mxu0 %v681_v29 }
  0x3d   : > { %402 = vmatpush1.bf16.msra.mxu0 %v683_v30 }
  0x3e   : > { %403 = vmatprep.subr.bf16.mxu0 %v684_v31 }
  0x41   : > { %404 = vmatpush1.bf16.msra.mxu0 %v686_v32 }
  0x44   : > { %422 = vmatmul.mubr.bf16.vlgmr.msra.gmra.mrb[0].mxu0 %v687_v33 }
 0x117   : > { %v423_v34 = vpop.f32.mrb[0].mxu0  ;;  %449 = sbr.rel (%p627_p10) target bundleno = 286 (0x11e), region = 70 }
 0x118   : > { %v425_v35 = vpop.f32.mrb[1].mxu0 }
 0x119   : > { %v634_v36 = vpack.c.bf16 %v425_v35, %v423_v34  ;;  %v427_v37 = vpop.f32.mrb[2].mxu0 }
 0x11a   : > { %v429_v38 = vpop.f32.mrb[3].mxu0 }
 0x11b   : > { %444 = vst [vmem:[%s808_s11] sm:$0xff] %v634_v36  ;;  %v635_v39 = vpack.c.bf16 %v429_v38, %v427_v37 }
 0x11d   : > { %445 = vst [vmem:[%s808_s11 + $0x8] sm:$0xff] %v635_v39 }
 0x11e PF: > { %v470_v41 = vmul.f32 %v423_v34, %v423_v34  ;;  %v471_v42 = vmul.f32 %v425_v35, %v425_v35  ;;  %v457_v43 = vadd.f32 %v425_v35, %v423_v34  ;;  %v472_v44 = vmul.f32 %v427_v37, %v427_v37  ;;  %v455_v49 = vld [vmem:[%s870_s3] sm:$0xff]  ;;  %v456_v54 = vld [vmem:[%s870_s3 + $0x8] sm:$0xff]  ;;  %s636_s17 = sshll.u32 (%p770_p5), %s755_s18, 3 }
 0x11f   : > { %v473_v45 = vmul.f32 %v429_v38, %v429_v38  ;;  %v460_v47 = vadd.f32 %v429_v38, %v427_v37  ;;  %vm465_vm1 = vcmask 7168   ;;  %v468_v50 = vld [vmem:[%s871_s4] sm:$0xff]  ;;  %v469_v56 = vld [vmem:[%s871_s4 + $0x8] sm:$0xff]  ;;  %s493_s24 = scalar_lea.vmem (%p770_p5), %s869_s2, %s636_s17 }
 0x120   : > { %v474_v46 = vadd.f32 %v471_v42, %v470_v41  ;;  %458 = vadd.xlane.f32.xlu0 %v457_v43 }
 0x121   : > { %v477_v48 = vadd.f32 %v473_v45, %v472_v44 }
 0x122   : > { %475 = vadd.xlane.f32.xlu1 %v474_v46  ;;  %v523_v61 = vld [vmem:[%s808_s11] sm:$0xff] (%p770_p5) }
 0x123   : > { %524 = vst [vmem:[%s493_s24] sm:$0xff] (%p770_p5), %v523_v61 }
 0x124   : > { %461 = vadd.xlane.f32.xlu0 %v460_v47  ;;  %v525_v62 = vld [vmem:[%s808_s11 + $0x8] sm:$0xff] (%p770_p5) }
 0x125   : > { %526 = vst [vmem:[%s493_s24 + $0x10] sm:$0xff] (%p770_p5), %v525_v62 }
 0x126   : > { %478 = vadd.xlane.f32.xlu1 %v477_v48 }
 0x1ad   : > { %v459_v51 = vpop.xlane.xlu0 %458 }
 0x1ae   : > { %v463_v52 = vadd.f32 %v459_v51, %v455_v49 }
 0x1af   : > { %v476_v53 = vpop.xlane.xlu1 %475 }
 0x1b0   : > { %v480_v55 = vadd.f32 %v476_v53, %v468_v50  ;;  %466 = vst.msk [vmem:[%s870_s3] sm:$0xff] %vm465_vm1, %v463_v52  ;;  %490 = sbr.rel (!%p770_p5) target bundleno = 439 (0x1b7), region = 74 }
 0x1b1   : > { %v462_v57 = vpop.xlane.xlu0 %461 }
 0x1b2   : > { %482 = vst.msk [vmem:[%s871_s4] sm:$0xff] %vm465_vm1, %v480_v55  ;;  %v464_v58 = vadd.f32 %v462_v57, %v456_v54 }
 0x1b3   : > { %v479_v59 = vpop.xlane.xlu1 %478 }
 0x1b4   : > { %v481_v60 = vadd.f32 %v479_v59, %v469_v56  ;;  %467 = vst.msk [vmem:[%s870_s3 + $0x8] sm:$0xff] %vm465_vm1, %v464_v58 }
 0x1b6   : > { %483 = vst.msk [vmem:[%s871_s4 + $0x8] sm:$0xff] %vm465_vm1, %v481_v60 }
 0x1b7 PF: > { %p12_p11 = scmp.ge.s32.totalorder %s758_s19, 4   ;;  %s873_s15 = smov %s706_s16 }
 0x1b8   : > { %s874_s16 = smov %s768_s22  ;;  %s875_s17 = smov %s758_s19 }
 0x1b9   :  { %14 = sbr.rel (!%p12_p11) target bundleno = 2 (0x2), region = 159 }

// kernel: tile.33
= control target key start
LH: loop header
LB: loop body
LE: loop exit
PB: predicated region body
PF: predicated region fallthrough
CT: control target
= control target key end

     0   :  { %s28_s0 = inlined_call_operand.vmem [shape: f32[16], index: 0, kind: input, shape index: {}]   ;;  %s29_s1 = inlined_call_operand.vmem [shape: f32[16,16], index: 1, kind: output, shape index: {}]  }
   0x1   :  { %v4_v0 = vld [vmem:[%s28_s0] ss:$0 sm:$0xff] }
   0x2   :  { %5 = vst [vmem:[%s29_s1] sm:$0xff] %v4_v0  ;;  %8 = vst [vmem:[%s29_s1 + $0x8] sm:$0xff] %v4_v0 }

// kernel: tile.0
= control target key start
LH: loop header
LB: loop body
LE: loop exit
PB: predicated region body
PF: predicated region fallthrough
CT: control target
= control target key end

     0   :  { %vm3_vm0 = vcmask 7168   ;;  %s550_s10 = smov 127   ;;  %s551_s27 = smov 125   ;;  %s1092_s0 = inlined_call_operand.vmem [shape: f32[16,16], index: 0, kind: input, shape index: {}]   ;;  %s1093_s1 = inlined_call_operand.vmem [shape: f32[256,1], index: 1, kind: output, shape index: {}]  }
   0x1   :  { %v44_v0 = vld [vmem:[%s1092_s0] sm:$0xff]   ;;  %v412_v1 = vld [vmem:[%s1092_s0 + $0x8] sm:$0xff]   ;;  %s549_s0 = smov 126   ;;  %s552_s28 = smov 124  }
   0x2   :  { %45 = vrot.lane.b32.xlu1 %v44_v0, %s549_s0  ;;  %20 = vrot.lane.b32.xlu0 %v44_v0, %s550_s10  ;;  %4 = vst.msk [vmem:[%s1093_s1] ss:$16 sm:$0x3] %vm3_vm0, %v44_v0   ;;  %5 = vst.msk [vmem:[%s1093_s1] ss:$16 sm:$0xc] %vm3_vm0, %v44_v0  }
   0x3   :  { %6 = vst.msk [vmem:[%s1093_s1] ss:$16 sm:$0x30] %vm3_vm0, %v44_v0   ;;  %7 = vst.msk [vmem:[%s1093_s1] ss:$16 sm:$0xc0] %vm3_vm0, %v44_v0  }
   0x4   :  { %395 = vst.msk [vmem:[%s1093_s1 + $0x80] ss:$16 sm:$0x3] %vm3_vm0, %v412_v1   ;;  %396 = vst.msk [vmem:[%s1093_s1 + $0x80] ss:$16 sm:$0xc] %vm3_vm0, %v412_v1  }
   0x5   :  { %397 = vst.msk [vmem:[%s1093_s1 + $0x80] ss:$16 sm:$0x30] %vm3_vm0, %v412_v1   ;;  %398 = vst.msk [vmem:[%s1093_s1 + $0x80] ss:$16 sm:$0xc0] %vm3_vm0, %v412_v1  }
   0x6   :  { %58 = vrot.lane.b32.xlu1 %v412_v1, %s549_s0  ;;  %33 = vrot.lane.b32.xlu0 %v412_v1, %s550_s10  ;;  %s553_s29 = smov 123   ;;  %s554_s30 = smov 122  }
   0x7   :  { %s555_s2 = smov 121   ;;  %s556_s3 = smov 120  }
   0x8   :  { %s557_s4 = smov 119   ;;  %s558_s5 = smov 118  }
   0x9   :  { %s559_s6 = smov 117   ;;  %s560_s7 = smov 116  }
   0xa   :  { %83 = vrot.lane.b32.xlu1 %v412_v1, %s551_s27  ;;  %70 = vrot.lane.b32.xlu0 %v44_v0, %s551_s27  ;;  %s561_s8 = smov 115   ;;  %s562_s9 = smov 114  }
   0xb   :  { %s563_s0 = smov 113  }
   0xe   :  { %108 = vrot.lane.b32.xlu1 %v412_v1, %s552_s28  ;;  %95 = vrot.lane.b32.xlu0 %v44_v0, %s552_s28 }
  0x12   :  { %133 = vrot.lane.b32.xlu1 %v412_v1, %s553_s29  ;;  %120 = vrot.lane.b32.xlu0 %v44_v0, %s553_s29 }
  0x16   :  { %158 = vrot.lane.b32.xlu1 %v412_v1, %s554_s30  ;;  %145 = vrot.lane.b32.xlu0 %v44_v0, %s554_s30 }
  0x1a   :  { %183 = vrot.lane.b32.xlu1 %v412_v1, %s555_s2  ;;  %170 = vrot.lane.b32.xlu0 %v44_v0, %s555_s2 }
  0x1e   :  { %208 = vrot.lane.b32.xlu1 %v412_v1, %s556_s3  ;;  %195 = vrot.lane.b32.xlu0 %v44_v0, %s556_s3 }
  0x22   :  { %233 = vrot.lane.b32.xlu1 %v412_v1, %s557_s4  ;;  %220 = vrot.lane.b32.xlu0 %v44_v0, %s557_s4 }
  0x26   :  { %258 = vrot.lane.b32.xlu1 %v412_v1, %s558_s5  ;;  %245 = vrot.lane.b32.xlu0 %v44_v0, %s558_s5 }
  0x2a   :  { %283 = vrot.lane.b32.xlu1 %v412_v1, %s559_s6  ;;  %270 = vrot.lane.b32.xlu0 %v44_v0, %s559_s6 }
  0x2e   :  { %308 = vrot.lane.b32.xlu1 %v412_v1, %s560_s7  ;;  %295 = vrot.lane.b32.xlu0 %v44_v0, %s560_s7 }
  0x32   :  { %333 = vrot.lane.b32.xlu1 %v412_v1, %s561_s8  ;;  %320 = vrot.lane.b32.xlu0 %v44_v0, %s561_s8 }
  0x36   :  { %358 = vrot.lane.b32.xlu1 %v412_v1, %s562_s9  ;;  %345 = vrot.lane.b32.xlu0 %v44_v0, %s562_s9 }
  0x3a   :  { %383 = vrot.lane.b32.xlu1 %v412_v1, %s563_s0  ;;  %370 = vrot.lane.b32.xlu0 %v44_v0, %s563_s0 }
  0x74   :  { %v46_v2 = vpop.permute.xlu1 %45   ;;  %v21_v3 = vpop.permute.xlu0 %20  }
  0x75   :  { %408 = vst.msk [vmem:[%s1093_s1 + $0x2] ss:$16 sm:$0x3] %vm3_vm0, %v46_v2   ;;  %409 = vst.msk [vmem:[%s1093_s1 + $0x2] ss:$16 sm:$0xc] %vm3_vm0, %v46_v2  }
  0x76   :  { %410 = vst.msk [vmem:[%s1093_s1 + $0x2] ss:$16 sm:$0x30] %vm3_vm0, %v46_v2   ;;  %411 = vst.msk [vmem:[%s1093_s1 + $0x2] ss:$16 sm:$0xc0] %vm3_vm0, %v46_v2  }
  0x77   :  { %399 = vst.msk [vmem:[%s1093_s1 + $0x1] ss:$16 sm:$0x3] %vm3_vm0, %v21_v3   ;;  %400 = vst.msk [vmem:[%s1093_s1 + $0x1] ss:$16 sm:$0xc] %vm3_vm0, %v21_v3  }
  0x78   :  { %401 = vst.msk [vmem:[%s1093_s1 + $0x1] ss:$16 sm:$0x30] %vm3_vm0, %v21_v3   ;;  %402 = vst.msk [vmem:[%s1093_s1 + $0x1] ss:$16 sm:$0xc0] %vm3_vm0, %v21_v3   ;;  %v59_v4 = vpop.permute.xlu1 %58   ;;  %v34_v5 = vpop.permute.xlu0 %33  }
  0x79   :  { %413 = vst.msk [vmem:[%s1093_s1 + $0x82] ss:$16 sm:$0x3] %vm3_vm0, %v59_v4   ;;  %414 = vst.msk [vmem:[%s1093_s1 + $0x82] ss:$16 sm:$0xc] %vm3_vm0, %v59_v4  }
  0x7a   :  { %415 = vst.msk [vmem:[%s1093_s1 + $0x82] ss:$16 sm:$0x30] %vm3_vm0, %v59_v4   ;;  %416 = vst.msk [vmem:[%s1093_s1 + $0x82] ss:$16 sm:$0xc0] %vm3_vm0, %v59_v4  }
  0x7b   :  { %404 = vst.msk [vmem:[%s1093_s1 + $0x81] ss:$16 sm:$0x3] %vm3_vm0, %v34_v5   ;;  %405 = vst.msk [vmem:[%s1093_s1 + $0x81] ss:$16 sm:$0xc] %vm3_vm0, %v34_v5  }
  0x7c   :  { %406 = vst.msk [vmem:[%s1093_s1 + $0x81] ss:$16 sm:$0x30] %vm3_vm0, %v34_v5   ;;  %407 = vst.msk [vmem:[%s1093_s1 + $0x81] ss:$16 sm:$0xc0] %vm3_vm0, %v34_v5   ;;  %v84_v6 = vpop.permute.xlu1 %83   ;;  %v71_v7 = vpop.permute.xlu0 %70  }
  0x7d   :  { %422 = vst.msk [vmem:[%s1093_s1 + $0x83] ss:$16 sm:$0x3] %vm3_vm0, %v84_v6   ;;  %423 = vst.msk [vmem:[%s1093_s1 + $0x83] ss:$16 sm:$0xc] %vm3_vm0, %v84_v6  }
  0x7e   :  { %424 = vst.msk [vmem:[%s1093_s1 + $0x83] ss:$16 sm:$0x30] %vm3_vm0, %v84_v6   ;;  %425 = vst.msk [vmem:[%s1093_s1 + $0x83] ss:$16 sm:$0xc0] %vm3_vm0, %v84_v6  }
  0x7f   :  { %417 = vst.msk [vmem:[%s1093_s1 + $0x3] ss:$16 sm:$0x3] %vm3_vm0, %v71_v7   ;;  %418 = vst.msk [vmem:[%s1093_s1 + $0x3] ss:$16 sm:$0xc] %vm3_vm0, %v71_v7  }
  0x80   :  { %419 = vst.msk [vmem:[%s1093_s1 + $0x3] ss:$16 sm:$0x30] %vm3_vm0, %v71_v7   ;;  %420 = vst.msk [vmem:[%s1093_s1 + $0x3] ss:$16 sm:$0xc0] %vm3_vm0, %v71_v7   ;;  %v109_v8 = vpop.permute.xlu1 %108   ;;  %v96_v9 = vpop.permute.xlu0 %95  }
  0x81   :  { %431 = vst.msk [vmem:[%s1093_s1 + $0x84] ss:$16 sm:$0x3] %vm3_vm0, %v109_v8   ;;  %432 = vst.msk [vmem:[%s1093_s1 + $0x84] ss:$16 sm:$0xc] %vm3_vm0, %v109_v8  }
  0x82   :  { %433 = vst.msk [vmem:[%s1093_s1 + $0x84] ss:$16 sm:$0x30] %vm3_vm0, %v109_v8   ;;  %434 = vst.msk [vmem:[%s1093_s1 + $0x84] ss:$16 sm:$0xc0] %vm3_vm0, %v109_v8  }
  0x83   :  { %426 = vst.msk [vmem:[%s1093_s1 + $0x4] ss:$16 sm:$0x3] %vm3_vm0, %v96_v9   ;;  %427 = vst.msk [vmem:[%s1093_s1 + $0x4] ss:$16 sm:$0xc] %vm3_vm0, %v96_v9  }
  0x84   :  { %428 = vst.msk [vmem:[%s1093_s1 + $0x4] ss:$16 sm:$0x30] %vm3_vm0, %v96_v9   ;;  %429 = vst.msk [vmem:[%s1093_s1 + $0x4] ss:$16 sm:$0xc0] %vm3_vm0, %v96_v9   ;;  %v134_v10 = vpop.permute.xlu1 %133   ;;  %v121_v11 = vpop.permute.xlu0 %120  }
  0x85   :  { %440 = vst.msk [vmem:[%s1093_s1 + $0x85] ss:$16 sm:$0x3] %vm3_vm0, %v134_v10   ;;  %441 = vst.msk [vmem:[%s1093_s1 + $0x85] ss:$16 sm:$0xc] %vm3_vm0, %v134_v10  }
  0x86   :  { %442 = vst.msk [vmem:[%s1093_s1 + $0x85] ss:$16 sm:$0x30] %vm3_vm0, %v134_v10   ;;  %443 = vst.msk [vmem:[%s1093_s1 + $0x85] ss:$16 sm:$0xc0] %vm3_vm0, %v134_v10  }
  0x87   :  { %435 = vst.msk [vmem:[%s1093_s1 + $0x5] ss:$16 sm:$0x3] %vm3_vm0, %v121_v11   ;;  %436 = vst.msk [vmem:[%s1093_s1 + $0x5] ss:$16 sm:$0xc] %vm3_vm0, %v121_v11  }
  0x88   :  { %437 = vst.msk [vmem:[%s1093_s1 + $0x5] ss:$16 sm:$0x30] %vm3_vm0, %v121_v11   ;;  %438 = vst.msk [vmem:[%s1093_s1 + $0x5] ss:$16 sm:$0xc0] %vm3_vm0, %v121_v11   ;;  %v159_v12 = vpop.permute.xlu1 %158   ;;  %v146_v13 = vpop.permute.xlu0 %145  }
  0x89   :  { %449 = vst.msk [vmem:[%s1093_s1 + $0x86] ss:$16 sm:$0x3] %vm3_vm0, %v159_v12   ;;  %450 = vst.msk [vmem:[%s1093_s1 + $0x86] ss:$16 sm:$0xc] %vm3_vm0, %v159_v12  }
  0x8a   :  { %451 = vst.msk [vmem:[%s1093_s1 + $0x86] ss:$16 sm:$0x30] %vm3_vm0, %v159_v12   ;;  %452 = vst.msk [vmem:[%s1093_s1 + $0x86] ss:$16 sm:$0xc0] %vm3_vm0, %v159_v12  }
  0x8b   :  { %444 = vst.msk [vmem:[%s1093_s1 + $0x6] ss:$16 sm:$0x3] %vm3_vm0, %v146_v13   ;;  %445 = vst.msk [vmem:[%s1093_s1 + $0x6] ss:$16 sm:$0xc] %vm3_vm0, %v146_v13  }
  0x8c   :  { %446 = vst.msk [vmem:[%s1093_s1 + $0x6] ss:$16 sm:$0x30] %vm3_vm0, %v146_v13   ;;  %447 = vst.msk [vmem:[%s1093_s1 + $0x6] ss:$16 sm:$0xc0] %vm3_vm0, %v146_v13   ;;  %v184_v14 = vpop.permute.xlu1 %183   ;;  %v171_v15 = vpop.permute.xlu0 %170  }
  0x8d   :  { %458 = vst.msk [vmem:[%s1093_s1 + $0x87] ss:$16 sm:$0x3] %vm3_vm0, %v184_v14   ;;  %459 = vst.msk [vmem:[%s1093_s1 + $0x87] ss:$16 sm:$0xc] %vm3_vm0, %v184_v14  }
  0x8e   :  { %460 = vst.msk [vmem:[%s1093_s1 + $0x87] ss:$16 sm:$0x30] %vm3_vm0, %v184_v14   ;;  %461 = vst.msk [vmem:[%s1093_s1 + $0x87] ss:$16 sm:$0xc0] %vm3_vm0, %v184_v14  }
  0x8f   :  { %453 = vst.msk [vmem:[%s1093_s1 + $0x7] ss:$16 sm:$0x3] %vm3_vm0, %v171_v15   ;;  %454 = vst.msk [vmem:[%s1093_s1 + $0x7] ss:$16 sm:$0xc] %vm3_vm0, %v171_v15  }
  0x90   :  { %455 = vst.msk [vmem:[%s1093_s1 + $0x7] ss:$16 sm:$0x30] %vm3_vm0, %v171_v15   ;;  %456 = vst.msk [vmem:[%s1093_s1 + $0x7] ss:$16 sm:$0xc0] %vm3_vm0, %v171_v15   ;;  %v209_v16 = vpop.permute.xlu1 %208   ;;  %v196_v17 = vpop.permute.xlu0 %195  }
  0x91   :  { %467 = vst.msk [vmem:[%s1093_s1 + $0x88] ss:$16 sm:$0x3] %vm3_vm0, %v209_v16   ;;  %468 = vst.msk [vmem:[%s1093_s1 + $0x88] ss:$16 sm:$0xc] %vm3_vm0, %v209_v16  }
  0x92   :  { %469 = vst.msk [vmem:[%s1093_s1 + $0x88] ss:$16 sm:$0x30] %vm3_vm0, %v209_v16   ;;  %470 = vst.msk [vmem:[%s1093_s1 + $0x88] ss:$16 sm:$0xc0] %vm3_vm0, %v209_v16  }
  0x93   :  { %462 = vst.msk [vmem:[%s1093_s1 + $0x8] ss:$16 sm:$0x3] %vm3_vm0, %v196_v17   ;;  %463 = vst.msk [vmem:[%s1093_s1 + $0x8] ss:$16 sm:$0xc] %vm3_vm0, %v196_v17  }
  0x94   :  { %464 = vst.msk [vmem:[%s1093_s1 + $0x8] ss:$16 sm:$0x30] %vm3_vm0, %v196_v17   ;;  %465 = vst.msk [vmem:[%s1093_s1 + $0x8] ss:$16 sm:$0xc0] %vm3_vm0, %v196_v17   ;;  %v234_v18 = vpop.permute.xlu1 %233   ;;  %v221_v19 = vpop.permute.xlu0 %220  }
  0x95   :  { %476 = vst.msk [vmem:[%s1093_s1 + $0x89] ss:$16 sm:$0x3] %vm3_vm0, %v234_v18   ;;  %477 = vst.msk [vmem:[%s1093_s1 + $0x89] ss:$16 sm:$0xc] %vm3_vm0, %v234_v18  }
  0x96   :  { %478 = vst.msk [vmem:[%s1093_s1 + $0x89] ss:$16 sm:$0x30] %vm3_vm0, %v234_v18   ;;  %479 = vst.msk [vmem:[%s1093_s1 + $0x89] ss:$16 sm:$0xc0] %vm3_vm0, %v234_v18  }
  0x97   :  { %471 = vst.msk [vmem:[%s1093_s1 + $0x9] ss:$16 sm:$0x3] %vm3_vm0, %v221_v19   ;;  %472 = vst.msk [vmem:[%s1093_s1 + $0x9] ss:$16 sm:$0xc] %vm3_vm0, %v221_v19  }
  0x98   :  { %473 = vst.msk [vmem:[%s1093_s1 + $0x9] ss:$16 sm:$0x30] %vm3_vm0, %v221_v19   ;;  %474 = vst.msk [vmem:[%s1093_s1 + $0x9] ss:$16 sm:$0xc0] %vm3_vm0, %v221_v19   ;;  %v259_v20 = vpop.permute.xlu1 %258   ;;  %v246_v21 = vpop.permute.xlu0 %245  }
  0x99   :  { %485 = vst.msk [vmem:[%s1093_s1 + $0x8a] ss:$16 sm:$0x3] %vm3_vm0, %v259_v20   ;;  %486 = vst.msk [vmem:[%s1093_s1 + $0x8a] ss:$16 sm:$0xc] %vm3_vm0, %v259_v20  }
  0x9a   :  { %487 = vst.msk [vmem:[%s1093_s1 + $0x8a] ss:$16 sm:$0x30] %vm3_vm0, %v259_v20   ;;  %488 = vst.msk [vmem:[%s1093_s1 + $0x8a] ss:$16 sm:$0xc0] %vm3_vm0, %v259_v20  }
  0x9b   :  { %480 = vst.msk [vmem:[%s1093_s1 + $0xa] ss:$16 sm:$0x3] %vm3_vm0, %v246_v21   ;;  %481 = vst.msk [vmem:[%s1093_s1 + $0xa] ss:$16 sm:$0xc] %vm3_vm0, %v246_v21  }
  0x9c   :  { %482 = vst.msk [vmem:[%s1093_s1 + $0xa] ss:$16 sm:$0x30] %vm3_vm0, %v246_v21   ;;  %483 = vst.msk [vmem:[%s1093_s1 + $0xa] ss:$16 sm:$0xc0] %vm3_vm0, %v246_v21   ;;  %v284_v22 = vpop.permute.xlu1 %283   ;;  %v271_v23 = vpop.permute.xlu0 %270  }
  0x9d   :  { %494 = vst.msk [vmem:[%s1093_s1 + $0x8b] ss:$16 sm:$0x3] %vm3_vm0, %v284_v22   ;;  %495 = vst.msk [vmem:[%s1093_s1 + $0x8b] ss:$16 sm:$0xc] %vm3_vm0, %v284_v22  }
  0x9e   :  { %496 = vst.msk [vmem:[%s1093_s1 + $0x8b] ss:$16 sm:$0x30] %vm3_vm0, %v284_v22   ;;  %497 = vst.msk [vmem:[%s1093_s1 + $0x8b] ss:$16 sm:$0xc0] %vm3_vm0, %v284_v22  }
  0x9f   :  { %489 = vst.msk [vmem:[%s1093_s1 + $0xb] ss:$16 sm:$0x3] %vm3_vm0, %v271_v23   ;;  %490 = vst.msk [vmem:[%s1093_s1 + $0xb] ss:$16 sm:$0xc] %vm3_vm0, %v271_v23  }
  0xa0   :  { %491 = vst.msk [vmem:[%s1093_s1 + $0xb] ss:$16 sm:$0x30] %vm3_vm0, %v271_v23   ;;  %492 = vst.msk [vmem:[%s1093_s1 + $0xb] ss:$16 sm:$0xc0] %vm3_vm0, %v271_v23   ;;  %v309_v24 = vpop.permute.xlu1 %308   ;;  %v296_v25 = vpop.permute.xlu0 %295  }
  0xa1   :  { %503 = vst.msk [vmem:[%s1093_s1 + $0x8c] ss:$16 sm:$0x3] %vm3_vm0, %v309_v24   ;;  %504 = vst.msk [vmem:[%s1093_s1 + $0x8c] ss:$16 sm:$0xc] %vm3_vm0, %v309_v24  }
  0xa2   :  { %505 = vst.msk [vmem:[%s1093_s1 + $0x8c] ss:$16 sm:$0x30] %vm3_vm0, %v309_v24   ;;  %506 = vst.msk [vmem:[%s1093_s1 + $0x8c] ss:$16 sm:$0xc0] %vm3_vm0, %v309_v24  }
  0xa3   :  { %498 = vst.msk [vmem:[%s1093_s1 + $0xc] ss:$16 sm:$0x3] %vm3_vm0, %v296_v25   ;;  %499 = vst.msk [vmem:[%s1093_s1 + $0xc] ss:$16 sm:$0xc] %vm3_vm0, %v296_v25  }
  0xa4   :  { %500 = vst.msk [vmem:[%s1093_s1 + $0xc] ss:$16 sm:$0x30] %vm3_vm0, %v296_v25   ;;  %501 = vst.msk [vmem:[%s1093_s1 + $0xc] ss:$16 sm:$0xc0] %vm3_vm0, %v296_v25   ;;  %v334_v26 = vpop.permute.xlu1 %333   ;;  %v321_v27 = vpop.permute.xlu0 %320  }
  0xa5   :  { %512 = vst.msk [vmem:[%s1093_s1 + $0x8d] ss:$16 sm:$0x3] %vm3_vm0, %v334_v26   ;;  %513 = vst.msk [vmem:[%s1093_s1 + $0x8d] ss:$16 sm:$0xc] %vm3_vm0, %v334_v26  }
  0xa6   :  { %514 = vst.msk [vmem:[%s1093_s1 + $0x8d] ss:$16 sm:$0x30] %vm3_vm0, %v334_v26   ;;  %515 = vst.msk [vmem:[%s1093_s1 + $0x8d] ss:$16 sm:$0xc0] %vm3_vm0, %v334_v26  }
  0xa7   :  { %507 = vst.msk [vmem:[%s1093_s1 + $0xd] ss:$16 sm:$0x3] %vm3_vm0, %v321_v27   ;;  %508 = vst.msk [vmem:[%s1093_s1 + $0xd] ss:$16 sm:$0xc] %vm3_vm0, %v321_v27  }
  0xa8   :  { %509 = vst.msk [vmem:[%s1093_s1 + $0xd] ss:$16 sm:$0x30] %vm3_vm0, %v321_v27   ;;  %510 = vst.msk [vmem:[%s1093_s1 + $0xd] ss:$16 sm:$0xc0] %vm3_vm0, %v321_v27   ;;  %v359_v28 = vpop.permute.xlu1 %358   ;;  %v346_v29 = vpop.permute.xlu0 %345  }
  0xa9   :  { %521 = vst.msk [vmem:[%s1093_s1 + $0x8e] ss:$16 sm:$0x3] %vm3_vm0, %v359_v28   ;;  %522 = vst.msk [vmem:[%s1093_s1 + $0x8e] ss:$16 sm:$0xc] %vm3_vm0, %v359_v28  }
  0xaa   :  { %523 = vst.msk [vmem:[%s1093_s1 + $0x8e] ss:$16 sm:$0x30] %vm3_vm0, %v359_v28   ;;  %524 = vst.msk [vmem:[%s1093_s1 + $0x8e] ss:$16 sm:$0xc0] %vm3_vm0, %v359_v28  }
  0xab   :  { %516 = vst.msk [vmem:[%s1093_s1 + $0xe] ss:$16 sm:$0x3] %vm3_vm0, %v346_v29   ;;  %517 = vst.msk [vmem:[%s1093_s1 + $0xe] ss:$16 sm:$0xc] %vm3_vm0, %v346_v29  }
  0xac   :  { %518 = vst.msk [vmem:[%s1093_s1 + $0xe] ss:$16 sm:$0x30] %vm3_vm0, %v346_v29   ;;  %519 = vst.msk [vmem:[%s1093_s1 + $0xe] ss:$16 sm:$0xc0] %vm3_vm0, %v346_v29   ;;  %v384_v30 = vpop.permute.xlu1 %383   ;;  %v371_v31 = vpop.permute.xlu0 %370  }
  0xad   :  { %530 = vst.msk [vmem:[%s1093_s1 + $0x8f] ss:$16 sm:$0x3] %vm3_vm0, %v384_v30   ;;  %531 = vst.msk [vmem:[%s1093_s1 + $0x8f] ss:$16 sm:$0xc] %vm3_vm0, %v384_v30  }
  0xae   :  { %532 = vst.msk [vmem:[%s1093_s1 + $0x8f] ss:$16 sm:$0x30] %vm3_vm0, %v384_v30   ;;  %533 = vst.msk [vmem:[%s1093_s1 + $0x8f] ss:$16 sm:$0xc0] %vm3_vm0, %v384_v30  }
  0xaf   :  { %525 = vst.msk [vmem:[%s1093_s1 + $0xf] ss:$16 sm:$0x3] %vm3_vm0, %v371_v31   ;;  %526 = vst.msk [vmem:[%s1093_s1 + $0xf] ss:$16 sm:$0xc] %vm3_vm0, %v371_v31  }
  0xb0   :  { %527 = vst.msk [vmem:[%s1093_s1 + $0xf] ss:$16 sm:$0x30] %vm3_vm0, %v371_v31   ;;  %528 = vst.msk [vmem:[%s1093_s1 + $0xf] ss:$16 sm:$0xc0] %vm3_vm0, %v371_v31  }

// kernel: discriminator_forward.7
= control target key start
LH: loop header
LB: loop body
LE: loop exit
PB: predicated region body
PF: predicated region fallthrough
CT: control target
= control target key end

     0   :  { %v964_v0 = vmov 0   ;;  %s1347_s0 = inlined_call_operand.vmem [shape: f32[256,1], index: 0, kind: input, shape index: {}]   ;;  %s1348_s1 = inlined_call_operand.vmem [shape: f32[256,1], index: 1, kind: input, shape index: {}]   ;;  %s1349_s3 = inlined_call_operand.vmem [shape: bf16[256,128], index: 3, kind: input, shape index: {}]   ;;  %s1350_s2 = inlined_call_operand.vmem [shape: bf16[32,256], index: 2, kind: input, shape index: {}]   ;;  %s1351_s5 = inlined_call_operand.vmem [shape: f32[32,1], index: 5, kind: output, shape index: {1}]   ;;  %s1352_s4 = inlined_call_operand.vmem [shape: bf16[32,128], index: 4, kind: output, shape index: {0}]   ;;  %s1353_s6 = inlined_call_operand.vmem [shape: f32[32,1], index: 6, kind: output, shape index: {2}]  }
   0x1   :  { %957 = vset.pattern.permute.xlu1 %v964_v0  ;;  %956 = vset.pattern.permute.xlu0 %v964_v0  ;;  %v101_v1 = vld [vmem:[%s1347_s0 + $0x80] sm:$0xff]  ;;  %v102_v3 = vld [vmem:[%s1347_s0 + $0x88] sm:$0xff]  ;;  %v103_v9 = vld [vmem:[%s1347_s0 + $0x90] sm:$0xff] }
   0x2   :  { %v85_v2 = vld [vmem:[%s1347_s0] sm:$0xff]  ;;  %199 = vperm.xlu0 %956, %v101_v1   ;;  %v86_v4 = vld [vmem:[%s1347_s0 + $0x8] sm:$0xff]  ;;  %v104_v10 = vld [vmem:[%s1347_s0 + $0x98] sm:$0xff] }
   0x3   :  { %119 = vperm.xlu1 %957, %v85_v2   ;;  %v325_v5 = vld [vmem:[%s1348_s1 + $0x80] sm:$0xff]  ;;  %v326_v6 = vld [vmem:[%s1348_s1 + $0x88] sm:$0xff]  ;;  %v87_v11 = vld [vmem:[%s1347_s0 + $0x10] sm:$0xff] }
   0x4   :  { %v309_v7 = vld [vmem:[%s1348_s1] sm:$0xff]  ;;  %v310_v8 = vld [vmem:[%s1348_s1 + $0x8] sm:$0xff]  ;;  %v88_v12 = vld [vmem:[%s1347_s0 + $0x18] sm:$0xff] }
   0x5   :  { %v327_v13 = vld [vmem:[%s1348_s1 + $0x90] sm:$0xff]  ;;  %v328_v14 = vld [vmem:[%s1348_s1 + $0x98] sm:$0xff]  ;;  %v105_v17 = vld [vmem:[%s1347_s0 + $0xa0] sm:$0xff] }
   0x6   :  { %204 = vperm.xlu0 %956, %v102_v3   ;;  %v311_v15 = vld [vmem:[%s1348_s1 + $0x10] sm:$0xff]  ;;  %v312_v16 = vld [vmem:[%s1348_s1 + $0x18] sm:$0xff]  ;;  %v106_v18 = vld [vmem:[%s1347_s0 + $0xa8] sm:$0xff] }
   0x7   :  { %124 = vperm.xlu1 %957, %v86_v4   ;;  %v89_v19 = vld [vmem:[%s1347_s0 + $0x20] sm:$0xff]  ;;  %v90_v20 = vld [vmem:[%s1347_s0 + $0x28] sm:$0xff]  ;;  %v107_v25 = vld [vmem:[%s1347_s0 + $0xb0] sm:$0xff] }
   0x8   :  { %v329_v21 = vld [vmem:[%s1348_s1 + $0xa0] sm:$0xff]  ;;  %v330_v22 = vld [vmem:[%s1348_s1 + $0xa8] sm:$0xff]  ;;  %v108_v26 = vld [vmem:[%s1347_s0 + $0xb8] sm:$0xff] }
   0x9   :  { %v313_v23 = vld [vmem:[%s1348_s1 + $0x20] sm:$0xff]  ;;  %v314_v24 = vld [vmem:[%s1348_s1 + $0x28] sm:$0xff]  ;;  %v91_v27 = vld [vmem:[%s1347_s0 + $0x30] sm:$0xff] }
   0xa   :  { %423 = vperm.xlu0 %956, %v325_v5   ;;  %v92_v28 = vld [vmem:[%s1347_s0 + $0x38] sm:$0xff]  ;;  %v331_v29 = vld [vmem:[%s1348_s1 + $0xb0] sm:$0xff]  ;;  %v109_v33 = vld [vmem:[%s1347_s0 + $0xc0] sm:$0xff] }
   0xb   :  { %428 = vperm.xlu1 %957, %v326_v6   ;;  %v332_v30 = vld [vmem:[%s1348_s1 + $0xb8] sm:$0xff]  ;;  %v315_v31 = vld [vmem:[%s1348_s1 + $0x30] sm:$0xff]  ;;  %v110_v34 = vld [vmem:[%s1347_s0 + $0xc8] sm:$0xff] }
   0xc   :  { %v316_v32 = vld [vmem:[%s1348_s1 + $0x38] sm:$0xff]  ;;  %v93_v35 = vld [vmem:[%s1347_s0 + $0x40] sm:$0xff]  ;;  %v94_v36 = vld [vmem:[%s1347_s0 + $0x48] sm:$0xff] }
   0xd   :  { %v333_v37 = vld [vmem:[%s1348_s1 + $0xc0] sm:$0xff]  ;;  %v334_v38 = vld [vmem:[%s1348_s1 + $0xc8] sm:$0xff]  ;;  %v111_v41 = vld [vmem:[%s1347_s0 + $0xd0] sm:$0xff] }
   0xe   :  { %343 = vperm.xlu0 %956, %v309_v7   ;;  %v317_v39 = vld [vmem:[%s1348_s1 + $0x40] sm:$0xff]  ;;  %v318_v40 = vld [vmem:[%s1348_s1 + $0x48] sm:$0xff]  ;;  %v112_v42 = vld [vmem:[%s1347_s0 + $0xd8] sm:$0xff] }
   0xf   :  { %348 = vperm.xlu1 %957, %v310_v8   ;;  %v95_v43 = vld [vmem:[%s1347_s0 + $0x50] sm:$0xff]  ;;  %v96_v44 = vld [vmem:[%s1347_s0 + $0x58] sm:$0xff]  ;;  %v113_v49 = vld [vmem:[%s1347_s0 + $0xe0] sm:$0xff] }
  0x10   :  { %v335_v45 = vld [vmem:[%s1348_s1 + $0xd0] sm:$0xff]  ;;  %v336_v46 = vld [vmem:[%s1348_s1 + $0xd8] sm:$0xff]  ;;  %v114_v50 = vld [vmem:[%s1347_s0 + $0xe8] sm:$0xff] }
  0x11   :  { %v319_v47 = vld [vmem:[%s1348_s1 + $0x50] sm:$0xff]  ;;  %v320_v48 = vld [vmem:[%s1348_s1 + $0x58] sm:$0xff]  ;;  %v97_v51 = vld [vmem:[%s1347_s0 + $0x60] sm:$0xff] }
  0x12   :  { %209 = vperm.xlu0 %956, %v103_v9   ;;  %v98_v52 = vld [vmem:[%s1347_s0 + $0x68] sm:$0xff]  ;;  %v337_v53 = vld [vmem:[%s1348_s1 + $0xe0] sm:$0xff]  ;;  %v115_v57 = vld [vmem:[%s1347_s0 + $0xf0] sm:$0xff] }
  0x13   :  { %214 = vperm.xlu1 %957, %v104_v10   ;;  %v338_v54 = vld [vmem:[%s1348_s1 + $0xe8] sm:$0xff]  ;;  %v321_v55 = vld [vmem:[%s1348_s1 + $0x60] sm:$0xff]  ;;  %v116_v58 = vld [vmem:[%s1347_s0 + $0xf8] sm:$0xff] }
  0x14   :  { %v322_v56 = vld [vmem:[%s1348_s1 + $0x68] sm:$0xff]  ;;  %v99_v59 = vld [vmem:[%s1347_s0 + $0x70] sm:$0xff]  ;;  %v100_v60 = vld [vmem:[%s1347_s0 + $0x78] sm:$0xff] }
  0x15   :  { %v339_v61 = vld [vmem:[%s1348_s1 + $0xf0] sm:$0xff]  ;;  %v340_v62 = vld [vmem:[%s1348_s1 + $0xf8] sm:$0xff]  ;;  %v901_v1 = vld [vmem:[%s1349_s3 + $0x40] sm:$0xff]  }
  0x16   :  { %129 = vperm.xlu0 %956, %v87_v11   ;;  %v323_v63 = vld [vmem:[%s1348_s1 + $0x70] sm:$0xff]  ;;  %v324_v0 = vld [vmem:[%s1348_s1 + $0x78] sm:$0xff]  ;;  %v854_v4 = vunpack.c.l.bf16 %v901_v1  ;;  %v821_v5 = vld [vmem:[%s1349_s3] sm:$0xff]   ;;  %v855_v6 = vunpack.c.h.bf16 %v901_v1 }
  0x17   :  { %134 = vperm.xlu1 %957, %v88_v12   ;;  %v960_v9 = vld [vmem:[%s1350_s2 + $0x4] ss:$8 sps:$4 sm:$0xff]   ;;  %v822_v10 = vunpack.c.l.bf16 %v821_v5  ;;  %v823_v11 = vunpack.c.h.bf16 %v821_v5  ;;  %v963_v12 = vld [vmem:[%s1350_s2 + $0x14] ss:$8 sps:$4 sm:$0xff]  }
  0x18   :  { %701 = vmatprep.mubr.bf16.mxu0 %v960_v9  ;;  %709 = vmatprep.mubr.bf16.mxu1 %v963_v12 }
  0x1a   :  { %433 = vperm.xlu0 %956, %v327_v13  }
  0x1b   :  { %438 = vperm.xlu1 %957, %v328_v14  }
  0x1e   :  { %353 = vperm.xlu0 %956, %v311_v15  }
  0x1f   :  { %358 = vperm.xlu1 %957, %v312_v16  }
  0x22   :  { %219 = vperm.xlu0 %956, %v105_v17  }
  0x23   :  { %224 = vperm.xlu1 %957, %v106_v18  }
  0x26   :  { %139 = vperm.xlu0 %956, %v89_v19  }
  0x27   :  { %144 = vperm.xlu1 %957, %v90_v20  }
  0x2a   :  { %443 = vperm.xlu0 %956, %v329_v21  }
  0x2b   :  { %448 = vperm.xlu1 %957, %v330_v22  }
  0x2e   :  { %363 = vperm.xlu0 %956, %v313_v23  }
  0x2f   :  { %368 = vperm.xlu1 %957, %v314_v24  }
  0x32   :  { %229 = vperm.xlu0 %956, %v107_v25  }
  0x33   :  { %234 = vperm.xlu1 %957, %v108_v26  }
  0x36   :  { %149 = vperm.xlu0 %956, %v91_v27  }
  0x37   :  { %154 = vperm.xlu1 %957, %v92_v28  }
  0x3a   :  { %453 = vperm.xlu0 %956, %v331_v29  }
  0x3b   :  { %458 = vperm.xlu1 %957, %v332_v30  }
  0x3e   :  { %373 = vperm.xlu0 %956, %v315_v31  }
  0x3f   :  { %378 = vperm.xlu1 %957, %v316_v32   ;;  %v902_v32 = vld [vmem:[%s1349_s3 + $0x48] sm:$0xff]  }
  0x42   :  { %239 = vperm.xlu0 %956, %v109_v33  }
  0x43   :  { %244 = vperm.xlu1 %957, %v110_v34  }
  0x46   :  { %159 = vperm.xlu0 %956, %v93_v35  }
  0x47   :  { %164 = vperm.xlu1 %957, %v94_v36  }
  0x4a   :  { %463 = vperm.xlu0 %956, %v333_v37  }
  0x4b   :  { %468 = vperm.xlu1 %957, %v334_v38   ;;  %v858_v38 = vunpack.c.l.bf16 %v902_v32 }
  0x4e   :  { %383 = vperm.xlu0 %956, %v317_v39   ;;  %v859_v39 = vunpack.c.h.bf16 %v902_v32  ;;  %v904_v32 = vld [vmem:[%s1349_s3 + $0x58] sm:$0xff]  }
  0x4f   :  { %388 = vperm.xlu1 %957, %v318_v40   ;;  %v894_v40 = vld [vmem:[%s1349_s3 + $0x8] sm:$0xff]  }
  0x52   :  { %249 = vperm.xlu0 %956, %v111_v41  }
  0x53   :  { %254 = vperm.xlu1 %957, %v112_v42  }
  0x56   :  { %169 = vperm.xlu0 %956, %v95_v43   ;;  %v826_v43 = vunpack.c.l.bf16 %v894_v40 }
  0x57   :  { %174 = vperm.xlu1 %957, %v96_v44   ;;  %v827_v44 = vunpack.c.h.bf16 %v894_v40  ;;  %v896_v40 = vld [vmem:[%s1349_s3 + $0x18] sm:$0xff]  }
  0x5a   :  { %473 = vperm.xlu0 %956, %v335_v45  }
  0x5b   :  { %478 = vperm.xlu1 %957, %v336_v46  }
  0x5e   :  { %393 = vperm.xlu0 %956, %v319_v47  }
  0x5f   :  { %398 = vperm.xlu1 %957, %v320_v48  }
  0x62   :  { %259 = vperm.xlu0 %956, %v113_v49  }
  0x63   :  { %264 = vperm.xlu1 %957, %v114_v50  }
  0x66   :  { %179 = vperm.xlu0 %956, %v97_v51  }
  0x67   :  { %184 = vperm.xlu1 %957, %v98_v52  }
  0x6a   :  { %483 = vperm.xlu0 %956, %v337_v53  }
  0x6b   :  { %488 = vperm.xlu1 %957, %v338_v54  }
  0x6e   :  { %403 = vperm.xlu0 %956, %v321_v55  }
  0x6f   :  { %408 = vperm.xlu1 %957, %v322_v56  }
  0x72   :  { %269 = vperm.xlu0 %956, %v115_v57  }
  0x73   :  { %274 = vperm.xlu1 %957, %v116_v58  }
  0x76   :  { %189 = vperm.xlu0 %956, %v99_v59  }
  0x77   :  { %194 = vperm.xlu1 %957, %v100_v60  }
  0x7a   :  { %493 = vperm.xlu0 %956, %v339_v61  }
  0x7b   :  { %498 = vperm.xlu1 %957, %v340_v62  }
  0x7e   :  { %413 = vperm.xlu0 %956, %v323_v63  }
  0x7f   :  { %418 = vperm.xlu1 %957, %v324_v0   ;;  %v903_v0 = vld [vmem:[%s1349_s3 + $0x50] sm:$0xff]  }
  0x81   :  { %v200_v2 = vpop.permute.xlu0 %199 }
  0x82   :  { %v120_v3 = vpop.permute.xlu1 %119  ;;  %v293_v13 = vmul.f32 %v854_v4, %v200_v2 }
  0x83   :  { %v277_v19 = vmul.f32 %v822_v10, %v120_v3 }
  0x85   :  { %v205_v7 = vpop.permute.xlu0 %204 }
  0x86   :  { %v125_v8 = vpop.permute.xlu1 %124  ;;  %v294_v14 = vmul.f32 %v855_v6, %v205_v7  ;;  %v862_v6 = vunpack.c.l.bf16 %v903_v0  ;;  %v863_v7 = vunpack.c.h.bf16 %v903_v0  ;;  %v905_v0 = vld [vmem:[%s1349_s3 + $0x60] sm:$0xff]  }
  0x87   :  { %v278_v20 = vmul.f32 %v823_v11, %v125_v8  ;;  %v895_v8 = vld [vmem:[%s1349_s3 + $0x10] sm:$0xff]  }
  0x88   :  { %v830_v11 = vunpack.c.l.bf16 %v895_v8  ;;  %v831_v12 = vunpack.c.h.bf16 %v895_v8  ;;  %v897_v8 = vld [vmem:[%s1349_s3 + $0x20] sm:$0xff]  }
  0x89   :  { %v424_v15 = vpop.permute.xlu0 %423 }
  0x8a   :  { %v429_v16 = vpop.permute.xlu1 %428  ;;  %v517_v17 = vadd.f32 %v424_v15, %v293_v13 }
  0x8b   :  { %v518_v18 = vadd.f32 %v429_v16, %v294_v14 }
  0x8c   :  { %v581_v21 = vmul.f32 0.2, %v517_v17  ;;  %vm549_vm0 = vcmp.ge.f32.partialorder %v517_v17, 0.0 }
  0x8d   :  { %v582_v22 = vmul.f32 0.2, %v518_v18  ;;  %vm550_vm1 = vcmp.ge.f32.partialorder %v518_v18, 0.0  ;;  %v344_v23 = vpop.permute.xlu0 %343 }
  0x8e   :  { %v349_v24 = vpop.permute.xlu1 %348  ;;  %v501_v25 = vadd.f32 %v344_v23, %v277_v19  ;;  %v613_v27 = vsel %vm549_vm0, %v517_v17, %v581_v21 }
  0x8f   :  { %v502_v26 = vadd.f32 %v349_v24, %v278_v20  ;;  %v614_v28 = vsel %vm550_vm1, %v518_v18, %v582_v22 }
  0x90   :  { %v637_v29 = vpack.c.bf16 %v614_v28, %v613_v27  ;;  %v565_v30 = vmul.f32 0.2, %v501_v25  ;;  %vm533_vm2 = vcmp.ge.f32.partialorder %v501_v25, 0.0 }
  0x91   :  { %v566_v31 = vmul.f32 0.2, %v502_v26  ;;  %vm534_vm3 = vcmp.ge.f32.partialorder %v502_v26, 0.0  ;;  %v210_v33 = vpop.permute.xlu0 %209 }
  0x92   :  { %910 = vmatprep.subr.bf16.mxu0 %v637_v29  ;;  %938 = vmatprep.subr.bf16.mxu1 %v637_v29  ;;  %v215_v34 = vpop.permute.xlu1 %214  ;;  %v597_v35 = vsel %vm533_vm2, %v501_v25, %v565_v30  ;;  %v295_v45 = vmul.f32 %v858_v38, %v210_v33  ;;  %v866_v38 = vunpack.c.l.bf16 %v904_v32 }
  0x93   :  { %v598_v36 = vsel %vm534_vm3, %v502_v26, %v566_v31  ;;  %v296_v46 = vmul.f32 %v859_v39, %v215_v34  ;;  %v867_v39 = vunpack.c.h.bf16 %v904_v32  ;;  %v906_v32 = vld [vmem:[%s1349_s3 + $0x68] sm:$0xff]  }
  0x94   :  { %v629_v37 = vpack.c.bf16 %v598_v36, %v597_v35 }
  0x95   :  { %v130_v41 = vpop.permute.xlu0 %129 }
  0x96   :  { %911 = vmatpush3.bf16.msra.mxu0 %v629_v37  ;;  %946 = vmatpush3.bf16.msra.mxu1 %v629_v37  ;;  %v135_v42 = vpop.permute.xlu1 %134  ;;  %v279_v51 = vmul.f32 %v826_v43, %v130_v41  ;;  %v834_v43 = vunpack.c.l.bf16 %v896_v40 }
  0x97   :  { %v280_v52 = vmul.f32 %v827_v44, %v135_v42  ;;  %v835_v44 = vunpack.c.h.bf16 %v896_v40  ;;  %v898_v40 = vld [vmem:[%s1349_s3 + $0x28] sm:$0xff]  }
  0x99   :  { %v434_v47 = vpop.permute.xlu0 %433 }
  0x9a   :  { %v439_v48 = vpop.permute.xlu1 %438  ;;  %v519_v49 = vadd.f32 %v434_v47, %v295_v45 }
  0x9b   :  { %v520_v50 = vadd.f32 %v439_v48, %v296_v46 }
  0x9c   :  { %vm551_vm4 = vcmp.ge.f32.partialorder %v519_v49, 0.0  ;;  %v583_v53 = vmul.f32 0.2, %v519_v49 }
  0x9d   :  { %vm552_vm5 = vcmp.ge.f32.partialorder %v520_v50, 0.0  ;;  %v584_v54 = vmul.f32 0.2, %v520_v50  ;;  %v354_v55 = vpop.permute.xlu0 %353 }
  0x9e   :  { %v359_v56 = vpop.permute.xlu1 %358  ;;  %v503_v57 = vadd.f32 %v354_v55, %v279_v51  ;;  %v615_v59 = vsel %vm551_vm4, %v519_v49, %v583_v53 }
  0x9f   :  { %v504_v58 = vadd.f32 %v359_v56, %v280_v52  ;;  %v616_v60 = vsel %vm552_vm5, %v520_v50, %v584_v54 }
  0xa0   :  { %v638_v61 = vpack.c.bf16 %v616_v60, %v615_v59  ;;  %vm535_vm6 = vcmp.ge.f32.partialorder %v503_v57, 0.0  ;;  %v567_v62 = vmul.f32 0.2, %v503_v57 }
  0xa1   :  { %vm536_vm7 = vcmp.ge.f32.partialorder %v504_v58, 0.0  ;;  %v568_v63 = vmul.f32 0.2, %v504_v58  ;;  %v220_v1 = vpop.permute.xlu0 %219 }
  0xa2   :  { %912 = vmatprep.subr.bf16.mxu0 %v638_v61  ;;  %939 = vmatprep.subr.bf16.mxu1 %v638_v61  ;;  %v225_v2 = vpop.permute.xlu1 %224  ;;  %v599_v3 = vsel %vm535_vm6, %v503_v57, %v567_v62  ;;  %v297_v13 = vmul.f32 %v862_v6, %v220_v1  ;;  %v870_v6 = vunpack.c.l.bf16 %v905_v0 }
  0xa3   :  { %v600_v4 = vsel %vm536_vm7, %v504_v58, %v568_v63  ;;  %v298_v14 = vmul.f32 %v863_v7, %v225_v2  ;;  %v871_v7 = vunpack.c.h.bf16 %v905_v0  ;;  %v907_v0 = vld [vmem:[%s1349_s3 + $0x70] sm:$0xff]  }
  0xa4   :  { %v630_v5 = vpack.c.bf16 %v600_v4, %v599_v3 }
  0xa5   :  { %v140_v9 = vpop.permute.xlu0 %139 }
  0xa6   :  { %913 = vmatpush3.bf16.msra.mxu0 %v630_v5  ;;  %947 = vmatpush3.bf16.msra.mxu1 %v630_v5  ;;  %v145_v10 = vpop.permute.xlu1 %144  ;;  %v281_v19 = vmul.f32 %v830_v11, %v140_v9  ;;  %v838_v11 = vunpack.c.l.bf16 %v897_v8 }
  0xa7   :  { %v282_v20 = vmul.f32 %v831_v12, %v145_v10  ;;  %v839_v12 = vunpack.c.h.bf16 %v897_v8  ;;  %v899_v8 = vld [vmem:[%s1349_s3 + $0x30] sm:$0xff]  }
  0xa9   :  { %v444_v15 = vpop.permute.xlu0 %443 }
  0xaa   :  { %v449_v16 = vpop.permute.xlu1 %448  ;;  %v521_v17 = vadd.f32 %v444_v15, %v297_v13 }
  0xab   :  { %v522_v18 = vadd.f32 %v449_v16, %v298_v14 }
  0xac   :  { %vm553_vm8 = vcmp.ge.f32.partialorder %v521_v17, 0.0  ;;  %v585_v21 = vmul.f32 0.2, %v521_v17 }
  0xad   :  { %vm554_vm9 = vcmp.ge.f32.partialorder %v522_v18, 0.0  ;;  %v586_v22 = vmul.f32 0.2, %v522_v18  ;;  %v364_v23 = vpop.permute.xlu0 %363 }
  0xae   :  { %v369_v24 = vpop.permute.xlu1 %368  ;;  %v505_v25 = vadd.f32 %v364_v23, %v281_v19  ;;  %v617_v27 = vsel %vm553_vm8, %v521_v17, %v585_v21 }
  0xaf   :  { %v506_v26 = vadd.f32 %v369_v24, %v282_v20  ;;  %v618_v28 = vsel %vm554_vm9, %v522_v18, %v586_v22 }
  0xb0   :  { %v639_v29 = vpack.c.bf16 %v618_v28, %v617_v27  ;;  %vm537_vm10 = vcmp.ge.f32.partialorder %v505_v25, 0.0  ;;  %v569_v30 = vmul.f32 0.2, %v505_v25 }
  0xb1   :  { %vm538_vm11 = vcmp.ge.f32.partialorder %v506_v26, 0.0  ;;  %v570_v31 = vmul.f32 0.2, %v506_v26  ;;  %v230_v33 = vpop.permute.xlu0 %229 }
  0xb2   :  { %914 = vmatprep.subr.bf16.mxu0 %v639_v29  ;;  %940 = vmatprep.subr.bf16.mxu1 %v639_v29  ;;  %v235_v34 = vpop.permute.xlu1 %234  ;;  %v601_v35 = vsel %vm537_vm10, %v505_v25, %v569_v30  ;;  %v299_v45 = vmul.f32 %v866_v38, %v230_v33  ;;  %v874_v38 = vunpack.c.l.bf16 %v906_v32 }
  0xb3   :  { %v602_v36 = vsel %vm538_vm11, %v506_v26, %v570_v31  ;;  %v300_v46 = vmul.f32 %v867_v39, %v235_v34  ;;  %v875_v39 = vunpack.c.h.bf16 %v906_v32  ;;  %v908_v32 = vld [vmem:[%s1349_s3 + $0x78] sm:$0xff]  }
  0xb4   :  { %v631_v37 = vpack.c.bf16 %v602_v36, %v601_v35 }
  0xb5   :  { %v150_v41 = vpop.permute.xlu0 %149 }
  0xb6   :  { %915 = vmatpush3.bf16.msra.mxu0 %v631_v37  ;;  %948 = vmatpush3.bf16.msra.mxu1 %v631_v37  ;;  %v155_v42 = vpop.permute.xlu1 %154  ;;  %v283_v51 = vmul.f32 %v834_v43, %v150_v41  ;;  %v842_v43 = vunpack.c.l.bf16 %v898_v40 }
  0xb7   :  { %v284_v52 = vmul.f32 %v835_v44, %v155_v42  ;;  %v843_v44 = vunpack.c.h.bf16 %v898_v40  ;;  %v900_v40 = vld [vmem:[%s1349_s3 + $0x38] sm:$0xff]  }
  0xb9   :  { %v454_v47 = vpop.permute.xlu0 %453 }
  0xba   :  { %v459_v48 = vpop.permute.xlu1 %458  ;;  %v523_v49 = vadd.f32 %v454_v47, %v299_v45 }
  0xbb   :  { %v524_v50 = vadd.f32 %v459_v48, %v300_v46 }
  0xbc   :  { %vm555_vm12 = vcmp.ge.f32.partialorder %v523_v49, 0.0  ;;  %v587_v53 = vmul.f32 0.2, %v523_v49 }
  0xbd   :  { %vm556_vm13 = vcmp.ge.f32.partialorder %v524_v50, 0.0  ;;  %v588_v54 = vmul.f32 0.2, %v524_v50  ;;  %v374_v55 = vpop.permute.xlu0 %373 }
  0xbe   :  { %v379_v56 = vpop.permute.xlu1 %378  ;;  %v507_v57 = vadd.f32 %v374_v55, %v283_v51  ;;  %v619_v59 = vsel %vm555_vm12, %v523_v49, %v587_v53 }
  0xbf   :  { %v508_v58 = vadd.f32 %v379_v56, %v284_v52  ;;  %v620_v60 = vsel %vm556_vm13, %v524_v50, %v588_v54 }
  0xc0   :  { %v640_v61 = vpack.c.bf16 %v620_v60, %v619_v59  ;;  %vm539_vm14 = vcmp.ge.f32.partialorder %v507_v57, 0.0  ;;  %v571_v62 = vmul.f32 0.2, %v507_v57 }
  0xc1   :  { %vm540_vm15 = vcmp.ge.f32.partialorder %v508_v58, 0.0  ;;  %v572_v63 = vmul.f32 0.2, %v508_v58  ;;  %v240_v1 = vpop.permute.xlu0 %239 }
  0xc2   :  { %916 = vmatprep.subr.bf16.mxu0 %v640_v61  ;;  %941 = vmatprep.subr.bf16.mxu1 %v640_v61  ;;  %v245_v2 = vpop.permute.xlu1 %244  ;;  %v603_v3 = vsel %vm539_vm14, %v507_v57, %v571_v62  ;;  %v301_v13 = vmul.f32 %v870_v6, %v240_v1  ;;  %v878_v6 = vunpack.c.l.bf16 %v907_v0 }
  0xc3   :  { %v604_v4 = vsel %vm540_vm15, %v508_v58, %v572_v63  ;;  %v302_v14 = vmul.f32 %v871_v7, %v245_v2  ;;  %v879_v7 = vunpack.c.h.bf16 %v907_v0 }
  0xc4   :  { %v632_v5 = vpack.c.bf16 %v604_v4, %v603_v3 }
  0xc5   :  { %v160_v9 = vpop.permute.xlu0 %159 }
  0xc6   :  { %917 = vmatpush3.bf16.msra.mxu0 %v632_v5  ;;  %949 = vmatpush3.bf16.msra.mxu1 %v632_v5  ;;  %v165_v10 = vpop.permute.xlu1 %164  ;;  %v285_v19 = vmul.f32 %v838_v11, %v160_v9  ;;  %v846_v11 = vunpack.c.l.bf16 %v899_v8 }
  0xc7   :  { %v286_v20 = vmul.f32 %v839_v12, %v165_v10  ;;  %v847_v12 = vunpack.c.h.bf16 %v899_v8 }
  0xc9   :  { %v464_v15 = vpop.permute.xlu0 %463 }
  0xca   :  { %v469_v16 = vpop.permute.xlu1 %468  ;;  %v525_v17 = vadd.f32 %v464_v15, %v301_v13 }
  0xcb   :  { %v526_v18 = vadd.f32 %v469_v16, %v302_v14 }
  0xcc   :  { %vm557_vm0 = vcmp.ge.f32.partialorder %v525_v17, 0.0  ;;  %v589_v21 = vmul.f32 0.2, %v525_v17 }
  0xcd   :  { %vm558_vm1 = vcmp.ge.f32.partialorder %v526_v18, 0.0  ;;  %v590_v22 = vmul.f32 0.2, %v526_v18  ;;  %v384_v23 = vpop.permute.xlu0 %383 }
  0xce   :  { %v389_v24 = vpop.permute.xlu1 %388  ;;  %v509_v25 = vadd.f32 %v384_v23, %v285_v19  ;;  %v621_v27 = vsel %vm557_vm0, %v525_v17, %v589_v21  ;;  %vm742_vm0 = vcmask 7168  }
  0xcf   :  { %v510_v26 = vadd.f32 %v389_v24, %v286_v20  ;;  %v622_v28 = vsel %vm558_vm1, %v526_v18, %v590_v22 }
  0xd0   :  { %v641_v29 = vpack.c.bf16 %v622_v28, %v621_v27  ;;  %vm541_vm2 = vcmp.ge.f32.partialorder %v509_v25, 0.0  ;;  %v573_v30 = vmul.f32 0.2, %v509_v25 }
  0xd1   :  { %vm542_vm3 = vcmp.ge.f32.partialorder %v510_v26, 0.0  ;;  %v574_v31 = vmul.f32 0.2, %v510_v26  ;;  %v250_v33 = vpop.permute.xlu0 %249 }
  0xd2   :  { %918 = vmatprep.subr.bf16.mxu0 %v641_v29  ;;  %942 = vmatprep.subr.bf16.mxu1 %v641_v29  ;;  %v255_v34 = vpop.permute.xlu1 %254  ;;  %v605_v35 = vsel %vm541_vm2, %v509_v25, %v573_v30  ;;  %v303_v45 = vmul.f32 %v874_v38, %v250_v33  ;;  %v882_v38 = vunpack.c.l.bf16 %v908_v32 }
  0xd3   :  { %v606_v36 = vsel %vm542_vm3, %v510_v26, %v574_v31  ;;  %v304_v46 = vmul.f32 %v875_v39, %v255_v34  ;;  %v883_v39 = vunpack.c.h.bf16 %v908_v32 }
  0xd4   :  { %v633_v37 = vpack.c.bf16 %v606_v36, %v605_v35 }
  0xd5   :  { %v170_v41 = vpop.permute.xlu0 %169 }
  0xd6   :  { %919 = vmatpush3.bf16.msra.mxu0 %v633_v37  ;;  %950 = vmatpush3.bf16.msra.mxu1 %v633_v37  ;;  %v175_v42 = vpop.permute.xlu1 %174  ;;  %v287_v51 = vmul.f32 %v842_v43, %v170_v41  ;;  %v850_v43 = vunpack.c.l.bf16 %v900_v40 }
  0xd7   :  { %v288_v52 = vmul.f32 %v843_v44, %v175_v42  ;;  %v851_v44 = vunpack.c.h.bf16 %v900_v40 }
  0xd9   :  { %v474_v47 = vpop.permute.xlu0 %473 }
  0xda   :  { %v479_v48 = vpop.permute.xlu1 %478  ;;  %v527_v49 = vadd.f32 %v474_v47, %v303_v45 }
  0xdb   :  { %v528_v50 = vadd.f32 %v479_v48, %v304_v46 }
  0xdc   :  { %vm559_vm4 = vcmp.ge.f32.partialorder %v527_v49, 0.0  ;;  %v591_v53 = vmul.f32 0.2, %v527_v49 }
  0xdd   :  { %vm560_vm5 = vcmp.ge.f32.partialorder %v528_v50, 0.0  ;;  %v592_v54 = vmul.f32 0.2, %v528_v50  ;;  %v394_v55 = vpop.permute.xlu0 %393 }
  0xde   :  { %v399_v56 = vpop.permute.xlu1 %398  ;;  %v511_v57 = vadd.f32 %v394_v55, %v287_v51  ;;  %v623_v59 = vsel %vm559_vm4, %v527_v49, %v591_v53 }
  0xdf   :  { %v512_v58 = vadd.f32 %v399_v56, %v288_v52  ;;  %v624_v60 = vsel %vm560_vm5, %v528_v50, %v592_v54 }
  0xe0   :  { %v642_v61 = vpack.c.bf16 %v624_v60, %v623_v59  ;;  %vm543_vm6 = vcmp.ge.f32.partialorder %v511_v57, 0.0  ;;  %v575_v62 = vmul.f32 0.2, %v511_v57 }
  0xe1   :  { %vm544_vm7 = vcmp.ge.f32.partialorder %v512_v58, 0.0  ;;  %v576_v63 = vmul.f32 0.2, %v512_v58  ;;  %v260_v1 = vpop.permute.xlu0 %259 }
  0xe2   :  { %920 = vmatprep.subr.bf16.mxu0 %v642_v61  ;;  %943 = vmatprep.subr.bf16.mxu1 %v642_v61  ;;  %v265_v2 = vpop.permute.xlu1 %264  ;;  %v607_v3 = vsel %vm543_vm6, %v511_v57, %v575_v62  ;;  %v305_v13 = vmul.f32 %v878_v6, %v260_v1 }
  0xe3   :  { %v608_v4 = vsel %vm544_vm7, %v512_v58, %v576_v63  ;;  %v306_v14 = vmul.f32 %v879_v7, %v265_v2 }
  0xe4   :  { %v634_v5 = vpack.c.bf16 %v608_v4, %v607_v3  ;;  %v958_v3 = vld [vmem:[%s1350_s2] ss:$8 sps:$4 sm:$0xff]   ;;  %v961_v4 = vld [vmem:[%s1350_s2 + $0x10] ss:$8 sps:$4 sm:$0xff]  }
  0xe5   :  { %v180_v9 = vpop.permute.xlu0 %179 }
  0xe6   :  { %921 = vmatpush3.bf16.msra.mxu0 %v634_v5  ;;  %951 = vmatpush3.bf16.msra.mxu1 %v634_v5  ;;  %v185_v10 = vpop.permute.xlu1 %184  ;;  %v289_v19 = vmul.f32 %v846_v11, %v180_v9  ;;  %v965_v5 = vmov 0.0  }
  0xe7   :  { %v290_v20 = vmul.f32 %v847_v12, %v185_v10  ;;  %743 = vst.msk [vmem:[%s1351_s5] sm:$0xff] %vm742_vm0, %v965_v5  ;;  %744 = vst.msk [vmem:[%s1351_s5 + $0x8] sm:$0xff] %vm742_vm0, %v965_v5 }
  0xe8   :  { %745 = vst.msk [vmem:[%s1351_s5 + $0x10] sm:$0xff] %vm742_vm0, %v965_v5  ;;  %746 = vst.msk [vmem:[%s1351_s5 + $0x18] sm:$0xff] %vm742_vm0, %v965_v5 }
  0xe9   :  { %v484_v15 = vpop.permute.xlu0 %483  ;;  %747 = vst.msk [vmem:[%s1353_s6] sm:$0xff] %vm742_vm0, %v965_v5  ;;  %748 = vst.msk [vmem:[%s1353_s6 + $0x8] sm:$0xff] %vm742_vm0, %v965_v5 }
  0xea   :  { %v489_v16 = vpop.permute.xlu1 %488  ;;  %v529_v17 = vadd.f32 %v484_v15, %v305_v13  ;;  %749 = vst.msk [vmem:[%s1353_s6 + $0x10] sm:$0xff] %vm742_vm0, %v965_v5  ;;  %750 = vst.msk [vmem:[%s1353_s6 + $0x18] sm:$0xff] %vm742_vm0, %v965_v5 }
  0xeb   :  { %v530_v18 = vadd.f32 %v489_v16, %v306_v14 }
  0xec   :  { %vm561_vm8 = vcmp.ge.f32.partialorder %v529_v17, 0.0  ;;  %v593_v21 = vmul.f32 0.2, %v529_v17 }
  0xed   :  { %vm562_vm9 = vcmp.ge.f32.partialorder %v530_v18, 0.0  ;;  %v594_v22 = vmul.f32 0.2, %v530_v18  ;;  %v404_v23 = vpop.permute.xlu0 %403 }
  0xee   :  { %v409_v24 = vpop.permute.xlu1 %408  ;;  %v513_v25 = vadd.f32 %v404_v23, %v289_v19  ;;  %v625_v27 = vsel %vm561_vm8, %v529_v17, %v593_v21 }
  0xef   :  { %v514_v26 = vadd.f32 %v409_v24, %v290_v20  ;;  %v626_v28 = vsel %vm562_vm9, %v530_v18, %v594_v22  ;;  %v751_v24 = vld [vmem:[%s1351_s5] sm:$0xff] }
  0xf0   :  { %v643_v29 = vpack.c.bf16 %v626_v28, %v625_v27  ;;  %vm545_vm10 = vcmp.ge.f32.partialorder %v513_v25, 0.0  ;;  %v577_v30 = vmul.f32 0.2, %v513_v25  ;;  %v772_v32 = vld [vmem:[%s1353_s6] sm:$0xff] }
  0xf1   :  { %vm546_vm11 = vcmp.ge.f32.partialorder %v514_v26, 0.0  ;;  %v578_v31 = vmul.f32 0.2, %v514_v26  ;;  %v270_v33 = vpop.permute.xlu0 %269 }
  0xf2   :  { %922 = vmatprep.subr.bf16.mxu0 %v643_v29  ;;  %944 = vmatprep.subr.bf16.mxu1 %v643_v29  ;;  %v275_v34 = vpop.permute.xlu1 %274  ;;  %v609_v35 = vsel %vm545_vm10, %v513_v25, %v577_v30  ;;  %v307_v45 = vmul.f32 %v882_v38, %v270_v33  ;;  %v753_v29 = vld [vmem:[%s1351_s5 + $0x10] sm:$0xff] }
  0xf3   :  { %v610_v36 = vsel %vm546_vm11, %v514_v26, %v578_v31  ;;  %v308_v46 = vmul.f32 %v883_v39, %v275_v34  ;;  %v752_v26 = vld [vmem:[%s1351_s5 + $0x8] sm:$0xff]  ;;  %v774_v38 = vld [vmem:[%s1353_s6 + $0x10] sm:$0xff] }
  0xf4   :  { %v635_v37 = vpack.c.bf16 %v610_v36, %v609_v35  ;;  %v754_v35 = vld [vmem:[%s1351_s5 + $0x18] sm:$0xff] }
  0xf5   :  { %v190_v41 = vpop.permute.xlu0 %189 }
  0xf6   :  { %923 = vmatpush3.bf16.msra.mxu0 %v635_v37  ;;  %952 = vmatpush3.bf16.msra.mxu1 %v635_v37  ;;  %v195_v42 = vpop.permute.xlu1 %194  ;;  %v291_v51 = vmul.f32 %v850_v43, %v190_v41  ;;  %v773_v41 = vld [vmem:[%s1353_s6 + $0x8] sm:$0xff] }
  0xf7   :  { %v292_v52 = vmul.f32 %v851_v44, %v195_v42 }
  0xf9   :  { %v494_v47 = vpop.permute.xlu0 %493 }
  0xfa   :  { %v499_v48 = vpop.permute.xlu1 %498  ;;  %v531_v49 = vadd.f32 %v494_v47, %v307_v45  ;;  %v775_v45 = vld [vmem:[%s1353_s6 + $0x18] sm:$0xff] }
  0xfb   :  { %v532_v50 = vadd.f32 %v499_v48, %v308_v46 }
  0xfc   :  { %vm563_vm12 = vcmp.ge.f32.partialorder %v531_v49, 0.0  ;;  %v595_v53 = vmul.f32 0.2, %v531_v49 }
  0xfd   :  { %vm564_vm13 = vcmp.ge.f32.partialorder %v532_v50, 0.0  ;;  %v596_v54 = vmul.f32 0.2, %v532_v50  ;;  %v414_v55 = vpop.permute.xlu0 %413 }
  0xfe   :  { %v419_v56 = vpop.permute.xlu1 %418  ;;  %v515_v57 = vadd.f32 %v414_v55, %v291_v51  ;;  %v627_v59 = vsel %vm563_vm12, %v531_v49, %v595_v53 }
  0xff   :  { %v516_v58 = vadd.f32 %v419_v56, %v292_v52  ;;  %v628_v60 = vsel %vm564_vm13, %v532_v50, %v596_v54 }
 0x100   :  { %v644_v61 = vpack.c.bf16 %v628_v60, %v627_v59  ;;  %vm547_vm14 = vcmp.ge.f32.partialorder %v515_v57, 0.0  ;;  %v579_v62 = vmul.f32 0.2, %v515_v57 }
 0x101   :  { %vm548_vm15 = vcmp.ge.f32.partialorder %v516_v58, 0.0  ;;  %v580_v63 = vmul.f32 0.2, %v516_v58 }
 0x102   :  { %924 = vmatprep.subr.bf16.mxu0 %v644_v61  ;;  %945 = vmatprep.subr.bf16.mxu1 %v644_v61  ;;  %v611_v0 = vsel %vm547_vm14, %v515_v57, %v579_v62 }
 0x103   :  { %v612_v1 = vsel %vm548_vm15, %v516_v58, %v580_v63 }
 0x104   :  { %v636_v2 = vpack.c.bf16 %v612_v1, %v611_v0 }
 0x106   :  { %925 = vmatpush3.bf16.msra.mxu0 %v636_v2  ;;  %953 = vmatpush3.bf16.msra.mxu1 %v636_v2 }
 0x109   :  { %702 = vmatmul.mubr.bf16.vlgmr.msra.gmra.mrb[0].mxu0 %v958_v3  ;;  %710 = vmatmul.mubr.bf16.vlgmr.msra.gmra.mrb[0].mxu1 %v961_v4 }
 0x1dc   :  { %v926_v6 = vpop.f32.mrb[0].mxu0  ;;  %v932_v7 = vpop.f32.mrb[0].mxu1 }
 0x1dd   :  { %v927_v8 = vpop.f32.mrb[1].mxu0  ;;  %v933_v9 = vpop.f32.mrb[1].mxu1 }
 0x1de   :  { %v928_v10 = vadd.f32 %v927_v8, %v926_v6  ;;  %v929_v11 = vpop.f32.mrb[2].mxu0  ;;  %v934_v12 = vadd.f32 %v933_v9, %v932_v7  ;;  %v935_v13 = vpop.f32.mrb[2].mxu1 }
 0x1df   :  { %v930_v14 = vpop.f32.mrb[3].mxu0  ;;  %v936_v15 = vpop.f32.mrb[3].mxu1 }
 0x1e0   :  { %v931_v16 = vadd.f32 %v930_v14, %v929_v11  ;;  %v937_v17 = vadd.f32 %v936_v15, %v935_v13  ;;  %755 = vadd.xlane.f32.xlu0 %v928_v10  ;;  %v776_v20 = vmul.f32 %v928_v10, %v928_v10  ;;  %v778_v21 = vmul.f32 %v934_v12, %v934_v12 }
 0x1e2   :  { %v887_v18 = vpack.c.bf16 %v931_v16, %v928_v10  ;;  %v892_v19 = vpack.c.bf16 %v937_v17, %v934_v12  ;;  %757 = vadd.xlane.f32.xlu1 %v931_v16  ;;  %v777_v22 = vmul.f32 %v931_v16, %v931_v16  ;;  %v779_v23 = vmul.f32 %v937_v17, %v937_v17 }
 0x1e4   :  { %888 = vst [vmem:[%s1352_s4] sm:$0xff] %v887_v18   ;;  %909 = vst [vmem:[%s1352_s4 + $0x8] sm:$0xff] %v892_v19   ;;  %759 = vadd.xlane.f32.xlu0 %v934_v12 }
 0x1e6   :  { %780 = vadd.xlane.f32.xlu1 %v776_v20 }
 0x1e8   :  { %761 = vadd.xlane.f32.xlu0 %v937_v17 }
 0x1ea   :  { %784 = vadd.xlane.f32.xlu1 %v778_v21 }
 0x1ec   :  { %782 = vadd.xlane.f32.xlu0 %v777_v22 }
 0x1f0   :  { %786 = vadd.xlane.f32.xlu0 %v779_v23 }
 0x26d   :  { %v756_v25 = vpop.xlane.xlu0 %755 }
 0x26e   :  { %v763_v27 = vadd.f32 %v756_v25, %v751_v24 }
 0x26f   :  { %v758_v28 = vpop.xlane.xlu1 %757 }
 0x270   :  { %768 = vst.msk [vmem:[%s1351_s5] sm:$0xff] %vm742_vm0, %v763_v27  ;;  %v764_v30 = vadd.f32 %v758_v28, %v752_v26 }
 0x271   :  { %v760_v31 = vpop.xlane.xlu0 %759 }
 0x272   :  { %769 = vst.msk [vmem:[%s1351_s5 + $0x8] sm:$0xff] %vm742_vm0, %v764_v30  ;;  %v765_v33 = vadd.f32 %v760_v31, %v753_v29 }
 0x273   :  { %v781_v34 = vpop.xlane.xlu1 %780 }
 0x274   :  { %770 = vst.msk [vmem:[%s1351_s5 + $0x10] sm:$0xff] %vm742_vm0, %v765_v33  ;;  %v788_v36 = vadd.f32 %v781_v34, %v772_v32 }
 0x275   :  { %v762_v37 = vpop.xlane.xlu0 %761 }
 0x276   :  { %792 = vst.msk [vmem:[%s1353_s6] sm:$0xff] %vm742_vm0, %v788_v36  ;;  %v766_v39 = vadd.f32 %v762_v37, %v754_v35 }
 0x277   :  { %v785_v40 = vpop.xlane.xlu1 %784 }
 0x278   :  { %771 = vst.msk [vmem:[%s1351_s5 + $0x18] sm:$0xff] %vm742_vm0, %v766_v39  ;;  %v790_v42 = vadd.f32 %v785_v40, %v774_v38 }
 0x279   :  { %v783_v43 = vpop.xlane.xlu0 %782 }
 0x27a   :  { %794 = vst.msk [vmem:[%s1353_s6 + $0x10] sm:$0xff] %vm742_vm0, %v790_v42  ;;  %v789_v44 = vadd.f32 %v783_v43, %v773_v41 }
 0x27c   :  { %793 = vst.msk [vmem:[%s1353_s6 + $0x8] sm:$0xff] %vm742_vm0, %v789_v44 }
 0x27d   :  { %v787_v46 = vpop.xlane.xlu0 %786 }
 0x27e   :  { %v791_v47 = vadd.f32 %v787_v46, %v775_v45 }
 0x280   :  { %795 = vst.msk [vmem:[%s1353_s6 + $0x18] sm:$0xff] %vm742_vm0, %v791_v47 }

// kernel: tile.43
= control target key start
LH: loop header
LB: loop body
LE: loop exit
PB: predicated region body
PF: predicated region fallthrough
CT: control target
= control target key end

     0   :  { %s28_s0 = inlined_call_operand.vmem [shape: f32[32], index: 0, kind: input, shape index: {}]   ;;  %s29_s1 = inlined_call_operand.vmem [shape: f32[16,32], index: 1, kind: output, shape index: {}]  }
   0x1   :  { %v4_v0 = vld [vmem:[%s28_s0] ss:$0 sm:$0xff] }
   0x2   :  { %5 = vst [vmem:[%s29_s1] sm:$0xff] %v4_v0  ;;  %8 = vst [vmem:[%s29_s1 + $0x8] sm:$0xff] %v4_v0 }

// kernel: tile.2
= control target key start
LH: loop header
LB: loop body
LE: loop exit
PB: predicated region body
PF: predicated region fallthrough
CT: control target
= control target key end

     0   :  { %s1883_s8 = smov 126   ;;  %s1884_s9 = smov 127   ;;  %vm3_vm0 = vcmask 7168   ;;  %s4050_s0 = inlined_call_operand.vmem [shape: f32[16,32], index: 0, kind: input, shape index: {}]   ;;  %s4051_s1 = inlined_call_operand.vmem [shape: f32[512,1], index: 1, kind: output, shape index: {}]  }
   0x1   :  { %v1927_v0 = vld [vmem:[%s4050_s0] sm:$0xff]   ;;  %v1934_v1 = vld [vmem:[%s4050_s0 + $0x8] sm:$0xff]   ;;  %s1885_s12 = smov 125   ;;  %s1886_s13 = smov 124  }
   0x2   :  { %80 = vrot.lane.b32.xlu1 %v1927_v0, %s1883_s8  ;;  %39 = vrot.lane.b32.xlu0 %v1927_v0, %s1884_s9  ;;  %s1887_s14 = smov 123   ;;  %s1888_s15 = smov 122   ;;  %v2_v2 = vld [vmem:[%s4050_s0] sm:$0xff]   ;;  %v1316_v3 = vld [vmem:[%s4050_s0 + $0x8] sm:$0xff]  }
   0x3   :  { %s1889_s16 = smov 121   ;;  %s1890_s17 = smov 120   ;;  %4 = vst.msk [vmem:[%s4051_s1] sm:$0x1] %vm3_vm0, %v2_v2   ;;  %1309 = vst.msk [vmem:[%s4051_s1 + $0x1f] sm:$0x2] %vm3_vm0, %v2_v2  }
   0x4   :  { %s1891_s18 = smov 119   ;;  %s1892_s19 = smov 118   ;;  %1310 = vst.msk [vmem:[%s4051_s1 + $0x3e] sm:$0x4] %vm3_vm0, %v2_v2   ;;  %1311 = vst.msk [vmem:[%s4051_s1 + $0x5d] sm:$0x8] %vm3_vm0, %v2_v2  }
   0x5   :  { %s1893_s20 = smov 117   ;;  %s1894_s21 = smov 116   ;;  %1312 = vst.msk [vmem:[%s4051_s1 + $0x7c] sm:$0x10] %vm3_vm0, %v2_v2   ;;  %1313 = vst.msk [vmem:[%s4051_s1 + $0x9b] sm:$0x20] %vm3_vm0, %v2_v2  }
   0x6   :  { %101 = vrot.lane.b32.xlu1 %v1934_v1, %s1883_s8  ;;  %60 = vrot.lane.b32.xlu0 %v1934_v1, %s1884_s9  ;;  %s1895_s22 = smov 115   ;;  %s1896_s23 = smov 114   ;;  %1314 = vst.msk [vmem:[%s4051_s1 + $0xba] sm:$0x40] %vm3_vm0, %v2_v2   ;;  %1315 = vst.msk [vmem:[%s4051_s1 + $0xd9] sm:$0x80] %vm3_vm0, %v2_v2  }
   0x7   :  { %s1897_s24 = smov 113   ;;  %s1898_s25 = smov 112   ;;  %1317 = vst.msk [vmem:[%s4051_s1 + $0x100] sm:$0x1] %vm3_vm0, %v1316_v3   ;;  %1318 = vst.msk [vmem:[%s4051_s1 + $0x11f] sm:$0x2] %vm3_vm0, %v1316_v3  }
   0x8   :  { %s1899_s26 = smov 111   ;;  %s1900_s27 = smov 110   ;;  %1319 = vst.msk [vmem:[%s4051_s1 + $0x13e] sm:$0x4] %vm3_vm0, %v1316_v3   ;;  %1320 = vst.msk [vmem:[%s4051_s1 + $0x15d] sm:$0x8] %vm3_vm0, %v1316_v3  }
   0x9   :  { %s1901_s28 = smov 109   ;;  %s1902_s29 = smov 108   ;;  %1321 = vst.msk [vmem:[%s4051_s1 + $0x17c] sm:$0x10] %vm3_vm0, %v1316_v3   ;;  %1322 = vst.msk [vmem:[%s4051_s1 + $0x19b] sm:$0x20] %vm3_vm0, %v1316_v3  }
   0xa   :  { %142 = vrot.lane.b32.xlu1 %v1934_v1, %s1885_s12  ;;  %121 = vrot.lane.b32.xlu0 %v1927_v0, %s1885_s12  ;;  %s1903_s30 = smov 107   ;;  %s1904_s2 = smov 106   ;;  %1323 = vst.msk [vmem:[%s4051_s1 + $0x1ba] sm:$0x40] %vm3_vm0, %v1316_v3   ;;  %1324 = vst.msk [vmem:[%s4051_s1 + $0x1d9] sm:$0x80] %vm3_vm0, %v1316_v3  }
   0xb   :  { %s1905_s3 = smov 105   ;;  %s1906_s4 = smov 104  }
   0xc   :  { %s1907_s5 = smov 103   ;;  %s1908_s6 = smov 102  }
   0xd   :  { %s1909_s7 = smov 101  }
   0xe   :  { %183 = vrot.lane.b32.xlu1 %v1934_v1, %s1886_s13  ;;  %162 = vrot.lane.b32.xlu0 %v1927_v0, %s1886_s13  ;;  %s1910_s13 = smov 100  }
  0x12   :  { %224 = vrot.lane.b32.xlu1 %v1934_v1, %s1887_s14  ;;  %203 = vrot.lane.b32.xlu0 %v1927_v0, %s1887_s14  ;;  %s1911_s14 = smov 99  }
  0x16   :  { %265 = vrot.lane.b32.xlu1 %v1934_v1, %s1888_s15  ;;  %244 = vrot.lane.b32.xlu0 %v1927_v0, %s1888_s15 }
  0x1a   :  { %306 = vrot.lane.b32.xlu1 %v1934_v1, %s1889_s16  ;;  %285 = vrot.lane.b32.xlu0 %v1927_v0, %s1889_s16 }
  0x1e   :  { %347 = vrot.lane.b32.xlu1 %v1934_v1, %s1890_s17  ;;  %326 = vrot.lane.b32.xlu0 %v1927_v0, %s1890_s17  ;;  %s1912_s17 = smov 98  }
  0x22   :  { %388 = vrot.lane.b32.xlu1 %v1934_v1, %s1891_s18  ;;  %367 = vrot.lane.b32.xlu0 %v1927_v0, %s1891_s18 }
  0x26   :  { %429 = vrot.lane.b32.xlu1 %v1934_v1, %s1892_s19  ;;  %408 = vrot.lane.b32.xlu0 %v1927_v0, %s1892_s19 }
  0x2a   :  { %470 = vrot.lane.b32.xlu1 %v1934_v1, %s1893_s20  ;;  %449 = vrot.lane.b32.xlu0 %v1927_v0, %s1893_s20  ;;  %s1913_s20 = smov 97  }
  0x2e   :  { %511 = vrot.lane.b32.xlu1 %v1934_v1, %s1894_s21  ;;  %490 = vrot.lane.b32.xlu0 %v1927_v0, %s1894_s21 }
  0x32   :  { %552 = vrot.lane.b32.xlu1 %v1934_v1, %s1895_s22  ;;  %531 = vrot.lane.b32.xlu0 %v1927_v0, %s1895_s22 }
  0x36   :  { %593 = vrot.lane.b32.xlu1 %v1934_v1, %s1896_s23  ;;  %572 = vrot.lane.b32.xlu0 %v1927_v0, %s1896_s23 }
  0x3a   :  { %634 = vrot.lane.b32.xlu1 %v1934_v1, %s1897_s24  ;;  %613 = vrot.lane.b32.xlu0 %v1927_v0, %s1897_s24 }
  0x3e   :  { %675 = vrot.lane.b32.xlu1 %v1934_v1, %s1898_s25  ;;  %654 = vrot.lane.b32.xlu0 %v1927_v0, %s1898_s25 }
  0x42   :  { %716 = vrot.lane.b32.xlu1 %v1934_v1, %s1899_s26  ;;  %695 = vrot.lane.b32.xlu0 %v1927_v0, %s1899_s26 }
  0x46   :  { %757 = vrot.lane.b32.xlu1 %v1934_v1, %s1900_s27  ;;  %736 = vrot.lane.b32.xlu0 %v1927_v0, %s1900_s27 }
  0x4a   :  { %798 = vrot.lane.b32.xlu1 %v1934_v1, %s1901_s28  ;;  %777 = vrot.lane.b32.xlu0 %v1927_v0, %s1901_s28 }
  0x4e   :  { %839 = vrot.lane.b32.xlu1 %v1934_v1, %s1902_s29  ;;  %818 = vrot.lane.b32.xlu0 %v1927_v0, %s1902_s29 }
  0x52   :  { %880 = vrot.lane.b32.xlu1 %v1934_v1, %s1903_s30  ;;  %859 = vrot.lane.b32.xlu0 %v1927_v0, %s1903_s30 }
  0x56   :  { %921 = vrot.lane.b32.xlu1 %v1934_v1, %s1904_s2  ;;  %900 = vrot.lane.b32.xlu0 %v1927_v0, %s1904_s2 }
  0x5a   :  { %962 = vrot.lane.b32.xlu1 %v1934_v1, %s1905_s3  ;;  %941 = vrot.lane.b32.xlu0 %v1927_v0, %s1905_s3 }
  0x5e   :  { %1003 = vrot.lane.b32.xlu1 %v1934_v1, %s1906_s4  ;;  %982 = vrot.lane.b32.xlu0 %v1927_v0, %s1906_s4 }
  0x62   :  { %1044 = vrot.lane.b32.xlu1 %v1934_v1, %s1907_s5  ;;  %1023 = vrot.lane.b32.xlu0 %v1927_v0, %s1907_s5 }
  0x66   :  { %1085 = vrot.lane.b32.xlu1 %v1934_v1, %s1908_s6  ;;  %1064 = vrot.lane.b32.xlu0 %v1927_v0, %s1908_s6 }
  0x6a   :  { %1126 = vrot.lane.b32.xlu1 %v1934_v1, %s1909_s7  ;;  %1105 = vrot.lane.b32.xlu0 %v1927_v0, %s1909_s7 }
  0x6e   :  { %1167 = vrot.lane.b32.xlu1 %v1934_v1, %s1910_s13  ;;  %1146 = vrot.lane.b32.xlu0 %v1927_v0, %s1910_s13 }
  0x72   :  { %1208 = vrot.lane.b32.xlu1 %v1934_v1, %s1911_s14  ;;  %1187 = vrot.lane.b32.xlu0 %v1927_v0, %s1911_s14 }
  0x74   :  { %v81_v4 = vpop.permute.xlu1 %80   ;;  %v40_v5 = vpop.permute.xlu0 %39  }
  0x75   :  { %1342 = vst.msk [vmem:[%s4051_s1 + $0x2] sm:$0x1] %vm3_vm0, %v81_v4   ;;  %1343 = vst.msk [vmem:[%s4051_s1 + $0x21] sm:$0x2] %vm3_vm0, %v81_v4  }
  0x76   :  { %1344 = vst.msk [vmem:[%s4051_s1 + $0x40] sm:$0x4] %vm3_vm0, %v81_v4   ;;  %1345 = vst.msk [vmem:[%s4051_s1 + $0x5f] sm:$0x8] %vm3_vm0, %v81_v4   ;;  %1249 = vrot.lane.b32.xlu1 %v1934_v1, %s1912_s17  ;;  %1228 = vrot.lane.b32.xlu0 %v1927_v0, %s1912_s17 }
  0x77   :  { %1346 = vst.msk [vmem:[%s4051_s1 + $0x7e] sm:$0x10] %vm3_vm0, %v81_v4   ;;  %1347 = vst.msk [vmem:[%s4051_s1 + $0x9d] sm:$0x20] %vm3_vm0, %v81_v4  }
  0x78   :  { %1348 = vst.msk [vmem:[%s4051_s1 + $0xbc] sm:$0x40] %vm3_vm0, %v81_v4   ;;  %1349 = vst.msk [vmem:[%s4051_s1 + $0xdb] sm:$0x80] %vm3_vm0, %v81_v4   ;;  %v102_v6 = vpop.permute.xlu1 %101   ;;  %v61_v7 = vpop.permute.xlu0 %60  }
  0x79   :  { %1325 = vst.msk [vmem:[%s4051_s1 + $0x1] sm:$0x1] %vm3_vm0, %v40_v5   ;;  %1326 = vst.msk [vmem:[%s4051_s1 + $0x20] sm:$0x2] %vm3_vm0, %v40_v5  }
  0x7a   :  { %1327 = vst.msk [vmem:[%s4051_s1 + $0x3f] sm:$0x4] %vm3_vm0, %v40_v5   ;;  %1328 = vst.msk [vmem:[%s4051_s1 + $0x5e] sm:$0x8] %vm3_vm0, %v40_v5   ;;  %1290 = vrot.lane.b32.xlu1 %v1934_v1, %s1913_s20  ;;  %1269 = vrot.lane.b32.xlu0 %v1927_v0, %s1913_s20 }
  0x7b   :  { %1329 = vst.msk [vmem:[%s4051_s1 + $0x7d] sm:$0x10] %vm3_vm0, %v40_v5   ;;  %1330 = vst.msk [vmem:[%s4051_s1 + $0x9c] sm:$0x20] %vm3_vm0, %v40_v5  }
  0x7c   :  { %1331 = vst.msk [vmem:[%s4051_s1 + $0xbb] sm:$0x40] %vm3_vm0, %v40_v5   ;;  %1332 = vst.msk [vmem:[%s4051_s1 + $0xda] sm:$0x80] %vm3_vm0, %v40_v5   ;;  %v143_v8 = vpop.permute.xlu1 %142   ;;  %v122_v9 = vpop.permute.xlu0 %121  }
  0x7d   :  { %1351 = vst.msk [vmem:[%s4051_s1 + $0x102] sm:$0x1] %vm3_vm0, %v102_v6   ;;  %1352 = vst.msk [vmem:[%s4051_s1 + $0x121] sm:$0x2] %vm3_vm0, %v102_v6  }
  0x7e   :  { %1353 = vst.msk [vmem:[%s4051_s1 + $0x140] sm:$0x4] %vm3_vm0, %v102_v6   ;;  %1354 = vst.msk [vmem:[%s4051_s1 + $0x15f] sm:$0x8] %vm3_vm0, %v102_v6  }
  0x7f   :  { %1355 = vst.msk [vmem:[%s4051_s1 + $0x17e] sm:$0x10] %vm3_vm0, %v102_v6   ;;  %1356 = vst.msk [vmem:[%s4051_s1 + $0x19d] sm:$0x20] %vm3_vm0, %v102_v6  }
  0x80   :  { %1357 = vst.msk [vmem:[%s4051_s1 + $0x1bc] sm:$0x40] %vm3_vm0, %v102_v6   ;;  %1358 = vst.msk [vmem:[%s4051_s1 + $0x1db] sm:$0x80] %vm3_vm0, %v102_v6   ;;  %v184_v10 = vpop.permute.xlu1 %183   ;;  %v163_v11 = vpop.permute.xlu0 %162  }
  0x81   :  { %1334 = vst.msk [vmem:[%s4051_s1 + $0x101] sm:$0x1] %vm3_vm0, %v61_v7   ;;  %1335 = vst.msk [vmem:[%s4051_s1 + $0x120] sm:$0x2] %vm3_vm0, %v61_v7  }
  0x82   :  { %1336 = vst.msk [vmem:[%s4051_s1 + $0x13f] sm:$0x4] %vm3_vm0, %v61_v7   ;;  %1337 = vst.msk [vmem:[%s4051_s1 + $0x15e] sm:$0x8] %vm3_vm0, %v61_v7  }
  0x83   :  { %1338 = vst.msk [vmem:[%s4051_s1 + $0x17d] sm:$0x10] %vm3_vm0, %v61_v7   ;;  %1339 = vst.msk [vmem:[%s4051_s1 + $0x19c] sm:$0x20] %vm3_vm0, %v61_v7  }
  0x84   :  { %1340 = vst.msk [vmem:[%s4051_s1 + $0x1bb] sm:$0x40] %vm3_vm0, %v61_v7   ;;  %1341 = vst.msk [vmem:[%s4051_s1 + $0x1da] sm:$0x80] %vm3_vm0, %v61_v7   ;;  %v225_v12 = vpop.permute.xlu1 %224   ;;  %v204_v13 = vpop.permute.xlu0 %203  }
  0x85   :  { %1368 = vst.msk [vmem:[%s4051_s1 + $0x103] sm:$0x1] %vm3_vm0, %v143_v8   ;;  %1369 = vst.msk [vmem:[%s4051_s1 + $0x122] sm:$0x2] %vm3_vm0, %v143_v8  }
  0x86   :  { %1370 = vst.msk [vmem:[%s4051_s1 + $0x141] sm:$0x4] %vm3_vm0, %v143_v8   ;;  %1371 = vst.msk [vmem:[%s4051_s1 + $0x160] sm:$0x8] %vm3_vm0, %v143_v8  }
  0x87   :  { %1372 = vst.msk [vmem:[%s4051_s1 + $0x17f] sm:$0x10] %vm3_vm0, %v143_v8   ;;  %1373 = vst.msk [vmem:[%s4051_s1 + $0x19e] sm:$0x20] %vm3_vm0, %v143_v8  }
  0x88   :  { %1374 = vst.msk [vmem:[%s4051_s1 + $0x1bd] sm:$0x40] %vm3_vm0, %v143_v8   ;;  %1375 = vst.msk [vmem:[%s4051_s1 + $0x1dc] sm:$0x80] %vm3_vm0, %v143_v8   ;;  %v266_v14 = vpop.permute.xlu1 %265   ;;  %v245_v15 = vpop.permute.xlu0 %244  }
  0x89   :  { %1359 = vst.msk [vmem:[%s4051_s1 + $0x3] sm:$0x1] %vm3_vm0, %v122_v9   ;;  %1360 = vst.msk [vmem:[%s4051_s1 + $0x22] sm:$0x2] %vm3_vm0, %v122_v9  }
  0x8a   :  { %1361 = vst.msk [vmem:[%s4051_s1 + $0x41] sm:$0x4] %vm3_vm0, %v122_v9   ;;  %1362 = vst.msk [vmem:[%s4051_s1 + $0x60] sm:$0x8] %vm3_vm0, %v122_v9  }
  0x8b   :  { %1363 = vst.msk [vmem:[%s4051_s1 + $0x7f] sm:$0x10] %vm3_vm0, %v122_v9   ;;  %1364 = vst.msk [vmem:[%s4051_s1 + $0x9e] sm:$0x20] %vm3_vm0, %v122_v9  }
  0x8c   :  { %1365 = vst.msk [vmem:[%s4051_s1 + $0xbd] sm:$0x40] %vm3_vm0, %v122_v9   ;;  %1366 = vst.msk [vmem:[%s4051_s1 + $0xdc] sm:$0x80] %vm3_vm0, %v122_v9   ;;  %v307_v16 = vpop.permute.xlu1 %306   ;;  %v286_v17 = vpop.permute.xlu0 %285  }
  0x8d   :  { %1385 = vst.msk [vmem:[%s4051_s1 + $0x104] sm:$0x1] %vm3_vm0, %v184_v10   ;;  %1386 = vst.msk [vmem:[%s4051_s1 + $0x123] sm:$0x2] %vm3_vm0, %v184_v10  }
  0x8e   :  { %1387 = vst.msk [vmem:[%s4051_s1 + $0x142] sm:$0x4] %vm3_vm0, %v184_v10   ;;  %1388 = vst.msk [vmem:[%s4051_s1 + $0x161] sm:$0x8] %vm3_vm0, %v184_v10  }
  0x8f   :  { %1389 = vst.msk [vmem:[%s4051_s1 + $0x180] sm:$0x10] %vm3_vm0, %v184_v10   ;;  %1390 = vst.msk [vmem:[%s4051_s1 + $0x19f] sm:$0x20] %vm3_vm0, %v184_v10  }
  0x90   :  { %1391 = vst.msk [vmem:[%s4051_s1 + $0x1be] sm:$0x40] %vm3_vm0, %v184_v10   ;;  %1392 = vst.msk [vmem:[%s4051_s1 + $0x1dd] sm:$0x80] %vm3_vm0, %v184_v10   ;;  %v348_v18 = vpop.permute.xlu1 %347   ;;  %v327_v19 = vpop.permute.xlu0 %326  }
  0x91   :  { %1376 = vst.msk [vmem:[%s4051_s1 + $0x4] sm:$0x1] %vm3_vm0, %v163_v11   ;;  %1377 = vst.msk [vmem:[%s4051_s1 + $0x23] sm:$0x2] %vm3_vm0, %v163_v11  }
  0x92   :  { %1378 = vst.msk [vmem:[%s4051_s1 + $0x42] sm:$0x4] %vm3_vm0, %v163_v11   ;;  %1379 = vst.msk [vmem:[%s4051_s1 + $0x61] sm:$0x8] %vm3_vm0, %v163_v11  }
  0x93   :  { %1380 = vst.msk [vmem:[%s4051_s1 + $0x80] sm:$0x10] %vm3_vm0, %v163_v11   ;;  %1381 = vst.msk [vmem:[%s4051_s1 + $0x9f] sm:$0x20] %vm3_vm0, %v163_v11  }
  0x94   :  { %1382 = vst.msk [vmem:[%s4051_s1 + $0xbe] sm:$0x40] %vm3_vm0, %v163_v11   ;;  %1383 = vst.msk [vmem:[%s4051_s1 + $0xdd] sm:$0x80] %vm3_vm0, %v163_v11   ;;  %v389_v20 = vpop.permute.xlu1 %388   ;;  %v368_v21 = vpop.permute.xlu0 %367  }
  0x95   :  { %1402 = vst.msk [vmem:[%s4051_s1 + $0x105] sm:$0x1] %vm3_vm0, %v225_v12   ;;  %1403 = vst.msk [vmem:[%s4051_s1 + $0x124] sm:$0x2] %vm3_vm0, %v225_v12  }
  0x96   :  { %1404 = vst.msk [vmem:[%s4051_s1 + $0x143] sm:$0x4] %vm3_vm0, %v225_v12   ;;  %1405 = vst.msk [vmem:[%s4051_s1 + $0x162] sm:$0x8] %vm3_vm0, %v225_v12  }
  0x97   :  { %1406 = vst.msk [vmem:[%s4051_s1 + $0x181] sm:$0x10] %vm3_vm0, %v225_v12   ;;  %1407 = vst.msk [vmem:[%s4051_s1 + $0x1a0] sm:$0x20] %vm3_vm0, %v225_v12  }
  0x98   :  { %1408 = vst.msk [vmem:[%s4051_s1 + $0x1bf] sm:$0x40] %vm3_vm0, %v225_v12   ;;  %1409 = vst.msk [vmem:[%s4051_s1 + $0x1de] sm:$0x80] %vm3_vm0, %v225_v12   ;;  %v430_v22 = vpop.permute.xlu1 %429   ;;  %v409_v23 = vpop.permute.xlu0 %408  }
  0x99   :  { %1393 = vst.msk [vmem:[%s4051_s1 + $0x5] sm:$0x1] %vm3_vm0, %v204_v13   ;;  %1394 = vst.msk [vmem:[%s4051_s1 + $0x24] sm:$0x2] %vm3_vm0, %v204_v13  }
  0x9a   :  { %1395 = vst.msk [vmem:[%s4051_s1 + $0x43] sm:$0x4] %vm3_vm0, %v204_v13   ;;  %1396 = vst.msk [vmem:[%s4051_s1 + $0x62] sm:$0x8] %vm3_vm0, %v204_v13  }
  0x9b   :  { %1397 = vst.msk [vmem:[%s4051_s1 + $0x81] sm:$0x10] %vm3_vm0, %v204_v13   ;;  %1398 = vst.msk [vmem:[%s4051_s1 + $0xa0] sm:$0x20] %vm3_vm0, %v204_v13  }
  0x9c   :  { %1399 = vst.msk [vmem:[%s4051_s1 + $0xbf] sm:$0x40] %vm3_vm0, %v204_v13   ;;  %1400 = vst.msk [vmem:[%s4051_s1 + $0xde] sm:$0x80] %vm3_vm0, %v204_v13   ;;  %v471_v24 = vpop.permute.xlu1 %470   ;;  %v450_v25 = vpop.permute.xlu0 %449  }
  0x9d   :  { %1419 = vst.msk [vmem:[%s4051_s1 + $0x106] sm:$0x1] %vm3_vm0, %v266_v14   ;;  %1420 = vst.msk [vmem:[%s4051_s1 + $0x125] sm:$0x2] %vm3_vm0, %v266_v14  }
  0x9e   :  { %1421 = vst.msk [vmem:[%s4051_s1 + $0x144] sm:$0x4] %vm3_vm0, %v266_v14   ;;  %1422 = vst.msk [vmem:[%s4051_s1 + $0x163] sm:$0x8] %vm3_vm0, %v266_v14  }
  0x9f   :  { %1423 = vst.msk [vmem:[%s4051_s1 + $0x182] sm:$0x10] %vm3_vm0, %v266_v14   ;;  %1424 = vst.msk [vmem:[%s4051_s1 + $0x1a1] sm:$0x20] %vm3_vm0, %v266_v14  }
  0xa0   :  { %1425 = vst.msk [vmem:[%s4051_s1 + $0x1c0] sm:$0x40] %vm3_vm0, %v266_v14   ;;  %1426 = vst.msk [vmem:[%s4051_s1 + $0x1df] sm:$0x80] %vm3_vm0, %v266_v14   ;;  %v512_v26 = vpop.permute.xlu1 %511   ;;  %v491_v27 = vpop.permute.xlu0 %490  }
  0xa1   :  { %1410 = vst.msk [vmem:[%s4051_s1 + $0x6] sm:$0x1] %vm3_vm0, %v245_v15   ;;  %1411 = vst.msk [vmem:[%s4051_s1 + $0x25] sm:$0x2] %vm3_vm0, %v245_v15  }
  0xa2   :  { %1412 = vst.msk [vmem:[%s4051_s1 + $0x44] sm:$0x4] %vm3_vm0, %v245_v15   ;;  %1413 = vst.msk [vmem:[%s4051_s1 + $0x63] sm:$0x8] %vm3_vm0, %v245_v15  }
  0xa3   :  { %1414 = vst.msk [vmem:[%s4051_s1 + $0x82] sm:$0x10] %vm3_vm0, %v245_v15   ;;  %1415 = vst.msk [vmem:[%s4051_s1 + $0xa1] sm:$0x20] %vm3_vm0, %v245_v15  }
  0xa4   :  { %1416 = vst.msk [vmem:[%s4051_s1 + $0xc0] sm:$0x40] %vm3_vm0, %v245_v15   ;;  %1417 = vst.msk [vmem:[%s4051_s1 + $0xdf] sm:$0x80] %vm3_vm0, %v245_v15   ;;  %v553_v28 = vpop.permute.xlu1 %552   ;;  %v532_v29 = vpop.permute.xlu0 %531  }
  0xa5   :  { %1436 = vst.msk [vmem:[%s4051_s1 + $0x107] sm:$0x1] %vm3_vm0, %v307_v16   ;;  %1437 = vst.msk [vmem:[%s4051_s1 + $0x126] sm:$0x2] %vm3_vm0, %v307_v16  }
  0xa6   :  { %1438 = vst.msk [vmem:[%s4051_s1 + $0x145] sm:$0x4] %vm3_vm0, %v307_v16   ;;  %1439 = vst.msk [vmem:[%s4051_s1 + $0x164] sm:$0x8] %vm3_vm0, %v307_v16  }
  0xa7   :  { %1440 = vst.msk [vmem:[%s4051_s1 + $0x183] sm:$0x10] %vm3_vm0, %v307_v16   ;;  %1441 = vst.msk [vmem:[%s4051_s1 + $0x1a2] sm:$0x20] %vm3_vm0, %v307_v16  }
  0xa8   :  { %1442 = vst.msk [vmem:[%s4051_s1 + $0x1c1] sm:$0x40] %vm3_vm0, %v307_v16   ;;  %1443 = vst.msk [vmem:[%s4051_s1 + $0x1e0] sm:$0x80] %vm3_vm0, %v307_v16   ;;  %v594_v30 = vpop.permute.xlu1 %593   ;;  %v573_v31 = vpop.permute.xlu0 %572  }
  0xa9   :  { %1427 = vst.msk [vmem:[%s4051_s1 + $0x7] sm:$0x1] %vm3_vm0, %v286_v17   ;;  %1428 = vst.msk [vmem:[%s4051_s1 + $0x26] sm:$0x2] %vm3_vm0, %v286_v17  }
  0xaa   :  { %1429 = vst.msk [vmem:[%s4051_s1 + $0x45] sm:$0x4] %vm3_vm0, %v286_v17   ;;  %1430 = vst.msk [vmem:[%s4051_s1 + $0x64] sm:$0x8] %vm3_vm0, %v286_v17  }
  0xab   :  { %1431 = vst.msk [vmem:[%s4051_s1 + $0x83] sm:$0x10] %vm3_vm0, %v286_v17   ;;  %1432 = vst.msk [vmem:[%s4051_s1 + $0xa2] sm:$0x20] %vm3_vm0, %v286_v17  }
  0xac   :  { %1433 = vst.msk [vmem:[%s4051_s1 + $0xc1] sm:$0x40] %vm3_vm0, %v286_v17   ;;  %1434 = vst.msk [vmem:[%s4051_s1 + $0xe0] sm:$0x80] %vm3_vm0, %v286_v17   ;;  %v635_v32 = vpop.permute.xlu1 %634   ;;  %v614_v33 = vpop.permute.xlu0 %613  }
  0xad   :  { %1453 = vst.msk [vmem:[%s4051_s1 + $0x108] sm:$0x1] %vm3_vm0, %v348_v18   ;;  %1454 = vst.msk [vmem:[%s4051_s1 + $0x127] sm:$0x2] %vm3_vm0, %v348_v18  }
  0xae   :  { %1455 = vst.msk [vmem:[%s4051_s1 + $0x146] sm:$0x4] %vm3_vm0, %v348_v18   ;;  %1456 = vst.msk [vmem:[%s4051_s1 + $0x165] sm:$0x8] %vm3_vm0, %v348_v18  }
  0xaf   :  { %1457 = vst.msk [vmem:[%s4051_s1 + $0x184] sm:$0x10] %vm3_vm0, %v348_v18   ;;  %1458 = vst.msk [vmem:[%s4051_s1 + $0x1a3] sm:$0x20] %vm3_vm0, %v348_v18  }
  0xb0   :  { %1459 = vst.msk [vmem:[%s4051_s1 + $0x1c2] sm:$0x40] %vm3_vm0, %v348_v18   ;;  %1460 = vst.msk [vmem:[%s4051_s1 + $0x1e1] sm:$0x80] %vm3_vm0, %v348_v18   ;;  %v676_v34 = vpop.permute.xlu1 %675   ;;  %v655_v35 = vpop.permute.xlu0 %654  }
  0xb1   :  { %1444 = vst.msk [vmem:[%s4051_s1 + $0x8] sm:$0x1] %vm3_vm0, %v327_v19   ;;  %1445 = vst.msk [vmem:[%s4051_s1 + $0x27] sm:$0x2] %vm3_vm0, %v327_v19  }
  0xb2   :  { %1446 = vst.msk [vmem:[%s4051_s1 + $0x46] sm:$0x4] %vm3_vm0, %v327_v19   ;;  %1447 = vst.msk [vmem:[%s4051_s1 + $0x65] sm:$0x8] %vm3_vm0, %v327_v19  }
  0xb3   :  { %1448 = vst.msk [vmem:[%s4051_s1 + $0x84] sm:$0x10] %vm3_vm0, %v327_v19   ;;  %1449 = vst.msk [vmem:[%s4051_s1 + $0xa3] sm:$0x20] %vm3_vm0, %v327_v19  }
  0xb4   :  { %1450 = vst.msk [vmem:[%s4051_s1 + $0xc2] sm:$0x40] %vm3_vm0, %v327_v19   ;;  %1451 = vst.msk [vmem:[%s4051_s1 + $0xe1] sm:$0x80] %vm3_vm0, %v327_v19   ;;  %v717_v36 = vpop.permute.xlu1 %716   ;;  %v696_v37 = vpop.permute.xlu0 %695  }
  0xb5   :  { %1470 = vst.msk [vmem:[%s4051_s1 + $0x109] sm:$0x1] %vm3_vm0, %v389_v20   ;;  %1471 = vst.msk [vmem:[%s4051_s1 + $0x128] sm:$0x2] %vm3_vm0, %v389_v20  }
  0xb6   :  { %1472 = vst.msk [vmem:[%s4051_s1 + $0x147] sm:$0x4] %vm3_vm0, %v389_v20   ;;  %1473 = vst.msk [vmem:[%s4051_s1 + $0x166] sm:$0x8] %vm3_vm0, %v389_v20  }
  0xb7   :  { %1474 = vst.msk [vmem:[%s4051_s1 + $0x185] sm:$0x10] %vm3_vm0, %v389_v20   ;;  %1475 = vst.msk [vmem:[%s4051_s1 + $0x1a4] sm:$0x20] %vm3_vm0, %v389_v20  }
  0xb8   :  { %1476 = vst.msk [vmem:[%s4051_s1 + $0x1c3] sm:$0x40] %vm3_vm0, %v389_v20   ;;  %1477 = vst.msk [vmem:[%s4051_s1 + $0x1e2] sm:$0x80] %vm3_vm0, %v389_v20   ;;  %v758_v38 = vpop.permute.xlu1 %757   ;;  %v737_v39 = vpop.permute.xlu0 %736  }
  0xb9   :  { %1461 = vst.msk [vmem:[%s4051_s1 + $0x9] sm:$0x1] %vm3_vm0, %v368_v21   ;;  %1462 = vst.msk [vmem:[%s4051_s1 + $0x28] sm:$0x2] %vm3_vm0, %v368_v21  }
  0xba   :  { %1463 = vst.msk [vmem:[%s4051_s1 + $0x47] sm:$0x4] %vm3_vm0, %v368_v21   ;;  %1464 = vst.msk [vmem:[%s4051_s1 + $0x66] sm:$0x8] %vm3_vm0, %v368_v21  }
  0xbb   :  { %1465 = vst.msk [vmem:[%s4051_s1 + $0x85] sm:$0x10] %vm3_vm0, %v368_v21   ;;  %1466 = vst.msk [vmem:[%s4051_s1 + $0xa4] sm:$0x20] %vm3_vm0, %v368_v21  }
  0xbc   :  { %1467 = vst.msk [vmem:[%s4051_s1 + $0xc3] sm:$0x40] %vm3_vm0, %v368_v21   ;;  %1468 = vst.msk [vmem:[%s4051_s1 + $0xe2] sm:$0x80] %vm3_vm0, %v368_v21   ;;  %v799_v40 = vpop.permute.xlu1 %798   ;;  %v778_v41 = vpop.permute.xlu0 %777  }
  0xbd   :  { %1487 = vst.msk [vmem:[%s4051_s1 + $0x10a] sm:$0x1] %vm3_vm0, %v430_v22   ;;  %1488 = vst.msk [vmem:[%s4051_s1 + $0x129] sm:$0x2] %vm3_vm0, %v430_v22  }
  0xbe   :  { %1489 = vst.msk [vmem:[%s4051_s1 + $0x148] sm:$0x4] %vm3_vm0, %v430_v22   ;;  %1490 = vst.msk [vmem:[%s4051_s1 + $0x167] sm:$0x8] %vm3_vm0, %v430_v22  }
  0xbf   :  { %1491 = vst.msk [vmem:[%s4051_s1 + $0x186] sm:$0x10] %vm3_vm0, %v430_v22   ;;  %1492 = vst.msk [vmem:[%s4051_s1 + $0x1a5] sm:$0x20] %vm3_vm0, %v430_v22  }
  0xc0   :  { %1493 = vst.msk [vmem:[%s4051_s1 + $0x1c4] sm:$0x40] %vm3_vm0, %v430_v22   ;;  %1494 = vst.msk [vmem:[%s4051_s1 + $0x1e3] sm:$0x80] %vm3_vm0, %v430_v22   ;;  %v840_v42 = vpop.permute.xlu1 %839   ;;  %v819_v43 = vpop.permute.xlu0 %818  }
  0xc1   :  { %1478 = vst.msk [vmem:[%s4051_s1 + $0xa] sm:$0x1] %vm3_vm0, %v409_v23   ;;  %1479 = vst.msk [vmem:[%s4051_s1 + $0x29] sm:$0x2] %vm3_vm0, %v409_v23  }
  0xc2   :  { %1480 = vst.msk [vmem:[%s4051_s1 + $0x48] sm:$0x4] %vm3_vm0, %v409_v23   ;;  %1481 = vst.msk [vmem:[%s4051_s1 + $0x67] sm:$0x8] %vm3_vm0, %v409_v23  }
  0xc3   :  { %1482 = vst.msk [vmem:[%s4051_s1 + $0x86] sm:$0x10] %vm3_vm0, %v409_v23   ;;  %1483 = vst.msk [vmem:[%s4051_s1 + $0xa5] sm:$0x20] %vm3_vm0, %v409_v23  }
  0xc4   :  { %1484 = vst.msk [vmem:[%s4051_s1 + $0xc4] sm:$0x40] %vm3_vm0, %v409_v23   ;;  %1485 = vst.msk [vmem:[%s4051_s1 + $0xe3] sm:$0x80] %vm3_vm0, %v409_v23   ;;  %v881_v44 = vpop.permute.xlu1 %880   ;;  %v860_v45 = vpop.permute.xlu0 %859  }
  0xc5   :  { %1504 = vst.msk [vmem:[%s4051_s1 + $0x10b] sm:$0x1] %vm3_vm0, %v471_v24   ;;  %1505 = vst.msk [vmem:[%s4051_s1 + $0x12a] sm:$0x2] %vm3_vm0, %v471_v24  }
  0xc6   :  { %1506 = vst.msk [vmem:[%s4051_s1 + $0x149] sm:$0x4] %vm3_vm0, %v471_v24   ;;  %1507 = vst.msk [vmem:[%s4051_s1 + $0x168] sm:$0x8] %vm3_vm0, %v471_v24  }
  0xc7   :  { %1508 = vst.msk [vmem:[%s4051_s1 + $0x187] sm:$0x10] %vm3_vm0, %v471_v24   ;;  %1509 = vst.msk [vmem:[%s4051_s1 + $0x1a6] sm:$0x20] %vm3_vm0, %v471_v24  }
  0xc8   :  { %1510 = vst.msk [vmem:[%s4051_s1 + $0x1c5] sm:$0x40] %vm3_vm0, %v471_v24   ;;  %1511 = vst.msk [vmem:[%s4051_s1 + $0x1e4] sm:$0x80] %vm3_vm0, %v471_v24   ;;  %v922_v46 = vpop.permute.xlu1 %921   ;;  %v901_v47 = vpop.permute.xlu0 %900  }
  0xc9   :  { %1495 = vst.msk [vmem:[%s4051_s1 + $0xb] sm:$0x1] %vm3_vm0, %v450_v25   ;;  %1496 = vst.msk [vmem:[%s4051_s1 + $0x2a] sm:$0x2] %vm3_vm0, %v450_v25  }
  0xca   :  { %1497 = vst.msk [vmem:[%s4051_s1 + $0x49] sm:$0x4] %vm3_vm0, %v450_v25   ;;  %1498 = vst.msk [vmem:[%s4051_s1 + $0x68] sm:$0x8] %vm3_vm0, %v450_v25  }
  0xcb   :  { %1499 = vst.msk [vmem:[%s4051_s1 + $0x87] sm:$0x10] %vm3_vm0, %v450_v25   ;;  %1500 = vst.msk [vmem:[%s4051_s1 + $0xa6] sm:$0x20] %vm3_vm0, %v450_v25  }
  0xcc   :  { %1501 = vst.msk [vmem:[%s4051_s1 + $0xc5] sm:$0x40] %vm3_vm0, %v450_v25   ;;  %1502 = vst.msk [vmem:[%s4051_s1 + $0xe4] sm:$0x80] %vm3_vm0, %v450_v25   ;;  %v963_v48 = vpop.permute.xlu1 %962   ;;  %v942_v49 = vpop.permute.xlu0 %941  }
  0xcd   :  { %1521 = vst.msk [vmem:[%s4051_s1 + $0x10c] sm:$0x1] %vm3_vm0, %v512_v26   ;;  %1522 = vst.msk [vmem:[%s4051_s1 + $0x12b] sm:$0x2] %vm3_vm0, %v512_v26  }
  0xce   :  { %1523 = vst.msk [vmem:[%s4051_s1 + $0x14a] sm:$0x4] %vm3_vm0, %v512_v26   ;;  %1524 = vst.msk [vmem:[%s4051_s1 + $0x169] sm:$0x8] %vm3_vm0, %v512_v26  }
  0xcf   :  { %1525 = vst.msk [vmem:[%s4051_s1 + $0x188] sm:$0x10] %vm3_vm0, %v512_v26   ;;  %1526 = vst.msk [vmem:[%s4051_s1 + $0x1a7] sm:$0x20] %vm3_vm0, %v512_v26  }
  0xd0   :  { %1527 = vst.msk [vmem:[%s4051_s1 + $0x1c6] sm:$0x40] %vm3_vm0, %v512_v26   ;;  %1528 = vst.msk [vmem:[%s4051_s1 + $0x1e5] sm:$0x80] %vm3_vm0, %v512_v26   ;;  %v1004_v50 = vpop.permute.xlu1 %1003   ;;  %v983_v51 = vpop.permute.xlu0 %982  }
  0xd1   :  { %1512 = vst.msk [vmem:[%s4051_s1 + $0xc] sm:$0x1] %vm3_vm0, %v491_v27   ;;  %1513 = vst.msk [vmem:[%s4051_s1 + $0x2b] sm:$0x2] %vm3_vm0, %v491_v27  }
  0xd2   :  { %1514 = vst.msk [vmem:[%s4051_s1 + $0x4a] sm:$0x4] %vm3_vm0, %v491_v27   ;;  %1515 = vst.msk [vmem:[%s4051_s1 + $0x69] sm:$0x8] %vm3_vm0, %v491_v27  }
  0xd3   :  { %1516 = vst.msk [vmem:[%s4051_s1 + $0x88] sm:$0x10] %vm3_vm0, %v491_v27   ;;  %1517 = vst.msk [vmem:[%s4051_s1 + $0xa7] sm:$0x20] %vm3_vm0, %v491_v27  }
  0xd4   :  { %1518 = vst.msk [vmem:[%s4051_s1 + $0xc6] sm:$0x40] %vm3_vm0, %v491_v27   ;;  %1519 = vst.msk [vmem:[%s4051_s1 + $0xe5] sm:$0x80] %vm3_vm0, %v491_v27   ;;  %v1045_v52 = vpop.permute.xlu1 %1044   ;;  %v1024_v53 = vpop.permute.xlu0 %1023  }
  0xd5   :  { %1538 = vst.msk [vmem:[%s4051_s1 + $0x10d] sm:$0x1] %vm3_vm0, %v553_v28   ;;  %1539 = vst.msk [vmem:[%s4051_s1 + $0x12c] sm:$0x2] %vm3_vm0, %v553_v28  }
  0xd6   :  { %1540 = vst.msk [vmem:[%s4051_s1 + $0x14b] sm:$0x4] %vm3_vm0, %v553_v28   ;;  %1541 = vst.msk [vmem:[%s4051_s1 + $0x16a] sm:$0x8] %vm3_vm0, %v553_v28  }
  0xd7   :  { %1542 = vst.msk [vmem:[%s4051_s1 + $0x189] sm:$0x10] %vm3_vm0, %v553_v28   ;;  %1543 = vst.msk [vmem:[%s4051_s1 + $0x1a8] sm:$0x20] %vm3_vm0, %v553_v28  }
  0xd8   :  { %1544 = vst.msk [vmem:[%s4051_s1 + $0x1c7] sm:$0x40] %vm3_vm0, %v553_v28   ;;  %1545 = vst.msk [vmem:[%s4051_s1 + $0x1e6] sm:$0x80] %vm3_vm0, %v553_v28   ;;  %v1086_v54 = vpop.permute.xlu1 %1085   ;;  %v1065_v55 = vpop.permute.xlu0 %1064  }
  0xd9   :  { %1529 = vst.msk [vmem:[%s4051_s1 + $0xd] sm:$0x1] %vm3_vm0, %v532_v29   ;;  %1530 = vst.msk [vmem:[%s4051_s1 + $0x2c] sm:$0x2] %vm3_vm0, %v532_v29  }
  0xda   :  { %1531 = vst.msk [vmem:[%s4051_s1 + $0x4b] sm:$0x4] %vm3_vm0, %v532_v29   ;;  %1532 = vst.msk [vmem:[%s4051_s1 + $0x6a] sm:$0x8] %vm3_vm0, %v532_v29  }
  0xdb   :  { %1533 = vst.msk [vmem:[%s4051_s1 + $0x89] sm:$0x10] %vm3_vm0, %v532_v29   ;;  %1534 = vst.msk [vmem:[%s4051_s1 + $0xa8] sm:$0x20] %vm3_vm0, %v532_v29  }
  0xdc   :  { %1535 = vst.msk [vmem:[%s4051_s1 + $0xc7] sm:$0x40] %vm3_vm0, %v532_v29   ;;  %1536 = vst.msk [vmem:[%s4051_s1 + $0xe6] sm:$0x80] %vm3_vm0, %v532_v29   ;;  %v1127_v56 = vpop.permute.xlu1 %1126   ;;  %v1106_v57 = vpop.permute.xlu0 %1105  }
  0xdd   :  { %1555 = vst.msk [vmem:[%s4051_s1 + $0x10e] sm:$0x1] %vm3_vm0, %v594_v30   ;;  %1556 = vst.msk [vmem:[%s4051_s1 + $0x12d] sm:$0x2] %vm3_vm0, %v594_v30  }
  0xde   :  { %1557 = vst.msk [vmem:[%s4051_s1 + $0x14c] sm:$0x4] %vm3_vm0, %v594_v30   ;;  %1558 = vst.msk [vmem:[%s4051_s1 + $0x16b] sm:$0x8] %vm3_vm0, %v594_v30  }
  0xdf   :  { %1559 = vst.msk [vmem:[%s4051_s1 + $0x18a] sm:$0x10] %vm3_vm0, %v594_v30   ;;  %1560 = vst.msk [vmem:[%s4051_s1 + $0x1a9] sm:$0x20] %vm3_vm0, %v594_v30  }
  0xe0   :  { %1561 = vst.msk [vmem:[%s4051_s1 + $0x1c8] sm:$0x40] %vm3_vm0, %v594_v30   ;;  %1562 = vst.msk [vmem:[%s4051_s1 + $0x1e7] sm:$0x80] %vm3_vm0, %v594_v30   ;;  %v1168_v58 = vpop.permute.xlu1 %1167   ;;  %v1147_v59 = vpop.permute.xlu0 %1146  }
  0xe1   :  { %1546 = vst.msk [vmem:[%s4051_s1 + $0xe] sm:$0x1] %vm3_vm0, %v573_v31   ;;  %1547 = vst.msk [vmem:[%s4051_s1 + $0x2d] sm:$0x2] %vm3_vm0, %v573_v31  }
  0xe2   :  { %1548 = vst.msk [vmem:[%s4051_s1 + $0x4c] sm:$0x4] %vm3_vm0, %v573_v31   ;;  %1549 = vst.msk [vmem:[%s4051_s1 + $0x6b] sm:$0x8] %vm3_vm0, %v573_v31  }
  0xe3   :  { %1550 = vst.msk [vmem:[%s4051_s1 + $0x8a] sm:$0x10] %vm3_vm0, %v573_v31   ;;  %1551 = vst.msk [vmem:[%s4051_s1 + $0xa9] sm:$0x20] %vm3_vm0, %v573_v31  }
  0xe4   :  { %1552 = vst.msk [vmem:[%s4051_s1 + $0xc8] sm:$0x40] %vm3_vm0, %v573_v31   ;;  %1553 = vst.msk [vmem:[%s4051_s1 + $0xe7] sm:$0x80] %vm3_vm0, %v573_v31   ;;  %v1209_v60 = vpop.permute.xlu1 %1208   ;;  %v1188_v61 = vpop.permute.xlu0 %1187  }
  0xe5   :  { %1572 = vst.msk [vmem:[%s4051_s1 + $0x10f] sm:$0x1] %vm3_vm0, %v635_v32   ;;  %1573 = vst.msk [vmem:[%s4051_s1 + $0x12e] sm:$0x2] %vm3_vm0, %v635_v32  }
  0xe6   :  { %1574 = vst.msk [vmem:[%s4051_s1 + $0x14d] sm:$0x4] %vm3_vm0, %v635_v32   ;;  %1575 = vst.msk [vmem:[%s4051_s1 + $0x16c] sm:$0x8] %vm3_vm0, %v635_v32  }
  0xe7   :  { %1576 = vst.msk [vmem:[%s4051_s1 + $0x18b] sm:$0x10] %vm3_vm0, %v635_v32   ;;  %1577 = vst.msk [vmem:[%s4051_s1 + $0x1aa] sm:$0x20] %vm3_vm0, %v635_v32  }
  0xe8   :  { %1578 = vst.msk [vmem:[%s4051_s1 + $0x1c9] sm:$0x40] %vm3_vm0, %v635_v32   ;;  %1579 = vst.msk [vmem:[%s4051_s1 + $0x1e8] sm:$0x80] %vm3_vm0, %v635_v32   ;;  %v1250_v62 = vpop.permute.xlu1 %1249   ;;  %v1229_v63 = vpop.permute.xlu0 %1228  }
  0xe9   :  { %1563 = vst.msk [vmem:[%s4051_s1 + $0xf] sm:$0x1] %vm3_vm0, %v614_v33   ;;  %1564 = vst.msk [vmem:[%s4051_s1 + $0x2e] sm:$0x2] %vm3_vm0, %v614_v33  }
  0xea   :  { %1565 = vst.msk [vmem:[%s4051_s1 + $0x4d] sm:$0x4] %vm3_vm0, %v614_v33   ;;  %1566 = vst.msk [vmem:[%s4051_s1 + $0x6c] sm:$0x8] %vm3_vm0, %v614_v33  }
  0xeb   :  { %1567 = vst.msk [vmem:[%s4051_s1 + $0x8b] sm:$0x10] %vm3_vm0, %v614_v33   ;;  %1568 = vst.msk [vmem:[%s4051_s1 + $0xaa] sm:$0x20] %vm3_vm0, %v614_v33  }
  0xec   :  { %1569 = vst.msk [vmem:[%s4051_s1 + $0xc9] sm:$0x40] %vm3_vm0, %v614_v33   ;;  %1570 = vst.msk [vmem:[%s4051_s1 + $0xe8] sm:$0x80] %vm3_vm0, %v614_v33   ;;  %v1291_v0 = vpop.permute.xlu1 %1290   ;;  %v1270_v1 = vpop.permute.xlu0 %1269  }
  0xed   :  { %1589 = vst.msk [vmem:[%s4051_s1 + $0x110] sm:$0x1] %vm3_vm0, %v676_v34   ;;  %1590 = vst.msk [vmem:[%s4051_s1 + $0x12f] sm:$0x2] %vm3_vm0, %v676_v34  }
  0xee   :  { %1591 = vst.msk [vmem:[%s4051_s1 + $0x14e] sm:$0x4] %vm3_vm0, %v676_v34   ;;  %1592 = vst.msk [vmem:[%s4051_s1 + $0x16d] sm:$0x8] %vm3_vm0, %v676_v34  }
  0xef   :  { %1593 = vst.msk [vmem:[%s4051_s1 + $0x18c] sm:$0x10] %vm3_vm0, %v676_v34   ;;  %1594 = vst.msk [vmem:[%s4051_s1 + $0x1ab] sm:$0x20] %vm3_vm0, %v676_v34  }
  0xf0   :  { %1595 = vst.msk [vmem:[%s4051_s1 + $0x1ca] sm:$0x40] %vm3_vm0, %v676_v34   ;;  %1596 = vst.msk [vmem:[%s4051_s1 + $0x1e9] sm:$0x80] %vm3_vm0, %v676_v34  }
  0xf1   :  { %1580 = vst.msk [vmem:[%s4051_s1 + $0x10] sm:$0x1] %vm3_vm0, %v655_v35   ;;  %1581 = vst.msk [vmem:[%s4051_s1 + $0x2f] sm:$0x2] %vm3_vm0, %v655_v35  }
  0xf2   :  { %1582 = vst.msk [vmem:[%s4051_s1 + $0x4e] sm:$0x4] %vm3_vm0, %v655_v35   ;;  %1583 = vst.msk [vmem:[%s4051_s1 + $0x6d] sm:$0x8] %vm3_vm0, %v655_v35  }
  0xf3   :  { %1584 = vst.msk [vmem:[%s4051_s1 + $0x8c] sm:$0x10] %vm3_vm0, %v655_v35   ;;  %1585 = vst.msk [vmem:[%s4051_s1 + $0xab] sm:$0x20] %vm3_vm0, %v655_v35  }
  0xf4   :  { %1586 = vst.msk [vmem:[%s4051_s1 + $0xca] sm:$0x40] %vm3_vm0, %v655_v35   ;;  %1587 = vst.msk [vmem:[%s4051_s1 + $0xe9] sm:$0x80] %vm3_vm0, %v655_v35  }
  0xf5   :  { %1606 = vst.msk [vmem:[%s4051_s1 + $0x111] sm:$0x1] %vm3_vm0, %v717_v36   ;;  %1607 = vst.msk [vmem:[%s4051_s1 + $0x130] sm:$0x2] %vm3_vm0, %v717_v36  }
  0xf6   :  { %1608 = vst.msk [vmem:[%s4051_s1 + $0x14f] sm:$0x4] %vm3_vm0, %v717_v36   ;;  %1609 = vst.msk [vmem:[%s4051_s1 + $0x16e] sm:$0x8] %vm3_vm0, %v717_v36  }
  0xf7   :  { %1610 = vst.msk [vmem:[%s4051_s1 + $0x18d] sm:$0x10] %vm3_vm0, %v717_v36   ;;  %1611 = vst.msk [vmem:[%s4051_s1 + $0x1ac] sm:$0x20] %vm3_vm0, %v717_v36  }
  0xf8   :  { %1612 = vst.msk [vmem:[%s4051_s1 + $0x1cb] sm:$0x40] %vm3_vm0, %v717_v36   ;;  %1613 = vst.msk [vmem:[%s4051_s1 + $0x1ea] sm:$0x80] %vm3_vm0, %v717_v36  }
  0xf9   :  { %1597 = vst.msk [vmem:[%s4051_s1 + $0x11] sm:$0x1] %vm3_vm0, %v696_v37   ;;  %1598 = vst.msk [vmem:[%s4051_s1 + $0x30] sm:$0x2] %vm3_vm0, %v696_v37  }
  0xfa   :  { %1599 = vst.msk [vmem:[%s4051_s1 + $0x4f] sm:$0x4] %vm3_vm0, %v696_v37   ;;  %1600 = vst.msk [vmem:[%s4051_s1 + $0x6e] sm:$0x8] %vm3_vm0, %v696_v37  }
  0xfb   :  { %1601 = vst.msk [vmem:[%s4051_s1 + $0x8d] sm:$0x10] %vm3_vm0, %v696_v37   ;;  %1602 = vst.msk [vmem:[%s4051_s1 + $0xac] sm:$0x20] %vm3_vm0, %v696_v37  }
  0xfc   :  { %1603 = vst.msk [vmem:[%s4051_s1 + $0xcb] sm:$0x40] %vm3_vm0, %v696_v37   ;;  %1604 = vst.msk [vmem:[%s4051_s1 + $0xea] sm:$0x80] %vm3_vm0, %v696_v37  }
  0xfd   :  { %1623 = vst.msk [vmem:[%s4051_s1 + $0x112] sm:$0x1] %vm3_vm0, %v758_v38   ;;  %1624 = vst.msk [vmem:[%s4051_s1 + $0x131] sm:$0x2] %vm3_vm0, %v758_v38  }
  0xfe   :  { %1625 = vst.msk [vmem:[%s4051_s1 + $0x150] sm:$0x4] %vm3_vm0, %v758_v38   ;;  %1626 = vst.msk [vmem:[%s4051_s1 + $0x16f] sm:$0x8] %vm3_vm0, %v758_v38  }
  0xff   :  { %1627 = vst.msk [vmem:[%s4051_s1 + $0x18e] sm:$0x10] %vm3_vm0, %v758_v38   ;;  %1628 = vst.msk [vmem:[%s4051_s1 + $0x1ad] sm:$0x20] %vm3_vm0, %v758_v38  }
 0x100   :  { %1629 = vst.msk [vmem:[%s4051_s1 + $0x1cc] sm:$0x40] %vm3_vm0, %v758_v38   ;;  %1630 = vst.msk [vmem:[%s4051_s1 + $0x1eb] sm:$0x80] %vm3_vm0, %v758_v38  }
 0x101   :  { %1614 = vst.msk [vmem:[%s4051_s1 + $0x12] sm:$0x1] %vm3_vm0, %v737_v39   ;;  %1615 = vst.msk [vmem:[%s4051_s1 + $0x31] sm:$0x2] %vm3_vm0, %v737_v39  }
 0x102   :  { %1616 = vst.msk [vmem:[%s4051_s1 + $0x50] sm:$0x4] %vm3_vm0, %v737_v39   ;;  %1617 = vst.msk [vmem:[%s4051_s1 + $0x6f] sm:$0x8] %vm3_vm0, %v737_v39  }
 0x103   :  { %1618 = vst.msk [vmem:[%s4051_s1 + $0x8e] sm:$0x10] %vm3_vm0, %v737_v39   ;;  %1619 = vst.msk [vmem:[%s4051_s1 + $0xad] sm:$0x20] %vm3_vm0, %v737_v39  }
 0x104   :  { %1620 = vst.msk [vmem:[%s4051_s1 + $0xcc] sm:$0x40] %vm3_vm0, %v737_v39   ;;  %1621 = vst.msk [vmem:[%s4051_s1 + $0xeb] sm:$0x80] %vm3_vm0, %v737_v39  }
 0x105   :  { %1640 = vst.msk [vmem:[%s4051_s1 + $0x113] sm:$0x1] %vm3_vm0, %v799_v40   ;;  %1641 = vst.msk [vmem:[%s4051_s1 + $0x132] sm:$0x2] %vm3_vm0, %v799_v40  }
 0x106   :  { %1642 = vst.msk [vmem:[%s4051_s1 + $0x151] sm:$0x4] %vm3_vm0, %v799_v40   ;;  %1643 = vst.msk [vmem:[%s4051_s1 + $0x170] sm:$0x8] %vm3_vm0, %v799_v40  }
 0x107   :  { %1644 = vst.msk [vmem:[%s4051_s1 + $0x18f] sm:$0x10] %vm3_vm0, %v799_v40   ;;  %1645 = vst.msk [vmem:[%s4051_s1 + $0x1ae] sm:$0x20] %vm3_vm0, %v799_v40  }
 0x108   :  { %1646 = vst.msk [vmem:[%s4051_s1 + $0x1cd] sm:$0x40] %vm3_vm0, %v799_v40   ;;  %1647 = vst.msk [vmem:[%s4051_s1 + $0x1ec] sm:$0x80] %vm3_vm0, %v799_v40  }
 0x109   :  { %1631 = vst.msk [vmem:[%s4051_s1 + $0x13] sm:$0x1] %vm3_vm0, %v778_v41   ;;  %1632 = vst.msk [vmem:[%s4051_s1 + $0x32] sm:$0x2] %vm3_vm0, %v778_v41  }
 0x10a   :  { %1633 = vst.msk [vmem:[%s4051_s1 + $0x51] sm:$0x4] %vm3_vm0, %v778_v41   ;;  %1634 = vst.msk [vmem:[%s4051_s1 + $0x70] sm:$0x8] %vm3_vm0, %v778_v41  }
 0x10b   :  { %1635 = vst.msk [vmem:[%s4051_s1 + $0x8f] sm:$0x10] %vm3_vm0, %v778_v41   ;;  %1636 = vst.msk [vmem:[%s4051_s1 + $0xae] sm:$0x20] %vm3_vm0, %v778_v41  }
 0x10c   :  { %1637 = vst.msk [vmem:[%s4051_s1 + $0xcd] sm:$0x40] %vm3_vm0, %v778_v41   ;;  %1638 = vst.msk [vmem:[%s4051_s1 + $0xec] sm:$0x80] %vm3_vm0, %v778_v41  }
 0x10d   :  { %1657 = vst.msk [vmem:[%s4051_s1 + $0x114] sm:$0x1] %vm3_vm0, %v840_v42   ;;  %1658 = vst.msk [vmem:[%s4051_s1 + $0x133] sm:$0x2] %vm3_vm0, %v840_v42  }
 0x10e   :  { %1659 = vst.msk [vmem:[%s4051_s1 + $0x152] sm:$0x4] %vm3_vm0, %v840_v42   ;;  %1660 = vst.msk [vmem:[%s4051_s1 + $0x171] sm:$0x8] %vm3_vm0, %v840_v42  }
 0x10f   :  { %1661 = vst.msk [vmem:[%s4051_s1 + $0x190] sm:$0x10] %vm3_vm0, %v840_v42   ;;  %1662 = vst.msk [vmem:[%s4051_s1 + $0x1af] sm:$0x20] %vm3_vm0, %v840_v42  }
 0x110   :  { %1663 = vst.msk [vmem:[%s4051_s1 + $0x1ce] sm:$0x40] %vm3_vm0, %v840_v42   ;;  %1664 = vst.msk [vmem:[%s4051_s1 + $0x1ed] sm:$0x80] %vm3_vm0, %v840_v42  }
 0x111   :  { %1648 = vst.msk [vmem:[%s4051_s1 + $0x14] sm:$0x1] %vm3_vm0, %v819_v43   ;;  %1649 = vst.msk [vmem:[%s4051_s1 + $0x33] sm:$0x2] %vm3_vm0, %v819_v43  }
 0x112   :  { %1650 = vst.msk [vmem:[%s4051_s1 + $0x52] sm:$0x4] %vm3_vm0, %v819_v43   ;;  %1651 = vst.msk [vmem:[%s4051_s1 + $0x71] sm:$0x8] %vm3_vm0, %v819_v43  }
 0x113   :  { %1652 = vst.msk [vmem:[%s4051_s1 + $0x90] sm:$0x10] %vm3_vm0, %v819_v43   ;;  %1653 = vst.msk [vmem:[%s4051_s1 + $0xaf] sm:$0x20] %vm3_vm0, %v819_v43  }
 0x114   :  { %1654 = vst.msk [vmem:[%s4051_s1 + $0xce] sm:$0x40] %vm3_vm0, %v819_v43   ;;  %1655 = vst.msk [vmem:[%s4051_s1 + $0xed] sm:$0x80] %vm3_vm0, %v819_v43  }
 0x115   :  { %1674 = vst.msk [vmem:[%s4051_s1 + $0x115] sm:$0x1] %vm3_vm0, %v881_v44   ;;  %1675 = vst.msk [vmem:[%s4051_s1 + $0x134] sm:$0x2] %vm3_vm0, %v881_v44  }
 0x116   :  { %1676 = vst.msk [vmem:[%s4051_s1 + $0x153] sm:$0x4] %vm3_vm0, %v881_v44   ;;  %1677 = vst.msk [vmem:[%s4051_s1 + $0x172] sm:$0x8] %vm3_vm0, %v881_v44  }
 0x117   :  { %1678 = vst.msk [vmem:[%s4051_s1 + $0x191] sm:$0x10] %vm3_vm0, %v881_v44   ;;  %1679 = vst.msk [vmem:[%s4051_s1 + $0x1b0] sm:$0x20] %vm3_vm0, %v881_v44  }
 0x118   :  { %1680 = vst.msk [vmem:[%s4051_s1 + $0x1cf] sm:$0x40] %vm3_vm0, %v881_v44   ;;  %1681 = vst.msk [vmem:[%s4051_s1 + $0x1ee] sm:$0x80] %vm3_vm0, %v881_v44  }
 0x119   :  { %1665 = vst.msk [vmem:[%s4051_s1 + $0x15] sm:$0x1] %vm3_vm0, %v860_v45   ;;  %1666 = vst.msk [vmem:[%s4051_s1 + $0x34] sm:$0x2] %vm3_vm0, %v860_v45  }
 0x11a   :  { %1667 = vst.msk [vmem:[%s4051_s1 + $0x53] sm:$0x4] %vm3_vm0, %v860_v45   ;;  %1668 = vst.msk [vmem:[%s4051_s1 + $0x72] sm:$0x8] %vm3_vm0, %v860_v45  }
 0x11b   :  { %1669 = vst.msk [vmem:[%s4051_s1 + $0x91] sm:$0x10] %vm3_vm0, %v860_v45   ;;  %1670 = vst.msk [vmem:[%s4051_s1 + $0xb0] sm:$0x20] %vm3_vm0, %v860_v45  }
 0x11c   :  { %1671 = vst.msk [vmem:[%s4051_s1 + $0xcf] sm:$0x40] %vm3_vm0, %v860_v45   ;;  %1672 = vst.msk [vmem:[%s4051_s1 + $0xee] sm:$0x80] %vm3_vm0, %v860_v45  }
 0x11d   :  { %1691 = vst.msk [vmem:[%s4051_s1 + $0x116] sm:$0x1] %vm3_vm0, %v922_v46   ;;  %1692 = vst.msk [vmem:[%s4051_s1 + $0x135] sm:$0x2] %vm3_vm0, %v922_v46  }
 0x11e   :  { %1693 = vst.msk [vmem:[%s4051_s1 + $0x154] sm:$0x4] %vm3_vm0, %v922_v46   ;;  %1694 = vst.msk [vmem:[%s4051_s1 + $0x173] sm:$0x8] %vm3_vm0, %v922_v46  }
 0x11f   :  { %1695 = vst.msk [vmem:[%s4051_s1 + $0x192] sm:$0x10] %vm3_vm0, %v922_v46   ;;  %1696 = vst.msk [vmem:[%s4051_s1 + $0x1b1] sm:$0x20] %vm3_vm0, %v922_v46  }
 0x120   :  { %1697 = vst.msk [vmem:[%s4051_s1 + $0x1d0] sm:$0x40] %vm3_vm0, %v922_v46   ;;  %1698 = vst.msk [vmem:[%s4051_s1 + $0x1ef] sm:$0x80] %vm3_vm0, %v922_v46  }
 0x121   :  { %1682 = vst.msk [vmem:[%s4051_s1 + $0x16] sm:$0x1] %vm3_vm0, %v901_v47   ;;  %1683 = vst.msk [vmem:[%s4051_s1 + $0x35] sm:$0x2] %vm3_vm0, %v901_v47  }
 0x122   :  { %1684 = vst.msk [vmem:[%s4051_s1 + $0x54] sm:$0x4] %vm3_vm0, %v901_v47   ;;  %1685 = vst.msk [vmem:[%s4051_s1 + $0x73] sm:$0x8] %vm3_vm0, %v901_v47  }
 0x123   :  { %1686 = vst.msk [vmem:[%s4051_s1 + $0x92] sm:$0x10] %vm3_vm0, %v901_v47   ;;  %1687 = vst.msk [vmem:[%s4051_s1 + $0xb1] sm:$0x20] %vm3_vm0, %v901_v47  }
 0x124   :  { %1688 = vst.msk [vmem:[%s4051_s1 + $0xd0] sm:$0x40] %vm3_vm0, %v901_v47   ;;  %1689 = vst.msk [vmem:[%s4051_s1 + $0xef] sm:$0x80] %vm3_vm0, %v901_v47  }
 0x125   :  { %1708 = vst.msk [vmem:[%s4051_s1 + $0x117] sm:$0x1] %vm3_vm0, %v963_v48   ;;  %1709 = vst.msk [vmem:[%s4051_s1 + $0x136] sm:$0x2] %vm3_vm0, %v963_v48  }
 0x126   :  { %1710 = vst.msk [vmem:[%s4051_s1 + $0x155] sm:$0x4] %vm3_vm0, %v963_v48   ;;  %1711 = vst.msk [vmem:[%s4051_s1 + $0x174] sm:$0x8] %vm3_vm0, %v963_v48  }
 0x127   :  { %1712 = vst.msk [vmem:[%s4051_s1 + $0x193] sm:$0x10] %vm3_vm0, %v963_v48   ;;  %1713 = vst.msk [vmem:[%s4051_s1 + $0x1b2] sm:$0x20] %vm3_vm0, %v963_v48  }
 0x128   :  { %1714 = vst.msk [vmem:[%s4051_s1 + $0x1d1] sm:$0x40] %vm3_vm0, %v963_v48   ;;  %1715 = vst.msk [vmem:[%s4051_s1 + $0x1f0] sm:$0x80] %vm3_vm0, %v963_v48  }
 0x129   :  { %1699 = vst.msk [vmem:[%s4051_s1 + $0x17] sm:$0x1] %vm3_vm0, %v942_v49   ;;  %1700 = vst.msk [vmem:[%s4051_s1 + $0x36] sm:$0x2] %vm3_vm0, %v942_v49  }
 0x12a   :  { %1701 = vst.msk [vmem:[%s4051_s1 + $0x55] sm:$0x4] %vm3_vm0, %v942_v49   ;;  %1702 = vst.msk [vmem:[%s4051_s1 + $0x74] sm:$0x8] %vm3_vm0, %v942_v49  }
 0x12b   :  { %1703 = vst.msk [vmem:[%s4051_s1 + $0x93] sm:$0x10] %vm3_vm0, %v942_v49   ;;  %1704 = vst.msk [vmem:[%s4051_s1 + $0xb2] sm:$0x20] %vm3_vm0, %v942_v49  }
 0x12c   :  { %1705 = vst.msk [vmem:[%s4051_s1 + $0xd1] sm:$0x40] %vm3_vm0, %v942_v49   ;;  %1706 = vst.msk [vmem:[%s4051_s1 + $0xf0] sm:$0x80] %vm3_vm0, %v942_v49  }
 0x12d   :  { %1725 = vst.msk [vmem:[%s4051_s1 + $0x118] sm:$0x1] %vm3_vm0, %v1004_v50   ;;  %1726 = vst.msk [vmem:[%s4051_s1 + $0x137] sm:$0x2] %vm3_vm0, %v1004_v50  }
 0x12e   :  { %1727 = vst.msk [vmem:[%s4051_s1 + $0x156] sm:$0x4] %vm3_vm0, %v1004_v50   ;;  %1728 = vst.msk [vmem:[%s4051_s1 + $0x175] sm:$0x8] %vm3_vm0, %v1004_v50  }
 0x12f   :  { %1729 = vst.msk [vmem:[%s4051_s1 + $0x194] sm:$0x10] %vm3_vm0, %v1004_v50   ;;  %1730 = vst.msk [vmem:[%s4051_s1 + $0x1b3] sm:$0x20] %vm3_vm0, %v1004_v50  }
 0x130   :  { %1731 = vst.msk [vmem:[%s4051_s1 + $0x1d2] sm:$0x40] %vm3_vm0, %v1004_v50   ;;  %1732 = vst.msk [vmem:[%s4051_s1 + $0x1f1] sm:$0x80] %vm3_vm0, %v1004_v50  }
 0x131   :  { %1716 = vst.msk [vmem:[%s4051_s1 + $0x18] sm:$0x1] %vm3_vm0, %v983_v51   ;;  %1717 = vst.msk [vmem:[%s4051_s1 + $0x37] sm:$0x2] %vm3_vm0, %v983_v51  }
 0x132   :  { %1718 = vst.msk [vmem:[%s4051_s1 + $0x56] sm:$0x4] %vm3_vm0, %v983_v51   ;;  %1719 = vst.msk [vmem:[%s4051_s1 + $0x75] sm:$0x8] %vm3_vm0, %v983_v51  }
 0x133   :  { %1720 = vst.msk [vmem:[%s4051_s1 + $0x94] sm:$0x10] %vm3_vm0, %v983_v51   ;;  %1721 = vst.msk [vmem:[%s4051_s1 + $0xb3] sm:$0x20] %vm3_vm0, %v983_v51  }
 0x134   :  { %1722 = vst.msk [vmem:[%s4051_s1 + $0xd2] sm:$0x40] %vm3_vm0, %v983_v51   ;;  %1723 = vst.msk [vmem:[%s4051_s1 + $0xf1] sm:$0x80] %vm3_vm0, %v983_v51  }
 0x135   :  { %1742 = vst.msk [vmem:[%s4051_s1 + $0x119] sm:$0x1] %vm3_vm0, %v1045_v52   ;;  %1743 = vst.msk [vmem:[%s4051_s1 + $0x138] sm:$0x2] %vm3_vm0, %v1045_v52  }
 0x136   :  { %1744 = vst.msk [vmem:[%s4051_s1 + $0x157] sm:$0x4] %vm3_vm0, %v1045_v52   ;;  %1745 = vst.msk [vmem:[%s4051_s1 + $0x176] sm:$0x8] %vm3_vm0, %v1045_v52  }
 0x137   :  { %1746 = vst.msk [vmem:[%s4051_s1 + $0x195] sm:$0x10] %vm3_vm0, %v1045_v52   ;;  %1747 = vst.msk [vmem:[%s4051_s1 + $0x1b4] sm:$0x20] %vm3_vm0, %v1045_v52  }
 0x138   :  { %1748 = vst.msk [vmem:[%s4051_s1 + $0x1d3] sm:$0x40] %vm3_vm0, %v1045_v52   ;;  %1749 = vst.msk [vmem:[%s4051_s1 + $0x1f2] sm:$0x80] %vm3_vm0, %v1045_v52  }
 0x139   :  { %1733 = vst.msk [vmem:[%s4051_s1 + $0x19] sm:$0x1] %vm3_vm0, %v1024_v53   ;;  %1734 = vst.msk [vmem:[%s4051_s1 + $0x38] sm:$0x2] %vm3_vm0, %v1024_v53  }
 0x13a   :  { %1735 = vst.msk [vmem:[%s4051_s1 + $0x57] sm:$0x4] %vm3_vm0, %v1024_v53   ;;  %1736 = vst.msk [vmem:[%s4051_s1 + $0x76] sm:$0x8] %vm3_vm0, %v1024_v53  }
 0x13b   :  { %1737 = vst.msk [vmem:[%s4051_s1 + $0x95] sm:$0x10] %vm3_vm0, %v1024_v53   ;;  %1738 = vst.msk [vmem:[%s4051_s1 + $0xb4] sm:$0x20] %vm3_vm0, %v1024_v53  }
 0x13c   :  { %1739 = vst.msk [vmem:[%s4051_s1 + $0xd3] sm:$0x40] %vm3_vm0, %v1024_v53   ;;  %1740 = vst.msk [vmem:[%s4051_s1 + $0xf2] sm:$0x80] %vm3_vm0, %v1024_v53  }
 0x13d   :  { %1759 = vst.msk [vmem:[%s4051_s1 + $0x11a] sm:$0x1] %vm3_vm0, %v1086_v54   ;;  %1760 = vst.msk [vmem:[%s4051_s1 + $0x139] sm:$0x2] %vm3_vm0, %v1086_v54  }
 0x13e   :  { %1761 = vst.msk [vmem:[%s4051_s1 + $0x158] sm:$0x4] %vm3_vm0, %v1086_v54   ;;  %1762 = vst.msk [vmem:[%s4051_s1 + $0x177] sm:$0x8] %vm3_vm0, %v1086_v54  }
 0x13f   :  { %1763 = vst.msk [vmem:[%s4051_s1 + $0x196] sm:$0x10] %vm3_vm0, %v1086_v54   ;;  %1764 = vst.msk [vmem:[%s4051_s1 + $0x1b5] sm:$0x20] %vm3_vm0, %v1086_v54  }
 0x140   :  { %1765 = vst.msk [vmem:[%s4051_s1 + $0x1d4] sm:$0x40] %vm3_vm0, %v1086_v54   ;;  %1766 = vst.msk [vmem:[%s4051_s1 + $0x1f3] sm:$0x80] %vm3_vm0, %v1086_v54  }
 0x141   :  { %1750 = vst.msk [vmem:[%s4051_s1 + $0x1a] sm:$0x1] %vm3_vm0, %v1065_v55   ;;  %1751 = vst.msk [vmem:[%s4051_s1 + $0x39] sm:$0x2] %vm3_vm0, %v1065_v55  }
 0x142   :  { %1752 = vst.msk [vmem:[%s4051_s1 + $0x58] sm:$0x4] %vm3_vm0, %v1065_v55   ;;  %1753 = vst.msk [vmem:[%s4051_s1 + $0x77] sm:$0x8] %vm3_vm0, %v1065_v55  }
 0x143   :  { %1754 = vst.msk [vmem:[%s4051_s1 + $0x96] sm:$0x10] %vm3_vm0, %v1065_v55   ;;  %1755 = vst.msk [vmem:[%s4051_s1 + $0xb5] sm:$0x20] %vm3_vm0, %v1065_v55  }
 0x144   :  { %1756 = vst.msk [vmem:[%s4051_s1 + $0xd4] sm:$0x40] %vm3_vm0, %v1065_v55   ;;  %1757 = vst.msk [vmem:[%s4051_s1 + $0xf3] sm:$0x80] %vm3_vm0, %v1065_v55  }
 0x145   :  { %1776 = vst.msk [vmem:[%s4051_s1 + $0x11b] sm:$0x1] %vm3_vm0, %v1127_v56   ;;  %1777 = vst.msk [vmem:[%s4051_s1 + $0x13a] sm:$0x2] %vm3_vm0, %v1127_v56  }
 0x146   :  { %1778 = vst.msk [vmem:[%s4051_s1 + $0x159] sm:$0x4] %vm3_vm0, %v1127_v56   ;;  %1779 = vst.msk [vmem:[%s4051_s1 + $0x178] sm:$0x8] %vm3_vm0, %v1127_v56  }
 0x147   :  { %1780 = vst.msk [vmem:[%s4051_s1 + $0x197] sm:$0x10] %vm3_vm0, %v1127_v56   ;;  %1781 = vst.msk [vmem:[%s4051_s1 + $0x1b6] sm:$0x20] %vm3_vm0, %v1127_v56  }
 0x148   :  { %1782 = vst.msk [vmem:[%s4051_s1 + $0x1d5] sm:$0x40] %vm3_vm0, %v1127_v56   ;;  %1783 = vst.msk [vmem:[%s4051_s1 + $0x1f4] sm:$0x80] %vm3_vm0, %v1127_v56  }
 0x149   :  { %1767 = vst.msk [vmem:[%s4051_s1 + $0x1b] sm:$0x1] %vm3_vm0, %v1106_v57   ;;  %1768 = vst.msk [vmem:[%s4051_s1 + $0x3a] sm:$0x2] %vm3_vm0, %v1106_v57  }
 0x14a   :  { %1769 = vst.msk [vmem:[%s4051_s1 + $0x59] sm:$0x4] %vm3_vm0, %v1106_v57   ;;  %1770 = vst.msk [vmem:[%s4051_s1 + $0x78] sm:$0x8] %vm3_vm0, %v1106_v57  }
 0x14b   :  { %1771 = vst.msk [vmem:[%s4051_s1 + $0x97] sm:$0x10] %vm3_vm0, %v1106_v57   ;;  %1772 = vst.msk [vmem:[%s4051_s1 + $0xb6] sm:$0x20] %vm3_vm0, %v1106_v57  }
 0x14c   :  { %1773 = vst.msk [vmem:[%s4051_s1 + $0xd5] sm:$0x40] %vm3_vm0, %v1106_v57   ;;  %1774 = vst.msk [vmem:[%s4051_s1 + $0xf4] sm:$0x80] %vm3_vm0, %v1106_v57  }
 0x14d   :  { %1793 = vst.msk [vmem:[%s4051_s1 + $0x11c] sm:$0x1] %vm3_vm0, %v1168_v58   ;;  %1794 = vst.msk [vmem:[%s4051_s1 + $0x13b] sm:$0x2] %vm3_vm0, %v1168_v58  }
 0x14e   :  { %1795 = vst.msk [vmem:[%s4051_s1 + $0x15a] sm:$0x4] %vm3_vm0, %v1168_v58   ;;  %1796 = vst.msk [vmem:[%s4051_s1 + $0x179] sm:$0x8] %vm3_vm0, %v1168_v58  }
 0x14f   :  { %1797 = vst.msk [vmem:[%s4051_s1 + $0x198] sm:$0x10] %vm3_vm0, %v1168_v58   ;;  %1798 = vst.msk [vmem:[%s4051_s1 + $0x1b7] sm:$0x20] %vm3_vm0, %v1168_v58  }
 0x150   :  { %1799 = vst.msk [vmem:[%s4051_s1 + $0x1d6] sm:$0x40] %vm3_vm0, %v1168_v58   ;;  %1800 = vst.msk [vmem:[%s4051_s1 + $0x1f5] sm:$0x80] %vm3_vm0, %v1168_v58  }
 0x151   :  { %1784 = vst.msk [vmem:[%s4051_s1 + $0x1c] sm:$0x1] %vm3_vm0, %v1147_v59   ;;  %1785 = vst.msk [vmem:[%s4051_s1 + $0x3b] sm:$0x2] %vm3_vm0, %v1147_v59  }
 0x152   :  { %1786 = vst.msk [vmem:[%s4051_s1 + $0x5a] sm:$0x4] %vm3_vm0, %v1147_v59   ;;  %1787 = vst.msk [vmem:[%s4051_s1 + $0x79] sm:$0x8] %vm3_vm0, %v1147_v59  }
 0x153   :  { %1788 = vst.msk [vmem:[%s4051_s1 + $0x98] sm:$0x10] %vm3_vm0, %v1147_v59   ;;  %1789 = vst.msk [vmem:[%s4051_s1 + $0xb7] sm:$0x20] %vm3_vm0, %v1147_v59  }
 0x154   :  { %1790 = vst.msk [vmem:[%s4051_s1 + $0xd6] sm:$0x40] %vm3_vm0, %v1147_v59   ;;  %1791 = vst.msk [vmem:[%s4051_s1 + $0xf5] sm:$0x80] %vm3_vm0, %v1147_v59  }
 0x155   :  { %1810 = vst.msk [vmem:[%s4051_s1 + $0x11d] sm:$0x1] %vm3_vm0, %v1209_v60   ;;  %1811 = vst.msk [vmem:[%s4051_s1 + $0x13c] sm:$0x2] %vm3_vm0, %v1209_v60  }
 0x156   :  { %1812 = vst.msk [vmem:[%s4051_s1 + $0x15b] sm:$0x4] %vm3_vm0, %v1209_v60   ;;  %1813 = vst.msk [vmem:[%s4051_s1 + $0x17a] sm:$0x8] %vm3_vm0, %v1209_v60  }
 0x157   :  { %1814 = vst.msk [vmem:[%s4051_s1 + $0x199] sm:$0x10] %vm3_vm0, %v1209_v60   ;;  %1815 = vst.msk [vmem:[%s4051_s1 + $0x1b8] sm:$0x20] %vm3_vm0, %v1209_v60  }
 0x158   :  { %1816 = vst.msk [vmem:[%s4051_s1 + $0x1d7] sm:$0x40] %vm3_vm0, %v1209_v60   ;;  %1817 = vst.msk [vmem:[%s4051_s1 + $0x1f6] sm:$0x80] %vm3_vm0, %v1209_v60  }
 0x159   :  { %1801 = vst.msk [vmem:[%s4051_s1 + $0x1d] sm:$0x1] %vm3_vm0, %v1188_v61   ;;  %1802 = vst.msk [vmem:[%s4051_s1 + $0x3c] sm:$0x2] %vm3_vm0, %v1188_v61  }
 0x15a   :  { %1803 = vst.msk [vmem:[%s4051_s1 + $0x5b] sm:$0x4] %vm3_vm0, %v1188_v61   ;;  %1804 = vst.msk [vmem:[%s4051_s1 + $0x7a] sm:$0x8] %vm3_vm0, %v1188_v61  }
 0x15b   :  { %1805 = vst.msk [vmem:[%s4051_s1 + $0x99] sm:$0x10] %vm3_vm0, %v1188_v61   ;;  %1806 = vst.msk [vmem:[%s4051_s1 + $0xb8] sm:$0x20] %vm3_vm0, %v1188_v61  }
 0x15c   :  { %1807 = vst.msk [vmem:[%s4051_s1 + $0xd7] sm:$0x40] %vm3_vm0, %v1188_v61   ;;  %1808 = vst.msk [vmem:[%s4051_s1 + $0xf6] sm:$0x80] %vm3_vm0, %v1188_v61  }
 0x15d   :  { %1827 = vst.msk [vmem:[%s4051_s1 + $0x11e] sm:$0x1] %vm3_vm0, %v1250_v62   ;;  %1828 = vst.msk [vmem:[%s4051_s1 + $0x13d] sm:$0x2] %vm3_vm0, %v1250_v62  }
 0x15e   :  { %1829 = vst.msk [vmem:[%s4051_s1 + $0x15c] sm:$0x4] %vm3_vm0, %v1250_v62   ;;  %1830 = vst.msk [vmem:[%s4051_s1 + $0x17b] sm:$0x8] %vm3_vm0, %v1250_v62  }
 0x15f   :  { %1831 = vst.msk [vmem:[%s4051_s1 + $0x19a] sm:$0x10] %vm3_vm0, %v1250_v62   ;;  %1832 = vst.msk [vmem:[%s4051_s1 + $0x1b9] sm:$0x20] %vm3_vm0, %v1250_v62  }
 0x160   :  { %1833 = vst.msk [vmem:[%s4051_s1 + $0x1d8] sm:$0x40] %vm3_vm0, %v1250_v62   ;;  %1834 = vst.msk [vmem:[%s4051_s1 + $0x1f7] sm:$0x80] %vm3_vm0, %v1250_v62  }
 0x161   :  { %1818 = vst.msk [vmem:[%s4051_s1 + $0x1e] sm:$0x1] %vm3_vm0, %v1229_v63   ;;  %1819 = vst.msk [vmem:[%s4051_s1 + $0x3d] sm:$0x2] %vm3_vm0, %v1229_v63  }
 0x162   :  { %1820 = vst.msk [vmem:[%s4051_s1 + $0x5c] sm:$0x4] %vm3_vm0, %v1229_v63   ;;  %1821 = vst.msk [vmem:[%s4051_s1 + $0x7b] sm:$0x8] %vm3_vm0, %v1229_v63  }
 0x163   :  { %1822 = vst.msk [vmem:[%s4051_s1 + $0x9a] sm:$0x10] %vm3_vm0, %v1229_v63   ;;  %1823 = vst.msk [vmem:[%s4051_s1 + $0xb9] sm:$0x20] %vm3_vm0, %v1229_v63  }
 0x164   :  { %1824 = vst.msk [vmem:[%s4051_s1 + $0xd8] sm:$0x40] %vm3_vm0, %v1229_v63   ;;  %1825 = vst.msk [vmem:[%s4051_s1 + $0xf7] sm:$0x80] %vm3_vm0, %v1229_v63  }
 0x165   :  { %1844 = vst.msk [vmem:[%s4051_s1 + $0x11f] sm:$0x1] %vm3_vm0, %v1291_v0   ;;  %1845 = vst.msk [vmem:[%s4051_s1 + $0x13e] sm:$0x2] %vm3_vm0, %v1291_v0  }
 0x166   :  { %1846 = vst.msk [vmem:[%s4051_s1 + $0x15d] sm:$0x4] %vm3_vm0, %v1291_v0   ;;  %1847 = vst.msk [vmem:[%s4051_s1 + $0x17c] sm:$0x8] %vm3_vm0, %v1291_v0  }
 0x167   :  { %1848 = vst.msk [vmem:[%s4051_s1 + $0x19b] sm:$0x10] %vm3_vm0, %v1291_v0   ;;  %1849 = vst.msk [vmem:[%s4051_s1 + $0x1ba] sm:$0x20] %vm3_vm0, %v1291_v0  }
 0x168   :  { %1850 = vst.msk [vmem:[%s4051_s1 + $0x1d9] sm:$0x40] %vm3_vm0, %v1291_v0   ;;  %1851 = vst.msk [vmem:[%s4051_s1 + $0x1f8] sm:$0x80] %vm3_vm0, %v1291_v0  }
 0x169   :  { %1835 = vst.msk [vmem:[%s4051_s1 + $0x1f] sm:$0x1] %vm3_vm0, %v1270_v1   ;;  %1836 = vst.msk [vmem:[%s4051_s1 + $0x3e] sm:$0x2] %vm3_vm0, %v1270_v1  }
 0x16a   :  { %1837 = vst.msk [vmem:[%s4051_s1 + $0x5d] sm:$0x4] %vm3_vm0, %v1270_v1   ;;  %1838 = vst.msk [vmem:[%s4051_s1 + $0x7c] sm:$0x8] %vm3_vm0, %v1270_v1  }
 0x16b   :  { %1839 = vst.msk [vmem:[%s4051_s1 + $0x9b] sm:$0x10] %vm3_vm0, %v1270_v1   ;;  %1840 = vst.msk [vmem:[%s4051_s1 + $0xba] sm:$0x20] %vm3_vm0, %v1270_v1  }
 0x16c   :  { %1841 = vst.msk [vmem:[%s4051_s1 + $0xd9] sm:$0x40] %vm3_vm0, %v1270_v1   ;;  %1842 = vst.msk [vmem:[%s4051_s1 + $0xf8] sm:$0x80] %vm3_vm0, %v1270_v1  }

// kernel: tile.53
= control target key start
LH: loop header
LB: loop body
LE: loop exit
PB: predicated region body
PF: predicated region fallthrough
CT: control target
= control target key end

     0   :  { %s28_s0 = inlined_call_operand.vmem [shape: f32[64], index: 0, kind: input, shape index: {}]   ;;  %s29_s1 = inlined_call_operand.vmem [shape: f32[16,64], index: 1, kind: output, shape index: {}]  }
   0x1   :  { %v4_v0 = vld [vmem:[%s28_s0] ss:$0 sm:$0xff] }
   0x2   :  { %5 = vst [vmem:[%s29_s1] sm:$0xff] %v4_v0  ;;  %8 = vst [vmem:[%s29_s1 + $0x8] sm:$0xff] %v4_v0 }

// kernel: tile.4
= control target key start
LH: loop header
LB: loop body
LE: loop exit
PB: predicated region body
PF: predicated region fallthrough
CT: control target
= control target key end

     0   :  { %s3771_s8 = smov 126   ;;  %s3772_s9 = smov 127   ;;  %vm3_vm0 = vcmask 7168   ;;  %s8092_s0 = inlined_call_operand.vmem [shape: f32[16,64], index: 0, kind: input, shape index: {}]   ;;  %s8093_s1 = inlined_call_operand.vmem [shape: f32[1024,1], index: 1, kind: output, shape index: {}]  }
   0x1   :  { %v3847_v0 = vld [vmem:[%s8092_s0] sm:$0xff]   ;;  %v3854_v1 = vld [vmem:[%s8092_s0 + $0x8] sm:$0xff]   ;;  %s3773_s12 = smov 125   ;;  %s3774_s13 = smov 124  }
   0x2   :  { %80 = vrot.lane.b32.xlu1 %v3847_v0, %s3771_s8  ;;  %39 = vrot.lane.b32.xlu0 %v3847_v0, %s3772_s9  ;;  %s3775_s14 = smov 123   ;;  %s3776_s15 = smov 122   ;;  %v4905_v32 = vld [vmem:[%s8092_s0] sm:$0xff]   ;;  %v4976_v35 = vld [vmem:[%s8092_s0 + $0x8] sm:$0xff]  }
   0x3   :  { %s3777_s16 = smov 121   ;;  %s3778_s17 = smov 120  }
   0x4   :  { %s3779_s18 = smov 119   ;;  %s3780_s19 = smov 118  }
   0x5   :  { %s3781_s20 = smov 117   ;;  %s3782_s21 = smov 116  }
   0x6   :  { %101 = vrot.lane.b32.xlu1 %v3854_v1, %s3771_s8  ;;  %60 = vrot.lane.b32.xlu0 %v3854_v1, %s3772_s9  ;;  %s3783_s22 = smov 115   ;;  %s3784_s23 = smov 114  }
   0x7   :  { %s3785_s24 = smov 113   ;;  %s3786_s25 = smov 112  }
   0x8   :  { %s3787_s26 = smov 111   ;;  %s3788_s27 = smov 110  }
   0x9   :  { %s3789_s28 = smov 109   ;;  %s3790_s29 = smov 108  }
   0xa   :  { %142 = vrot.lane.b32.xlu1 %v3854_v1, %s3773_s12  ;;  %121 = vrot.lane.b32.xlu0 %v3847_v0, %s3773_s12  ;;  %s3791_s30 = smov 107   ;;  %s3792_s2 = smov 106  }
   0xb   :  { %s3793_s3 = smov 105   ;;  %s3794_s4 = smov 104  }
   0xc   :  { %s3795_s5 = smov 103   ;;  %s3796_s6 = smov 102  }
   0xd   :  { %s3797_s7 = smov 101   ;;  %s3798_s8 = smov 100  }
   0xe   :  { %183 = vrot.lane.b32.xlu1 %v3854_v1, %s3774_s13  ;;  %162 = vrot.lane.b32.xlu0 %v3847_v0, %s3774_s13  ;;  %s3799_s9 = smov 99   ;;  %s3800_s13 = smov 98  }
   0xf   :  { %s3807_s12 = smov 91   ;;  %s3814_s11 = smov 84  }
  0x10   :  { %s3820_s10 = smov 78  }
  0x12   :  { %224 = vrot.lane.b32.xlu1 %v3854_v1, %s3775_s14  ;;  %203 = vrot.lane.b32.xlu0 %v3847_v0, %s3775_s14  ;;  %s3821_s14 = smov 77  }
  0x16   :  { %265 = vrot.lane.b32.xlu1 %v3854_v1, %s3776_s15  ;;  %244 = vrot.lane.b32.xlu0 %v3847_v0, %s3776_s15 }
  0x1a   :  { %306 = vrot.lane.b32.xlu1 %v3854_v1, %s3777_s16  ;;  %285 = vrot.lane.b32.xlu0 %v3847_v0, %s3777_s16  ;;  %s3808_s16 = smov 90  }
  0x1e   :  { %347 = vrot.lane.b32.xlu1 %v3854_v1, %s3778_s17  ;;  %326 = vrot.lane.b32.xlu0 %v3847_v0, %s3778_s17  ;;  %s3801_s17 = smov 97  }
  0x22   :  { %388 = vrot.lane.b32.xlu1 %v3854_v1, %s3779_s18  ;;  %367 = vrot.lane.b32.xlu0 %v3847_v0, %s3779_s18  ;;  %s3822_s18 = smov 76  }
  0x26   :  { %429 = vrot.lane.b32.xlu1 %v3854_v1, %s3780_s19  ;;  %408 = vrot.lane.b32.xlu0 %v3847_v0, %s3780_s19 }
  0x2a   :  { %470 = vrot.lane.b32.xlu1 %v3854_v1, %s3781_s20  ;;  %449 = vrot.lane.b32.xlu0 %v3847_v0, %s3781_s20  ;;  %s3809_s20 = smov 89  }
  0x2e   :  { %511 = vrot.lane.b32.xlu1 %v3854_v1, %s3782_s21  ;;  %490 = vrot.lane.b32.xlu0 %v3847_v0, %s3782_s21  ;;  %s3802_s21 = smov 96  }
  0x32   :  { %552 = vrot.lane.b32.xlu1 %v3854_v1, %s3783_s22  ;;  %531 = vrot.lane.b32.xlu0 %v3847_v0, %s3783_s22  ;;  %s3823_s22 = smov 75  }
  0x36   :  { %593 = vrot.lane.b32.xlu1 %v3854_v1, %s3784_s23  ;;  %572 = vrot.lane.b32.xlu0 %v3847_v0, %s3784_s23  ;;  %s3816_s23 = smov 82  }
  0x3a   :  { %634 = vrot.lane.b32.xlu1 %v3854_v1, %s3785_s24  ;;  %613 = vrot.lane.b32.xlu0 %v3847_v0, %s3785_s24  ;;  %s3810_s24 = smov 88  }
  0x3e   :  { %675 = vrot.lane.b32.xlu1 %v3854_v1, %s3786_s25  ;;  %654 = vrot.lane.b32.xlu0 %v3847_v0, %s3786_s25  ;;  %s3803_s25 = smov 95  }
  0x42   :  { %716 = vrot.lane.b32.xlu1 %v3854_v1, %s3787_s26  ;;  %695 = vrot.lane.b32.xlu0 %v3847_v0, %s3787_s26  ;;  %s3824_s26 = smov 74  }
  0x46   :  { %757 = vrot.lane.b32.xlu1 %v3854_v1, %s3788_s27  ;;  %736 = vrot.lane.b32.xlu0 %v3847_v0, %s3788_s27  ;;  %s3817_s27 = smov 81  }
  0x4a   :  { %798 = vrot.lane.b32.xlu1 %v3854_v1, %s3789_s28  ;;  %777 = vrot.lane.b32.xlu0 %v3847_v0, %s3789_s28  ;;  %s3811_s28 = smov 87  }
  0x4e   :  { %839 = vrot.lane.b32.xlu1 %v3854_v1, %s3790_s29  ;;  %818 = vrot.lane.b32.xlu0 %v3847_v0, %s3790_s29  ;;  %s3804_s29 = smov 94  }
  0x52   :  { %880 = vrot.lane.b32.xlu1 %v3854_v1, %s3791_s30  ;;  %859 = vrot.lane.b32.xlu0 %v3847_v0, %s3791_s30  ;;  %s3825_s30 = smov 73  }
  0x56   :  { %921 = vrot.lane.b32.xlu1 %v3854_v1, %s3792_s2  ;;  %900 = vrot.lane.b32.xlu0 %v3847_v0, %s3792_s2  ;;  %s3818_s2 = smov 80  }
  0x5a   :  { %962 = vrot.lane.b32.xlu1 %v3854_v1, %s3793_s3  ;;  %941 = vrot.lane.b32.xlu0 %v3847_v0, %s3793_s3  ;;  %s3812_s3 = smov 86  }
  0x5e   :  { %1003 = vrot.lane.b32.xlu1 %v3854_v1, %s3794_s4  ;;  %982 = vrot.lane.b32.xlu0 %v3847_v0, %s3794_s4  ;;  %s3805_s4 = smov 93  }
  0x62   :  { %1044 = vrot.lane.b32.xlu1 %v3854_v1, %s3795_s5  ;;  %1023 = vrot.lane.b32.xlu0 %v3847_v0, %s3795_s5  ;;  %s3826_s5 = smov 72  }
  0x66   :  { %1085 = vrot.lane.b32.xlu1 %v3854_v1, %s3796_s6  ;;  %1064 = vrot.lane.b32.xlu0 %v3847_v0, %s3796_s6  ;;  %s3819_s6 = smov 79  }
  0x6a   :  { %1126 = vrot.lane.b32.xlu1 %v3854_v1, %s3797_s7  ;;  %1105 = vrot.lane.b32.xlu0 %v3847_v0, %s3797_s7  ;;  %s3813_s7 = smov 85  }
  0x6e   :  { %1167 = vrot.lane.b32.xlu1 %v3854_v1, %s3798_s8  ;;  %1146 = vrot.lane.b32.xlu0 %v3847_v0, %s3798_s8  ;;  %s3806_s8 = smov 92  }
  0x72   :  { %1208 = vrot.lane.b32.xlu1 %v3854_v1, %s3799_s9  ;;  %1187 = vrot.lane.b32.xlu0 %v3847_v0, %s3799_s9  ;;  %s3827_s9 = smov 71  }
  0x74   :  { %v81_v2 = vpop.permute.xlu1 %80   ;;  %v40_v3 = vpop.permute.xlu0 %39  }
  0x75   :  { %2654 = vst.msk [vmem:[%s8093_s1 + $0x2] sm:$0x1] %vm3_vm0, %v81_v2   ;;  %2655 = vst.msk [vmem:[%s8093_s1 + $0x41] sm:$0x2] %vm3_vm0, %v81_v2  }
  0x76   :  { %2656 = vst.msk [vmem:[%s8093_s1 + $0x80] sm:$0x4] %vm3_vm0, %v81_v2   ;;  %2657 = vst.msk [vmem:[%s8093_s1 + $0xbf] sm:$0x8] %vm3_vm0, %v81_v2   ;;  %1249 = vrot.lane.b32.xlu1 %v3854_v1, %s3800_s13  ;;  %1228 = vrot.lane.b32.xlu0 %v3847_v0, %s3800_s13  ;;  %s3828_s13 = smov 70  }
  0x77   :  { %2658 = vst.msk [vmem:[%s8093_s1 + $0xfe] sm:$0x10] %vm3_vm0, %v81_v2   ;;  %2659 = vst.msk [vmem:[%s8093_s1 + $0x13d] sm:$0x20] %vm3_vm0, %v81_v2  }
  0x78   :  { %2660 = vst.msk [vmem:[%s8093_s1 + $0x17c] sm:$0x40] %vm3_vm0, %v81_v2   ;;  %2661 = vst.msk [vmem:[%s8093_s1 + $0x1bb] sm:$0x80] %vm3_vm0, %v81_v2   ;;  %v102_v4 = vpop.permute.xlu1 %101   ;;  %v61_v5 = vpop.permute.xlu0 %60   ;;  %v2_v2 = vld [vmem:[%s8092_s0] sm:$0xff]  }
  0x79   :  { %2637 = vst.msk [vmem:[%s8093_s1 + $0x1] sm:$0x1] %vm3_vm0, %v40_v3   ;;  %2638 = vst.msk [vmem:[%s8093_s1 + $0x40] sm:$0x2] %vm3_vm0, %v40_v3  }
  0x7a   :  { %2639 = vst.msk [vmem:[%s8093_s1 + $0x7f] sm:$0x4] %vm3_vm0, %v40_v3   ;;  %2640 = vst.msk [vmem:[%s8093_s1 + $0xbe] sm:$0x8] %vm3_vm0, %v40_v3   ;;  %1290 = vrot.lane.b32.xlu1 %v3854_v1, %s3801_s17  ;;  %1269 = vrot.lane.b32.xlu0 %v3847_v0, %s3801_s17  ;;  %s3815_s17 = smov 83  }
  0x7b   :  { %2641 = vst.msk [vmem:[%s8093_s1 + $0xfd] sm:$0x10] %vm3_vm0, %v40_v3   ;;  %2642 = vst.msk [vmem:[%s8093_s1 + $0x13c] sm:$0x20] %vm3_vm0, %v40_v3  }
  0x7c   :  { %2643 = vst.msk [vmem:[%s8093_s1 + $0x17b] sm:$0x40] %vm3_vm0, %v40_v3   ;;  %2644 = vst.msk [vmem:[%s8093_s1 + $0x1ba] sm:$0x80] %vm3_vm0, %v40_v3   ;;  %v143_v6 = vpop.permute.xlu1 %142   ;;  %v122_v7 = vpop.permute.xlu0 %121   ;;  %v2628_v3 = vld [vmem:[%s8092_s0 + $0x8] sm:$0xff]  }
  0x7d   :  { %2663 = vst.msk [vmem:[%s8093_s1 + $0x202] sm:$0x1] %vm3_vm0, %v102_v4   ;;  %2664 = vst.msk [vmem:[%s8093_s1 + $0x241] sm:$0x2] %vm3_vm0, %v102_v4  }
  0x7e   :  { %2665 = vst.msk [vmem:[%s8093_s1 + $0x280] sm:$0x4] %vm3_vm0, %v102_v4   ;;  %2666 = vst.msk [vmem:[%s8093_s1 + $0x2bf] sm:$0x8] %vm3_vm0, %v102_v4   ;;  %1331 = vrot.lane.b32.xlu1 %v3854_v1, %s3802_s21  ;;  %1310 = vrot.lane.b32.xlu0 %v3847_v0, %s3802_s21 }
  0x7f   :  { %2667 = vst.msk [vmem:[%s8093_s1 + $0x2fe] sm:$0x10] %vm3_vm0, %v102_v4   ;;  %2668 = vst.msk [vmem:[%s8093_s1 + $0x33d] sm:$0x20] %vm3_vm0, %v102_v4  }
  0x80   :  { %2669 = vst.msk [vmem:[%s8093_s1 + $0x37c] sm:$0x40] %vm3_vm0, %v102_v4   ;;  %2670 = vst.msk [vmem:[%s8093_s1 + $0x3bb] sm:$0x80] %vm3_vm0, %v102_v4   ;;  %v184_v8 = vpop.permute.xlu1 %183   ;;  %v163_v9 = vpop.permute.xlu0 %162  }
  0x81   :  { %2646 = vst.msk [vmem:[%s8093_s1 + $0x201] sm:$0x1] %vm3_vm0, %v61_v5   ;;  %2647 = vst.msk [vmem:[%s8093_s1 + $0x240] sm:$0x2] %vm3_vm0, %v61_v5  }
  0x82   :  { %2648 = vst.msk [vmem:[%s8093_s1 + $0x27f] sm:$0x4] %vm3_vm0, %v61_v5   ;;  %2649 = vst.msk [vmem:[%s8093_s1 + $0x2be] sm:$0x8] %vm3_vm0, %v61_v5   ;;  %1372 = vrot.lane.b32.xlu1 %v3854_v1, %s3803_s25  ;;  %1351 = vrot.lane.b32.xlu0 %v3847_v0, %s3803_s25  ;;  %s3830_s25 = smov 68  }
  0x83   :  { %2650 = vst.msk [vmem:[%s8093_s1 + $0x2fd] sm:$0x10] %vm3_vm0, %v61_v5   ;;  %2651 = vst.msk [vmem:[%s8093_s1 + $0x33c] sm:$0x20] %vm3_vm0, %v61_v5  }
  0x84   :  { %2652 = vst.msk [vmem:[%s8093_s1 + $0x37b] sm:$0x40] %vm3_vm0, %v61_v5   ;;  %2653 = vst.msk [vmem:[%s8093_s1 + $0x3ba] sm:$0x80] %vm3_vm0, %v61_v5   ;;  %v225_v10 = vpop.permute.xlu1 %224   ;;  %v204_v11 = vpop.permute.xlu0 %203  }
  0x85   :  { %2680 = vst.msk [vmem:[%s8093_s1 + $0x203] sm:$0x1] %vm3_vm0, %v143_v6   ;;  %2681 = vst.msk [vmem:[%s8093_s1 + $0x242] sm:$0x2] %vm3_vm0, %v143_v6  }
  0x86   :  { %2682 = vst.msk [vmem:[%s8093_s1 + $0x281] sm:$0x4] %vm3_vm0, %v143_v6   ;;  %2683 = vst.msk [vmem:[%s8093_s1 + $0x2c0] sm:$0x8] %vm3_vm0, %v143_v6   ;;  %1413 = vrot.lane.b32.xlu1 %v3854_v1, %s3804_s29  ;;  %1392 = vrot.lane.b32.xlu0 %v3847_v0, %s3804_s29 }
  0x87   :  { %2684 = vst.msk [vmem:[%s8093_s1 + $0x2ff] sm:$0x10] %vm3_vm0, %v143_v6   ;;  %2685 = vst.msk [vmem:[%s8093_s1 + $0x33e] sm:$0x20] %vm3_vm0, %v143_v6  }
  0x88   :  { %2686 = vst.msk [vmem:[%s8093_s1 + $0x37d] sm:$0x40] %vm3_vm0, %v143_v6   ;;  %2687 = vst.msk [vmem:[%s8093_s1 + $0x3bc] sm:$0x80] %vm3_vm0, %v143_v6   ;;  %v266_v12 = vpop.permute.xlu1 %265   ;;  %v245_v13 = vpop.permute.xlu0 %244  }
  0x89   :  { %2671 = vst.msk [vmem:[%s8093_s1 + $0x3] sm:$0x1] %vm3_vm0, %v122_v7   ;;  %2672 = vst.msk [vmem:[%s8093_s1 + $0x42] sm:$0x2] %vm3_vm0, %v122_v7  }
  0x8a   :  { %2673 = vst.msk [vmem:[%s8093_s1 + $0x81] sm:$0x4] %vm3_vm0, %v122_v7   ;;  %2674 = vst.msk [vmem:[%s8093_s1 + $0xc0] sm:$0x8] %vm3_vm0, %v122_v7   ;;  %1454 = vrot.lane.b32.xlu1 %v3854_v1, %s3805_s4  ;;  %1433 = vrot.lane.b32.xlu0 %v3847_v0, %s3805_s4 }
  0x8b   :  { %2675 = vst.msk [vmem:[%s8093_s1 + $0xff] sm:$0x10] %vm3_vm0, %v122_v7   ;;  %2676 = vst.msk [vmem:[%s8093_s1 + $0x13e] sm:$0x20] %vm3_vm0, %v122_v7  }
  0x8c   :  { %2677 = vst.msk [vmem:[%s8093_s1 + $0x17d] sm:$0x40] %vm3_vm0, %v122_v7   ;;  %2678 = vst.msk [vmem:[%s8093_s1 + $0x1bc] sm:$0x80] %vm3_vm0, %v122_v7   ;;  %v307_v14 = vpop.permute.xlu1 %306   ;;  %v286_v15 = vpop.permute.xlu0 %285  }
  0x8d   :  { %2697 = vst.msk [vmem:[%s8093_s1 + $0x204] sm:$0x1] %vm3_vm0, %v184_v8   ;;  %2698 = vst.msk [vmem:[%s8093_s1 + $0x243] sm:$0x2] %vm3_vm0, %v184_v8  }
  0x8e   :  { %2699 = vst.msk [vmem:[%s8093_s1 + $0x282] sm:$0x4] %vm3_vm0, %v184_v8   ;;  %2700 = vst.msk [vmem:[%s8093_s1 + $0x2c1] sm:$0x8] %vm3_vm0, %v184_v8   ;;  %1495 = vrot.lane.b32.xlu1 %v3854_v1, %s3806_s8  ;;  %1474 = vrot.lane.b32.xlu0 %v3847_v0, %s3806_s8 }
  0x8f   :  { %2701 = vst.msk [vmem:[%s8093_s1 + $0x300] sm:$0x10] %vm3_vm0, %v184_v8   ;;  %2702 = vst.msk [vmem:[%s8093_s1 + $0x33f] sm:$0x20] %vm3_vm0, %v184_v8  }
  0x90   :  { %2703 = vst.msk [vmem:[%s8093_s1 + $0x37e] sm:$0x40] %vm3_vm0, %v184_v8   ;;  %2704 = vst.msk [vmem:[%s8093_s1 + $0x3bd] sm:$0x80] %vm3_vm0, %v184_v8   ;;  %v348_v16 = vpop.permute.xlu1 %347   ;;  %v327_v17 = vpop.permute.xlu0 %326  }
  0x91   :  { %2688 = vst.msk [vmem:[%s8093_s1 + $0x4] sm:$0x1] %vm3_vm0, %v163_v9   ;;  %2689 = vst.msk [vmem:[%s8093_s1 + $0x43] sm:$0x2] %vm3_vm0, %v163_v9  }
  0x92   :  { %2690 = vst.msk [vmem:[%s8093_s1 + $0x82] sm:$0x4] %vm3_vm0, %v163_v9   ;;  %2691 = vst.msk [vmem:[%s8093_s1 + $0xc1] sm:$0x8] %vm3_vm0, %v163_v9   ;;  %1536 = vrot.lane.b32.xlu1 %v3854_v1, %s3807_s12  ;;  %1515 = vrot.lane.b32.xlu0 %v3847_v0, %s3807_s12 }
  0x93   :  { %2692 = vst.msk [vmem:[%s8093_s1 + $0x100] sm:$0x10] %vm3_vm0, %v163_v9   ;;  %2693 = vst.msk [vmem:[%s8093_s1 + $0x13f] sm:$0x20] %vm3_vm0, %v163_v9  }
  0x94   :  { %2694 = vst.msk [vmem:[%s8093_s1 + $0x17e] sm:$0x40] %vm3_vm0, %v163_v9   ;;  %2695 = vst.msk [vmem:[%s8093_s1 + $0x1bd] sm:$0x80] %vm3_vm0, %v163_v9   ;;  %v389_v18 = vpop.permute.xlu1 %388   ;;  %v368_v19 = vpop.permute.xlu0 %367  }
  0x95   :  { %2714 = vst.msk [vmem:[%s8093_s1 + $0x205] sm:$0x1] %vm3_vm0, %v225_v10   ;;  %2715 = vst.msk [vmem:[%s8093_s1 + $0x244] sm:$0x2] %vm3_vm0, %v225_v10  }
  0x96   :  { %2716 = vst.msk [vmem:[%s8093_s1 + $0x283] sm:$0x4] %vm3_vm0, %v225_v10   ;;  %2717 = vst.msk [vmem:[%s8093_s1 + $0x2c2] sm:$0x8] %vm3_vm0, %v225_v10   ;;  %1577 = vrot.lane.b32.xlu1 %v3854_v1, %s3808_s16  ;;  %1556 = vrot.lane.b32.xlu0 %v3847_v0, %s3808_s16 }
  0x97   :  { %2718 = vst.msk [vmem:[%s8093_s1 + $0x301] sm:$0x10] %vm3_vm0, %v225_v10   ;;  %2719 = vst.msk [vmem:[%s8093_s1 + $0x340] sm:$0x20] %vm3_vm0, %v225_v10  }
  0x98   :  { %2720 = vst.msk [vmem:[%s8093_s1 + $0x37f] sm:$0x40] %vm3_vm0, %v225_v10   ;;  %2721 = vst.msk [vmem:[%s8093_s1 + $0x3be] sm:$0x80] %vm3_vm0, %v225_v10   ;;  %v430_v20 = vpop.permute.xlu1 %429   ;;  %v409_v21 = vpop.permute.xlu0 %408  }
  0x99   :  { %2705 = vst.msk [vmem:[%s8093_s1 + $0x5] sm:$0x1] %vm3_vm0, %v204_v11   ;;  %2706 = vst.msk [vmem:[%s8093_s1 + $0x44] sm:$0x2] %vm3_vm0, %v204_v11  }
  0x9a   :  { %2707 = vst.msk [vmem:[%s8093_s1 + $0x83] sm:$0x4] %vm3_vm0, %v204_v11   ;;  %2708 = vst.msk [vmem:[%s8093_s1 + $0xc2] sm:$0x8] %vm3_vm0, %v204_v11   ;;  %1618 = vrot.lane.b32.xlu1 %v3854_v1, %s3809_s20  ;;  %1597 = vrot.lane.b32.xlu0 %v3847_v0, %s3809_s20 }
  0x9b   :  { %2709 = vst.msk [vmem:[%s8093_s1 + $0x101] sm:$0x10] %vm3_vm0, %v204_v11   ;;  %2710 = vst.msk [vmem:[%s8093_s1 + $0x140] sm:$0x20] %vm3_vm0, %v204_v11  }
  0x9c   :  { %2711 = vst.msk [vmem:[%s8093_s1 + $0x17f] sm:$0x40] %vm3_vm0, %v204_v11   ;;  %2712 = vst.msk [vmem:[%s8093_s1 + $0x1be] sm:$0x80] %vm3_vm0, %v204_v11   ;;  %v471_v22 = vpop.permute.xlu1 %470   ;;  %v450_v23 = vpop.permute.xlu0 %449  }
  0x9d   :  { %2731 = vst.msk [vmem:[%s8093_s1 + $0x206] sm:$0x1] %vm3_vm0, %v266_v12   ;;  %2732 = vst.msk [vmem:[%s8093_s1 + $0x245] sm:$0x2] %vm3_vm0, %v266_v12  }
  0x9e   :  { %2733 = vst.msk [vmem:[%s8093_s1 + $0x284] sm:$0x4] %vm3_vm0, %v266_v12   ;;  %2734 = vst.msk [vmem:[%s8093_s1 + $0x2c3] sm:$0x8] %vm3_vm0, %v266_v12   ;;  %1659 = vrot.lane.b32.xlu1 %v3854_v1, %s3810_s24  ;;  %1638 = vrot.lane.b32.xlu0 %v3847_v0, %s3810_s24 }
  0x9f   :  { %2735 = vst.msk [vmem:[%s8093_s1 + $0x302] sm:$0x10] %vm3_vm0, %v266_v12   ;;  %2736 = vst.msk [vmem:[%s8093_s1 + $0x341] sm:$0x20] %vm3_vm0, %v266_v12  }
  0xa0   :  { %2737 = vst.msk [vmem:[%s8093_s1 + $0x380] sm:$0x40] %vm3_vm0, %v266_v12   ;;  %2738 = vst.msk [vmem:[%s8093_s1 + $0x3bf] sm:$0x80] %vm3_vm0, %v266_v12   ;;  %v512_v24 = vpop.permute.xlu1 %511   ;;  %v491_v25 = vpop.permute.xlu0 %490  }
  0xa1   :  { %2722 = vst.msk [vmem:[%s8093_s1 + $0x6] sm:$0x1] %vm3_vm0, %v245_v13   ;;  %2723 = vst.msk [vmem:[%s8093_s1 + $0x45] sm:$0x2] %vm3_vm0, %v245_v13  }
  0xa2   :  { %2724 = vst.msk [vmem:[%s8093_s1 + $0x84] sm:$0x4] %vm3_vm0, %v245_v13   ;;  %2725 = vst.msk [vmem:[%s8093_s1 + $0xc3] sm:$0x8] %vm3_vm0, %v245_v13   ;;  %1700 = vrot.lane.b32.xlu1 %v3854_v1, %s3811_s28  ;;  %1679 = vrot.lane.b32.xlu0 %v3847_v0, %s3811_s28  ;;  %s3831_s28 = smov 67  }
  0xa3   :  { %2726 = vst.msk [vmem:[%s8093_s1 + $0x102] sm:$0x10] %vm3_vm0, %v245_v13   ;;  %2727 = vst.msk [vmem:[%s8093_s1 + $0x141] sm:$0x20] %vm3_vm0, %v245_v13  }
  0xa4   :  { %2728 = vst.msk [vmem:[%s8093_s1 + $0x180] sm:$0x40] %vm3_vm0, %v245_v13   ;;  %2729 = vst.msk [vmem:[%s8093_s1 + $0x1bf] sm:$0x80] %vm3_vm0, %v245_v13   ;;  %v553_v26 = vpop.permute.xlu1 %552   ;;  %v532_v27 = vpop.permute.xlu0 %531  }
  0xa5   :  { %2748 = vst.msk [vmem:[%s8093_s1 + $0x207] sm:$0x1] %vm3_vm0, %v307_v14   ;;  %2749 = vst.msk [vmem:[%s8093_s1 + $0x246] sm:$0x2] %vm3_vm0, %v307_v14  }
  0xa6   :  { %2750 = vst.msk [vmem:[%s8093_s1 + $0x285] sm:$0x4] %vm3_vm0, %v307_v14   ;;  %2751 = vst.msk [vmem:[%s8093_s1 + $0x2c4] sm:$0x8] %vm3_vm0, %v307_v14   ;;  %1741 = vrot.lane.b32.xlu1 %v3854_v1, %s3812_s3  ;;  %1720 = vrot.lane.b32.xlu0 %v3847_v0, %s3812_s3 }
  0xa7   :  { %2752 = vst.msk [vmem:[%s8093_s1 + $0x303] sm:$0x10] %vm3_vm0, %v307_v14   ;;  %2753 = vst.msk [vmem:[%s8093_s1 + $0x342] sm:$0x20] %vm3_vm0, %v307_v14  }
  0xa8   :  { %2754 = vst.msk [vmem:[%s8093_s1 + $0x381] sm:$0x40] %vm3_vm0, %v307_v14   ;;  %2755 = vst.msk [vmem:[%s8093_s1 + $0x3c0] sm:$0x80] %vm3_vm0, %v307_v14   ;;  %v594_v28 = vpop.permute.xlu1 %593   ;;  %v573_v29 = vpop.permute.xlu0 %572  }
  0xa9   :  { %2739 = vst.msk [vmem:[%s8093_s1 + $0x7] sm:$0x1] %vm3_vm0, %v286_v15   ;;  %2740 = vst.msk [vmem:[%s8093_s1 + $0x46] sm:$0x2] %vm3_vm0, %v286_v15  }
  0xaa   :  { %2741 = vst.msk [vmem:[%s8093_s1 + $0x85] sm:$0x4] %vm3_vm0, %v286_v15   ;;  %2742 = vst.msk [vmem:[%s8093_s1 + $0xc4] sm:$0x8] %vm3_vm0, %v286_v15   ;;  %1782 = vrot.lane.b32.xlu1 %v3854_v1, %s3813_s7  ;;  %1761 = vrot.lane.b32.xlu0 %v3847_v0, %s3813_s7 }
  0xab   :  { %2743 = vst.msk [vmem:[%s8093_s1 + $0x103] sm:$0x10] %vm3_vm0, %v286_v15   ;;  %2744 = vst.msk [vmem:[%s8093_s1 + $0x142] sm:$0x20] %vm3_vm0, %v286_v15  }
  0xac   :  { %2745 = vst.msk [vmem:[%s8093_s1 + $0x181] sm:$0x40] %vm3_vm0, %v286_v15   ;;  %2746 = vst.msk [vmem:[%s8093_s1 + $0x1c0] sm:$0x80] %vm3_vm0, %v286_v15   ;;  %v635_v30 = vpop.permute.xlu1 %634   ;;  %v614_v31 = vpop.permute.xlu0 %613  }
  0xad   :  { %2765 = vst.msk [vmem:[%s8093_s1 + $0x208] sm:$0x1] %vm3_vm0, %v348_v16   ;;  %2766 = vst.msk [vmem:[%s8093_s1 + $0x247] sm:$0x2] %vm3_vm0, %v348_v16  }
  0xae   :  { %2767 = vst.msk [vmem:[%s8093_s1 + $0x286] sm:$0x4] %vm3_vm0, %v348_v16   ;;  %2768 = vst.msk [vmem:[%s8093_s1 + $0x2c5] sm:$0x8] %vm3_vm0, %v348_v16   ;;  %1823 = vrot.lane.b32.xlu1 %v3854_v1, %s3814_s11  ;;  %1802 = vrot.lane.b32.xlu0 %v3847_v0, %s3814_s11 }
  0xaf   :  { %2769 = vst.msk [vmem:[%s8093_s1 + $0x304] sm:$0x10] %vm3_vm0, %v348_v16   ;;  %2770 = vst.msk [vmem:[%s8093_s1 + $0x343] sm:$0x20] %vm3_vm0, %v348_v16  }
  0xb0   :  { %2771 = vst.msk [vmem:[%s8093_s1 + $0x382] sm:$0x40] %vm3_vm0, %v348_v16   ;;  %2772 = vst.msk [vmem:[%s8093_s1 + $0x3c1] sm:$0x80] %vm3_vm0, %v348_v16   ;;  %v676_v33 = vpop.permute.xlu1 %675   ;;  %v655_v34 = vpop.permute.xlu0 %654  }
  0xb1   :  { %2756 = vst.msk [vmem:[%s8093_s1 + $0x8] sm:$0x1] %vm3_vm0, %v327_v17   ;;  %2757 = vst.msk [vmem:[%s8093_s1 + $0x47] sm:$0x2] %vm3_vm0, %v327_v17  }
  0xb2   :  { %2758 = vst.msk [vmem:[%s8093_s1 + $0x86] sm:$0x4] %vm3_vm0, %v327_v17   ;;  %2759 = vst.msk [vmem:[%s8093_s1 + $0xc5] sm:$0x8] %vm3_vm0, %v327_v17   ;;  %1864 = vrot.lane.b32.xlu1 %v3854_v1, %s3815_s17  ;;  %1843 = vrot.lane.b32.xlu0 %v4905_v32, %s3815_s17  ;;  %s3829_s17 = smov 69  }
  0xb3   :  { %2760 = vst.msk [vmem:[%s8093_s1 + $0x104] sm:$0x10] %vm3_vm0, %v327_v17   ;;  %2761 = vst.msk [vmem:[%s8093_s1 + $0x143] sm:$0x20] %vm3_vm0, %v327_v17  }
  0xb4   :  { %2762 = vst.msk [vmem:[%s8093_s1 + $0x182] sm:$0x40] %vm3_vm0, %v327_v17   ;;  %2763 = vst.msk [vmem:[%s8093_s1 + $0x1c1] sm:$0x80] %vm3_vm0, %v327_v17   ;;  %v717_v36 = vpop.permute.xlu1 %716   ;;  %v696_v37 = vpop.permute.xlu0 %695  }
  0xb5   :  { %2782 = vst.msk [vmem:[%s8093_s1 + $0x209] sm:$0x1] %vm3_vm0, %v389_v18   ;;  %2783 = vst.msk [vmem:[%s8093_s1 + $0x248] sm:$0x2] %vm3_vm0, %v389_v18  }
  0xb6   :  { %2784 = vst.msk [vmem:[%s8093_s1 + $0x287] sm:$0x4] %vm3_vm0, %v389_v18   ;;  %2785 = vst.msk [vmem:[%s8093_s1 + $0x2c6] sm:$0x8] %vm3_vm0, %v389_v18   ;;  %1905 = vrot.lane.b32.xlu1 %v4976_v35, %s3816_s23  ;;  %1884 = vrot.lane.b32.xlu0 %v4905_v32, %s3816_s23 }
  0xb7   :  { %2786 = vst.msk [vmem:[%s8093_s1 + $0x305] sm:$0x10] %vm3_vm0, %v389_v18   ;;  %2787 = vst.msk [vmem:[%s8093_s1 + $0x344] sm:$0x20] %vm3_vm0, %v389_v18  }
  0xb8   :  { %2788 = vst.msk [vmem:[%s8093_s1 + $0x383] sm:$0x40] %vm3_vm0, %v389_v18   ;;  %2789 = vst.msk [vmem:[%s8093_s1 + $0x3c2] sm:$0x80] %vm3_vm0, %v389_v18   ;;  %v758_v38 = vpop.permute.xlu1 %757   ;;  %v737_v39 = vpop.permute.xlu0 %736  }
  0xb9   :  { %2773 = vst.msk [vmem:[%s8093_s1 + $0x9] sm:$0x1] %vm3_vm0, %v368_v19   ;;  %2774 = vst.msk [vmem:[%s8093_s1 + $0x48] sm:$0x2] %vm3_vm0, %v368_v19  }
  0xba   :  { %2775 = vst.msk [vmem:[%s8093_s1 + $0x87] sm:$0x4] %vm3_vm0, %v368_v19   ;;  %2776 = vst.msk [vmem:[%s8093_s1 + $0xc6] sm:$0x8] %vm3_vm0, %v368_v19   ;;  %1946 = vrot.lane.b32.xlu1 %v4976_v35, %s3817_s27  ;;  %1925 = vrot.lane.b32.xlu0 %v4905_v32, %s3817_s27 }
  0xbb   :  { %2777 = vst.msk [vmem:[%s8093_s1 + $0x105] sm:$0x10] %vm3_vm0, %v368_v19   ;;  %2778 = vst.msk [vmem:[%s8093_s1 + $0x144] sm:$0x20] %vm3_vm0, %v368_v19  }
  0xbc   :  { %2779 = vst.msk [vmem:[%s8093_s1 + $0x183] sm:$0x40] %vm3_vm0, %v368_v19   ;;  %2780 = vst.msk [vmem:[%s8093_s1 + $0x1c2] sm:$0x80] %vm3_vm0, %v368_v19   ;;  %v799_v40 = vpop.permute.xlu1 %798   ;;  %v778_v41 = vpop.permute.xlu0 %777  }
  0xbd   :  { %2799 = vst.msk [vmem:[%s8093_s1 + $0x20a] sm:$0x1] %vm3_vm0, %v430_v20   ;;  %2800 = vst.msk [vmem:[%s8093_s1 + $0x249] sm:$0x2] %vm3_vm0, %v430_v20  }
  0xbe   :  { %2801 = vst.msk [vmem:[%s8093_s1 + $0x288] sm:$0x4] %vm3_vm0, %v430_v20   ;;  %2802 = vst.msk [vmem:[%s8093_s1 + $0x2c7] sm:$0x8] %vm3_vm0, %v430_v20   ;;  %1987 = vrot.lane.b32.xlu1 %v4976_v35, %s3818_s2  ;;  %1966 = vrot.lane.b32.xlu0 %v4905_v32, %s3818_s2  ;;  %s3832_s2 = smov 66  }
  0xbf   :  { %2803 = vst.msk [vmem:[%s8093_s1 + $0x306] sm:$0x10] %vm3_vm0, %v430_v20   ;;  %2804 = vst.msk [vmem:[%s8093_s1 + $0x345] sm:$0x20] %vm3_vm0, %v430_v20  }
  0xc0   :  { %2805 = vst.msk [vmem:[%s8093_s1 + $0x384] sm:$0x40] %vm3_vm0, %v430_v20   ;;  %2806 = vst.msk [vmem:[%s8093_s1 + $0x3c3] sm:$0x80] %vm3_vm0, %v430_v20   ;;  %v840_v42 = vpop.permute.xlu1 %839   ;;  %v819_v43 = vpop.permute.xlu0 %818  }
  0xc1   :  { %2790 = vst.msk [vmem:[%s8093_s1 + $0xa] sm:$0x1] %vm3_vm0, %v409_v21   ;;  %2791 = vst.msk [vmem:[%s8093_s1 + $0x49] sm:$0x2] %vm3_vm0, %v409_v21  }
  0xc2   :  { %2792 = vst.msk [vmem:[%s8093_s1 + $0x88] sm:$0x4] %vm3_vm0, %v409_v21   ;;  %2793 = vst.msk [vmem:[%s8093_s1 + $0xc7] sm:$0x8] %vm3_vm0, %v409_v21   ;;  %2028 = vrot.lane.b32.xlu1 %v4976_v35, %s3819_s6  ;;  %2007 = vrot.lane.b32.xlu0 %v4905_v32, %s3819_s6 }
  0xc3   :  { %2794 = vst.msk [vmem:[%s8093_s1 + $0x106] sm:$0x10] %vm3_vm0, %v409_v21   ;;  %2795 = vst.msk [vmem:[%s8093_s1 + $0x145] sm:$0x20] %vm3_vm0, %v409_v21  }
  0xc4   :  { %2796 = vst.msk [vmem:[%s8093_s1 + $0x184] sm:$0x40] %vm3_vm0, %v409_v21   ;;  %2797 = vst.msk [vmem:[%s8093_s1 + $0x1c3] sm:$0x80] %vm3_vm0, %v409_v21   ;;  %v881_v44 = vpop.permute.xlu1 %880   ;;  %v860_v45 = vpop.permute.xlu0 %859  }
  0xc5   :  { %2816 = vst.msk [vmem:[%s8093_s1 + $0x20b] sm:$0x1] %vm3_vm0, %v471_v22   ;;  %2817 = vst.msk [vmem:[%s8093_s1 + $0x24a] sm:$0x2] %vm3_vm0, %v471_v22  }
  0xc6   :  { %2818 = vst.msk [vmem:[%s8093_s1 + $0x289] sm:$0x4] %vm3_vm0, %v471_v22   ;;  %2819 = vst.msk [vmem:[%s8093_s1 + $0x2c8] sm:$0x8] %vm3_vm0, %v471_v22   ;;  %2069 = vrot.lane.b32.xlu1 %v4976_v35, %s3820_s10  ;;  %2048 = vrot.lane.b32.xlu0 %v4905_v32, %s3820_s10 }
  0xc7   :  { %2820 = vst.msk [vmem:[%s8093_s1 + $0x307] sm:$0x10] %vm3_vm0, %v471_v22   ;;  %2821 = vst.msk [vmem:[%s8093_s1 + $0x346] sm:$0x20] %vm3_vm0, %v471_v22  }
  0xc8   :  { %2822 = vst.msk [vmem:[%s8093_s1 + $0x385] sm:$0x40] %vm3_vm0, %v471_v22   ;;  %2823 = vst.msk [vmem:[%s8093_s1 + $0x3c4] sm:$0x80] %vm3_vm0, %v471_v22   ;;  %v922_v46 = vpop.permute.xlu1 %921   ;;  %v901_v47 = vpop.permute.xlu0 %900  }
  0xc9   :  { %2807 = vst.msk [vmem:[%s8093_s1 + $0xb] sm:$0x1] %vm3_vm0, %v450_v23   ;;  %2808 = vst.msk [vmem:[%s8093_s1 + $0x4a] sm:$0x2] %vm3_vm0, %v450_v23  }
  0xca   :  { %2809 = vst.msk [vmem:[%s8093_s1 + $0x89] sm:$0x4] %vm3_vm0, %v450_v23   ;;  %2810 = vst.msk [vmem:[%s8093_s1 + $0xc8] sm:$0x8] %vm3_vm0, %v450_v23   ;;  %2110 = vrot.lane.b32.xlu1 %v4976_v35, %s3821_s14  ;;  %2089 = vrot.lane.b32.xlu0 %v4905_v32, %s3821_s14 }
  0xcb   :  { %2811 = vst.msk [vmem:[%s8093_s1 + $0x107] sm:$0x10] %vm3_vm0, %v450_v23   ;;  %2812 = vst.msk [vmem:[%s8093_s1 + $0x146] sm:$0x20] %vm3_vm0, %v450_v23  }
  0xcc   :  { %2813 = vst.msk [vmem:[%s8093_s1 + $0x185] sm:$0x40] %vm3_vm0, %v450_v23   ;;  %2814 = vst.msk [vmem:[%s8093_s1 + $0x1c4] sm:$0x80] %vm3_vm0, %v450_v23   ;;  %v963_v48 = vpop.permute.xlu1 %962   ;;  %v942_v49 = vpop.permute.xlu0 %941  }
  0xcd   :  { %2833 = vst.msk [vmem:[%s8093_s1 + $0x20c] sm:$0x1] %vm3_vm0, %v512_v24   ;;  %2834 = vst.msk [vmem:[%s8093_s1 + $0x24b] sm:$0x2] %vm3_vm0, %v512_v24  }
  0xce   :  { %2835 = vst.msk [vmem:[%s8093_s1 + $0x28a] sm:$0x4] %vm3_vm0, %v512_v24   ;;  %2836 = vst.msk [vmem:[%s8093_s1 + $0x2c9] sm:$0x8] %vm3_vm0, %v512_v24   ;;  %2151 = vrot.lane.b32.xlu1 %v4976_v35, %s3822_s18  ;;  %2130 = vrot.lane.b32.xlu0 %v4905_v32, %s3822_s18 }
  0xcf   :  { %2837 = vst.msk [vmem:[%s8093_s1 + $0x308] sm:$0x10] %vm3_vm0, %v512_v24   ;;  %2838 = vst.msk [vmem:[%s8093_s1 + $0x347] sm:$0x20] %vm3_vm0, %v512_v24  }
  0xd0   :  { %2839 = vst.msk [vmem:[%s8093_s1 + $0x386] sm:$0x40] %vm3_vm0, %v512_v24   ;;  %2840 = vst.msk [vmem:[%s8093_s1 + $0x3c5] sm:$0x80] %vm3_vm0, %v512_v24   ;;  %v1004_v50 = vpop.permute.xlu1 %1003   ;;  %v983_v51 = vpop.permute.xlu0 %982  }
  0xd1   :  { %2824 = vst.msk [vmem:[%s8093_s1 + $0xc] sm:$0x1] %vm3_vm0, %v491_v25   ;;  %2825 = vst.msk [vmem:[%s8093_s1 + $0x4b] sm:$0x2] %vm3_vm0, %v491_v25  }
  0xd2   :  { %2826 = vst.msk [vmem:[%s8093_s1 + $0x8a] sm:$0x4] %vm3_vm0, %v491_v25   ;;  %2827 = vst.msk [vmem:[%s8093_s1 + $0xc9] sm:$0x8] %vm3_vm0, %v491_v25   ;;  %2192 = vrot.lane.b32.xlu1 %v4976_v35, %s3823_s22  ;;  %2171 = vrot.lane.b32.xlu0 %v4905_v32, %s3823_s22 }
  0xd3   :  { %2828 = vst.msk [vmem:[%s8093_s1 + $0x108] sm:$0x10] %vm3_vm0, %v491_v25   ;;  %2829 = vst.msk [vmem:[%s8093_s1 + $0x147] sm:$0x20] %vm3_vm0, %v491_v25  }
  0xd4   :  { %2830 = vst.msk [vmem:[%s8093_s1 + $0x186] sm:$0x40] %vm3_vm0, %v491_v25   ;;  %2831 = vst.msk [vmem:[%s8093_s1 + $0x1c5] sm:$0x80] %vm3_vm0, %v491_v25   ;;  %v1045_v52 = vpop.permute.xlu1 %1044   ;;  %v1024_v53 = vpop.permute.xlu0 %1023  }
  0xd5   :  { %2850 = vst.msk [vmem:[%s8093_s1 + $0x20d] sm:$0x1] %vm3_vm0, %v553_v26   ;;  %2851 = vst.msk [vmem:[%s8093_s1 + $0x24c] sm:$0x2] %vm3_vm0, %v553_v26  }
  0xd6   :  { %2852 = vst.msk [vmem:[%s8093_s1 + $0x28b] sm:$0x4] %vm3_vm0, %v553_v26   ;;  %2853 = vst.msk [vmem:[%s8093_s1 + $0x2ca] sm:$0x8] %vm3_vm0, %v553_v26   ;;  %2233 = vrot.lane.b32.xlu1 %v4976_v35, %s3824_s26  ;;  %2212 = vrot.lane.b32.xlu0 %v4905_v32, %s3824_s26 }
  0xd7   :  { %2854 = vst.msk [vmem:[%s8093_s1 + $0x309] sm:$0x10] %vm3_vm0, %v553_v26   ;;  %2855 = vst.msk [vmem:[%s8093_s1 + $0x348] sm:$0x20] %vm3_vm0, %v553_v26  }
  0xd8   :  { %2856 = vst.msk [vmem:[%s8093_s1 + $0x387] sm:$0x40] %vm3_vm0, %v553_v26   ;;  %2857 = vst.msk [vmem:[%s8093_s1 + $0x3c6] sm:$0x80] %vm3_vm0, %v553_v26   ;;  %v1086_v54 = vpop.permute.xlu1 %1085   ;;  %v1065_v55 = vpop.permute.xlu0 %1064  }
  0xd9   :  { %2841 = vst.msk [vmem:[%s8093_s1 + $0xd] sm:$0x1] %vm3_vm0, %v532_v27   ;;  %2842 = vst.msk [vmem:[%s8093_s1 + $0x4c] sm:$0x2] %vm3_vm0, %v532_v27  }
  0xda   :  { %2843 = vst.msk [vmem:[%s8093_s1 + $0x8b] sm:$0x4] %vm3_vm0, %v532_v27   ;;  %2844 = vst.msk [vmem:[%s8093_s1 + $0xca] sm:$0x8] %vm3_vm0, %v532_v27   ;;  %2274 = vrot.lane.b32.xlu1 %v4976_v35, %s3825_s30  ;;  %2253 = vrot.lane.b32.xlu0 %v4905_v32, %s3825_s30 }
  0xdb   :  { %2845 = vst.msk [vmem:[%s8093_s1 + $0x109] sm:$0x10] %vm3_vm0, %v532_v27   ;;  %2846 = vst.msk [vmem:[%s8093_s1 + $0x148] sm:$0x20] %vm3_vm0, %v532_v27  }
  0xdc   :  { %2847 = vst.msk [vmem:[%s8093_s1 + $0x187] sm:$0x40] %vm3_vm0, %v532_v27   ;;  %2848 = vst.msk [vmem:[%s8093_s1 + $0x1c6] sm:$0x80] %vm3_vm0, %v532_v27   ;;  %v1127_v56 = vpop.permute.xlu1 %1126   ;;  %v1106_v57 = vpop.permute.xlu0 %1105  }
  0xdd   :  { %2867 = vst.msk [vmem:[%s8093_s1 + $0x20e] sm:$0x1] %vm3_vm0, %v594_v28   ;;  %2868 = vst.msk [vmem:[%s8093_s1 + $0x24d] sm:$0x2] %vm3_vm0, %v594_v28  }
  0xde   :  { %2869 = vst.msk [vmem:[%s8093_s1 + $0x28c] sm:$0x4] %vm3_vm0, %v594_v28   ;;  %2870 = vst.msk [vmem:[%s8093_s1 + $0x2cb] sm:$0x8] %vm3_vm0, %v594_v28   ;;  %2315 = vrot.lane.b32.xlu1 %v4976_v35, %s3826_s5  ;;  %2294 = vrot.lane.b32.xlu0 %v4905_v32, %s3826_s5  ;;  %s3833_s5 = smov 65  }
  0xdf   :  { %2871 = vst.msk [vmem:[%s8093_s1 + $0x30a] sm:$0x10] %vm3_vm0, %v594_v28   ;;  %2872 = vst.msk [vmem:[%s8093_s1 + $0x349] sm:$0x20] %vm3_vm0, %v594_v28  }
  0xe0   :  { %2873 = vst.msk [vmem:[%s8093_s1 + $0x388] sm:$0x40] %vm3_vm0, %v594_v28   ;;  %2874 = vst.msk [vmem:[%s8093_s1 + $0x3c7] sm:$0x80] %vm3_vm0, %v594_v28   ;;  %v1168_v58 = vpop.permute.xlu1 %1167   ;;  %v1147_v59 = vpop.permute.xlu0 %1146  }
  0xe1   :  { %2858 = vst.msk [vmem:[%s8093_s1 + $0xe] sm:$0x1] %vm3_vm0, %v573_v29   ;;  %2859 = vst.msk [vmem:[%s8093_s1 + $0x4d] sm:$0x2] %vm3_vm0, %v573_v29  }
  0xe2   :  { %2860 = vst.msk [vmem:[%s8093_s1 + $0x8c] sm:$0x4] %vm3_vm0, %v573_v29   ;;  %2861 = vst.msk [vmem:[%s8093_s1 + $0xcb] sm:$0x8] %vm3_vm0, %v573_v29   ;;  %2356 = vrot.lane.b32.xlu1 %v4976_v35, %s3827_s9  ;;  %2335 = vrot.lane.b32.xlu0 %v4905_v32, %s3827_s9 }
  0xe3   :  { %2862 = vst.msk [vmem:[%s8093_s1 + $0x10a] sm:$0x10] %vm3_vm0, %v573_v29   ;;  %2863 = vst.msk [vmem:[%s8093_s1 + $0x149] sm:$0x20] %vm3_vm0, %v573_v29  }
  0xe4   :  { %2864 = vst.msk [vmem:[%s8093_s1 + $0x188] sm:$0x40] %vm3_vm0, %v573_v29   ;;  %2865 = vst.msk [vmem:[%s8093_s1 + $0x1c7] sm:$0x80] %vm3_vm0, %v573_v29   ;;  %v1209_v60 = vpop.permute.xlu1 %1208   ;;  %v1188_v61 = vpop.permute.xlu0 %1187  }
  0xe5   :  { %2884 = vst.msk [vmem:[%s8093_s1 + $0x20f] sm:$0x1] %vm3_vm0, %v635_v30   ;;  %2885 = vst.msk [vmem:[%s8093_s1 + $0x24e] sm:$0x2] %vm3_vm0, %v635_v30  }
  0xe6   :  { %2886 = vst.msk [vmem:[%s8093_s1 + $0x28d] sm:$0x4] %vm3_vm0, %v635_v30   ;;  %2887 = vst.msk [vmem:[%s8093_s1 + $0x2cc] sm:$0x8] %vm3_vm0, %v635_v30   ;;  %2397 = vrot.lane.b32.xlu1 %v4976_v35, %s3828_s13  ;;  %2376 = vrot.lane.b32.xlu0 %v4905_v32, %s3828_s13 }
  0xe7   :  { %2888 = vst.msk [vmem:[%s8093_s1 + $0x30b] sm:$0x10] %vm3_vm0, %v635_v30   ;;  %2889 = vst.msk [vmem:[%s8093_s1 + $0x34a] sm:$0x20] %vm3_vm0, %v635_v30  }
  0xe8   :  { %2890 = vst.msk [vmem:[%s8093_s1 + $0x389] sm:$0x40] %vm3_vm0, %v635_v30   ;;  %2891 = vst.msk [vmem:[%s8093_s1 + $0x3c8] sm:$0x80] %vm3_vm0, %v635_v30   ;;  %v1250_v62 = vpop.permute.xlu1 %1249   ;;  %v1229_v63 = vpop.permute.xlu0 %1228  }
  0xe9   :  { %2875 = vst.msk [vmem:[%s8093_s1 + $0xf] sm:$0x1] %vm3_vm0, %v614_v31   ;;  %2876 = vst.msk [vmem:[%s8093_s1 + $0x4e] sm:$0x2] %vm3_vm0, %v614_v31  }
  0xea   :  { %2877 = vst.msk [vmem:[%s8093_s1 + $0x8d] sm:$0x4] %vm3_vm0, %v614_v31   ;;  %2878 = vst.msk [vmem:[%s8093_s1 + $0xcc] sm:$0x8] %vm3_vm0, %v614_v31   ;;  %2438 = vrot.lane.b32.xlu1 %v4976_v35, %s3829_s17  ;;  %2417 = vrot.lane.b32.xlu0 %v4905_v32, %s3829_s17 }
  0xeb   :  { %2879 = vst.msk [vmem:[%s8093_s1 + $0x10b] sm:$0x10] %vm3_vm0, %v614_v31   ;;  %2880 = vst.msk [vmem:[%s8093_s1 + $0x14a] sm:$0x20] %vm3_vm0, %v614_v31  }
  0xec   :  { %2881 = vst.msk [vmem:[%s8093_s1 + $0x189] sm:$0x40] %vm3_vm0, %v614_v31   ;;  %2882 = vst.msk [vmem:[%s8093_s1 + $0x1c8] sm:$0x80] %vm3_vm0, %v614_v31   ;;  %v1291_v0 = vpop.permute.xlu1 %1290   ;;  %v1270_v1 = vpop.permute.xlu0 %1269  }
  0xed   :  { %2901 = vst.msk [vmem:[%s8093_s1 + $0x210] sm:$0x1] %vm3_vm0, %v676_v33   ;;  %2902 = vst.msk [vmem:[%s8093_s1 + $0x24f] sm:$0x2] %vm3_vm0, %v676_v33  }
  0xee   :  { %2903 = vst.msk [vmem:[%s8093_s1 + $0x28e] sm:$0x4] %vm3_vm0, %v676_v33   ;;  %2904 = vst.msk [vmem:[%s8093_s1 + $0x2cd] sm:$0x8] %vm3_vm0, %v676_v33   ;;  %2479 = vrot.lane.b32.xlu1 %v4976_v35, %s3830_s25  ;;  %2458 = vrot.lane.b32.xlu0 %v4905_v32, %s3830_s25 }
  0xef   :  { %2905 = vst.msk [vmem:[%s8093_s1 + $0x30c] sm:$0x10] %vm3_vm0, %v676_v33   ;;  %2906 = vst.msk [vmem:[%s8093_s1 + $0x34b] sm:$0x20] %vm3_vm0, %v676_v33  }
  0xf0   :  { %2907 = vst.msk [vmem:[%s8093_s1 + $0x38a] sm:$0x40] %vm3_vm0, %v676_v33   ;;  %2908 = vst.msk [vmem:[%s8093_s1 + $0x3c9] sm:$0x80] %vm3_vm0, %v676_v33   ;;  %v1332_v4 = vpop.permute.xlu1 %1331   ;;  %v1311_v5 = vpop.permute.xlu0 %1310  }
  0xf1   :  { %2892 = vst.msk [vmem:[%s8093_s1 + $0x10] sm:$0x1] %vm3_vm0, %v655_v34   ;;  %2893 = vst.msk [vmem:[%s8093_s1 + $0x4f] sm:$0x2] %vm3_vm0, %v655_v34  }
  0xf2   :  { %2894 = vst.msk [vmem:[%s8093_s1 + $0x8e] sm:$0x4] %vm3_vm0, %v655_v34   ;;  %2895 = vst.msk [vmem:[%s8093_s1 + $0xcd] sm:$0x8] %vm3_vm0, %v655_v34   ;;  %2520 = vrot.lane.b32.xlu1 %v4976_v35, %s3831_s28  ;;  %2499 = vrot.lane.b32.xlu0 %v4905_v32, %s3831_s28 }
  0xf3   :  { %2896 = vst.msk [vmem:[%s8093_s1 + $0x10c] sm:$0x10] %vm3_vm0, %v655_v34   ;;  %2897 = vst.msk [vmem:[%s8093_s1 + $0x14b] sm:$0x20] %vm3_vm0, %v655_v34  }
  0xf4   :  { %2898 = vst.msk [vmem:[%s8093_s1 + $0x18a] sm:$0x40] %vm3_vm0, %v655_v34   ;;  %2899 = vst.msk [vmem:[%s8093_s1 + $0x1c9] sm:$0x80] %vm3_vm0, %v655_v34   ;;  %v1373_v6 = vpop.permute.xlu1 %1372   ;;  %v1352_v7 = vpop.permute.xlu0 %1351  }
  0xf5   :  { %2918 = vst.msk [vmem:[%s8093_s1 + $0x211] sm:$0x1] %vm3_vm0, %v717_v36   ;;  %2919 = vst.msk [vmem:[%s8093_s1 + $0x250] sm:$0x2] %vm3_vm0, %v717_v36  }
  0xf6   :  { %2920 = vst.msk [vmem:[%s8093_s1 + $0x28f] sm:$0x4] %vm3_vm0, %v717_v36   ;;  %2921 = vst.msk [vmem:[%s8093_s1 + $0x2ce] sm:$0x8] %vm3_vm0, %v717_v36   ;;  %2561 = vrot.lane.b32.xlu1 %v4976_v35, %s3832_s2  ;;  %2540 = vrot.lane.b32.xlu0 %v4905_v32, %s3832_s2 }
  0xf7   :  { %2922 = vst.msk [vmem:[%s8093_s1 + $0x30d] sm:$0x10] %vm3_vm0, %v717_v36   ;;  %2923 = vst.msk [vmem:[%s8093_s1 + $0x34c] sm:$0x20] %vm3_vm0, %v717_v36  }
  0xf8   :  { %2924 = vst.msk [vmem:[%s8093_s1 + $0x38b] sm:$0x40] %vm3_vm0, %v717_v36   ;;  %2925 = vst.msk [vmem:[%s8093_s1 + $0x3ca] sm:$0x80] %vm3_vm0, %v717_v36   ;;  %v1414_v8 = vpop.permute.xlu1 %1413   ;;  %v1393_v9 = vpop.permute.xlu0 %1392  }
  0xf9   :  { %2909 = vst.msk [vmem:[%s8093_s1 + $0x11] sm:$0x1] %vm3_vm0, %v696_v37   ;;  %2910 = vst.msk [vmem:[%s8093_s1 + $0x50] sm:$0x2] %vm3_vm0, %v696_v37  }
  0xfa   :  { %2911 = vst.msk [vmem:[%s8093_s1 + $0x8f] sm:$0x4] %vm3_vm0, %v696_v37   ;;  %2912 = vst.msk [vmem:[%s8093_s1 + $0xce] sm:$0x8] %vm3_vm0, %v696_v37   ;;  %2602 = vrot.lane.b32.xlu1 %v4976_v35, %s3833_s5  ;;  %2581 = vrot.lane.b32.xlu0 %v4905_v32, %s3833_s5 }
  0xfb   :  { %2913 = vst.msk [vmem:[%s8093_s1 + $0x10d] sm:$0x10] %vm3_vm0, %v696_v37   ;;  %2914 = vst.msk [vmem:[%s8093_s1 + $0x14c] sm:$0x20] %vm3_vm0, %v696_v37  }
  0xfc   :  { %2915 = vst.msk [vmem:[%s8093_s1 + $0x18b] sm:$0x40] %vm3_vm0, %v696_v37   ;;  %2916 = vst.msk [vmem:[%s8093_s1 + $0x1ca] sm:$0x80] %vm3_vm0, %v696_v37   ;;  %v1455_v10 = vpop.permute.xlu1 %1454   ;;  %v1434_v11 = vpop.permute.xlu0 %1433  }
  0xfd   :  { %2935 = vst.msk [vmem:[%s8093_s1 + $0x212] sm:$0x1] %vm3_vm0, %v758_v38   ;;  %2936 = vst.msk [vmem:[%s8093_s1 + $0x251] sm:$0x2] %vm3_vm0, %v758_v38  }
  0xfe   :  { %2937 = vst.msk [vmem:[%s8093_s1 + $0x290] sm:$0x4] %vm3_vm0, %v758_v38   ;;  %2938 = vst.msk [vmem:[%s8093_s1 + $0x2cf] sm:$0x8] %vm3_vm0, %v758_v38  }
  0xff   :  { %2939 = vst.msk [vmem:[%s8093_s1 + $0x30e] sm:$0x10] %vm3_vm0, %v758_v38   ;;  %2940 = vst.msk [vmem:[%s8093_s1 + $0x34d] sm:$0x20] %vm3_vm0, %v758_v38  }
 0x100   :  { %2941 = vst.msk [vmem:[%s8093_s1 + $0x38c] sm:$0x40] %vm3_vm0, %v758_v38   ;;  %2942 = vst.msk [vmem:[%s8093_s1 + $0x3cb] sm:$0x80] %vm3_vm0, %v758_v38   ;;  %v1496_v12 = vpop.permute.xlu1 %1495   ;;  %v1475_v13 = vpop.permute.xlu0 %1474  }
 0x101   :  { %2926 = vst.msk [vmem:[%s8093_s1 + $0x12] sm:$0x1] %vm3_vm0, %v737_v39   ;;  %2927 = vst.msk [vmem:[%s8093_s1 + $0x51] sm:$0x2] %vm3_vm0, %v737_v39  }
 0x102   :  { %2928 = vst.msk [vmem:[%s8093_s1 + $0x90] sm:$0x4] %vm3_vm0, %v737_v39   ;;  %2929 = vst.msk [vmem:[%s8093_s1 + $0xcf] sm:$0x8] %vm3_vm0, %v737_v39  }
 0x103   :  { %2930 = vst.msk [vmem:[%s8093_s1 + $0x10e] sm:$0x10] %vm3_vm0, %v737_v39   ;;  %2931 = vst.msk [vmem:[%s8093_s1 + $0x14d] sm:$0x20] %vm3_vm0, %v737_v39  }
 0x104   :  { %2932 = vst.msk [vmem:[%s8093_s1 + $0x18c] sm:$0x40] %vm3_vm0, %v737_v39   ;;  %2933 = vst.msk [vmem:[%s8093_s1 + $0x1cb] sm:$0x80] %vm3_vm0, %v737_v39   ;;  %v1537_v14 = vpop.permute.xlu1 %1536   ;;  %v1516_v15 = vpop.permute.xlu0 %1515  }
 0x105   :  { %2952 = vst.msk [vmem:[%s8093_s1 + $0x213] sm:$0x1] %vm3_vm0, %v799_v40   ;;  %2953 = vst.msk [vmem:[%s8093_s1 + $0x252] sm:$0x2] %vm3_vm0, %v799_v40  }
 0x106   :  { %2954 = vst.msk [vmem:[%s8093_s1 + $0x291] sm:$0x4] %vm3_vm0, %v799_v40   ;;  %2955 = vst.msk [vmem:[%s8093_s1 + $0x2d0] sm:$0x8] %vm3_vm0, %v799_v40  }
 0x107   :  { %2956 = vst.msk [vmem:[%s8093_s1 + $0x30f] sm:$0x10] %vm3_vm0, %v799_v40   ;;  %2957 = vst.msk [vmem:[%s8093_s1 + $0x34e] sm:$0x20] %vm3_vm0, %v799_v40  }
 0x108   :  { %2958 = vst.msk [vmem:[%s8093_s1 + $0x38d] sm:$0x40] %vm3_vm0, %v799_v40   ;;  %2959 = vst.msk [vmem:[%s8093_s1 + $0x3cc] sm:$0x80] %vm3_vm0, %v799_v40   ;;  %v1578_v16 = vpop.permute.xlu1 %1577   ;;  %v1557_v17 = vpop.permute.xlu0 %1556  }
 0x109   :  { %2943 = vst.msk [vmem:[%s8093_s1 + $0x13] sm:$0x1] %vm3_vm0, %v778_v41   ;;  %2944 = vst.msk [vmem:[%s8093_s1 + $0x52] sm:$0x2] %vm3_vm0, %v778_v41  }
 0x10a   :  { %2945 = vst.msk [vmem:[%s8093_s1 + $0x91] sm:$0x4] %vm3_vm0, %v778_v41   ;;  %2946 = vst.msk [vmem:[%s8093_s1 + $0xd0] sm:$0x8] %vm3_vm0, %v778_v41  }
 0x10b   :  { %2947 = vst.msk [vmem:[%s8093_s1 + $0x10f] sm:$0x10] %vm3_vm0, %v778_v41   ;;  %2948 = vst.msk [vmem:[%s8093_s1 + $0x14e] sm:$0x20] %vm3_vm0, %v778_v41  }
 0x10c   :  { %2949 = vst.msk [vmem:[%s8093_s1 + $0x18d] sm:$0x40] %vm3_vm0, %v778_v41   ;;  %2950 = vst.msk [vmem:[%s8093_s1 + $0x1cc] sm:$0x80] %vm3_vm0, %v778_v41   ;;  %v1619_v18 = vpop.permute.xlu1 %1618   ;;  %v1598_v19 = vpop.permute.xlu0 %1597  }
 0x10d   :  { %2969 = vst.msk [vmem:[%s8093_s1 + $0x214] sm:$0x1] %vm3_vm0, %v840_v42   ;;  %2970 = vst.msk [vmem:[%s8093_s1 + $0x253] sm:$0x2] %vm3_vm0, %v840_v42  }
 0x10e   :  { %2971 = vst.msk [vmem:[%s8093_s1 + $0x292] sm:$0x4] %vm3_vm0, %v840_v42   ;;  %2972 = vst.msk [vmem:[%s8093_s1 + $0x2d1] sm:$0x8] %vm3_vm0, %v840_v42  }
 0x10f   :  { %2973 = vst.msk [vmem:[%s8093_s1 + $0x310] sm:$0x10] %vm3_vm0, %v840_v42   ;;  %2974 = vst.msk [vmem:[%s8093_s1 + $0x34f] sm:$0x20] %vm3_vm0, %v840_v42  }
 0x110   :  { %2975 = vst.msk [vmem:[%s8093_s1 + $0x38e] sm:$0x40] %vm3_vm0, %v840_v42   ;;  %2976 = vst.msk [vmem:[%s8093_s1 + $0x3cd] sm:$0x80] %vm3_vm0, %v840_v42   ;;  %v1660_v20 = vpop.permute.xlu1 %1659   ;;  %v1639_v21 = vpop.permute.xlu0 %1638  }
 0x111   :  { %2960 = vst.msk [vmem:[%s8093_s1 + $0x14] sm:$0x1] %vm3_vm0, %v819_v43   ;;  %2961 = vst.msk [vmem:[%s8093_s1 + $0x53] sm:$0x2] %vm3_vm0, %v819_v43  }
 0x112   :  { %2962 = vst.msk [vmem:[%s8093_s1 + $0x92] sm:$0x4] %vm3_vm0, %v819_v43   ;;  %2963 = vst.msk [vmem:[%s8093_s1 + $0xd1] sm:$0x8] %vm3_vm0, %v819_v43  }
 0x113   :  { %2964 = vst.msk [vmem:[%s8093_s1 + $0x110] sm:$0x10] %vm3_vm0, %v819_v43   ;;  %2965 = vst.msk [vmem:[%s8093_s1 + $0x14f] sm:$0x20] %vm3_vm0, %v819_v43  }
 0x114   :  { %2966 = vst.msk [vmem:[%s8093_s1 + $0x18e] sm:$0x40] %vm3_vm0, %v819_v43   ;;  %2967 = vst.msk [vmem:[%s8093_s1 + $0x1cd] sm:$0x80] %vm3_vm0, %v819_v43   ;;  %v1701_v22 = vpop.permute.xlu1 %1700   ;;  %v1680_v23 = vpop.permute.xlu0 %1679  }
 0x115   :  { %2986 = vst.msk [vmem:[%s8093_s1 + $0x215] sm:$0x1] %vm3_vm0, %v881_v44   ;;  %2987 = vst.msk [vmem:[%s8093_s1 + $0x254] sm:$0x2] %vm3_vm0, %v881_v44  }
 0x116   :  { %2988 = vst.msk [vmem:[%s8093_s1 + $0x293] sm:$0x4] %vm3_vm0, %v881_v44   ;;  %2989 = vst.msk [vmem:[%s8093_s1 + $0x2d2] sm:$0x8] %vm3_vm0, %v881_v44  }
 0x117   :  { %2990 = vst.msk [vmem:[%s8093_s1 + $0x311] sm:$0x10] %vm3_vm0, %v881_v44   ;;  %2991 = vst.msk [vmem:[%s8093_s1 + $0x350] sm:$0x20] %vm3_vm0, %v881_v44  }
 0x118   :  { %2992 = vst.msk [vmem:[%s8093_s1 + $0x38f] sm:$0x40] %vm3_vm0, %v881_v44   ;;  %2993 = vst.msk [vmem:[%s8093_s1 + $0x3ce] sm:$0x80] %vm3_vm0, %v881_v44   ;;  %v1742_v24 = vpop.permute.xlu1 %1741   ;;  %v1721_v25 = vpop.permute.xlu0 %1720  }
 0x119   :  { %2977 = vst.msk [vmem:[%s8093_s1 + $0x15] sm:$0x1] %vm3_vm0, %v860_v45   ;;  %2978 = vst.msk [vmem:[%s8093_s1 + $0x54] sm:$0x2] %vm3_vm0, %v860_v45  }
 0x11a   :  { %2979 = vst.msk [vmem:[%s8093_s1 + $0x93] sm:$0x4] %vm3_vm0, %v860_v45   ;;  %2980 = vst.msk [vmem:[%s8093_s1 + $0xd2] sm:$0x8] %vm3_vm0, %v860_v45  }
 0x11b   :  { %2981 = vst.msk [vmem:[%s8093_s1 + $0x111] sm:$0x10] %vm3_vm0, %v860_v45   ;;  %2982 = vst.msk [vmem:[%s8093_s1 + $0x150] sm:$0x20] %vm3_vm0, %v860_v45  }
 0x11c   :  { %2983 = vst.msk [vmem:[%s8093_s1 + $0x18f] sm:$0x40] %vm3_vm0, %v860_v45   ;;  %2984 = vst.msk [vmem:[%s8093_s1 + $0x1ce] sm:$0x80] %vm3_vm0, %v860_v45   ;;  %v1783_v26 = vpop.permute.xlu1 %1782   ;;  %v1762_v27 = vpop.permute.xlu0 %1761  }
 0x11d   :  { %3003 = vst.msk [vmem:[%s8093_s1 + $0x216] sm:$0x1] %vm3_vm0, %v922_v46   ;;  %3004 = vst.msk [vmem:[%s8093_s1 + $0x255] sm:$0x2] %vm3_vm0, %v922_v46  }
 0x11e   :  { %3005 = vst.msk [vmem:[%s8093_s1 + $0x294] sm:$0x4] %vm3_vm0, %v922_v46   ;;  %3006 = vst.msk [vmem:[%s8093_s1 + $0x2d3] sm:$0x8] %vm3_vm0, %v922_v46  }
 0x11f   :  { %3007 = vst.msk [vmem:[%s8093_s1 + $0x312] sm:$0x10] %vm3_vm0, %v922_v46   ;;  %3008 = vst.msk [vmem:[%s8093_s1 + $0x351] sm:$0x20] %vm3_vm0, %v922_v46  }
 0x120   :  { %3009 = vst.msk [vmem:[%s8093_s1 + $0x390] sm:$0x40] %vm3_vm0, %v922_v46   ;;  %3010 = vst.msk [vmem:[%s8093_s1 + $0x3cf] sm:$0x80] %vm3_vm0, %v922_v46   ;;  %v1824_v28 = vpop.permute.xlu1 %1823   ;;  %v1803_v29 = vpop.permute.xlu0 %1802  }
 0x121   :  { %2994 = vst.msk [vmem:[%s8093_s1 + $0x16] sm:$0x1] %vm3_vm0, %v901_v47   ;;  %2995 = vst.msk [vmem:[%s8093_s1 + $0x55] sm:$0x2] %vm3_vm0, %v901_v47  }
 0x122   :  { %2996 = vst.msk [vmem:[%s8093_s1 + $0x94] sm:$0x4] %vm3_vm0, %v901_v47   ;;  %2997 = vst.msk [vmem:[%s8093_s1 + $0xd3] sm:$0x8] %vm3_vm0, %v901_v47  }
 0x123   :  { %2998 = vst.msk [vmem:[%s8093_s1 + $0x112] sm:$0x10] %vm3_vm0, %v901_v47   ;;  %2999 = vst.msk [vmem:[%s8093_s1 + $0x151] sm:$0x20] %vm3_vm0, %v901_v47  }
 0x124   :  { %3000 = vst.msk [vmem:[%s8093_s1 + $0x190] sm:$0x40] %vm3_vm0, %v901_v47   ;;  %3001 = vst.msk [vmem:[%s8093_s1 + $0x1cf] sm:$0x80] %vm3_vm0, %v901_v47   ;;  %v1865_v30 = vpop.permute.xlu1 %1864   ;;  %v1844_v31 = vpop.permute.xlu0 %1843  }
 0x125   :  { %3020 = vst.msk [vmem:[%s8093_s1 + $0x217] sm:$0x1] %vm3_vm0, %v963_v48   ;;  %3021 = vst.msk [vmem:[%s8093_s1 + $0x256] sm:$0x2] %vm3_vm0, %v963_v48  }
 0x126   :  { %3022 = vst.msk [vmem:[%s8093_s1 + $0x295] sm:$0x4] %vm3_vm0, %v963_v48   ;;  %3023 = vst.msk [vmem:[%s8093_s1 + $0x2d4] sm:$0x8] %vm3_vm0, %v963_v48  }
 0x127   :  { %3024 = vst.msk [vmem:[%s8093_s1 + $0x313] sm:$0x10] %vm3_vm0, %v963_v48   ;;  %3025 = vst.msk [vmem:[%s8093_s1 + $0x352] sm:$0x20] %vm3_vm0, %v963_v48  }
 0x128   :  { %3026 = vst.msk [vmem:[%s8093_s1 + $0x391] sm:$0x40] %vm3_vm0, %v963_v48   ;;  %3027 = vst.msk [vmem:[%s8093_s1 + $0x3d0] sm:$0x80] %vm3_vm0, %v963_v48   ;;  %v1906_v32 = vpop.permute.xlu1 %1905   ;;  %v1885_v33 = vpop.permute.xlu0 %1884  }
 0x129   :  { %3011 = vst.msk [vmem:[%s8093_s1 + $0x17] sm:$0x1] %vm3_vm0, %v942_v49   ;;  %3012 = vst.msk [vmem:[%s8093_s1 + $0x56] sm:$0x2] %vm3_vm0, %v942_v49  }
 0x12a   :  { %3013 = vst.msk [vmem:[%s8093_s1 + $0x95] sm:$0x4] %vm3_vm0, %v942_v49   ;;  %3014 = vst.msk [vmem:[%s8093_s1 + $0xd4] sm:$0x8] %vm3_vm0, %v942_v49  }
 0x12b   :  { %3015 = vst.msk [vmem:[%s8093_s1 + $0x113] sm:$0x10] %vm3_vm0, %v942_v49   ;;  %3016 = vst.msk [vmem:[%s8093_s1 + $0x152] sm:$0x20] %vm3_vm0, %v942_v49  }
 0x12c   :  { %3017 = vst.msk [vmem:[%s8093_s1 + $0x191] sm:$0x40] %vm3_vm0, %v942_v49   ;;  %3018 = vst.msk [vmem:[%s8093_s1 + $0x1d0] sm:$0x80] %vm3_vm0, %v942_v49   ;;  %v1947_v34 = vpop.permute.xlu1 %1946   ;;  %v1926_v35 = vpop.permute.xlu0 %1925  }
 0x12d   :  { %3037 = vst.msk [vmem:[%s8093_s1 + $0x218] sm:$0x1] %vm3_vm0, %v1004_v50   ;;  %3038 = vst.msk [vmem:[%s8093_s1 + $0x257] sm:$0x2] %vm3_vm0, %v1004_v50  }
 0x12e   :  { %3039 = vst.msk [vmem:[%s8093_s1 + $0x296] sm:$0x4] %vm3_vm0, %v1004_v50   ;;  %3040 = vst.msk [vmem:[%s8093_s1 + $0x2d5] sm:$0x8] %vm3_vm0, %v1004_v50  }
 0x12f   :  { %3041 = vst.msk [vmem:[%s8093_s1 + $0x314] sm:$0x10] %vm3_vm0, %v1004_v50   ;;  %3042 = vst.msk [vmem:[%s8093_s1 + $0x353] sm:$0x20] %vm3_vm0, %v1004_v50  }
 0x130   :  { %3043 = vst.msk [vmem:[%s8093_s1 + $0x392] sm:$0x40] %vm3_vm0, %v1004_v50   ;;  %3044 = vst.msk [vmem:[%s8093_s1 + $0x3d1] sm:$0x80] %vm3_vm0, %v1004_v50   ;;  %v1988_v36 = vpop.permute.xlu1 %1987   ;;  %v1967_v37 = vpop.permute.xlu0 %1966  }
 0x131   :  { %3028 = vst.msk [vmem:[%s8093_s1 + $0x18] sm:$0x1] %vm3_vm0, %v983_v51   ;;  %3029 = vst.msk [vmem:[%s8093_s1 + $0x57] sm:$0x2] %vm3_vm0, %v983_v51  }
 0x132   :  { %3030 = vst.msk [vmem:[%s8093_s1 + $0x96] sm:$0x4] %vm3_vm0, %v983_v51   ;;  %3031 = vst.msk [vmem:[%s8093_s1 + $0xd5] sm:$0x8] %vm3_vm0, %v983_v51  }
 0x133   :  { %3032 = vst.msk [vmem:[%s8093_s1 + $0x114] sm:$0x10] %vm3_vm0, %v983_v51   ;;  %3033 = vst.msk [vmem:[%s8093_s1 + $0x153] sm:$0x20] %vm3_vm0, %v983_v51  }
 0x134   :  { %3034 = vst.msk [vmem:[%s8093_s1 + $0x192] sm:$0x40] %vm3_vm0, %v983_v51   ;;  %3035 = vst.msk [vmem:[%s8093_s1 + $0x1d1] sm:$0x80] %vm3_vm0, %v983_v51   ;;  %v2029_v38 = vpop.permute.xlu1 %2028   ;;  %v2008_v39 = vpop.permute.xlu0 %2007  }
 0x135   :  { %3054 = vst.msk [vmem:[%s8093_s1 + $0x219] sm:$0x1] %vm3_vm0, %v1045_v52   ;;  %3055 = vst.msk [vmem:[%s8093_s1 + $0x258] sm:$0x2] %vm3_vm0, %v1045_v52  }
 0x136   :  { %3056 = vst.msk [vmem:[%s8093_s1 + $0x297] sm:$0x4] %vm3_vm0, %v1045_v52   ;;  %3057 = vst.msk [vmem:[%s8093_s1 + $0x2d6] sm:$0x8] %vm3_vm0, %v1045_v52  }
 0x137   :  { %3058 = vst.msk [vmem:[%s8093_s1 + $0x315] sm:$0x10] %vm3_vm0, %v1045_v52   ;;  %3059 = vst.msk [vmem:[%s8093_s1 + $0x354] sm:$0x20] %vm3_vm0, %v1045_v52  }
 0x138   :  { %3060 = vst.msk [vmem:[%s8093_s1 + $0x393] sm:$0x40] %vm3_vm0, %v1045_v52   ;;  %3061 = vst.msk [vmem:[%s8093_s1 + $0x3d2] sm:$0x80] %vm3_vm0, %v1045_v52   ;;  %v2070_v40 = vpop.permute.xlu1 %2069   ;;  %v2049_v41 = vpop.permute.xlu0 %2048  }
 0x139   :  { %3045 = vst.msk [vmem:[%s8093_s1 + $0x19] sm:$0x1] %vm3_vm0, %v1024_v53   ;;  %3046 = vst.msk [vmem:[%s8093_s1 + $0x58] sm:$0x2] %vm3_vm0, %v1024_v53  }
 0x13a   :  { %3047 = vst.msk [vmem:[%s8093_s1 + $0x97] sm:$0x4] %vm3_vm0, %v1024_v53   ;;  %3048 = vst.msk [vmem:[%s8093_s1 + $0xd6] sm:$0x8] %vm3_vm0, %v1024_v53  }
 0x13b   :  { %3049 = vst.msk [vmem:[%s8093_s1 + $0x115] sm:$0x10] %vm3_vm0, %v1024_v53   ;;  %3050 = vst.msk [vmem:[%s8093_s1 + $0x154] sm:$0x20] %vm3_vm0, %v1024_v53  }
 0x13c   :  { %3051 = vst.msk [vmem:[%s8093_s1 + $0x193] sm:$0x40] %vm3_vm0, %v1024_v53   ;;  %3052 = vst.msk [vmem:[%s8093_s1 + $0x1d2] sm:$0x80] %vm3_vm0, %v1024_v53   ;;  %v2111_v42 = vpop.permute.xlu1 %2110   ;;  %v2090_v43 = vpop.permute.xlu0 %2089  }
 0x13d   :  { %3071 = vst.msk [vmem:[%s8093_s1 + $0x21a] sm:$0x1] %vm3_vm0, %v1086_v54   ;;  %3072 = vst.msk [vmem:[%s8093_s1 + $0x259] sm:$0x2] %vm3_vm0, %v1086_v54  }
 0x13e   :  { %3073 = vst.msk [vmem:[%s8093_s1 + $0x298] sm:$0x4] %vm3_vm0, %v1086_v54   ;;  %3074 = vst.msk [vmem:[%s8093_s1 + $0x2d7] sm:$0x8] %vm3_vm0, %v1086_v54  }
 0x13f   :  { %3075 = vst.msk [vmem:[%s8093_s1 + $0x316] sm:$0x10] %vm3_vm0, %v1086_v54   ;;  %3076 = vst.msk [vmem:[%s8093_s1 + $0x355] sm:$0x20] %vm3_vm0, %v1086_v54  }
 0x140   :  { %3077 = vst.msk [vmem:[%s8093_s1 + $0x394] sm:$0x40] %vm3_vm0, %v1086_v54   ;;  %3078 = vst.msk [vmem:[%s8093_s1 + $0x3d3] sm:$0x80] %vm3_vm0, %v1086_v54   ;;  %v2152_v44 = vpop.permute.xlu1 %2151   ;;  %v2131_v45 = vpop.permute.xlu0 %2130  }
 0x141   :  { %3062 = vst.msk [vmem:[%s8093_s1 + $0x1a] sm:$0x1] %vm3_vm0, %v1065_v55   ;;  %3063 = vst.msk [vmem:[%s8093_s1 + $0x59] sm:$0x2] %vm3_vm0, %v1065_v55  }
 0x142   :  { %3064 = vst.msk [vmem:[%s8093_s1 + $0x98] sm:$0x4] %vm3_vm0, %v1065_v55   ;;  %3065 = vst.msk [vmem:[%s8093_s1 + $0xd7] sm:$0x8] %vm3_vm0, %v1065_v55  }
 0x143   :  { %3066 = vst.msk [vmem:[%s8093_s1 + $0x116] sm:$0x10] %vm3_vm0, %v1065_v55   ;;  %3067 = vst.msk [vmem:[%s8093_s1 + $0x155] sm:$0x20] %vm3_vm0, %v1065_v55  }
 0x144   :  { %3068 = vst.msk [vmem:[%s8093_s1 + $0x194] sm:$0x40] %vm3_vm0, %v1065_v55   ;;  %3069 = vst.msk [vmem:[%s8093_s1 + $0x1d3] sm:$0x80] %vm3_vm0, %v1065_v55   ;;  %v2193_v46 = vpop.permute.xlu1 %2192   ;;  %v2172_v47 = vpop.permute.xlu0 %2171  }
 0x145   :  { %3088 = vst.msk [vmem:[%s8093_s1 + $0x21b] sm:$0x1] %vm3_vm0, %v1127_v56   ;;  %3089 = vst.msk [vmem:[%s8093_s1 + $0x25a] sm:$0x2] %vm3_vm0, %v1127_v56  }
 0x146   :  { %3090 = vst.msk [vmem:[%s8093_s1 + $0x299] sm:$0x4] %vm3_vm0, %v1127_v56   ;;  %3091 = vst.msk [vmem:[%s8093_s1 + $0x2d8] sm:$0x8] %vm3_vm0, %v1127_v56  }
 0x147   :  { %3092 = vst.msk [vmem:[%s8093_s1 + $0x317] sm:$0x10] %vm3_vm0, %v1127_v56   ;;  %3093 = vst.msk [vmem:[%s8093_s1 + $0x356] sm:$0x20] %vm3_vm0, %v1127_v56  }
 0x148   :  { %3094 = vst.msk [vmem:[%s8093_s1 + $0x395] sm:$0x40] %vm3_vm0, %v1127_v56   ;;  %3095 = vst.msk [vmem:[%s8093_s1 + $0x3d4] sm:$0x80] %vm3_vm0, %v1127_v56   ;;  %v2234_v48 = vpop.permute.xlu1 %2233   ;;  %v2213_v49 = vpop.permute.xlu0 %2212  }
 0x149   :  { %3079 = vst.msk [vmem:[%s8093_s1 + $0x1b] sm:$0x1] %vm3_vm0, %v1106_v57   ;;  %3080 = vst.msk [vmem:[%s8093_s1 + $0x5a] sm:$0x2] %vm3_vm0, %v1106_v57  }
 0x14a   :  { %3081 = vst.msk [vmem:[%s8093_s1 + $0x99] sm:$0x4] %vm3_vm0, %v1106_v57   ;;  %3082 = vst.msk [vmem:[%s8093_s1 + $0xd8] sm:$0x8] %vm3_vm0, %v1106_v57  }
 0x14b   :  { %3083 = vst.msk [vmem:[%s8093_s1 + $0x117] sm:$0x10] %vm3_vm0, %v1106_v57   ;;  %3084 = vst.msk [vmem:[%s8093_s1 + $0x156] sm:$0x20] %vm3_vm0, %v1106_v57  }
 0x14c   :  { %3085 = vst.msk [vmem:[%s8093_s1 + $0x195] sm:$0x40] %vm3_vm0, %v1106_v57   ;;  %3086 = vst.msk [vmem:[%s8093_s1 + $0x1d4] sm:$0x80] %vm3_vm0, %v1106_v57   ;;  %v2275_v50 = vpop.permute.xlu1 %2274   ;;  %v2254_v51 = vpop.permute.xlu0 %2253  }
 0x14d   :  { %3105 = vst.msk [vmem:[%s8093_s1 + $0x21c] sm:$0x1] %vm3_vm0, %v1168_v58   ;;  %3106 = vst.msk [vmem:[%s8093_s1 + $0x25b] sm:$0x2] %vm3_vm0, %v1168_v58  }
 0x14e   :  { %3107 = vst.msk [vmem:[%s8093_s1 + $0x29a] sm:$0x4] %vm3_vm0, %v1168_v58   ;;  %3108 = vst.msk [vmem:[%s8093_s1 + $0x2d9] sm:$0x8] %vm3_vm0, %v1168_v58  }
 0x14f   :  { %3109 = vst.msk [vmem:[%s8093_s1 + $0x318] sm:$0x10] %vm3_vm0, %v1168_v58   ;;  %3110 = vst.msk [vmem:[%s8093_s1 + $0x357] sm:$0x20] %vm3_vm0, %v1168_v58  }
 0x150   :  { %3111 = vst.msk [vmem:[%s8093_s1 + $0x396] sm:$0x40] %vm3_vm0, %v1168_v58   ;;  %3112 = vst.msk [vmem:[%s8093_s1 + $0x3d5] sm:$0x80] %vm3_vm0, %v1168_v58   ;;  %v2316_v52 = vpop.permute.xlu1 %2315   ;;  %v2295_v53 = vpop.permute.xlu0 %2294  }
 0x151   :  { %3096 = vst.msk [vmem:[%s8093_s1 + $0x1c] sm:$0x1] %vm3_vm0, %v1147_v59   ;;  %3097 = vst.msk [vmem:[%s8093_s1 + $0x5b] sm:$0x2] %vm3_vm0, %v1147_v59  }
 0x152   :  { %3098 = vst.msk [vmem:[%s8093_s1 + $0x9a] sm:$0x4] %vm3_vm0, %v1147_v59   ;;  %3099 = vst.msk [vmem:[%s8093_s1 + $0xd9] sm:$0x8] %vm3_vm0, %v1147_v59  }
 0x153   :  { %3100 = vst.msk [vmem:[%s8093_s1 + $0x118] sm:$0x10] %vm3_vm0, %v1147_v59   ;;  %3101 = vst.msk [vmem:[%s8093_s1 + $0x157] sm:$0x20] %vm3_vm0, %v1147_v59  }
 0x154   :  { %3102 = vst.msk [vmem:[%s8093_s1 + $0x196] sm:$0x40] %vm3_vm0, %v1147_v59   ;;  %3103 = vst.msk [vmem:[%s8093_s1 + $0x1d5] sm:$0x80] %vm3_vm0, %v1147_v59   ;;  %v2357_v54 = vpop.permute.xlu1 %2356   ;;  %v2336_v55 = vpop.permute.xlu0 %2335  }
 0x155   :  { %3122 = vst.msk [vmem:[%s8093_s1 + $0x21d] sm:$0x1] %vm3_vm0, %v1209_v60   ;;  %3123 = vst.msk [vmem:[%s8093_s1 + $0x25c] sm:$0x2] %vm3_vm0, %v1209_v60  }
 0x156   :  { %3124 = vst.msk [vmem:[%s8093_s1 + $0x29b] sm:$0x4] %vm3_vm0, %v1209_v60   ;;  %3125 = vst.msk [vmem:[%s8093_s1 + $0x2da] sm:$0x8] %vm3_vm0, %v1209_v60  }
 0x157   :  { %3126 = vst.msk [vmem:[%s8093_s1 + $0x319] sm:$0x10] %vm3_vm0, %v1209_v60   ;;  %3127 = vst.msk [vmem:[%s8093_s1 + $0x358] sm:$0x20] %vm3_vm0, %v1209_v60  }
 0x158   :  { %3128 = vst.msk [vmem:[%s8093_s1 + $0x397] sm:$0x40] %vm3_vm0, %v1209_v60   ;;  %3129 = vst.msk [vmem:[%s8093_s1 + $0x3d6] sm:$0x80] %vm3_vm0, %v1209_v60   ;;  %v2398_v56 = vpop.permute.xlu1 %2397   ;;  %v2377_v57 = vpop.permute.xlu0 %2376  }
 0x159   :  { %3113 = vst.msk [vmem:[%s8093_s1 + $0x1d] sm:$0x1] %vm3_vm0, %v1188_v61   ;;  %3114 = vst.msk [vmem:[%s8093_s1 + $0x5c] sm:$0x2] %vm3_vm0, %v1188_v61  }
 0x15a   :  { %3115 = vst.msk [vmem:[%s8093_s1 + $0x9b] sm:$0x4] %vm3_vm0, %v1188_v61   ;;  %3116 = vst.msk [vmem:[%s8093_s1 + $0xda] sm:$0x8] %vm3_vm0, %v1188_v61  }
 0x15b   :  { %3117 = vst.msk [vmem:[%s8093_s1 + $0x119] sm:$0x10] %vm3_vm0, %v1188_v61   ;;  %3118 = vst.msk [vmem:[%s8093_s1 + $0x158] sm:$0x20] %vm3_vm0, %v1188_v61  }
 0x15c   :  { %3119 = vst.msk [vmem:[%s8093_s1 + $0x197] sm:$0x40] %vm3_vm0, %v1188_v61   ;;  %3120 = vst.msk [vmem:[%s8093_s1 + $0x1d6] sm:$0x80] %vm3_vm0, %v1188_v61   ;;  %v2439_v58 = vpop.permute.xlu1 %2438   ;;  %v2418_v59 = vpop.permute.xlu0 %2417  }
 0x15d   :  { %3139 = vst.msk [vmem:[%s8093_s1 + $0x21e] sm:$0x1] %vm3_vm0, %v1250_v62   ;;  %3140 = vst.msk [vmem:[%s8093_s1 + $0x25d] sm:$0x2] %vm3_vm0, %v1250_v62  }
 0x15e   :  { %3141 = vst.msk [vmem:[%s8093_s1 + $0x29c] sm:$0x4] %vm3_vm0, %v1250_v62   ;;  %3142 = vst.msk [vmem:[%s8093_s1 + $0x2db] sm:$0x8] %vm3_vm0, %v1250_v62  }
 0x15f   :  { %3143 = vst.msk [vmem:[%s8093_s1 + $0x31a] sm:$0x10] %vm3_vm0, %v1250_v62   ;;  %3144 = vst.msk [vmem:[%s8093_s1 + $0x359] sm:$0x20] %vm3_vm0, %v1250_v62  }
 0x160   :  { %3145 = vst.msk [vmem:[%s8093_s1 + $0x398] sm:$0x40] %vm3_vm0, %v1250_v62   ;;  %3146 = vst.msk [vmem:[%s8093_s1 + $0x3d7] sm:$0x80] %vm3_vm0, %v1250_v62   ;;  %v2480_v60 = vpop.permute.xlu1 %2479   ;;  %v2459_v61 = vpop.permute.xlu0 %2458  }
 0x161   :  { %3130 = vst.msk [vmem:[%s8093_s1 + $0x1e] sm:$0x1] %vm3_vm0, %v1229_v63   ;;  %3131 = vst.msk [vmem:[%s8093_s1 + $0x5d] sm:$0x2] %vm3_vm0, %v1229_v63  }
 0x162   :  { %3132 = vst.msk [vmem:[%s8093_s1 + $0x9c] sm:$0x4] %vm3_vm0, %v1229_v63   ;;  %3133 = vst.msk [vmem:[%s8093_s1 + $0xdb] sm:$0x8] %vm3_vm0, %v1229_v63  }
 0x163   :  { %3134 = vst.msk [vmem:[%s8093_s1 + $0x11a] sm:$0x10] %vm3_vm0, %v1229_v63   ;;  %3135 = vst.msk [vmem:[%s8093_s1 + $0x159] sm:$0x20] %vm3_vm0, %v1229_v63  }
 0x164   :  { %3136 = vst.msk [vmem:[%s8093_s1 + $0x198] sm:$0x40] %vm3_vm0, %v1229_v63   ;;  %3137 = vst.msk [vmem:[%s8093_s1 + $0x1d7] sm:$0x80] %vm3_vm0, %v1229_v63   ;;  %v2521_v62 = vpop.permute.xlu1 %2520   ;;  %v2500_v63 = vpop.permute.xlu0 %2499  }
 0x165   :  { %3156 = vst.msk [vmem:[%s8093_s1 + $0x21f] sm:$0x1] %vm3_vm0, %v1291_v0   ;;  %3157 = vst.msk [vmem:[%s8093_s1 + $0x25e] sm:$0x2] %vm3_vm0, %v1291_v0  }
 0x166   :  { %3158 = vst.msk [vmem:[%s8093_s1 + $0x29d] sm:$0x4] %vm3_vm0, %v1291_v0   ;;  %3159 = vst.msk [vmem:[%s8093_s1 + $0x2dc] sm:$0x8] %vm3_vm0, %v1291_v0  }
 0x167   :  { %3160 = vst.msk [vmem:[%s8093_s1 + $0x31b] sm:$0x10] %vm3_vm0, %v1291_v0   ;;  %3161 = vst.msk [vmem:[%s8093_s1 + $0x35a] sm:$0x20] %vm3_vm0, %v1291_v0  }
 0x168   :  { %3162 = vst.msk [vmem:[%s8093_s1 + $0x399] sm:$0x40] %vm3_vm0, %v1291_v0   ;;  %3163 = vst.msk [vmem:[%s8093_s1 + $0x3d8] sm:$0x80] %vm3_vm0, %v1291_v0   ;;  %v2562_v0 = vpop.permute.xlu1 %2561  }
 0x169   :  { %3147 = vst.msk [vmem:[%s8093_s1 + $0x1f] sm:$0x1] %vm3_vm0, %v1270_v1   ;;  %3148 = vst.msk [vmem:[%s8093_s1 + $0x5e] sm:$0x2] %vm3_vm0, %v1270_v1  }
 0x16a   :  { %3149 = vst.msk [vmem:[%s8093_s1 + $0x9d] sm:$0x4] %vm3_vm0, %v1270_v1   ;;  %3150 = vst.msk [vmem:[%s8093_s1 + $0xdc] sm:$0x8] %vm3_vm0, %v1270_v1  }
 0x16b   :  { %3151 = vst.msk [vmem:[%s8093_s1 + $0x11b] sm:$0x10] %vm3_vm0, %v1270_v1   ;;  %3152 = vst.msk [vmem:[%s8093_s1 + $0x15a] sm:$0x20] %vm3_vm0, %v1270_v1  }
 0x16c   :  { %3153 = vst.msk [vmem:[%s8093_s1 + $0x199] sm:$0x40] %vm3_vm0, %v1270_v1   ;;  %3154 = vst.msk [vmem:[%s8093_s1 + $0x1d8] sm:$0x80] %vm3_vm0, %v1270_v1   ;;  %v2541_v1 = vpop.permute.xlu0 %2540  }
 0x16d   :  { %4 = vst.msk [vmem:[%s8093_s1] sm:$0x1] %vm3_vm0, %v2_v2   ;;  %2621 = vst.msk [vmem:[%s8093_s1 + $0x3f] sm:$0x2] %vm3_vm0, %v2_v2  }
 0x16e   :  { %2622 = vst.msk [vmem:[%s8093_s1 + $0x7e] sm:$0x4] %vm3_vm0, %v2_v2   ;;  %2623 = vst.msk [vmem:[%s8093_s1 + $0xbd] sm:$0x8] %vm3_vm0, %v2_v2  }
 0x16f   :  { %2624 = vst.msk [vmem:[%s8093_s1 + $0xfc] sm:$0x10] %vm3_vm0, %v2_v2   ;;  %2625 = vst.msk [vmem:[%s8093_s1 + $0x13b] sm:$0x20] %vm3_vm0, %v2_v2  }
 0x170   :  { %2626 = vst.msk [vmem:[%s8093_s1 + $0x17a] sm:$0x40] %vm3_vm0, %v2_v2   ;;  %2627 = vst.msk [vmem:[%s8093_s1 + $0x1b9] sm:$0x80] %vm3_vm0, %v2_v2   ;;  %v2603_v2 = vpop.permute.xlu1 %2602  }
 0x171   :  { %2629 = vst.msk [vmem:[%s8093_s1 + $0x200] sm:$0x1] %vm3_vm0, %v2628_v3   ;;  %2630 = vst.msk [vmem:[%s8093_s1 + $0x23f] sm:$0x2] %vm3_vm0, %v2628_v3  }
 0x172   :  { %2631 = vst.msk [vmem:[%s8093_s1 + $0x27e] sm:$0x4] %vm3_vm0, %v2628_v3   ;;  %2632 = vst.msk [vmem:[%s8093_s1 + $0x2bd] sm:$0x8] %vm3_vm0, %v2628_v3  }
 0x173   :  { %2633 = vst.msk [vmem:[%s8093_s1 + $0x2fc] sm:$0x10] %vm3_vm0, %v2628_v3   ;;  %2634 = vst.msk [vmem:[%s8093_s1 + $0x33b] sm:$0x20] %vm3_vm0, %v2628_v3  }
 0x174   :  { %2635 = vst.msk [vmem:[%s8093_s1 + $0x37a] sm:$0x40] %vm3_vm0, %v2628_v3   ;;  %2636 = vst.msk [vmem:[%s8093_s1 + $0x3b9] sm:$0x80] %vm3_vm0, %v2628_v3   ;;  %v2582_v3 = vpop.permute.xlu0 %2581  }
 0x175   :  { %3173 = vst.msk [vmem:[%s8093_s1 + $0x220] sm:$0x1] %vm3_vm0, %v1332_v4   ;;  %3174 = vst.msk [vmem:[%s8093_s1 + $0x25f] sm:$0x2] %vm3_vm0, %v1332_v4  }
 0x176   :  { %3175 = vst.msk [vmem:[%s8093_s1 + $0x29e] sm:$0x4] %vm3_vm0, %v1332_v4   ;;  %3176 = vst.msk [vmem:[%s8093_s1 + $0x2dd] sm:$0x8] %vm3_vm0, %v1332_v4  }
 0x177   :  { %3177 = vst.msk [vmem:[%s8093_s1 + $0x31c] sm:$0x10] %vm3_vm0, %v1332_v4   ;;  %3178 = vst.msk [vmem:[%s8093_s1 + $0x35b] sm:$0x20] %vm3_vm0, %v1332_v4  }
 0x178   :  { %3179 = vst.msk [vmem:[%s8093_s1 + $0x39a] sm:$0x40] %vm3_vm0, %v1332_v4   ;;  %3180 = vst.msk [vmem:[%s8093_s1 + $0x3d9] sm:$0x80] %vm3_vm0, %v1332_v4  }
 0x179   :  { %3164 = vst.msk [vmem:[%s8093_s1 + $0x20] sm:$0x1] %vm3_vm0, %v1311_v5   ;;  %3165 = vst.msk [vmem:[%s8093_s1 + $0x5f] sm:$0x2] %vm3_vm0, %v1311_v5  }
 0x17a   :  { %3166 = vst.msk [vmem:[%s8093_s1 + $0x9e] sm:$0x4] %vm3_vm0, %v1311_v5   ;;  %3167 = vst.msk [vmem:[%s8093_s1 + $0xdd] sm:$0x8] %vm3_vm0, %v1311_v5  }
 0x17b   :  { %3168 = vst.msk [vmem:[%s8093_s1 + $0x11c] sm:$0x10] %vm3_vm0, %v1311_v5   ;;  %3169 = vst.msk [vmem:[%s8093_s1 + $0x15b] sm:$0x20] %vm3_vm0, %v1311_v5  }
 0x17c   :  { %3170 = vst.msk [vmem:[%s8093_s1 + $0x19a] sm:$0x40] %vm3_vm0, %v1311_v5   ;;  %3171 = vst.msk [vmem:[%s8093_s1 + $0x1d9] sm:$0x80] %vm3_vm0, %v1311_v5  }
 0x17d   :  { %3190 = vst.msk [vmem:[%s8093_s1 + $0x221] sm:$0x1] %vm3_vm0, %v1373_v6   ;;  %3191 = vst.msk [vmem:[%s8093_s1 + $0x260] sm:$0x2] %vm3_vm0, %v1373_v6  }
 0x17e   :  { %3192 = vst.msk [vmem:[%s8093_s1 + $0x29f] sm:$0x4] %vm3_vm0, %v1373_v6   ;;  %3193 = vst.msk [vmem:[%s8093_s1 + $0x2de] sm:$0x8] %vm3_vm0, %v1373_v6  }
 0x17f   :  { %3194 = vst.msk [vmem:[%s8093_s1 + $0x31d] sm:$0x10] %vm3_vm0, %v1373_v6   ;;  %3195 = vst.msk [vmem:[%s8093_s1 + $0x35c] sm:$0x20] %vm3_vm0, %v1373_v6  }
 0x180   :  { %3196 = vst.msk [vmem:[%s8093_s1 + $0x39b] sm:$0x40] %vm3_vm0, %v1373_v6   ;;  %3197 = vst.msk [vmem:[%s8093_s1 + $0x3da] sm:$0x80] %vm3_vm0, %v1373_v6  }
 0x181   :  { %3181 = vst.msk [vmem:[%s8093_s1 + $0x21] sm:$0x1] %vm3_vm0, %v1352_v7   ;;  %3182 = vst.msk [vmem:[%s8093_s1 + $0x60] sm:$0x2] %vm3_vm0, %v1352_v7  }
 0x182   :  { %3183 = vst.msk [vmem:[%s8093_s1 + $0x9f] sm:$0x4] %vm3_vm0, %v1352_v7   ;;  %3184 = vst.msk [vmem:[%s8093_s1 + $0xde] sm:$0x8] %vm3_vm0, %v1352_v7  }
 0x183   :  { %3185 = vst.msk [vmem:[%s8093_s1 + $0x11d] sm:$0x10] %vm3_vm0, %v1352_v7   ;;  %3186 = vst.msk [vmem:[%s8093_s1 + $0x15c] sm:$0x20] %vm3_vm0, %v1352_v7  }
 0x184   :  { %3187 = vst.msk [vmem:[%s8093_s1 + $0x19b] sm:$0x40] %vm3_vm0, %v1352_v7   ;;  %3188 = vst.msk [vmem:[%s8093_s1 + $0x1da] sm:$0x80] %vm3_vm0, %v1352_v7  }
 0x185   :  { %3207 = vst.msk [vmem:[%s8093_s1 + $0x222] sm:$0x1] %vm3_vm0, %v1414_v8   ;;  %3208 = vst.msk [vmem:[%s8093_s1 + $0x261] sm:$0x2] %vm3_vm0, %v1414_v8  }
 0x186   :  { %3209 = vst.msk [vmem:[%s8093_s1 + $0x2a0] sm:$0x4] %vm3_vm0, %v1414_v8   ;;  %3210 = vst.msk [vmem:[%s8093_s1 + $0x2df] sm:$0x8] %vm3_vm0, %v1414_v8  }
 0x187   :  { %3211 = vst.msk [vmem:[%s8093_s1 + $0x31e] sm:$0x10] %vm3_vm0, %v1414_v8   ;;  %3212 = vst.msk [vmem:[%s8093_s1 + $0x35d] sm:$0x20] %vm3_vm0, %v1414_v8  }
 0x188   :  { %3213 = vst.msk [vmem:[%s8093_s1 + $0x39c] sm:$0x40] %vm3_vm0, %v1414_v8   ;;  %3214 = vst.msk [vmem:[%s8093_s1 + $0x3db] sm:$0x80] %vm3_vm0, %v1414_v8  }
 0x189   :  { %3198 = vst.msk [vmem:[%s8093_s1 + $0x22] sm:$0x1] %vm3_vm0, %v1393_v9   ;;  %3199 = vst.msk [vmem:[%s8093_s1 + $0x61] sm:$0x2] %vm3_vm0, %v1393_v9  }
 0x18a   :  { %3200 = vst.msk [vmem:[%s8093_s1 + $0xa0] sm:$0x4] %vm3_vm0, %v1393_v9   ;;  %3201 = vst.msk [vmem:[%s8093_s1 + $0xdf] sm:$0x8] %vm3_vm0, %v1393_v9  }
 0x18b   :  { %3202 = vst.msk [vmem:[%s8093_s1 + $0x11e] sm:$0x10] %vm3_vm0, %v1393_v9   ;;  %3203 = vst.msk [vmem:[%s8093_s1 + $0x15d] sm:$0x20] %vm3_vm0, %v1393_v9  }
 0x18c   :  { %3204 = vst.msk [vmem:[%s8093_s1 + $0x19c] sm:$0x40] %vm3_vm0, %v1393_v9   ;;  %3205 = vst.msk [vmem:[%s8093_s1 + $0x1db] sm:$0x80] %vm3_vm0, %v1393_v9  }
 0x18d   :  { %3224 = vst.msk [vmem:[%s8093_s1 + $0x223] sm:$0x1] %vm3_vm0, %v1455_v10   ;;  %3225 = vst.msk [vmem:[%s8093_s1 + $0x262] sm:$0x2] %vm3_vm0, %v1455_v10  }
 0x18e   :  { %3226 = vst.msk [vmem:[%s8093_s1 + $0x2a1] sm:$0x4] %vm3_vm0, %v1455_v10   ;;  %3227 = vst.msk [vmem:[%s8093_s1 + $0x2e0] sm:$0x8] %vm3_vm0, %v1455_v10  }
 0x18f   :  { %3228 = vst.msk [vmem:[%s8093_s1 + $0x31f] sm:$0x10] %vm3_vm0, %v1455_v10   ;;  %3229 = vst.msk [vmem:[%s8093_s1 + $0x35e] sm:$0x20] %vm3_vm0, %v1455_v10  }
 0x190   :  { %3230 = vst.msk [vmem:[%s8093_s1 + $0x39d] sm:$0x40] %vm3_vm0, %v1455_v10   ;;  %3231 = vst.msk [vmem:[%s8093_s1 + $0x3dc] sm:$0x80] %vm3_vm0, %v1455_v10  }
 0x191   :  { %3215 = vst.msk [vmem:[%s8093_s1 + $0x23] sm:$0x1] %vm3_vm0, %v1434_v11   ;;  %3216 = vst.msk [vmem:[%s8093_s1 + $0x62] sm:$0x2] %vm3_vm0, %v1434_v11  }
 0x192   :  { %3217 = vst.msk [vmem:[%s8093_s1 + $0xa1] sm:$0x4] %vm3_vm0, %v1434_v11   ;;  %3218 = vst.msk [vmem:[%s8093_s1 + $0xe0] sm:$0x8] %vm3_vm0, %v1434_v11  }
 0x193   :  { %3219 = vst.msk [vmem:[%s8093_s1 + $0x11f] sm:$0x10] %vm3_vm0, %v1434_v11   ;;  %3220 = vst.msk [vmem:[%s8093_s1 + $0x15e] sm:$0x20] %vm3_vm0, %v1434_v11  }
 0x194   :  { %3221 = vst.msk [vmem:[%s8093_s1 + $0x19d] sm:$0x40] %vm3_vm0, %v1434_v11   ;;  %3222 = vst.msk [vmem:[%s8093_s1 + $0x1dc] sm:$0x80] %vm3_vm0, %v1434_v11  }
 0x195   :  { %3241 = vst.msk [vmem:[%s8093_s1 + $0x224] sm:$0x1] %vm3_vm0, %v1496_v12   ;;  %3242 = vst.msk [vmem:[%s8093_s1 + $0x263] sm:$0x2] %vm3_vm0, %v1496_v12  }
 0x196   :  { %3243 = vst.msk [vmem:[%s8093_s1 + $0x2a2] sm:$0x4] %vm3_vm0, %v1496_v12   ;;  %3244 = vst.msk [vmem:[%s8093_s1 + $0x2e1] sm:$0x8] %vm3_vm0, %v1496_v12  }
 0x197   :  { %3245 = vst.msk [vmem:[%s8093_s1 + $0x320] sm:$0x10] %vm3_vm0, %v1496_v12   ;;  %3246 = vst.msk [vmem:[%s8093_s1 + $0x35f] sm:$0x20] %vm3_vm0, %v1496_v12  }
 0x198   :  { %3247 = vst.msk [vmem:[%s8093_s1 + $0x39e] sm:$0x40] %vm3_vm0, %v1496_v12   ;;  %3248 = vst.msk [vmem:[%s8093_s1 + $0x3dd] sm:$0x80] %vm3_vm0, %v1496_v12  }
 0x199   :  { %3232 = vst.msk [vmem:[%s8093_s1 + $0x24] sm:$0x1] %vm3_vm0, %v1475_v13   ;;  %3233 = vst.msk [vmem:[%s8093_s1 + $0x63] sm:$0x2] %vm3_vm0, %v1475_v13  }
 0x19a   :  { %3234 = vst.msk [vmem:[%s8093_s1 + $0xa2] sm:$0x4] %vm3_vm0, %v1475_v13   ;;  %3235 = vst.msk [vmem:[%s8093_s1 + $0xe1] sm:$0x8] %vm3_vm0, %v1475_v13  }
 0x19b   :  { %3236 = vst.msk [vmem:[%s8093_s1 + $0x120] sm:$0x10] %vm3_vm0, %v1475_v13   ;;  %3237 = vst.msk [vmem:[%s8093_s1 + $0x15f] sm:$0x20] %vm3_vm0, %v1475_v13  }
 0x19c   :  { %3238 = vst.msk [vmem:[%s8093_s1 + $0x19e] sm:$0x40] %vm3_vm0, %v1475_v13   ;;  %3239 = vst.msk [vmem:[%s8093_s1 + $0x1dd] sm:$0x80] %vm3_vm0, %v1475_v13  }
 0x19d   :  { %3258 = vst.msk [vmem:[%s8093_s1 + $0x225] sm:$0x1] %vm3_vm0, %v1537_v14   ;;  %3259 = vst.msk [vmem:[%s8093_s1 + $0x264] sm:$0x2] %vm3_vm0, %v1537_v14  }
 0x19e   :  { %3260 = vst.msk [vmem:[%s8093_s1 + $0x2a3] sm:$0x4] %vm3_vm0, %v1537_v14   ;;  %3261 = vst.msk [vmem:[%s8093_s1 + $0x2e2] sm:$0x8] %vm3_vm0, %v1537_v14  }
 0x19f   :  { %3262 = vst.msk [vmem:[%s8093_s1 + $0x321] sm:$0x10] %vm3_vm0, %v1537_v14   ;;  %3263 = vst.msk [vmem:[%s8093_s1 + $0x360] sm:$0x20] %vm3_vm0, %v1537_v14  }
 0x1a0   :  { %3264 = vst.msk [vmem:[%s8093_s1 + $0x39f] sm:$0x40] %vm3_vm0, %v1537_v14   ;;  %3265 = vst.msk [vmem:[%s8093_s1 + $0x3de] sm:$0x80] %vm3_vm0, %v1537_v14  }
 0x1a1   :  { %3249 = vst.msk [vmem:[%s8093_s1 + $0x25] sm:$0x1] %vm3_vm0, %v1516_v15   ;;  %3250 = vst.msk [vmem:[%s8093_s1 + $0x64] sm:$0x2] %vm3_vm0, %v1516_v15  }
 0x1a2   :  { %3251 = vst.msk [vmem:[%s8093_s1 + $0xa3] sm:$0x4] %vm3_vm0, %v1516_v15   ;;  %3252 = vst.msk [vmem:[%s8093_s1 + $0xe2] sm:$0x8] %vm3_vm0, %v1516_v15  }
 0x1a3   :  { %3253 = vst.msk [vmem:[%s8093_s1 + $0x121] sm:$0x10] %vm3_vm0, %v1516_v15   ;;  %3254 = vst.msk [vmem:[%s8093_s1 + $0x160] sm:$0x20] %vm3_vm0, %v1516_v15  }
 0x1a4   :  { %3255 = vst.msk [vmem:[%s8093_s1 + $0x19f] sm:$0x40] %vm3_vm0, %v1516_v15   ;;  %3256 = vst.msk [vmem:[%s8093_s1 + $0x1de] sm:$0x80] %vm3_vm0, %v1516_v15  }
 0x1a5   :  { %3275 = vst.msk [vmem:[%s8093_s1 + $0x226] sm:$0x1] %vm3_vm0, %v1578_v16   ;;  %3276 = vst.msk [vmem:[%s8093_s1 + $0x265] sm:$0x2] %vm3_vm0, %v1578_v16  }
 0x1a6   :  { %3277 = vst.msk [vmem:[%s8093_s1 + $0x2a4] sm:$0x4] %vm3_vm0, %v1578_v16   ;;  %3278 = vst.msk [vmem:[%s8093_s1 + $0x2e3] sm:$0x8] %vm3_vm0, %v1578_v16  }
 0x1a7   :  { %3279 = vst.msk [vmem:[%s8093_s1 + $0x322] sm:$0x10] %vm3_vm0, %v1578_v16   ;;  %3280 = vst.msk [vmem:[%s8093_s1 + $0x361] sm:$0x20] %vm3_vm0, %v1578_v16  }
 0x1a8   :  { %3281 = vst.msk [vmem:[%s8093_s1 + $0x3a0] sm:$0x40] %vm3_vm0, %v1578_v16   ;;  %3282 = vst.msk [vmem:[%s8093_s1 + $0x3df] sm:$0x80] %vm3_vm0, %v1578_v16  }
 0x1a9   :  { %3266 = vst.msk [vmem:[%s8093_s1 + $0x26] sm:$0x1] %vm3_vm0, %v1557_v17   ;;  %3267 = vst.msk [vmem:[%s8093_s1 + $0x65] sm:$0x2] %vm3_vm0, %v1557_v17  }
 0x1aa   :  { %3268 = vst.msk [vmem:[%s8093_s1 + $0xa4] sm:$0x4] %vm3_vm0, %v1557_v17   ;;  %3269 = vst.msk [vmem:[%s8093_s1 + $0xe3] sm:$0x8] %vm3_vm0, %v1557_v17  }
 0x1ab   :  { %3270 = vst.msk [vmem:[%s8093_s1 + $0x122] sm:$0x10] %vm3_vm0, %v1557_v17   ;;  %3271 = vst.msk [vmem:[%s8093_s1 + $0x161] sm:$0x20] %vm3_vm0, %v1557_v17  }
 0x1ac   :  { %3272 = vst.msk [vmem:[%s8093_s1 + $0x1a0] sm:$0x40] %vm3_vm0, %v1557_v17   ;;  %3273 = vst.msk [vmem:[%s8093_s1 + $0x1df] sm:$0x80] %vm3_vm0, %v1557_v17  }
 0x1ad   :  { %3292 = vst.msk [vmem:[%s8093_s1 + $0x227] sm:$0x1] %vm3_vm0, %v1619_v18   ;;  %3293 = vst.msk [vmem:[%s8093_s1 + $0x266] sm:$0x2] %vm3_vm0, %v1619_v18  }
 0x1ae   :  { %3294 = vst.msk [vmem:[%s8093_s1 + $0x2a5] sm:$0x4] %vm3_vm0, %v1619_v18   ;;  %3295 = vst.msk [vmem:[%s8093_s1 + $0x2e4] sm:$0x8] %vm3_vm0, %v1619_v18  }
 0x1af   :  { %3296 = vst.msk [vmem:[%s8093_s1 + $0x323] sm:$0x10] %vm3_vm0, %v1619_v18   ;;  %3297 = vst.msk [vmem:[%s8093_s1 + $0x362] sm:$0x20] %vm3_vm0, %v1619_v18  }
 0x1b0   :  { %3298 = vst.msk [vmem:[%s8093_s1 + $0x3a1] sm:$0x40] %vm3_vm0, %v1619_v18   ;;  %3299 = vst.msk [vmem:[%s8093_s1 + $0x3e0] sm:$0x80] %vm3_vm0, %v1619_v18  }
 0x1b1   :  { %3283 = vst.msk [vmem:[%s8093_s1 + $0x27] sm:$0x1] %vm3_vm0, %v1598_v19   ;;  %3284 = vst.msk [vmem:[%s8093_s1 + $0x66] sm:$0x2] %vm3_vm0, %v1598_v19  }
 0x1b2   :  { %3285 = vst.msk [vmem:[%s8093_s1 + $0xa5] sm:$0x4] %vm3_vm0, %v1598_v19   ;;  %3286 = vst.msk [vmem:[%s8093_s1 + $0xe4] sm:$0x8] %vm3_vm0, %v1598_v19  }
 0x1b3   :  { %3287 = vst.msk [vmem:[%s8093_s1 + $0x123] sm:$0x10] %vm3_vm0, %v1598_v19   ;;  %3288 = vst.msk [vmem:[%s8093_s1 + $0x162] sm:$0x20] %vm3_vm0, %v1598_v19  }
 0x1b4   :  { %3289 = vst.msk [vmem:[%s8093_s1 + $0x1a1] sm:$0x40] %vm3_vm0, %v1598_v19   ;;  %3290 = vst.msk [vmem:[%s8093_s1 + $0x1e0] sm:$0x80] %vm3_vm0, %v1598_v19  }
 0x1b5   :  { %3309 = vst.msk [vmem:[%s8093_s1 + $0x228] sm:$0x1] %vm3_vm0, %v1660_v20   ;;  %3310 = vst.msk [vmem:[%s8093_s1 + $0x267] sm:$0x2] %vm3_vm0, %v1660_v20  }
 0x1b6   :  { %3311 = vst.msk [vmem:[%s8093_s1 + $0x2a6] sm:$0x4] %vm3_vm0, %v1660_v20   ;;  %3312 = vst.msk [vmem:[%s8093_s1 + $0x2e5] sm:$0x8] %vm3_vm0, %v1660_v20  }
 0x1b7   :  { %3313 = vst.msk [vmem:[%s8093_s1 + $0x324] sm:$0x10] %vm3_vm0, %v1660_v20   ;;  %3314 = vst.msk [vmem:[%s8093_s1 + $0x363] sm:$0x20] %vm3_vm0, %v1660_v20  }
 0x1b8   :  { %3315 = vst.msk [vmem:[%s8093_s1 + $0x3a2] sm:$0x40] %vm3_vm0, %v1660_v20   ;;  %3316 = vst.msk [vmem:[%s8093_s1 + $0x3e1] sm:$0x80] %vm3_vm0, %v1660_v20  }
 0x1b9   :  { %3300 = vst.msk [vmem:[%s8093_s1 + $0x28] sm:$0x1] %vm3_vm0, %v1639_v21   ;;  %3301 = vst.msk [vmem:[%s8093_s1 + $0x67] sm:$0x2] %vm3_vm0, %v1639_v21  }
 0x1ba   :  { %3302 = vst.msk [vmem:[%s8093_s1 + $0xa6] sm:$0x4] %vm3_vm0, %v1639_v21   ;;  %3303 = vst.msk [vmem:[%s8093_s1 + $0xe5] sm:$0x8] %vm3_vm0, %v1639_v21  }
 0x1bb   :  { %3304 = vst.msk [vmem:[%s8093_s1 + $0x124] sm:$0x10] %vm3_vm0, %v1639_v21   ;;  %3305 = vst.msk [vmem:[%s8093_s1 + $0x163] sm:$0x20] %vm3_vm0, %v1639_v21  }
 0x1bc   :  { %3306 = vst.msk [vmem:[%s8093_s1 + $0x1a2] sm:$0x40] %vm3_vm0, %v1639_v21   ;;  %3307 = vst.msk [vmem:[%s8093_s1 + $0x1e1] sm:$0x80] %vm3_vm0, %v1639_v21  }
 0x1bd   :  { %3326 = vst.msk [vmem:[%s8093_s1 + $0x229] sm:$0x1] %vm3_vm0, %v1701_v22   ;;  %3327 = vst.msk [vmem:[%s8093_s1 + $0x268] sm:$0x2] %vm3_vm0, %v1701_v22  }
 0x1be   :  { %3328 = vst.msk [vmem:[%s8093_s1 + $0x2a7] sm:$0x4] %vm3_vm0, %v1701_v22   ;;  %3329 = vst.msk [vmem:[%s8093_s1 + $0x2e6] sm:$0x8] %vm3_vm0, %v1701_v22  }
 0x1bf   :  { %3330 = vst.msk [vmem:[%s8093_s1 + $0x325] sm:$0x10] %vm3_vm0, %v1701_v22   ;;  %3331 = vst.msk [vmem:[%s8093_s1 + $0x364] sm:$0x20] %vm3_vm0, %v1701_v22  }
 0x1c0   :  { %3332 = vst.msk [vmem:[%s8093_s1 + $0x3a3] sm:$0x40] %vm3_vm0, %v1701_v22   ;;  %3333 = vst.msk [vmem:[%s8093_s1 + $0x3e2] sm:$0x80] %vm3_vm0, %v1701_v22  }
 0x1c1   :  { %3317 = vst.msk [vmem:[%s8093_s1 + $0x29] sm:$0x1] %vm3_vm0, %v1680_v23   ;;  %3318 = vst.msk [vmem:[%s8093_s1 + $0x68] sm:$0x2] %vm3_vm0, %v1680_v23  }
 0x1c2   :  { %3319 = vst.msk [vmem:[%s8093_s1 + $0xa7] sm:$0x4] %vm3_vm0, %v1680_v23   ;;  %3320 = vst.msk [vmem:[%s8093_s1 + $0xe6] sm:$0x8] %vm3_vm0, %v1680_v23  }
 0x1c3   :  { %3321 = vst.msk [vmem:[%s8093_s1 + $0x125] sm:$0x10] %vm3_vm0, %v1680_v23   ;;  %3322 = vst.msk [vmem:[%s8093_s1 + $0x164] sm:$0x20] %vm3_vm0, %v1680_v23  }
 0x1c4   :  { %3323 = vst.msk [vmem:[%s8093_s1 + $0x1a3] sm:$0x40] %vm3_vm0, %v1680_v23   ;;  %3324 = vst.msk [vmem:[%s8093_s1 + $0x1e2] sm:$0x80] %vm3_vm0, %v1680_v23  }
 0x1c5   :  { %3343 = vst.msk [vmem:[%s8093_s1 + $0x22a] sm:$0x1] %vm3_vm0, %v1742_v24   ;;  %3344 = vst.msk [vmem:[%s8093_s1 + $0x269] sm:$0x2] %vm3_vm0, %v1742_v24  }
 0x1c6   :  { %3345 = vst.msk [vmem:[%s8093_s1 + $0x2a8] sm:$0x4] %vm3_vm0, %v1742_v24   ;;  %3346 = vst.msk [vmem:[%s8093_s1 + $0x2e7] sm:$0x8] %vm3_vm0, %v1742_v24  }
 0x1c7   :  { %3347 = vst.msk [vmem:[%s8093_s1 + $0x326] sm:$0x10] %vm3_vm0, %v1742_v24   ;;  %3348 = vst.msk [vmem:[%s8093_s1 + $0x365] sm:$0x20] %vm3_vm0, %v1742_v24  }
 0x1c8   :  { %3349 = vst.msk [vmem:[%s8093_s1 + $0x3a4] sm:$0x40] %vm3_vm0, %v1742_v24   ;;  %3350 = vst.msk [vmem:[%s8093_s1 + $0x3e3] sm:$0x80] %vm3_vm0, %v1742_v24  }
 0x1c9   :  { %3334 = vst.msk [vmem:[%s8093_s1 + $0x2a] sm:$0x1] %vm3_vm0, %v1721_v25   ;;  %3335 = vst.msk [vmem:[%s8093_s1 + $0x69] sm:$0x2] %vm3_vm0, %v1721_v25  }
 0x1ca   :  { %3336 = vst.msk [vmem:[%s8093_s1 + $0xa8] sm:$0x4] %vm3_vm0, %v1721_v25   ;;  %3337 = vst.msk [vmem:[%s8093_s1 + $0xe7] sm:$0x8] %vm3_vm0, %v1721_v25  }
 0x1cb   :  { %3338 = vst.msk [vmem:[%s8093_s1 + $0x126] sm:$0x10] %vm3_vm0, %v1721_v25   ;;  %3339 = vst.msk [vmem:[%s8093_s1 + $0x165] sm:$0x20] %vm3_vm0, %v1721_v25  }
 0x1cc   :  { %3340 = vst.msk [vmem:[%s8093_s1 + $0x1a4] sm:$0x40] %vm3_vm0, %v1721_v25   ;;  %3341 = vst.msk [vmem:[%s8093_s1 + $0x1e3] sm:$0x80] %vm3_vm0, %v1721_v25  }
 0x1cd   :  { %3360 = vst.msk [vmem:[%s8093_s1 + $0x22b] sm:$0x1] %vm3_vm0, %v1783_v26   ;;  %3361 = vst.msk [vmem:[%s8093_s1 + $0x26a] sm:$0x2] %vm3_vm0, %v1783_v26  }
 0x1ce   :  { %3362 = vst.msk [vmem:[%s8093_s1 + $0x2a9] sm:$0x4] %vm3_vm0, %v1783_v26   ;;  %3363 = vst.msk [vmem:[%s8093_s1 + $0x2e8] sm:$0x8] %vm3_vm0, %v1783_v26  }
 0x1cf   :  { %3364 = vst.msk [vmem:[%s8093_s1 + $0x327] sm:$0x10] %vm3_vm0, %v1783_v26   ;;  %3365 = vst.msk [vmem:[%s8093_s1 + $0x366] sm:$0x20] %vm3_vm0, %v1783_v26  }
 0x1d0   :  { %3366 = vst.msk [vmem:[%s8093_s1 + $0x3a5] sm:$0x40] %vm3_vm0, %v1783_v26   ;;  %3367 = vst.msk [vmem:[%s8093_s1 + $0x3e4] sm:$0x80] %vm3_vm0, %v1783_v26  }
 0x1d1   :  { %3351 = vst.msk [vmem:[%s8093_s1 + $0x2b] sm:$0x1] %vm3_vm0, %v1762_v27   ;;  %3352 = vst.msk [vmem:[%s8093_s1 + $0x6a] sm:$0x2] %vm3_vm0, %v1762_v27  }
 0x1d2   :  { %3353 = vst.msk [vmem:[%s8093_s1 + $0xa9] sm:$0x4] %vm3_vm0, %v1762_v27   ;;  %3354 = vst.msk [vmem:[%s8093_s1 + $0xe8] sm:$0x8] %vm3_vm0, %v1762_v27  }
 0x1d3   :  { %3355 = vst.msk [vmem:[%s8093_s1 + $0x127] sm:$0x10] %vm3_vm0, %v1762_v27   ;;  %3356 = vst.msk [vmem:[%s8093_s1 + $0x166] sm:$0x20] %vm3_vm0, %v1762_v27  }
 0x1d4   :  { %3357 = vst.msk [vmem:[%s8093_s1 + $0x1a5] sm:$0x40] %vm3_vm0, %v1762_v27   ;;  %3358 = vst.msk [vmem:[%s8093_s1 + $0x1e4] sm:$0x80] %vm3_vm0, %v1762_v27  }
 0x1d5   :  { %3377 = vst.msk [vmem:[%s8093_s1 + $0x22c] sm:$0x1] %vm3_vm0, %v1824_v28   ;;  %3378 = vst.msk [vmem:[%s8093_s1 + $0x26b] sm:$0x2] %vm3_vm0, %v1824_v28  }
 0x1d6   :  { %3379 = vst.msk [vmem:[%s8093_s1 + $0x2aa] sm:$0x4] %vm3_vm0, %v1824_v28   ;;  %3380 = vst.msk [vmem:[%s8093_s1 + $0x2e9] sm:$0x8] %vm3_vm0, %v1824_v28  }
 0x1d7   :  { %3381 = vst.msk [vmem:[%s8093_s1 + $0x328] sm:$0x10] %vm3_vm0, %v1824_v28   ;;  %3382 = vst.msk [vmem:[%s8093_s1 + $0x367] sm:$0x20] %vm3_vm0, %v1824_v28  }
 0x1d8   :  { %3383 = vst.msk [vmem:[%s8093_s1 + $0x3a6] sm:$0x40] %vm3_vm0, %v1824_v28   ;;  %3384 = vst.msk [vmem:[%s8093_s1 + $0x3e5] sm:$0x80] %vm3_vm0, %v1824_v28  }
 0x1d9   :  { %3368 = vst.msk [vmem:[%s8093_s1 + $0x2c] sm:$0x1] %vm3_vm0, %v1803_v29   ;;  %3369 = vst.msk [vmem:[%s8093_s1 + $0x6b] sm:$0x2] %vm3_vm0, %v1803_v29  }
 0x1da   :  { %3370 = vst.msk [vmem:[%s8093_s1 + $0xaa] sm:$0x4] %vm3_vm0, %v1803_v29   ;;  %3371 = vst.msk [vmem:[%s8093_s1 + $0xe9] sm:$0x8] %vm3_vm0, %v1803_v29  }
 0x1db   :  { %3372 = vst.msk [vmem:[%s8093_s1 + $0x128] sm:$0x10] %vm3_vm0, %v1803_v29   ;;  %3373 = vst.msk [vmem:[%s8093_s1 + $0x167] sm:$0x20] %vm3_vm0, %v1803_v29  }
 0x1dc   :  { %3374 = vst.msk [vmem:[%s8093_s1 + $0x1a6] sm:$0x40] %vm3_vm0, %v1803_v29   ;;  %3375 = vst.msk [vmem:[%s8093_s1 + $0x1e5] sm:$0x80] %vm3_vm0, %v1803_v29  }
 0x1dd   :  { %3394 = vst.msk [vmem:[%s8093_s1 + $0x22d] sm:$0x1] %vm3_vm0, %v1865_v30   ;;  %3395 = vst.msk [vmem:[%s8093_s1 + $0x26c] sm:$0x2] %vm3_vm0, %v1865_v30  }
 0x1de   :  { %3396 = vst.msk [vmem:[%s8093_s1 + $0x2ab] sm:$0x4] %vm3_vm0, %v1865_v30   ;;  %3397 = vst.msk [vmem:[%s8093_s1 + $0x2ea] sm:$0x8] %vm3_vm0, %v1865_v30  }
 0x1df   :  { %3398 = vst.msk [vmem:[%s8093_s1 + $0x329] sm:$0x10] %vm3_vm0, %v1865_v30   ;;  %3399 = vst.msk [vmem:[%s8093_s1 + $0x368] sm:$0x20] %vm3_vm0, %v1865_v30  }
 0x1e0   :  { %3400 = vst.msk [vmem:[%s8093_s1 + $0x3a7] sm:$0x40] %vm3_vm0, %v1865_v30   ;;  %3401 = vst.msk [vmem:[%s8093_s1 + $0x3e6] sm:$0x80] %vm3_vm0, %v1865_v30  }
 0x1e1   :  { %3385 = vst.msk [vmem:[%s8093_s1 + $0x2d] sm:$0x1] %vm3_vm0, %v1844_v31   ;;  %3386 = vst.msk [vmem:[%s8093_s1 + $0x6c] sm:$0x2] %vm3_vm0, %v1844_v31  }
 0x1e2   :  { %3387 = vst.msk [vmem:[%s8093_s1 + $0xab] sm:$0x4] %vm3_vm0, %v1844_v31   ;;  %3388 = vst.msk [vmem:[%s8093_s1 + $0xea] sm:$0x8] %vm3_vm0, %v1844_v31  }
 0x1e3   :  { %3389 = vst.msk [vmem:[%s8093_s1 + $0x129] sm:$0x10] %vm3_vm0, %v1844_v31   ;;  %3390 = vst.msk [vmem:[%s8093_s1 + $0x168] sm:$0x20] %vm3_vm0, %v1844_v31  }
 0x1e4   :  { %3391 = vst.msk [vmem:[%s8093_s1 + $0x1a7] sm:$0x40] %vm3_vm0, %v1844_v31   ;;  %3392 = vst.msk [vmem:[%s8093_s1 + $0x1e6] sm:$0x80] %vm3_vm0, %v1844_v31  }
 0x1e5   :  { %3411 = vst.msk [vmem:[%s8093_s1 + $0x22e] sm:$0x1] %vm3_vm0, %v1906_v32   ;;  %3412 = vst.msk [vmem:[%s8093_s1 + $0x26d] sm:$0x2] %vm3_vm0, %v1906_v32  }
 0x1e6   :  { %3413 = vst.msk [vmem:[%s8093_s1 + $0x2ac] sm:$0x4] %vm3_vm0, %v1906_v32   ;;  %3414 = vst.msk [vmem:[%s8093_s1 + $0x2eb] sm:$0x8] %vm3_vm0, %v1906_v32  }
 0x1e7   :  { %3415 = vst.msk [vmem:[%s8093_s1 + $0x32a] sm:$0x10] %vm3_vm0, %v1906_v32   ;;  %3416 = vst.msk [vmem:[%s8093_s1 + $0x369] sm:$0x20] %vm3_vm0, %v1906_v32  }
 0x1e8   :  { %3417 = vst.msk [vmem:[%s8093_s1 + $0x3a8] sm:$0x40] %vm3_vm0, %v1906_v32   ;;  %3418 = vst.msk [vmem:[%s8093_s1 + $0x3e7] sm:$0x80] %vm3_vm0, %v1906_v32  }
 0x1e9   :  { %3402 = vst.msk [vmem:[%s8093_s1 + $0x2e] sm:$0x1] %vm3_vm0, %v1885_v33   ;;  %3403 = vst.msk [vmem:[%s8093_s1 + $0x6d] sm:$0x2] %vm3_vm0, %v1885_v33  }
 0x1ea   :  { %3404 = vst.msk [vmem:[%s8093_s1 + $0xac] sm:$0x4] %vm3_vm0, %v1885_v33   ;;  %3405 = vst.msk [vmem:[%s8093_s1 + $0xeb] sm:$0x8] %vm3_vm0, %v1885_v33  }
 0x1eb   :  { %3406 = vst.msk [vmem:[%s8093_s1 + $0x12a] sm:$0x10] %vm3_vm0, %v1885_v33   ;;  %3407 = vst.msk [vmem:[%s8093_s1 + $0x169] sm:$0x20] %vm3_vm0, %v1885_v33  }
 0x1ec   :  { %3408 = vst.msk [vmem:[%s8093_s1 + $0x1a8] sm:$0x40] %vm3_vm0, %v1885_v33   ;;  %3409 = vst.msk [vmem:[%s8093_s1 + $0x1e7] sm:$0x80] %vm3_vm0, %v1885_v33  }
 0x1ed   :  { %3428 = vst.msk [vmem:[%s8093_s1 + $0x22f] sm:$0x1] %vm3_vm0, %v1947_v34   ;;  %3429 = vst.msk [vmem:[%s8093_s1 + $0x26e] sm:$0x2] %vm3_vm0, %v1947_v34  }
 0x1ee   :  { %3430 = vst.msk [vmem:[%s8093_s1 + $0x2ad] sm:$0x4] %vm3_vm0, %v1947_v34   ;;  %3431 = vst.msk [vmem:[%s8093_s1 + $0x2ec] sm:$0x8] %vm3_vm0, %v1947_v34  }
 0x1ef   :  { %3432 = vst.msk [vmem:[%s8093_s1 + $0x32b] sm:$0x10] %vm3_vm0, %v1947_v34   ;;  %3433 = vst.msk [vmem:[%s8093_s1 + $0x36a] sm:$0x20] %vm3_vm0, %v1947_v34  }
 0x1f0   :  { %3434 = vst.msk [vmem:[%s8093_s1 + $0x3a9] sm:$0x40] %vm3_vm0, %v1947_v34   ;;  %3435 = vst.msk [vmem:[%s8093_s1 + $0x3e8] sm:$0x80] %vm3_vm0, %v1947_v34  }
 0x1f1   :  { %3419 = vst.msk [vmem:[%s8093_s1 + $0x2f] sm:$0x1] %vm3_vm0, %v1926_v35   ;;  %3420 = vst.msk [vmem:[%s8093_s1 + $0x6e] sm:$0x2] %vm3_vm0, %v1926_v35  }
 0x1f2   :  { %3421 = vst.msk [vmem:[%s8093_s1 + $0xad] sm:$0x4] %vm3_vm0, %v1926_v35   ;;  %3422 = vst.msk [vmem:[%s8093_s1 + $0xec] sm:$0x8] %vm3_vm0, %v1926_v35  }
 0x1f3   :  { %3423 = vst.msk [vmem:[%s8093_s1 + $0x12b] sm:$0x10] %vm3_vm0, %v1926_v35   ;;  %3424 = vst.msk [vmem:[%s8093_s1 + $0x16a] sm:$0x20] %vm3_vm0, %v1926_v35  }
 0x1f4   :  { %3425 = vst.msk [vmem:[%s8093_s1 + $0x1a9] sm:$0x40] %vm3_vm0, %v1926_v35   ;;  %3426 = vst.msk [vmem:[%s8093_s1 + $0x1e8] sm:$0x80] %vm3_vm0, %v1926_v35  }
 0x1f5   :  { %3445 = vst.msk [vmem:[%s8093_s1 + $0x230] sm:$0x1] %vm3_vm0, %v1988_v36   ;;  %3446 = vst.msk [vmem:[%s8093_s1 + $0x26f] sm:$0x2] %vm3_vm0, %v1988_v36  }
 0x1f6   :  { %3447 = vst.msk [vmem:[%s8093_s1 + $0x2ae] sm:$0x4] %vm3_vm0, %v1988_v36   ;;  %3448 = vst.msk [vmem:[%s8093_s1 + $0x2ed] sm:$0x8] %vm3_vm0, %v1988_v36  }
 0x1f7   :  { %3449 = vst.msk [vmem:[%s8093_s1 + $0x32c] sm:$0x10] %vm3_vm0, %v1988_v36   ;;  %3450 = vst.msk [vmem:[%s8093_s1 + $0x36b] sm:$0x20] %vm3_vm0, %v1988_v36  }
 0x1f8   :  { %3451 = vst.msk [vmem:[%s8093_s1 + $0x3aa] sm:$0x40] %vm3_vm0, %v1988_v36   ;;  %3452 = vst.msk [vmem:[%s8093_s1 + $0x3e9] sm:$0x80] %vm3_vm0, %v1988_v36  }
 0x1f9   :  { %3436 = vst.msk [vmem:[%s8093_s1 + $0x30] sm:$0x1] %vm3_vm0, %v1967_v37   ;;  %3437 = vst.msk [vmem:[%s8093_s1 + $0x6f] sm:$0x2] %vm3_vm0, %v1967_v37  }
 0x1fa   :  { %3438 = vst.msk [vmem:[%s8093_s1 + $0xae] sm:$0x4] %vm3_vm0, %v1967_v37   ;;  %3439 = vst.msk [vmem:[%s8093_s1 + $0xed] sm:$0x8] %vm3_vm0, %v1967_v37  }
 0x1fb   :  { %3440 = vst.msk [vmem:[%s8093_s1 + $0x12c] sm:$0x10] %vm3_vm0, %v1967_v37   ;;  %3441 = vst.msk [vmem:[%s8093_s1 + $0x16b] sm:$0x20] %vm3_vm0, %v1967_v37  }
 0x1fc   :  { %3442 = vst.msk [vmem:[%s8093_s1 + $0x1aa] sm:$0x40] %vm3_vm0, %v1967_v37   ;;  %3443 = vst.msk [vmem:[%s8093_s1 + $0x1e9] sm:$0x80] %vm3_vm0, %v1967_v37  }
 0x1fd   :  { %3462 = vst.msk [vmem:[%s8093_s1 + $0x231] sm:$0x1] %vm3_vm0, %v2029_v38   ;;  %3463 = vst.msk [vmem:[%s8093_s1 + $0x270] sm:$0x2] %vm3_vm0, %v2029_v38  }
 0x1fe   :  { %3464 = vst.msk [vmem:[%s8093_s1 + $0x2af] sm:$0x4] %vm3_vm0, %v2029_v38   ;;  %3465 = vst.msk [vmem:[%s8093_s1 + $0x2ee] sm:$0x8] %vm3_vm0, %v2029_v38  }
 0x1ff   :  { %3466 = vst.msk [vmem:[%s8093_s1 + $0x32d] sm:$0x10] %vm3_vm0, %v2029_v38   ;;  %3467 = vst.msk [vmem:[%s8093_s1 + $0x36c] sm:$0x20] %vm3_vm0, %v2029_v38  }
 0x200   :  { %3468 = vst.msk [vmem:[%s8093_s1 + $0x3ab] sm:$0x40] %vm3_vm0, %v2029_v38   ;;  %3469 = vst.msk [vmem:[%s8093_s1 + $0x3ea] sm:$0x80] %vm3_vm0, %v2029_v38  }
 0x201   :  { %3453 = vst.msk [vmem:[%s8093_s1 + $0x31] sm:$0x1] %vm3_vm0, %v2008_v39   ;;  %3454 = vst.msk [vmem:[%s8093_s1 + $0x70] sm:$0x2] %vm3_vm0, %v2008_v39  }
 0x202   :  { %3455 = vst.msk [vmem:[%s8093_s1 + $0xaf] sm:$0x4] %vm3_vm0, %v2008_v39   ;;  %3456 = vst.msk [vmem:[%s8093_s1 + $0xee] sm:$0x8] %vm3_vm0, %v2008_v39  }
 0x203   :  { %3457 = vst.msk [vmem:[%s8093_s1 + $0x12d] sm:$0x10] %vm3_vm0, %v2008_v39   ;;  %3458 = vst.msk [vmem:[%s8093_s1 + $0x16c] sm:$0x20] %vm3_vm0, %v2008_v39  }
 0x204   :  { %3459 = vst.msk [vmem:[%s8093_s1 + $0x1ab] sm:$0x40] %vm3_vm0, %v2008_v39   ;;  %3460 = vst.msk [vmem:[%s8093_s1 + $0x1ea] sm:$0x80] %vm3_vm0, %v2008_v39  }
 0x205   :  { %3479 = vst.msk [vmem:[%s8093_s1 + $0x232] sm:$0x1] %vm3_vm0, %v2070_v40   ;;  %3480 = vst.msk [vmem:[%s8093_s1 + $0x271] sm:$0x2] %vm3_vm0, %v2070_v40  }
 0x206   :  { %3481 = vst.msk [vmem:[%s8093_s1 + $0x2b0] sm:$0x4] %vm3_vm0, %v2070_v40   ;;  %3482 = vst.msk [vmem:[%s8093_s1 + $0x2ef] sm:$0x8] %vm3_vm0, %v2070_v40  }
 0x207   :  { %3483 = vst.msk [vmem:[%s8093_s1 + $0x32e] sm:$0x10] %vm3_vm0, %v2070_v40   ;;  %3484 = vst.msk [vmem:[%s8093_s1 + $0x36d] sm:$0x20] %vm3_vm0, %v2070_v40  }
 0x208   :  { %3485 = vst.msk [vmem:[%s8093_s1 + $0x3ac] sm:$0x40] %vm3_vm0, %v2070_v40   ;;  %3486 = vst.msk [vmem:[%s8093_s1 + $0x3eb] sm:$0x80] %vm3_vm0, %v2070_v40  }
 0x209   :  { %3470 = vst.msk [vmem:[%s8093_s1 + $0x32] sm:$0x1] %vm3_vm0, %v2049_v41   ;;  %3471 = vst.msk [vmem:[%s8093_s1 + $0x71] sm:$0x2] %vm3_vm0, %v2049_v41  }
 0x20a   :  { %3472 = vst.msk [vmem:[%s8093_s1 + $0xb0] sm:$0x4] %vm3_vm0, %v2049_v41   ;;  %3473 = vst.msk [vmem:[%s8093_s1 + $0xef] sm:$0x8] %vm3_vm0, %v2049_v41  }
 0x20b   :  { %3474 = vst.msk [vmem:[%s8093_s1 + $0x12e] sm:$0x10] %vm3_vm0, %v2049_v41   ;;  %3475 = vst.msk [vmem:[%s8093_s1 + $0x16d] sm:$0x20] %vm3_vm0, %v2049_v41  }
 0x20c   :  { %3476 = vst.msk [vmem:[%s8093_s1 + $0x1ac] sm:$0x40] %vm3_vm0, %v2049_v41   ;;  %3477 = vst.msk [vmem:[%s8093_s1 + $0x1eb] sm:$0x80] %vm3_vm0, %v2049_v41  }
 0x20d   :  { %3496 = vst.msk [vmem:[%s8093_s1 + $0x233] sm:$0x1] %vm3_vm0, %v2111_v42   ;;  %3497 = vst.msk [vmem:[%s8093_s1 + $0x272] sm:$0x2] %vm3_vm0, %v2111_v42  }
 0x20e   :  { %3498 = vst.msk [vmem:[%s8093_s1 + $0x2b1] sm:$0x4] %vm3_vm0, %v2111_v42   ;;  %3499 = vst.msk [vmem:[%s8093_s1 + $0x2f0] sm:$0x8] %vm3_vm0, %v2111_v42  }
 0x20f   :  { %3500 = vst.msk [vmem:[%s8093_s1 + $0x32f] sm:$0x10] %vm3_vm0, %v2111_v42   ;;  %3501 = vst.msk [vmem:[%s8093_s1 + $0x36e] sm:$0x20] %vm3_vm0, %v2111_v42  }
 0x210   :  { %3502 = vst.msk [vmem:[%s8093_s1 + $0x3ad] sm:$0x40] %vm3_vm0, %v2111_v42   ;;  %3503 = vst.msk [vmem:[%s8093_s1 + $0x3ec] sm:$0x80] %vm3_vm0, %v2111_v42  }
 0x211   :  { %3487 = vst.msk [vmem:[%s8093_s1 + $0x33] sm:$0x1] %vm3_vm0, %v2090_v43   ;;  %3488 = vst.msk [vmem:[%s8093_s1 + $0x72] sm:$0x2] %vm3_vm0, %v2090_v43  }
 0x212   :  { %3489 = vst.msk [vmem:[%s8093_s1 + $0xb1] sm:$0x4] %vm3_vm0, %v2090_v43   ;;  %3490 = vst.msk [vmem:[%s8093_s1 + $0xf0] sm:$0x8] %vm3_vm0, %v2090_v43  }
 0x213   :  { %3491 = vst.msk [vmem:[%s8093_s1 + $0x12f] sm:$0x10] %vm3_vm0, %v2090_v43   ;;  %3492 = vst.msk [vmem:[%s8093_s1 + $0x16e] sm:$0x20] %vm3_vm0, %v2090_v43  }
 0x214   :  { %3493 = vst.msk [vmem:[%s8093_s1 + $0x1ad] sm:$0x40] %vm3_vm0, %v2090_v43   ;;  %3494 = vst.msk [vmem:[%s8093_s1 + $0x1ec] sm:$0x80] %vm3_vm0, %v2090_v43  }
 0x215   :  { %3513 = vst.msk [vmem:[%s8093_s1 + $0x234] sm:$0x1] %vm3_vm0, %v2152_v44   ;;  %3514 = vst.msk [vmem:[%s8093_s1 + $0x273] sm:$0x2] %vm3_vm0, %v2152_v44  }
 0x216   :  { %3515 = vst.msk [vmem:[%s8093_s1 + $0x2b2] sm:$0x4] %vm3_vm0, %v2152_v44   ;;  %3516 = vst.msk [vmem:[%s8093_s1 + $0x2f1] sm:$0x8] %vm3_vm0, %v2152_v44  }
 0x217   :  { %3517 = vst.msk [vmem:[%s8093_s1 + $0x330] sm:$0x10] %vm3_vm0, %v2152_v44   ;;  %3518 = vst.msk [vmem:[%s8093_s1 + $0x36f] sm:$0x20] %vm3_vm0, %v2152_v44  }
 0x218   :  { %3519 = vst.msk [vmem:[%s8093_s1 + $0x3ae] sm:$0x40] %vm3_vm0, %v2152_v44   ;;  %3520 = vst.msk [vmem:[%s8093_s1 + $0x3ed] sm:$0x80] %vm3_vm0, %v2152_v44  }
 0x219   :  { %3504 = vst.msk [vmem:[%s8093_s1 + $0x34] sm:$0x1] %vm3_vm0, %v2131_v45   ;;  %3505 = vst.msk [vmem:[%s8093_s1 + $0x73] sm:$0x2] %vm3_vm0, %v2131_v45  }
 0x21a   :  { %3506 = vst.msk [vmem:[%s8093_s1 + $0xb2] sm:$0x4] %vm3_vm0, %v2131_v45   ;;  %3507 = vst.msk [vmem:[%s8093_s1 + $0xf1] sm:$0x8] %vm3_vm0, %v2131_v45  }
 0x21b   :  { %3508 = vst.msk [vmem:[%s8093_s1 + $0x130] sm:$0x10] %vm3_vm0, %v2131_v45   ;;  %3509 = vst.msk [vmem:[%s8093_s1 + $0x16f] sm:$0x20] %vm3_vm0, %v2131_v45  }
 0x21c   :  { %3510 = vst.msk [vmem:[%s8093_s1 + $0x1ae] sm:$0x40] %vm3_vm0, %v2131_v45   ;;  %3511 = vst.msk [vmem:[%s8093_s1 + $0x1ed] sm:$0x80] %vm3_vm0, %v2131_v45  }
 0x21d   :  { %3530 = vst.msk [vmem:[%s8093_s1 + $0x235] sm:$0x1] %vm3_vm0, %v2193_v46   ;;  %3531 = vst.msk [vmem:[%s8093_s1 + $0x274] sm:$0x2] %vm3_vm0, %v2193_v46  }
 0x21e   :  { %3532 = vst.msk [vmem:[%s8093_s1 + $0x2b3] sm:$0x4] %vm3_vm0, %v2193_v46   ;;  %3533 = vst.msk [vmem:[%s8093_s1 + $0x2f2] sm:$0x8] %vm3_vm0, %v2193_v46  }
 0x21f   :  { %3534 = vst.msk [vmem:[%s8093_s1 + $0x331] sm:$0x10] %vm3_vm0, %v2193_v46   ;;  %3535 = vst.msk [vmem:[%s8093_s1 + $0x370] sm:$0x20] %vm3_vm0, %v2193_v46  }
 0x220   :  { %3536 = vst.msk [vmem:[%s8093_s1 + $0x3af] sm:$0x40] %vm3_vm0, %v2193_v46   ;;  %3537 = vst.msk [vmem:[%s8093_s1 + $0x3ee] sm:$0x80] %vm3_vm0, %v2193_v46  }
 0x221   :  { %3521 = vst.msk [vmem:[%s8093_s1 + $0x35] sm:$0x1] %vm3_vm0, %v2172_v47   ;;  %3522 = vst.msk [vmem:[%s8093_s1 + $0x74] sm:$0x2] %vm3_vm0, %v2172_v47  }
 0x222   :  { %3523 = vst.msk [vmem:[%s8093_s1 + $0xb3] sm:$0x4] %vm3_vm0, %v2172_v47   ;;  %3524 = vst.msk [vmem:[%s8093_s1 + $0xf2] sm:$0x8] %vm3_vm0, %v2172_v47  }
 0x223   :  { %3525 = vst.msk [vmem:[%s8093_s1 + $0x131] sm:$0x10] %vm3_vm0, %v2172_v47   ;;  %3526 = vst.msk [vmem:[%s8093_s1 + $0x170] sm:$0x20] %vm3_vm0, %v2172_v47  }
 0x224   :  { %3527 = vst.msk [vmem:[%s8093_s1 + $0x1af] sm:$0x40] %vm3_vm0, %v2172_v47   ;;  %3528 = vst.msk [vmem:[%s8093_s1 + $0x1ee] sm:$0x80] %vm3_vm0, %v2172_v47  }
 0x225   :  { %3547 = vst.msk [vmem:[%s8093_s1 + $0x236] sm:$0x1] %vm3_vm0, %v2234_v48   ;;  %3548 = vst.msk [vmem:[%s8093_s1 + $0x275] sm:$0x2] %vm3_vm0, %v2234_v48  }
 0x226   :  { %3549 = vst.msk [vmem:[%s8093_s1 + $0x2b4] sm:$0x4] %vm3_vm0, %v2234_v48   ;;  %3550 = vst.msk [vmem:[%s8093_s1 + $0x2f3] sm:$0x8] %vm3_vm0, %v2234_v48  }
 0x227   :  { %3551 = vst.msk [vmem:[%s8093_s1 + $0x332] sm:$0x10] %vm3_vm0, %v2234_v48   ;;  %3552 = vst.msk [vmem:[%s8093_s1 + $0x371] sm:$0x20] %vm3_vm0, %v2234_v48  }
 0x228   :  { %3553 = vst.msk [vmem:[%s8093_s1 + $0x3b0] sm:$0x40] %vm3_vm0, %v2234_v48   ;;  %3554 = vst.msk [vmem:[%s8093_s1 + $0x3ef] sm:$0x80] %vm3_vm0, %v2234_v48  }
 0x229   :  { %3538 = vst.msk [vmem:[%s8093_s1 + $0x36] sm:$0x1] %vm3_vm0, %v2213_v49   ;;  %3539 = vst.msk [vmem:[%s8093_s1 + $0x75] sm:$0x2] %vm3_vm0, %v2213_v49  }
 0x22a   :  { %3540 = vst.msk [vmem:[%s8093_s1 + $0xb4] sm:$0x4] %vm3_vm0, %v2213_v49   ;;  %3541 = vst.msk [vmem:[%s8093_s1 + $0xf3] sm:$0x8] %vm3_vm0, %v2213_v49  }
 0x22b   :  { %3542 = vst.msk [vmem:[%s8093_s1 + $0x132] sm:$0x10] %vm3_vm0, %v2213_v49   ;;  %3543 = vst.msk [vmem:[%s8093_s1 + $0x171] sm:$0x20] %vm3_vm0, %v2213_v49  }
 0x22c   :  { %3544 = vst.msk [vmem:[%s8093_s1 + $0x1b0] sm:$0x40] %vm3_vm0, %v2213_v49   ;;  %3545 = vst.msk [vmem:[%s8093_s1 + $0x1ef] sm:$0x80] %vm3_vm0, %v2213_v49  }
 0x22d   :  { %3564 = vst.msk [vmem:[%s8093_s1 + $0x237] sm:$0x1] %vm3_vm0, %v2275_v50   ;;  %3565 = vst.msk [vmem:[%s8093_s1 + $0x276] sm:$0x2] %vm3_vm0, %v2275_v50  }
 0x22e   :  { %3566 = vst.msk [vmem:[%s8093_s1 + $0x2b5] sm:$0x4] %vm3_vm0, %v2275_v50   ;;  %3567 = vst.msk [vmem:[%s8093_s1 + $0x2f4] sm:$0x8] %vm3_vm0, %v2275_v50  }
 0x22f   :  { %3568 = vst.msk [vmem:[%s8093_s1 + $0x333] sm:$0x10] %vm3_vm0, %v2275_v50   ;;  %3569 = vst.msk [vmem:[%s8093_s1 + $0x372] sm:$0x20] %vm3_vm0, %v2275_v50  }
 0x230   :  { %3570 = vst.msk [vmem:[%s8093_s1 + $0x3b1] sm:$0x40] %vm3_vm0, %v2275_v50   ;;  %3571 = vst.msk [vmem:[%s8093_s1 + $0x3f0] sm:$0x80] %vm3_vm0, %v2275_v50  }
 0x231   :  { %3555 = vst.msk [vmem:[%s8093_s1 + $0x37] sm:$0x1] %vm3_vm0, %v2254_v51   ;;  %3556 = vst.msk [vmem:[%s8093_s1 + $0x76] sm:$0x2] %vm3_vm0, %v2254_v51  }
 0x232   :  { %3557 = vst.msk [vmem:[%s8093_s1 + $0xb5] sm:$0x4] %vm3_vm0, %v2254_v51   ;;  %3558 = vst.msk [vmem:[%s8093_s1 + $0xf4] sm:$0x8] %vm3_vm0, %v2254_v51  }
 0x233   :  { %3559 = vst.msk [vmem:[%s8093_s1 + $0x133] sm:$0x10] %vm3_vm0, %v2254_v51   ;;  %3560 = vst.msk [vmem:[%s8093_s1 + $0x172] sm:$0x20] %vm3_vm0, %v2254_v51  }
 0x234   :  { %3561 = vst.msk [vmem:[%s8093_s1 + $0x1b1] sm:$0x40] %vm3_vm0, %v2254_v51   ;;  %3562 = vst.msk [vmem:[%s8093_s1 + $0x1f0] sm:$0x80] %vm3_vm0, %v2254_v51  }
 0x235   :  { %3581 = vst.msk [vmem:[%s8093_s1 + $0x238] sm:$0x1] %vm3_vm0, %v2316_v52   ;;  %3582 = vst.msk [vmem:[%s8093_s1 + $0x277] sm:$0x2] %vm3_vm0, %v2316_v52  }
 0x236   :  { %3583 = vst.msk [vmem:[%s8093_s1 + $0x2b6] sm:$0x4] %vm3_vm0, %v2316_v52   ;;  %3584 = vst.msk [vmem:[%s8093_s1 + $0x2f5] sm:$0x8] %vm3_vm0, %v2316_v52  }
 0x237   :  { %3585 = vst.msk [vmem:[%s8093_s1 + $0x334] sm:$0x10] %vm3_vm0, %v2316_v52   ;;  %3586 = vst.msk [vmem:[%s8093_s1 + $0x373] sm:$0x20] %vm3_vm0, %v2316_v52  }
 0x238   :  { %3587 = vst.msk [vmem:[%s8093_s1 + $0x3b2] sm:$0x40] %vm3_vm0, %v2316_v52   ;;  %3588 = vst.msk [vmem:[%s8093_s1 + $0x3f1] sm:$0x80] %vm3_vm0, %v2316_v52  }
 0x239   :  { %3572 = vst.msk [vmem:[%s8093_s1 + $0x38] sm:$0x1] %vm3_vm0, %v2295_v53   ;;  %3573 = vst.msk [vmem:[%s8093_s1 + $0x77] sm:$0x2] %vm3_vm0, %v2295_v53  }
 0x23a   :  { %3574 = vst.msk [vmem:[%s8093_s1 + $0xb6] sm:$0x4] %vm3_vm0, %v2295_v53   ;;  %3575 = vst.msk [vmem:[%s8093_s1 + $0xf5] sm:$0x8] %vm3_vm0, %v2295_v53  }
 0x23b   :  { %3576 = vst.msk [vmem:[%s8093_s1 + $0x134] sm:$0x10] %vm3_vm0, %v2295_v53   ;;  %3577 = vst.msk [vmem:[%s8093_s1 + $0x173] sm:$0x20] %vm3_vm0, %v2295_v53  }
 0x23c   :  { %3578 = vst.msk [vmem:[%s8093_s1 + $0x1b2] sm:$0x40] %vm3_vm0, %v2295_v53   ;;  %3579 = vst.msk [vmem:[%s8093_s1 + $0x1f1] sm:$0x80] %vm3_vm0, %v2295_v53  }
 0x23d   :  { %3598 = vst.msk [vmem:[%s8093_s1 + $0x239] sm:$0x1] %vm3_vm0, %v2357_v54   ;;  %3599 = vst.msk [vmem:[%s8093_s1 + $0x278] sm:$0x2] %vm3_vm0, %v2357_v54  }
 0x23e   :  { %3600 = vst.msk [vmem:[%s8093_s1 + $0x2b7] sm:$0x4] %vm3_vm0, %v2357_v54   ;;  %3601 = vst.msk [vmem:[%s8093_s1 + $0x2f6] sm:$0x8] %vm3_vm0, %v2357_v54  }
 0x23f   :  { %3602 = vst.msk [vmem:[%s8093_s1 + $0x335] sm:$0x10] %vm3_vm0, %v2357_v54   ;;  %3603 = vst.msk [vmem:[%s8093_s1 + $0x374] sm:$0x20] %vm3_vm0, %v2357_v54  }
 0x240   :  { %3604 = vst.msk [vmem:[%s8093_s1 + $0x3b3] sm:$0x40] %vm3_vm0, %v2357_v54   ;;  %3605 = vst.msk [vmem:[%s8093_s1 + $0x3f2] sm:$0x80] %vm3_vm0, %v2357_v54  }
 0x241   :  { %3589 = vst.msk [vmem:[%s8093_s1 + $0x39] sm:$0x1] %vm3_vm0, %v2336_v55   ;;  %3590 = vst.msk [vmem:[%s8093_s1 + $0x78] sm:$0x2] %vm3_vm0, %v2336_v55  }
 0x242   :  { %3591 = vst.msk [vmem:[%s8093_s1 + $0xb7] sm:$0x4] %vm3_vm0, %v2336_v55   ;;  %3592 = vst.msk [vmem:[%s8093_s1 + $0xf6] sm:$0x8] %vm3_vm0, %v2336_v55  }
 0x243   :  { %3593 = vst.msk [vmem:[%s8093_s1 + $0x135] sm:$0x10] %vm3_vm0, %v2336_v55   ;;  %3594 = vst.msk [vmem:[%s8093_s1 + $0x174] sm:$0x20] %vm3_vm0, %v2336_v55  }
 0x244   :  { %3595 = vst.msk [vmem:[%s8093_s1 + $0x1b3] sm:$0x40] %vm3_vm0, %v2336_v55   ;;  %3596 = vst.msk [vmem:[%s8093_s1 + $0x1f2] sm:$0x80] %vm3_vm0, %v2336_v55  }
 0x245   :  { %3615 = vst.msk [vmem:[%s8093_s1 + $0x23a] sm:$0x1] %vm3_vm0, %v2398_v56   ;;  %3616 = vst.msk [vmem:[%s8093_s1 + $0x279] sm:$0x2] %vm3_vm0, %v2398_v56  }
 0x246   :  { %3617 = vst.msk [vmem:[%s8093_s1 + $0x2b8] sm:$0x4] %vm3_vm0, %v2398_v56   ;;  %3618 = vst.msk [vmem:[%s8093_s1 + $0x2f7] sm:$0x8] %vm3_vm0, %v2398_v56  }
 0x247   :  { %3619 = vst.msk [vmem:[%s8093_s1 + $0x336] sm:$0x10] %vm3_vm0, %v2398_v56   ;;  %3620 = vst.msk [vmem:[%s8093_s1 + $0x375] sm:$0x20] %vm3_vm0, %v2398_v56  }
 0x248   :  { %3621 = vst.msk [vmem:[%s8093_s1 + $0x3b4] sm:$0x40] %vm3_vm0, %v2398_v56   ;;  %3622 = vst.msk [vmem:[%s8093_s1 + $0x3f3] sm:$0x80] %vm3_vm0, %v2398_v56  }
 0x249   :  { %3606 = vst.msk [vmem:[%s8093_s1 + $0x3a] sm:$0x1] %vm3_vm0, %v2377_v57   ;;  %3607 = vst.msk [vmem:[%s8093_s1 + $0x79] sm:$0x2] %vm3_vm0, %v2377_v57  }
 0x24a   :  { %3608 = vst.msk [vmem:[%s8093_s1 + $0xb8] sm:$0x4] %vm3_vm0, %v2377_v57   ;;  %3609 = vst.msk [vmem:[%s8093_s1 + $0xf7] sm:$0x8] %vm3_vm0, %v2377_v57  }
 0x24b   :  { %3610 = vst.msk [vmem:[%s8093_s1 + $0x136] sm:$0x10] %vm3_vm0, %v2377_v57   ;;  %3611 = vst.msk [vmem:[%s8093_s1 + $0x175] sm:$0x20] %vm3_vm0, %v2377_v57  }
 0x24c   :  { %3612 = vst.msk [vmem:[%s8093_s1 + $0x1b4] sm:$0x40] %vm3_vm0, %v2377_v57   ;;  %3613 = vst.msk [vmem:[%s8093_s1 + $0x1f3] sm:$0x80] %vm3_vm0, %v2377_v57  }
 0x24d   :  { %3632 = vst.msk [vmem:[%s8093_s1 + $0x23b] sm:$0x1] %vm3_vm0, %v2439_v58   ;;  %3633 = vst.msk [vmem:[%s8093_s1 + $0x27a] sm:$0x2] %vm3_vm0, %v2439_v58  }
 0x24e   :  { %3634 = vst.msk [vmem:[%s8093_s1 + $0x2b9] sm:$0x4] %vm3_vm0, %v2439_v58   ;;  %3635 = vst.msk [vmem:[%s8093_s1 + $0x2f8] sm:$0x8] %vm3_vm0, %v2439_v58  }
 0x24f   :  { %3636 = vst.msk [vmem:[%s8093_s1 + $0x337] sm:$0x10] %vm3_vm0, %v2439_v58   ;;  %3637 = vst.msk [vmem:[%s8093_s1 + $0x376] sm:$0x20] %vm3_vm0, %v2439_v58  }
 0x250   :  { %3638 = vst.msk [vmem:[%s8093_s1 + $0x3b5] sm:$0x40] %vm3_vm0, %v2439_v58   ;;  %3639 = vst.msk [vmem:[%s8093_s1 + $0x3f4] sm:$0x80] %vm3_vm0, %v2439_v58  }
 0x251   :  { %3623 = vst.msk [vmem:[%s8093_s1 + $0x3b] sm:$0x1] %vm3_vm0, %v2418_v59   ;;  %3624 = vst.msk [vmem:[%s8093_s1 + $0x7a] sm:$0x2] %vm3_vm0, %v2418_v59  }
 0x252   :  { %3625 = vst.msk [vmem:[%s8093_s1 + $0xb9] sm:$0x4] %vm3_vm0, %v2418_v59   ;;  %3626 = vst.msk [vmem:[%s8093_s1 + $0xf8] sm:$0x8] %vm3_vm0, %v2418_v59  }
 0x253   :  { %3627 = vst.msk [vmem:[%s8093_s1 + $0x137] sm:$0x10] %vm3_vm0, %v2418_v59   ;;  %3628 = vst.msk [vmem:[%s8093_s1 + $0x176] sm:$0x20] %vm3_vm0, %v2418_v59  }
 0x254   :  { %3629 = vst.msk [vmem:[%s8093_s1 + $0x1b5] sm:$0x40] %vm3_vm0, %v2418_v59   ;;  %3630 = vst.msk [vmem:[%s8093_s1 + $0x1f4] sm:$0x80] %vm3_vm0, %v2418_v59  }
 0x255   :  { %3649 = vst.msk [vmem:[%s8093_s1 + $0x23c] sm:$0x1] %vm3_vm0, %v2480_v60   ;;  %3650 = vst.msk [vmem:[%s8093_s1 + $0x27b] sm:$0x2] %vm3_vm0, %v2480_v60  }
 0x256   :  { %3651 = vst.msk [vmem:[%s8093_s1 + $0x2ba] sm:$0x4] %vm3_vm0, %v2480_v60   ;;  %3652 = vst.msk [vmem:[%s8093_s1 + $0x2f9] sm:$0x8] %vm3_vm0, %v2480_v60  }
 0x257   :  { %3653 = vst.msk [vmem:[%s8093_s1 + $0x338] sm:$0x10] %vm3_vm0, %v2480_v60   ;;  %3654 = vst.msk [vmem:[%s8093_s1 + $0x377] sm:$0x20] %vm3_vm0, %v2480_v60  }
 0x258   :  { %3655 = vst.msk [vmem:[%s8093_s1 + $0x3b6] sm:$0x40] %vm3_vm0, %v2480_v60   ;;  %3656 = vst.msk [vmem:[%s8093_s1 + $0x3f5] sm:$0x80] %vm3_vm0, %v2480_v60  }
 0x259   :  { %3640 = vst.msk [vmem:[%s8093_s1 + $0x3c] sm:$0x1] %vm3_vm0, %v2459_v61   ;;  %3641 = vst.msk [vmem:[%s8093_s1 + $0x7b] sm:$0x2] %vm3_vm0, %v2459_v61  }
 0x25a   :  { %3642 = vst.msk [vmem:[%s8093_s1 + $0xba] sm:$0x4] %vm3_vm0, %v2459_v61   ;;  %3643 = vst.msk [vmem:[%s8093_s1 + $0xf9] sm:$0x8] %vm3_vm0, %v2459_v61  }
 0x25b   :  { %3644 = vst.msk [vmem:[%s8093_s1 + $0x138] sm:$0x10] %vm3_vm0, %v2459_v61   ;;  %3645 = vst.msk [vmem:[%s8093_s1 + $0x177] sm:$0x20] %vm3_vm0, %v2459_v61  }
 0x25c   :  { %3646 = vst.msk [vmem:[%s8093_s1 + $0x1b6] sm:$0x40] %vm3_vm0, %v2459_v61   ;;  %3647 = vst.msk [vmem:[%s8093_s1 + $0x1f5] sm:$0x80] %vm3_vm0, %v2459_v61  }
 0x25d   :  { %3666 = vst.msk [vmem:[%s8093_s1 + $0x23d] sm:$0x1] %vm3_vm0, %v2521_v62   ;;  %3667 = vst.msk [vmem:[%s8093_s1 + $0x27c] sm:$0x2] %vm3_vm0, %v2521_v62  }
 0x25e   :  { %3668 = vst.msk [vmem:[%s8093_s1 + $0x2bb] sm:$0x4] %vm3_vm0, %v2521_v62   ;;  %3669 = vst.msk [vmem:[%s8093_s1 + $0x2fa] sm:$0x8] %vm3_vm0, %v2521_v62  }
 0x25f   :  { %3670 = vst.msk [vmem:[%s8093_s1 + $0x339] sm:$0x10] %vm3_vm0, %v2521_v62   ;;  %3671 = vst.msk [vmem:[%s8093_s1 + $0x378] sm:$0x20] %vm3_vm0, %v2521_v62  }
 0x260   :  { %3672 = vst.msk [vmem:[%s8093_s1 + $0x3b7] sm:$0x40] %vm3_vm0, %v2521_v62   ;;  %3673 = vst.msk [vmem:[%s8093_s1 + $0x3f6] sm:$0x80] %vm3_vm0, %v2521_v62  }
 0x261   :  { %3657 = vst.msk [vmem:[%s8093_s1 + $0x3d] sm:$0x1] %vm3_vm0, %v2500_v63   ;;  %3658 = vst.msk [vmem:[%s8093_s1 + $0x7c] sm:$0x2] %vm3_vm0, %v2500_v63  }
 0x262   :  { %3659 = vst.msk [vmem:[%s8093_s1 + $0xbb] sm:$0x4] %vm3_vm0, %v2500_v63   ;;  %3660 = vst.msk [vmem:[%s8093_s1 + $0xfa] sm:$0x8] %vm3_vm0, %v2500_v63  }
 0x263   :  { %3661 = vst.msk [vmem:[%s8093_s1 + $0x139] sm:$0x10] %vm3_vm0, %v2500_v63   ;;  %3662 = vst.msk [vmem:[%s8093_s1 + $0x178] sm:$0x20] %vm3_vm0, %v2500_v63  }
 0x264   :  { %3663 = vst.msk [vmem:[%s8093_s1 + $0x1b7] sm:$0x40] %vm3_vm0, %v2500_v63   ;;  %3664 = vst.msk [vmem:[%s8093_s1 + $0x1f6] sm:$0x80] %vm3_vm0, %v2500_v63  }
 0x265   :  { %3683 = vst.msk [vmem:[%s8093_s1 + $0x23e] sm:$0x1] %vm3_vm0, %v2562_v0   ;;  %3684 = vst.msk [vmem:[%s8093_s1 + $0x27d] sm:$0x2] %vm3_vm0, %v2562_v0  }
 0x266   :  { %3685 = vst.msk [vmem:[%s8093_s1 + $0x2bc] sm:$0x4] %vm3_vm0, %v2562_v0   ;;  %3686 = vst.msk [vmem:[%s8093_s1 + $0x2fb] sm:$0x8] %vm3_vm0, %v2562_v0  }
 0x267   :  { %3687 = vst.msk [vmem:[%s8093_s1 + $0x33a] sm:$0x10] %vm3_vm0, %v2562_v0   ;;  %3688 = vst.msk [vmem:[%s8093_s1 + $0x379] sm:$0x20] %vm3_vm0, %v2562_v0  }
 0x268   :  { %3689 = vst.msk [vmem:[%s8093_s1 + $0x3b8] sm:$0x40] %vm3_vm0, %v2562_v0   ;;  %3690 = vst.msk [vmem:[%s8093_s1 + $0x3f7] sm:$0x80] %vm3_vm0, %v2562_v0  }
 0x269   :  { %3674 = vst.msk [vmem:[%s8093_s1 + $0x3e] sm:$0x1] %vm3_vm0, %v2541_v1   ;;  %3675 = vst.msk [vmem:[%s8093_s1 + $0x7d] sm:$0x2] %vm3_vm0, %v2541_v1  }
 0x26a   :  { %3676 = vst.msk [vmem:[%s8093_s1 + $0xbc] sm:$0x4] %vm3_vm0, %v2541_v1   ;;  %3677 = vst.msk [vmem:[%s8093_s1 + $0xfb] sm:$0x8] %vm3_vm0, %v2541_v1  }
 0x26b   :  { %3678 = vst.msk [vmem:[%s8093_s1 + $0x13a] sm:$0x10] %vm3_vm0, %v2541_v1   ;;  %3679 = vst.msk [vmem:[%s8093_s1 + $0x179] sm:$0x20] %vm3_vm0, %v2541_v1  }
 0x26c   :  { %3680 = vst.msk [vmem:[%s8093_s1 + $0x1b8] sm:$0x40] %vm3_vm0, %v2541_v1   ;;  %3681 = vst.msk [vmem:[%s8093_s1 + $0x1f7] sm:$0x80] %vm3_vm0, %v2541_v1  }
 0x26d   :  { %3700 = vst.msk [vmem:[%s8093_s1 + $0x23f] sm:$0x1] %vm3_vm0, %v2603_v2   ;;  %3701 = vst.msk [vmem:[%s8093_s1 + $0x27e] sm:$0x2] %vm3_vm0, %v2603_v2  }
 0x26e   :  { %3702 = vst.msk [vmem:[%s8093_s1 + $0x2bd] sm:$0x4] %vm3_vm0, %v2603_v2   ;;  %3703 = vst.msk [vmem:[%s8093_s1 + $0x2fc] sm:$0x8] %vm3_vm0, %v2603_v2  }
 0x26f   :  { %3704 = vst.msk [vmem:[%s8093_s1 + $0x33b] sm:$0x10] %vm3_vm0, %v2603_v2   ;;  %3705 = vst.msk [vmem:[%s8093_s1 + $0x37a] sm:$0x20] %vm3_vm0, %v2603_v2  }
 0x270   :  { %3706 = vst.msk [vmem:[%s8093_s1 + $0x3b9] sm:$0x40] %vm3_vm0, %v2603_v2   ;;  %3707 = vst.msk [vmem:[%s8093_s1 + $0x3f8] sm:$0x80] %vm3_vm0, %v2603_v2  }
 0x271   :  { %3691 = vst.msk [vmem:[%s8093_s1 + $0x3f] sm:$0x1] %vm3_vm0, %v2582_v3   ;;  %3692 = vst.msk [vmem:[%s8093_s1 + $0x7e] sm:$0x2] %vm3_vm0, %v2582_v3  }
 0x272   :  { %3693 = vst.msk [vmem:[%s8093_s1 + $0xbd] sm:$0x4] %vm3_vm0, %v2582_v3   ;;  %3694 = vst.msk [vmem:[%s8093_s1 + $0xfc] sm:$0x8] %vm3_vm0, %v2582_v3  }
 0x273   :  { %3695 = vst.msk [vmem:[%s8093_s1 + $0x13b] sm:$0x10] %vm3_vm0, %v2582_v3   ;;  %3696 = vst.msk [vmem:[%s8093_s1 + $0x17a] sm:$0x20] %vm3_vm0, %v2582_v3  }
 0x274   :  { %3697 = vst.msk [vmem:[%s8093_s1 + $0x1b9] sm:$0x40] %vm3_vm0, %v2582_v3   ;;  %3698 = vst.msk [vmem:[%s8093_s1 + $0x1f8] sm:$0x80] %vm3_vm0, %v2582_v3  }

// kernel: discriminator_forward.8
= control target key start
LH: loop header
LB: loop body
LE: loop exit
PB: predicated region body
PF: predicated region fallthrough
CT: control target
= control target key end

     0   :  { %v1974_v0 = vmov 0   ;;  %s2878_s0 = inlined_call_operand.vmem [shape: f32[512,1], index: 0, kind: input, shape index: {}]   ;;  %s2879_s1 = inlined_call_operand.vmem [shape: f32[512,1], index: 1, kind: input, shape index: {}]   ;;  %s2880_s3 = inlined_call_operand.vmem [shape: bf16[512,32], index: 3, kind: input, shape index: {}]   ;;  %s2881_s2 = inlined_call_operand.vmem [shape: bf16[64,512], index: 2, kind: input, shape index: {}]   ;;  %s2882_s5 = inlined_call_operand.vmem [shape: f32[64,1], index: 5, kind: output, shape index: {1}]   ;;  %s2883_s4 = inlined_call_operand.vmem [shape: bf16[64,32], index: 4, kind: output, shape index: {0}]   ;;  %s2884_s6 = inlined_call_operand.vmem [shape: f32[64,1], index: 6, kind: output, shape index: {2}]  }
   0x1   :  { %1949 = vset.pattern.permute.xlu1 %v1974_v0  ;;  %1948 = vset.pattern.permute.xlu0 %v1974_v0  ;;  %v151_v1 = vld [vmem:[%s2878_s0 + $0x10] sm:$0xff]  ;;  %v149_v2 = vld [vmem:[%s2878_s0] sm:$0xff]  ;;  %v152_v3 = vld [vmem:[%s2878_s0 + $0x18] sm:$0xff] }
   0x2   :  { %225 = vperm.xlu1 %1949, %v151_v1   ;;  %215 = vperm.xlu0 %1948, %v149_v2   ;;  %v150_v4 = vld [vmem:[%s2878_s0 + $0x8] sm:$0xff]  ;;  %v153_v6 = vld [vmem:[%s2878_s0 + $0x20] sm:$0xff]  ;;  %v156_v7 = vld [vmem:[%s2878_s0 + $0x38] sm:$0xff] }
   0x3   :  { %v154_v5 = vld [vmem:[%s2878_s0 + $0x28] sm:$0xff]  ;;  %v155_v8 = vld [vmem:[%s2878_s0 + $0x30] sm:$0xff]  ;;  %v157_v10 = vld [vmem:[%s2878_s0 + $0x40] sm:$0xff] }
   0x4   :  { %v158_v9 = vld [vmem:[%s2878_s0 + $0x48] sm:$0xff]  ;;  %v160_v11 = vld [vmem:[%s2878_s0 + $0x58] sm:$0xff]  ;;  %v159_v12 = vld [vmem:[%s2878_s0 + $0x50] sm:$0xff] }
   0x5   :  { %v162_v13 = vld [vmem:[%s2878_s0 + $0x68] sm:$0xff]  ;;  %v161_v14 = vld [vmem:[%s2878_s0 + $0x60] sm:$0xff]  ;;  %v164_v15 = vld [vmem:[%s2878_s0 + $0x78] sm:$0xff] }
   0x6   :  { %230 = vperm.xlu1 %1949, %v152_v3   ;;  %220 = vperm.xlu0 %1948, %v150_v4   ;;  %v163_v16 = vld [vmem:[%s2878_s0 + $0x70] sm:$0xff]  ;;  %v166_v17 = vld [vmem:[%s2878_s0 + $0x88] sm:$0xff]  ;;  %v165_v18 = vld [vmem:[%s2878_s0 + $0x80] sm:$0xff] }
   0x7   :  { %v168_v19 = vld [vmem:[%s2878_s0 + $0x98] sm:$0xff]  ;;  %v167_v20 = vld [vmem:[%s2878_s0 + $0x90] sm:$0xff]  ;;  %v170_v21 = vld [vmem:[%s2878_s0 + $0xa8] sm:$0xff] }
   0x8   :  { %v169_v22 = vld [vmem:[%s2878_s0 + $0xa0] sm:$0xff]  ;;  %v172_v23 = vld [vmem:[%s2878_s0 + $0xb8] sm:$0xff]  ;;  %v171_v24 = vld [vmem:[%s2878_s0 + $0xb0] sm:$0xff] }
   0x9   :  { %v174_v25 = vld [vmem:[%s2878_s0 + $0xc8] sm:$0xff]  ;;  %v173_v26 = vld [vmem:[%s2878_s0 + $0xc0] sm:$0xff]  ;;  %v176_v27 = vld [vmem:[%s2878_s0 + $0xd8] sm:$0xff] }
   0xa   :  { %240 = vperm.xlu1 %1949, %v154_v5   ;;  %235 = vperm.xlu0 %1948, %v153_v6   ;;  %v175_v28 = vld [vmem:[%s2878_s0 + $0xd0] sm:$0xff]  ;;  %v178_v29 = vld [vmem:[%s2878_s0 + $0xe8] sm:$0xff]  ;;  %v177_v30 = vld [vmem:[%s2878_s0 + $0xe0] sm:$0xff] }
   0xb   :  { %v180_v31 = vld [vmem:[%s2878_s0 + $0xf8] sm:$0xff]  ;;  %v179_v32 = vld [vmem:[%s2878_s0 + $0xf0] sm:$0xff]  ;;  %v197_v33 = vld [vmem:[%s2878_s0 + $0x180] sm:$0xff] }
   0xc   :  { %v181_v34 = vld [vmem:[%s2878_s0 + $0x100] sm:$0xff]  ;;  %v182_v35 = vld [vmem:[%s2878_s0 + $0x108] sm:$0xff]  ;;  %v200_v45 = vld [vmem:[%s2878_s0 + $0x198] sm:$0xff] }
   0xd   :  { %v198_v36 = vld [vmem:[%s2878_s0 + $0x188] sm:$0xff]  ;;  %v613_v38 = vld [vmem:[%s2879_s1 + $0x80] sm:$0xff]  ;;  %v199_v46 = vld [vmem:[%s2878_s0 + $0x190] sm:$0xff] }
   0xe   :  { %250 = vperm.xlu1 %1949, %v156_v7   ;;  %245 = vperm.xlu0 %1948, %v155_v8   ;;  %v614_v37 = vld [vmem:[%s2879_s1 + $0x88] sm:$0xff]  ;;  %v645_v40 = vld [vmem:[%s2879_s1 + $0x180] sm:$0xff]  ;;  %v184_v47 = vld [vmem:[%s2878_s0 + $0x118] sm:$0xff] }
   0xf   :  { %v646_v39 = vld [vmem:[%s2879_s1 + $0x188] sm:$0xff]  ;;  %v597_v42 = vld [vmem:[%s2879_s1] sm:$0xff]  ;;  %v183_v48 = vld [vmem:[%s2878_s0 + $0x110] sm:$0xff] }
  0x10   :  { %v598_v41 = vld [vmem:[%s2879_s1 + $0x8] sm:$0xff]  ;;  %v629_v44 = vld [vmem:[%s2879_s1 + $0x100] sm:$0xff]  ;;  %v616_v49 = vld [vmem:[%s2879_s1 + $0x98] sm:$0xff] }
  0x11   :  { %v630_v43 = vld [vmem:[%s2879_s1 + $0x108] sm:$0xff]  ;;  %v615_v50 = vld [vmem:[%s2879_s1 + $0x90] sm:$0xff]  ;;  %v648_v51 = vld [vmem:[%s2879_s1 + $0x198] sm:$0xff] }
  0x12   :  { %260 = vperm.xlu1 %1949, %v158_v9   ;;  %255 = vperm.xlu0 %1948, %v157_v10   ;;  %v647_v52 = vld [vmem:[%s2879_s1 + $0x190] sm:$0xff]  ;;  %v600_v53 = vld [vmem:[%s2879_s1 + $0x18] sm:$0xff]  ;;  %v202_v57 = vld [vmem:[%s2878_s0 + $0x1a8] sm:$0xff] }
  0x13   :  { %v599_v54 = vld [vmem:[%s2879_s1 + $0x10] sm:$0xff]  ;;  %v632_v55 = vld [vmem:[%s2879_s1 + $0x118] sm:$0xff]  ;;  %v201_v58 = vld [vmem:[%s2878_s0 + $0x1a0] sm:$0xff] }
  0x14   :  { %v631_v56 = vld [vmem:[%s2879_s1 + $0x110] sm:$0xff]  ;;  %v186_v59 = vld [vmem:[%s2878_s0 + $0x128] sm:$0xff]  ;;  %v185_v60 = vld [vmem:[%s2878_s0 + $0x120] sm:$0xff] }
  0x15   :  { %v618_v61 = vld [vmem:[%s2879_s1 + $0xa8] sm:$0xff]  ;;  %v617_v62 = vld [vmem:[%s2879_s1 + $0xa0] sm:$0xff]  ;;  %v204_v9 = vld [vmem:[%s2878_s0 + $0x1b8] sm:$0xff] }
  0x16   :  { %270 = vperm.xlu1 %1949, %v160_v11   ;;  %265 = vperm.xlu0 %1948, %v159_v12   ;;  %v650_v63 = vld [vmem:[%s2879_s1 + $0x1a8] sm:$0xff]  ;;  %v649_v0 = vld [vmem:[%s2879_s1 + $0x1a0] sm:$0xff]  ;;  %v203_v10 = vld [vmem:[%s2878_s0 + $0x1b0] sm:$0xff] }
  0x17   :  { %v602_v1 = vld [vmem:[%s2879_s1 + $0x28] sm:$0xff]  ;;  %v601_v2 = vld [vmem:[%s2879_s1 + $0x20] sm:$0xff] }
  0x18   :  { %v634_v5 = vld [vmem:[%s2879_s1 + $0x128] sm:$0xff]  ;;  %v633_v6 = vld [vmem:[%s2879_s1 + $0x120] sm:$0xff] }
  0x1a   :  { %280 = vperm.xlu1 %1949, %v162_v13   ;;  %275 = vperm.xlu0 %1948, %v161_v14   ;;  %v188_v13 = vld [vmem:[%s2878_s0 + $0x138] sm:$0xff]  ;;  %v187_v14 = vld [vmem:[%s2878_s0 + $0x130] sm:$0xff] }
  0x1e   :  { %290 = vperm.xlu1 %1949, %v164_v15   ;;  %285 = vperm.xlu0 %1948, %v163_v16  }
  0x22   :  { %300 = vperm.xlu1 %1949, %v166_v17   ;;  %295 = vperm.xlu0 %1948, %v165_v18   ;;  %v620_v17 = vld [vmem:[%s2879_s1 + $0xb8] sm:$0xff]  ;;  %v619_v18 = vld [vmem:[%s2879_s1 + $0xb0] sm:$0xff] }
  0x26   :  { %310 = vperm.xlu1 %1949, %v168_v19   ;;  %305 = vperm.xlu0 %1948, %v167_v20  }
  0x2a   :  { %320 = vperm.xlu1 %1949, %v170_v21   ;;  %315 = vperm.xlu0 %1948, %v169_v22   ;;  %v652_v21 = vld [vmem:[%s2879_s1 + $0x1b8] sm:$0xff]  ;;  %v651_v22 = vld [vmem:[%s2879_s1 + $0x1b0] sm:$0xff] }
  0x2e   :  { %330 = vperm.xlu1 %1949, %v172_v23   ;;  %325 = vperm.xlu0 %1948, %v171_v24  }
  0x32   :  { %340 = vperm.xlu1 %1949, %v174_v25   ;;  %335 = vperm.xlu0 %1948, %v173_v26   ;;  %v604_v25 = vld [vmem:[%s2879_s1 + $0x38] sm:$0xff]  ;;  %v603_v26 = vld [vmem:[%s2879_s1 + $0x30] sm:$0xff] }
  0x36   :  { %350 = vperm.xlu1 %1949, %v176_v27   ;;  %345 = vperm.xlu0 %1948, %v175_v28  }
  0x3a   :  { %360 = vperm.xlu1 %1949, %v178_v29   ;;  %355 = vperm.xlu0 %1948, %v177_v30   ;;  %v636_v29 = vld [vmem:[%s2879_s1 + $0x138] sm:$0xff]  ;;  %v635_v30 = vld [vmem:[%s2879_s1 + $0x130] sm:$0xff] }
  0x3e   :  { %370 = vperm.xlu1 %1949, %v180_v31   ;;  %365 = vperm.xlu0 %1948, %v179_v32  }
  0x42   :  { %455 = vperm.xlu1 %1949, %v197_v33   ;;  %375 = vperm.xlu0 %1948, %v181_v34   ;;  %v206_v33 = vld [vmem:[%s2878_s0 + $0x1c8] sm:$0xff]  ;;  %v205_v34 = vld [vmem:[%s2878_s0 + $0x1c0] sm:$0xff] }
  0x46   :  { %380 = vperm.xlu1 %1949, %v182_v35   ;;  %460 = vperm.xlu0 %1948, %v198_v36  }
  0x4a   :  { %748 = vperm.xlu1 %1949, %v614_v37   ;;  %743 = vperm.xlu0 %1948, %v613_v38   ;;  %v190_v37 = vld [vmem:[%s2878_s0 + $0x148] sm:$0xff]  ;;  %v189_v38 = vld [vmem:[%s2878_s0 + $0x140] sm:$0xff] }
  0x4e   :  { %908 = vperm.xlu1 %1949, %v646_v39   ;;  %903 = vperm.xlu0 %1948, %v645_v40  }
  0x52   :  { %668 = vperm.xlu1 %1949, %v598_v41   ;;  %663 = vperm.xlu0 %1948, %v597_v42   ;;  %v622_v41 = vld [vmem:[%s2879_s1 + $0xc8] sm:$0xff]  ;;  %v621_v42 = vld [vmem:[%s2879_s1 + $0xc0] sm:$0xff] }
  0x56   :  { %828 = vperm.xlu1 %1949, %v630_v43   ;;  %823 = vperm.xlu0 %1948, %v629_v44  }
  0x5a   :  { %470 = vperm.xlu1 %1949, %v200_v45   ;;  %465 = vperm.xlu0 %1948, %v199_v46   ;;  %v654_v45 = vld [vmem:[%s2879_s1 + $0x1c8] sm:$0xff]  ;;  %v653_v46 = vld [vmem:[%s2879_s1 + $0x1c0] sm:$0xff] }
  0x5e   :  { %390 = vperm.xlu1 %1949, %v184_v47   ;;  %385 = vperm.xlu0 %1948, %v183_v48  }
  0x62   :  { %758 = vperm.xlu1 %1949, %v616_v49   ;;  %753 = vperm.xlu0 %1948, %v615_v50   ;;  %v606_v49 = vld [vmem:[%s2879_s1 + $0x48] sm:$0xff]  ;;  %v605_v50 = vld [vmem:[%s2879_s1 + $0x40] sm:$0xff] }
  0x66   :  { %918 = vperm.xlu1 %1949, %v648_v51   ;;  %913 = vperm.xlu0 %1948, %v647_v52  }
  0x6a   :  { %678 = vperm.xlu1 %1949, %v600_v53   ;;  %673 = vperm.xlu0 %1948, %v599_v54   ;;  %v638_v53 = vld [vmem:[%s2879_s1 + $0x148] sm:$0xff]  ;;  %v637_v54 = vld [vmem:[%s2879_s1 + $0x140] sm:$0xff] }
  0x6e   :  { %838 = vperm.xlu1 %1949, %v632_v55   ;;  %833 = vperm.xlu0 %1948, %v631_v56  }
  0x72   :  { %480 = vperm.xlu1 %1949, %v202_v57   ;;  %475 = vperm.xlu0 %1948, %v201_v58   ;;  %v208_v57 = vld [vmem:[%s2878_s0 + $0x1d8] sm:$0xff]  ;;  %v207_v58 = vld [vmem:[%s2878_s0 + $0x1d0] sm:$0xff] }
  0x76   :  { %400 = vperm.xlu1 %1949, %v186_v59   ;;  %395 = vperm.xlu0 %1948, %v185_v60  }
  0x7a   :  { %768 = vperm.xlu1 %1949, %v618_v61   ;;  %763 = vperm.xlu0 %1948, %v617_v62   ;;  %v192_v61 = vld [vmem:[%s2878_s0 + $0x158] sm:$0xff]  ;;  %v191_v62 = vld [vmem:[%s2878_s0 + $0x150] sm:$0xff] }
  0x7e   :  { %928 = vperm.xlu1 %1949, %v650_v63   ;;  %923 = vperm.xlu0 %1948, %v649_v0  }
  0x81   :  { %v2209_v3 = vpop.permute.xlu1 %225  ;;  %v2211_v4 = vpop.permute.xlu0 %215 }
  0x82   :  { %688 = vperm.xlu1 %1949, %v602_v1   ;;  %683 = vperm.xlu0 %1948, %v601_v2   ;;  %v624_v1 = vld [vmem:[%s2879_s1 + $0xd8] sm:$0xff]  ;;  %v623_v2 = vld [vmem:[%s2879_s1 + $0xd0] sm:$0xff] }
  0x85   :  { %v2219_v7 = vpop.permute.xlu1 %230  ;;  %v2221_v8 = vpop.permute.xlu0 %220 }
  0x86   :  { %848 = vperm.xlu1 %1949, %v634_v5   ;;  %843 = vperm.xlu0 %1948, %v633_v6   ;;  %v1842_v5 = vld [vmem:[%s2880_s3 + $0x40] sm:$0xff]  }
  0x89   :  { %v2229_v11 = vpop.permute.xlu1 %240  ;;  %v2231_v12 = vpop.permute.xlu0 %235 }
  0x8a   :  { %490 = vperm.xlu1 %1949, %v204_v9   ;;  %485 = vperm.xlu0 %1948, %v203_v10   ;;  %v656_v10 = vld [vmem:[%s2879_s1 + $0x1d8] sm:$0xff] }
  0x8d   :  { %v2239_v15 = vpop.permute.xlu1 %250  ;;  %v2241_v16 = vpop.permute.xlu0 %245 }
  0x8e   :  { %410 = vperm.xlu1 %1949, %v188_v13   ;;  %405 = vperm.xlu0 %1948, %v187_v14   ;;  %v655_v13 = vld [vmem:[%s2879_s1 + $0x1d0] sm:$0xff]  ;;  %v1742_v14 = vunpack.c.h.bf16 %v1842_v5 }
  0x91   :  { %v2249_v19 = vpop.permute.xlu1 %260  ;;  %v2251_v20 = vpop.permute.xlu0 %255 }
  0x92   :  { %778 = vperm.xlu1 %1949, %v620_v17   ;;  %773 = vperm.xlu0 %1948, %v619_v18   ;;  %v1741_v17 = vunpack.c.l.bf16 %v1842_v5  ;;  %v1858_v18 = vld [vmem:[%s2880_s3 + $0xc0] sm:$0xff]  }
  0x95   :  { %v2259_v23 = vpop.permute.xlu1 %270  ;;  %v2261_v24 = vpop.permute.xlu0 %265 }
  0x96   :  { %938 = vperm.xlu1 %1949, %v652_v21   ;;  %933 = vperm.xlu0 %1948, %v651_v22  }
  0x99   :  { %v2269_v27 = vpop.permute.xlu1 %280  ;;  %v2271_v28 = vpop.permute.xlu0 %275 }
  0x9a   :  { %698 = vperm.xlu1 %1949, %v604_v25   ;;  %693 = vperm.xlu0 %1948, %v603_v26   ;;  %v1805_v25 = vunpack.c.l.bf16 %v1858_v18  ;;  %v1806_v26 = vunpack.c.h.bf16 %v1858_v18  ;;  %v210_v18 = vld [vmem:[%s2878_s0 + $0x1e8] sm:$0xff] }
  0x9d   :  { %v2279_v31 = vpop.permute.xlu1 %290  ;;  %v2281_v32 = vpop.permute.xlu0 %285 }
  0x9e   :  { %858 = vperm.xlu1 %1949, %v636_v29   ;;  %853 = vperm.xlu0 %1948, %v635_v30   ;;  %v608_v29 = vld [vmem:[%s2879_s1 + $0x58] sm:$0xff]  ;;  %v607_v30 = vld [vmem:[%s2879_s1 + $0x50] sm:$0xff] }
  0xa1   :  { %v2289_v35 = vpop.permute.xlu1 %300  ;;  %v2291_v36 = vpop.permute.xlu0 %295 }
  0xa2   :  { %500 = vperm.xlu1 %1949, %v206_v33   ;;  %495 = vperm.xlu0 %1948, %v205_v34   ;;  %v1708_v33 = vld [vmem:[%s2880_s3] sm:$0xff]   ;;  %v550_v34 = vmul.f32 %v1742_v14, %v2289_v35  ;;  %v640_v35 = vld [vmem:[%s2879_s1 + $0x158] sm:$0xff] }
  0xa5   :  { %v2299_v39 = vpop.permute.xlu1 %310  ;;  %v2301_v40 = vpop.permute.xlu0 %305 }
  0xa6   :  { %420 = vperm.xlu1 %1949, %v190_v37   ;;  %415 = vperm.xlu0 %1948, %v189_v38   ;;  %v549_v37 = vmul.f32 %v1741_v17, %v2291_v36  ;;  %v639_v36 = vld [vmem:[%s2879_s1 + $0x150] sm:$0xff] }
  0xa9   :  { %v2309_v43 = vpop.permute.xlu1 %320  ;;  %v2311_v44 = vpop.permute.xlu0 %315 }
  0xaa   :  { %788 = vperm.xlu1 %1949, %v622_v41   ;;  %783 = vperm.xlu0 %1948, %v621_v42  }
  0xad   :  { %v2319_v47 = vpop.permute.xlu1 %330  ;;  %v2321_v48 = vpop.permute.xlu0 %325 }
  0xae   :  { %948 = vperm.xlu1 %1949, %v654_v45   ;;  %943 = vperm.xlu0 %1948, %v653_v46   ;;  %v1709_v46 = vunpack.c.l.bf16 %v1708_v33 }
  0xb1   :  { %v2329_v51 = vpop.permute.xlu1 %340  ;;  %v2331_v52 = vpop.permute.xlu0 %335 }
  0xb2   :  { %708 = vperm.xlu1 %1949, %v606_v49   ;;  %703 = vperm.xlu0 %1948, %v605_v50   ;;  %v1710_v49 = vunpack.c.h.bf16 %v1708_v33 }
  0xb5   :  { %v2339_v55 = vpop.permute.xlu1 %350  ;;  %v2341_v56 = vpop.permute.xlu0 %345 }
  0xb6   :  { %868 = vperm.xlu1 %1949, %v638_v53   ;;  %863 = vperm.xlu0 %1948, %v637_v54   ;;  %v1850_v53 = vld [vmem:[%s2880_s3 + $0x80] sm:$0xff]  }
  0xb7   :  { %v1774_v14 = vunpack.c.h.bf16 %v1850_v53 }
  0xb9   :  { %v2349_v59 = vpop.permute.xlu1 %360  ;;  %v2351_v60 = vpop.permute.xlu0 %355 }
  0xba   :  { %510 = vperm.xlu1 %1949, %v208_v57   ;;  %505 = vperm.xlu0 %1948, %v207_v58  }
  0xbd   :  { %v2359_v63 = vpop.permute.xlu1 %370  ;;  %v2361_v0 = vpop.permute.xlu0 %365 }
  0xbe   :  { %430 = vperm.xlu1 %1949, %v192_v61   ;;  %425 = vperm.xlu0 %1948, %v191_v62  }
  0xc1   :  { %v456_v6 = vpop.permute.xlu1 %455  ;;  %v2372_v9 = vpop.permute.xlu0 %375 }
  0xc2   :  { %798 = vperm.xlu1 %1949, %v624_v1   ;;  %793 = vperm.xlu0 %1948, %v623_v2   ;;  %v581_v50 = vmul.f32 %v1805_v25, %v456_v6  ;;  %v1773_v1 = vunpack.c.l.bf16 %v1850_v53  ;;  %v209_v25 = vld [vmem:[%s2878_s0 + $0x1e0] sm:$0xff] }
  0xc5   :  { %v381_v21 = vpop.permute.xlu1 %380  ;;  %v461_v22 = vpop.permute.xlu0 %460 }
  0xc6   :  { %958 = vperm.xlu1 %1949, %v656_v10   ;;  %953 = vperm.xlu0 %1948, %v655_v13   ;;  %v582_v54 = vmul.f32 %v1806_v26, %v461_v22  ;;  %v533_v10 = vmul.f32 %v1709_v46, %v2211_v4  ;;  %v534_v13 = vmul.f32 %v1710_v49, %v2221_v8 }
  0xc9   :  { %v749_v38 = vpop.permute.xlu1 %748  ;;  %v744_v41 = vpop.permute.xlu0 %743 }
  0xca   :  { %v998_v42 = vadd.f32 %v749_v38, %v550_v34  ;;  %v997_v45 = vadd.f32 %v744_v41, %v549_v37  ;;  %718 = vperm.xlu1 %1949, %v608_v29   ;;  %713 = vperm.xlu0 %1948, %v607_v30   ;;  %v565_v37 = vmul.f32 %v1773_v1, %v2372_v9  ;;  %v625_v1 = vld [vmem:[%s2879_s1 + $0xe0] sm:$0xff] }
  0xcb   :  { %v566_v38 = vmul.f32 %v1774_v14, %v381_v21  ;;  %v658_v14 = vld [vmem:[%s2879_s1 + $0x1e8] sm:$0xff] }
  0xcc   :  { %vm1061_vm0 = vcmp.ge.f32.partialorder %v997_v45, 0.0  ;;  %vm1062_vm1 = vcmp.ge.f32.partialorder %v998_v42, 0.0  ;;  %v1125_v57 = vmul.f32 0.2, %v997_v45  ;;  %v1126_v58 = vmul.f32 0.2, %v998_v42 }
  0xcd   :  { %v909_v61 = vpop.permute.xlu1 %908  ;;  %v904_v62 = vpop.permute.xlu0 %903 }
  0xce   :  { %v1030_v2 = vadd.f32 %v909_v61, %v582_v54  ;;  %v1029_v5 = vadd.f32 %v904_v62, %v581_v50  ;;  %878 = vperm.xlu1 %1949, %v640_v35   ;;  %873 = vperm.xlu0 %1948, %v639_v36   ;;  %v1189_v6 = vsel %vm1061_vm0, %v997_v45, %v1125_v57  ;;  %v193_v50 = vld [vmem:[%s2878_s0 + $0x160] sm:$0xff]  ;;  %v626_v57 = vld [vmem:[%s2879_s1 + $0xe8] sm:$0xff] }
  0xcf   :  { %v1190_v17 = vsel %vm1062_vm1, %v998_v42, %v1126_v58  ;;  %v194_v42 = vld [vmem:[%s2878_s0 + $0x168] sm:$0xff] }
  0xd0   :  { %v1245_v22 = vpack.c.bf16 %v1190_v17, %v1189_v6  ;;  %vm1093_vm2 = vcmp.ge.f32.partialorder %v1029_v5, 0.0  ;;  %vm1094_vm3 = vcmp.ge.f32.partialorder %v1030_v2, 0.0  ;;  %v1157_v26 = vmul.f32 0.2, %v1029_v5 }
  0xd1   :  { %v669_v29 = vpop.permute.xlu1 %668  ;;  %v664_v30 = vpop.permute.xlu0 %663  ;;  %v1158_v33 = vmul.f32 0.2, %v1030_v2 }
  0xd2   :  { %v982_v4 = vadd.f32 %v669_v29, %v534_v13  ;;  %1866 = vmatprep.subr.bf16.mxu0 %v1245_v22  ;;  %v981_v8 = vadd.f32 %v664_v30, %v533_v10  ;;  %520 = vperm.xlu1 %1949, %v210_v18   ;;  %v1221_v34 = vsel %vm1093_vm2, %v1029_v5, %v1157_v26  ;;  %v1859_v22 = vld [vmem:[%s2880_s3 + $0xc8] sm:$0xff]   ;;  %v657_v26 = vld [vmem:[%s2879_s1 + $0x1e0] sm:$0xff] }
  0xd3   :  { %515 = vperm.xlu0 %1948, %v209_v25   ;;  %v1222_v41 = vsel %vm1094_vm3, %v1030_v2, %v1158_v33  ;;  %v1843_v2 = vld [vmem:[%s2880_s3 + $0x48] sm:$0xff]   ;;  %v1810_v33 = vunpack.c.h.bf16 %v1859_v22 }
  0xd4   :  { %v1110_v45 = vmul.f32 0.2, %v982_v4  ;;  %v1109_v46 = vmul.f32 0.2, %v981_v8  ;;  %v1261_v49 = vpack.c.bf16 %v1222_v41, %v1221_v34  ;;  %vm1045_vm4 = vcmp.ge.f32.partialorder %v981_v8, 0.0  ;;  %v1835_v34 = vld [vmem:[%s2880_s3 + $0x8] sm:$0xff]  }
  0xd5   :  { %v829_v53 = vpop.permute.xlu1 %828  ;;  %v824_v54 = vpop.permute.xlu0 %823  ;;  %vm1046_vm5 = vcmp.ge.f32.partialorder %v982_v4, 0.0  ;;  %v1746_v17 = vunpack.c.h.bf16 %v1843_v2  ;;  %v1745_v18 = vunpack.c.l.bf16 %v1843_v2  ;;  %v609_v41 = vld [vmem:[%s2879_s1 + $0x60] sm:$0xff] }
  0xd6   :  { %v1014_v35 = vadd.f32 %v829_v53, %v566_v38  ;;  %1906 = vmatprep.subr.bf16.mxu1 %v1261_v49  ;;  %v1013_v9 = vadd.f32 %v824_v54, %v565_v37  ;;  %440 = vperm.xlu1 %1949, %v194_v42   ;;  %v1173_v21 = vsel %vm1045_vm4, %v981_v8, %v1109_v46  ;;  %v610_v8 = vld [vmem:[%s2879_s1 + $0x68] sm:$0xff]  ;;  %v1713_v53 = vunpack.c.l.bf16 %v1835_v34 }
  0xd7   :  { %435 = vperm.xlu0 %1948, %v193_v50   ;;  %v1174_v36 = vsel %vm1046_vm5, %v982_v4, %v1110_v45  ;;  %v1809_v4 = vunpack.c.l.bf16 %v1859_v22  ;;  %v552_v37 = vmul.f32 %v1746_v17, %v2299_v39  ;;  %v551_v38 = vmul.f32 %v1745_v18, %v2301_v40  ;;  %v1851_v46 = vld [vmem:[%s2880_s3 + $0x88] sm:$0xff]   ;;  %v641_v40 = vld [vmem:[%s2879_s1 + $0x160] sm:$0xff]  ;;  %v212_v17 = vld [vmem:[%s2878_s0 + $0x1f8] sm:$0xff] }
  0xd8   :  { %v1142_v58 = vmul.f32 0.2, %v1014_v35  ;;  %v1141_v61 = vmul.f32 0.2, %v1013_v9  ;;  %v1237_v62 = vpack.c.bf16 %v1174_v36, %v1173_v21  ;;  %vm1077_vm6 = vcmp.ge.f32.partialorder %v1013_v9, 0.0  ;;  %v642_v39 = vld [vmem:[%s2879_s1 + $0x168] sm:$0xff] }
  0xd9   :  { %v471_v5 = vpop.permute.xlu1 %470  ;;  %v466_v6 = vpop.permute.xlu0 %465  ;;  %vm1078_vm7 = vcmp.ge.f32.partialorder %v1014_v35, 0.0  ;;  %v1714_v54 = vunpack.c.h.bf16 %v1835_v34  ;;  %v211_v18 = vld [vmem:[%s2878_s0 + $0x1f0] sm:$0xff] }
  0xda   :  { %1867 = vmatpush3.bf16.msra.mxu0 %v1237_v62  ;;  %808 = vperm.xlu1 %1949, %v626_v57   ;;  %v1205_v10 = vsel %vm1077_vm6, %v1013_v9, %v1141_v61  ;;  %v1206_v13 = vsel %vm1078_vm7, %v1014_v35, %v1142_v58  ;;  %v584_v35 = vmul.f32 %v1810_v33, %v471_v5  ;;  %v1778_v57 = vunpack.c.h.bf16 %v1851_v46 }
  0xdb   :  { %803 = vperm.xlu0 %1948, %v625_v1   ;;  %v1253_v25 = vpack.c.bf16 %v1206_v13, %v1205_v10  ;;  %v583_v9 = vmul.f32 %v1809_v4, %v466_v6  ;;  %v535_v6 = vmul.f32 %v1713_v53, %v2209_v3  ;;  %v536_v10 = vmul.f32 %v1714_v54, %v2219_v7 }
  0xdc   :  { %v1777_v13 = vunpack.c.l.bf16 %v1851_v46 }
  0xdd   :  { %v391_v29 = vpop.permute.xlu1 %390  ;;  %v386_v30 = vpop.permute.xlu0 %385  ;;  %1907 = vmatpush3.bf16.msra.mxu1 %v1253_v25 }
  0xde   :  { %968 = vperm.xlu1 %1949, %v658_v14   ;;  %v568_v34 = vmul.f32 %v1778_v57, %v391_v29 }
  0xdf   :  { %963 = vperm.xlu0 %1948, %v657_v26  }
  0xe1   :  { %v759_v42 = vpop.permute.xlu1 %758  ;;  %v754_v45 = vpop.permute.xlu0 %753 }
  0xe2   :  { %v1000_v49 = vadd.f32 %v759_v42, %v552_v37  ;;  %v999_v50 = vadd.f32 %v754_v45, %v551_v38  ;;  %728 = vperm.xlu1 %1949, %v610_v8   ;;  %v567_v37 = vmul.f32 %v1777_v13, %v386_v30  ;;  %v195_v42 = vld [vmem:[%s2878_s0 + $0x170] sm:$0xff] }
  0xe3   :  { %723 = vperm.xlu0 %1948, %v609_v41   ;;  %v196_v41 = vld [vmem:[%s2878_s0 + $0x178] sm:$0xff]  ;;  %v659_v13 = vld [vmem:[%s2879_s1 + $0x1f0] sm:$0xff] }
  0xe4   :  { %vm1064_vm8 = vcmp.ge.f32.partialorder %v1000_v49, 0.0  ;;  %v1128_v21 = vmul.f32 0.2, %v1000_v49  ;;  %vm1063_vm9 = vcmp.ge.f32.partialorder %v999_v50, 0.0  ;;  %v1127_v36 = vmul.f32 0.2, %v999_v50 }
  0xe5   :  { %v919_v58 = vpop.permute.xlu1 %918  ;;  %v914_v61 = vpop.permute.xlu0 %913 }
  0xe6   :  { %v1032_v62 = vadd.f32 %v919_v58, %v584_v35  ;;  %v1031_v1 = vadd.f32 %v914_v61, %v583_v9  ;;  %888 = vperm.xlu1 %1949, %v642_v39   ;;  %v1191_v2 = vsel %vm1063_vm9, %v999_v50, %v1127_v36  ;;  %v1192_v5 = vsel %vm1064_vm8, %v1000_v49, %v1128_v21  ;;  %v628_v9 = vld [vmem:[%s2879_s1 + $0xf8] sm:$0xff]  ;;  %v627_v39 = vld [vmem:[%s2879_s1 + $0xf0] sm:$0xff] }
  0xe7   :  { %883 = vperm.xlu0 %1948, %v641_v40   ;;  %v1246_v14 = vpack.c.bf16 %v1192_v5, %v1191_v2  ;;  %v1844_v36 = vld [vmem:[%s2880_s3 + $0x50] sm:$0xff]   ;;  %v660_v2 = vld [vmem:[%s2879_s1 + $0x1f8] sm:$0xff] }
  0xe8   :  { %vm1096_vm10 = vcmp.ge.f32.partialorder %v1032_v62, 0.0  ;;  %v1160_v22 = vmul.f32 0.2, %v1032_v62  ;;  %vm1095_vm11 = vcmp.ge.f32.partialorder %v1031_v1, 0.0  ;;  %v1159_v25 = vmul.f32 0.2, %v1031_v1 }
  0xe9   :  { %v679_v26 = vpop.permute.xlu1 %678  ;;  %1868 = vmatprep.subr.bf16.mxu0 %v1246_v14  ;;  %v674_v3 = vpop.permute.xlu0 %673  ;;  %v1750_v5 = vunpack.c.h.bf16 %v1844_v36 }
  0xea   :  { %v984_v33 = vadd.f32 %v679_v26, %v536_v10  ;;  %v983_v7 = vadd.f32 %v674_v3, %v535_v6  ;;  %530 = vperm.xlu1 %1949, %v212_v17   ;;  %v1223_v4 = vsel %vm1095_vm11, %v1031_v1, %v1159_v25  ;;  %v1224_v8 = vsel %vm1096_vm10, %v1032_v62, %v1160_v22  ;;  %v1860_v10 = vld [vmem:[%s2880_s3 + $0xd0] sm:$0xff]   ;;  %v612_v25 = vld [vmem:[%s2879_s1 + $0x78] sm:$0xff] }
  0xeb   :  { %525 = vperm.xlu0 %1948, %v211_v18   ;;  %v1262_v38 = vpack.c.bf16 %v1224_v8, %v1223_v4  ;;  %v1749_v6 = vunpack.c.l.bf16 %v1844_v36  ;;  %v1814_v18 = vunpack.c.h.bf16 %v1860_v10  ;;  %v1813_v22 = vunpack.c.l.bf16 %v1860_v10  ;;  %v1836_v26 = vld [vmem:[%s2880_s3 + $0x10] sm:$0xff]  }
  0xec   :  { %vm1048_vm12 = vcmp.ge.f32.partialorder %v984_v33, 0.0  ;;  %v1112_v45 = vmul.f32 0.2, %v984_v33  ;;  %vm1047_vm13 = vcmp.ge.f32.partialorder %v983_v7, 0.0  ;;  %v1111_v46 = vmul.f32 0.2, %v983_v7 }
  0xed   :  { %v839_v49 = vpop.permute.xlu1 %838  ;;  %1908 = vmatprep.subr.bf16.mxu1 %v1262_v38  ;;  %v834_v50 = vpop.permute.xlu0 %833  ;;  %v554_v3 = vmul.f32 %v1750_v5, %v2309_v43  ;;  %v644_v43 = vld [vmem:[%s2879_s1 + $0x178] sm:$0xff] }
  0xee   :  { %v1016_v53 = vadd.f32 %v839_v49, %v568_v34  ;;  %v1015_v29 = vadd.f32 %v834_v50, %v567_v37  ;;  %450 = vperm.xlu1 %1949, %v196_v41   ;;  %v1175_v30 = vsel %vm1047_vm13, %v983_v7, %v1111_v46  ;;  %v1176_v54 = vsel %vm1048_vm12, %v984_v33, %v1112_v45  ;;  %v611_v7 = vld [vmem:[%s2879_s1 + $0x70] sm:$0xff] }
  0xef   :  { %445 = vperm.xlu0 %1948, %v195_v42   ;;  %v1238_v35 = vpack.c.bf16 %v1176_v54, %v1175_v30  ;;  %v553_v33 = vmul.f32 %v1749_v6, %v2311_v44  ;;  %v1852_v34 = vld [vmem:[%s2880_s3 + $0x90] sm:$0xff]   ;;  %v1718_v41 = vunpack.c.h.bf16 %v1836_v26  ;;  %v1717_v42 = vunpack.c.l.bf16 %v1836_v26 }
  0xf0   :  { %vm1080_vm14 = vcmp.ge.f32.partialorder %v1016_v53, 0.0  ;;  %v1144_v40 = vmul.f32 0.2, %v1016_v53  ;;  %vm1079_vm15 = vcmp.ge.f32.partialorder %v1015_v29, 0.0  ;;  %v1143_v21 = vmul.f32 0.2, %v1015_v29 }
  0xf1   :  { %v481_v57 = vpop.permute.xlu1 %480  ;;  %1869 = vmatpush3.bf16.msra.mxu0 %v1238_v35  ;;  %v476_v58 = vpop.permute.xlu0 %475  ;;  %v643_v44 = vld [vmem:[%s2879_s1 + $0x170] sm:$0xff]  ;;  %v1781_v36 = vunpack.c.l.bf16 %v1852_v34 }
  0xf2   :  { %818 = vperm.xlu1 %1949, %v628_v9   ;;  %v1207_v61 = vsel %vm1079_vm15, %v1015_v29, %v1143_v21  ;;  %v1208_v62 = vsel %vm1080_vm14, %v1016_v53, %v1144_v40  ;;  %v586_v45 = vmul.f32 %v1814_v18, %v481_v57  ;;  %v585_v46 = vmul.f32 %v1813_v22, %v476_v58 }
  0xf3   :  { %813 = vperm.xlu0 %1948, %v627_v39   ;;  %v1254_v1 = vpack.c.bf16 %v1208_v62, %v1207_v61  ;;  %v1782_v53 = vunpack.c.h.bf16 %v1852_v34  ;;  %v538_v40 = vmul.f32 %v1718_v41, %v2229_v11  ;;  %v537_v21 = vmul.f32 %v1717_v42, %v2231_v12 }
  0xf5   :  { %v401_v14 = vpop.permute.xlu1 %400  ;;  %1909 = vmatpush3.bf16.msra.mxu1 %v1254_v1  ;;  %v396_v17 = vpop.permute.xlu0 %395 }
  0xf6   :  { %978 = vperm.xlu1 %1949, %v660_v2   ;;  %v569_v18 = vmul.f32 %v1781_v36, %v396_v17  ;;  %v1853_v36 = vld [vmem:[%s2880_s3 + $0x98] sm:$0xff]  }
  0xf7   :  { %973 = vperm.xlu0 %1948, %v659_v13   ;;  %v570_v13 = vmul.f32 %v1782_v53, %v401_v14  ;;  %v1955_v14 = vld [vmem:[%s2881_s2 + $0xc] ss:$16 sps:$4 sm:$0xff]  }
  0xf8   :  { %1462 = vmatprep.mubr.bf16.mxu1 %v1955_v14 }
  0xf9   :  { %v769_v4 = vpop.permute.xlu1 %768  ;;  %v764_v8 = vpop.permute.xlu0 %763 }
  0xfa   :  { %v1002_v37 = vadd.f32 %v769_v4, %v554_v3  ;;  %v1001_v38 = vadd.f32 %v764_v8, %v553_v33  ;;  %738 = vperm.xlu1 %1949, %v612_v25   ;;  %v1952_v3 = vld [vmem:[%s2881_s2 + $0x4] ss:$16 sps:$4 sm:$0xff]  }
  0xfb   :  { %733 = vperm.xlu0 %1948, %v611_v7   ;;  %1397 = vmatprep.mubr.bf16.mxu0 %v1952_v3 }
  0xfc   :  { %vm1066_vm0 = vcmp.ge.f32.partialorder %v1002_v37, 0.0  ;;  %v1130_v49 = vmul.f32 0.2, %v1002_v37  ;;  %vm1065_vm1 = vcmp.ge.f32.partialorder %v1001_v38, 0.0  ;;  %v1129_v50 = vmul.f32 0.2, %v1001_v38 }
  0xfd   :  { %v929_v29 = vpop.permute.xlu1 %928  ;;  %v924_v30 = vpop.permute.xlu0 %923 }
  0xfe   :  { %v1034_v54 = vadd.f32 %v929_v29, %v586_v45  ;;  %v1033_v35 = vadd.f32 %v924_v30, %v585_v46  ;;  %898 = vperm.xlu1 %1949, %v644_v43   ;;  %v1193_v9 = vsel %vm1065_vm1, %v1001_v38, %v1129_v50  ;;  %v1194_v39 = vsel %vm1066_vm0, %v1002_v37, %v1130_v49  ;;  %v1845_v38 = vld [vmem:[%s2880_s3 + $0x58] sm:$0xff]  }
  0xff   :  { %893 = vperm.xlu0 %1948, %v643_v44   ;;  %v1247_v57 = vpack.c.bf16 %v1194_v39, %v1193_v9  ;;  %v1754_v44 = vunpack.c.h.bf16 %v1845_v38  ;;  %v1753_v49 = vunpack.c.l.bf16 %v1845_v38  ;;  %v1861_v50 = vld [vmem:[%s2880_s3 + $0xd8] sm:$0xff]  }
 0x100   :  { %vm1098_vm2 = vcmp.ge.f32.partialorder %v1034_v54, 0.0  ;;  %v1162_v58 = vmul.f32 0.2, %v1034_v54  ;;  %vm1097_vm3 = vcmp.ge.f32.partialorder %v1033_v35, 0.0  ;;  %v1161_v61 = vmul.f32 0.2, %v1033_v35 }
 0x101   :  { %v689_v62 = vpop.permute.xlu1 %688  ;;  %1870 = vmatprep.subr.bf16.mxu0 %v1247_v57  ;;  %v684_v1 = vpop.permute.xlu0 %683  ;;  %v1818_v30 = vunpack.c.h.bf16 %v1861_v50  ;;  %v556_v9 = vmul.f32 %v1754_v44, %v2319_v47  ;;  %v555_v39 = vmul.f32 %v1753_v49, %v2321_v48 }
 0x102   :  { %v986_v2 = vadd.f32 %v689_v62, %v538_v40  ;;  %v985_v5 = vadd.f32 %v684_v1, %v537_v21  ;;  %v1225_v6 = vsel %vm1097_vm3, %v1033_v35, %v1161_v61  ;;  %v1226_v10 = vsel %vm1098_vm2, %v1034_v54, %v1162_v58  ;;  %v1837_v35 = vld [vmem:[%s2880_s3 + $0x18] sm:$0xff]  }
 0x103   :  { %v1263_v22 = vpack.c.bf16 %v1226_v10, %v1225_v6  ;;  %v1817_v54 = vunpack.c.l.bf16 %v1861_v50  ;;  %v1722_v61 = vunpack.c.h.bf16 %v1837_v35  ;;  %v1721_v62 = vunpack.c.l.bf16 %v1837_v35 }
 0x104   :  { %vm1050_vm4 = vcmp.ge.f32.partialorder %v986_v2, 0.0  ;;  %v1114_v11 = vmul.f32 0.2, %v986_v2  ;;  %vm1049_vm5 = vcmp.ge.f32.partialorder %v985_v5, 0.0  ;;  %v1113_v12 = vmul.f32 0.2, %v985_v5 }
 0x105   :  { %v849_v25 = vpop.permute.xlu1 %848  ;;  %1910 = vmatprep.subr.bf16.mxu1 %v1263_v22  ;;  %v844_v26 = vpop.permute.xlu0 %843  ;;  %v1786_v10 = vunpack.c.h.bf16 %v1853_v36 }
 0x106   :  { %v1018_v33 = vadd.f32 %v849_v25, %v570_v13  ;;  %v1017_v7 = vadd.f32 %v844_v26, %v569_v18  ;;  %v1177_v4 = vsel %vm1049_vm5, %v985_v5, %v1113_v12  ;;  %v1178_v8 = vsel %vm1050_vm4, %v986_v2, %v1114_v11 }
 0x107   :  { %v1239_v17 = vpack.c.bf16 %v1178_v8, %v1177_v4  ;;  %v540_v12 = vmul.f32 %v1722_v61, %v2239_v15  ;;  %v539_v25 = vmul.f32 %v1721_v62, %v2241_v16  ;;  %v1785_v26 = vunpack.c.l.bf16 %v1853_v36 }
 0x108   :  { %vm1082_vm6 = vcmp.ge.f32.partialorder %v1018_v33, 0.0  ;;  %v1146_v34 = vmul.f32 0.2, %v1018_v33  ;;  %vm1081_vm7 = vcmp.ge.f32.partialorder %v1017_v7, 0.0  ;;  %v1145_v37 = vmul.f32 0.2, %v1017_v7 }
 0x109   :  { %v491_v41 = vpop.permute.xlu1 %490  ;;  %1871 = vmatpush3.bf16.msra.mxu0 %v1239_v17  ;;  %v486_v42 = vpop.permute.xlu0 %485 }
 0x10a   :  { %v1209_v45 = vsel %vm1081_vm7, %v1017_v7, %v1145_v37  ;;  %v1210_v46 = vsel %vm1082_vm6, %v1018_v33, %v1146_v34  ;;  %v588_v1 = vmul.f32 %v1818_v30, %v491_v41  ;;  %v587_v2 = vmul.f32 %v1817_v54, %v486_v42 }
 0x10b   :  { %v1255_v43 = vpack.c.bf16 %v1210_v46, %v1209_v45 }
 0x10d   :  { %v411_v53 = vpop.permute.xlu1 %410  ;;  %1911 = vmatpush3.bf16.msra.mxu1 %v1255_v43  ;;  %v406_v29 = vpop.permute.xlu0 %405 }
 0x10e   :  { %v572_v38 = vmul.f32 %v1786_v10, %v411_v53  ;;  %v571_v41 = vmul.f32 %v1785_v26, %v406_v29  ;;  %v1846_v53 = vld [vmem:[%s2880_s3 + $0x60] sm:$0xff]  }
 0x10f   :  { %v1758_v36 = vunpack.c.h.bf16 %v1846_v53  ;;  %v1854_v26 = vld [vmem:[%s2880_s3 + $0xa0] sm:$0xff]  }
 0x111   :  { %v779_v40 = vpop.permute.xlu1 %778  ;;  %v774_v21 = vpop.permute.xlu0 %773 }
 0x112   :  { %v1004_v57 = vadd.f32 %v779_v40, %v556_v9  ;;  %v1003_v58 = vadd.f32 %v774_v21, %v555_v39 }
 0x114   :  { %vm1068_vm8 = vcmp.ge.f32.partialorder %v1004_v57, 0.0  ;;  %v1132_v5 = vmul.f32 0.2, %v1004_v57  ;;  %vm1067_vm9 = vcmp.ge.f32.partialorder %v1003_v58, 0.0  ;;  %v1131_v6 = vmul.f32 0.2, %v1003_v58 }
 0x115   :  { %v939_v47 = vpop.permute.xlu1 %938  ;;  %v934_v13 = vpop.permute.xlu0 %933 }
 0x116   :  { %v1036_v48 = vadd.f32 %v939_v47, %v588_v1  ;;  %v1035_v18 = vadd.f32 %v934_v13, %v587_v2  ;;  %v1195_v22 = vsel %vm1067_vm9, %v1003_v58, %v1131_v6  ;;  %v1196_v11 = vsel %vm1068_vm8, %v1004_v57, %v1132_v5  ;;  %v1862_v58 = vld [vmem:[%s2880_s3 + $0xe0] sm:$0xff]  }
 0x117   :  { %v1248_v3 = vpack.c.bf16 %v1196_v11, %v1195_v22  ;;  %v1757_v57 = vunpack.c.l.bf16 %v1846_v53  ;;  %v1838_v1 = vld [vmem:[%s2880_s3 + $0x20] sm:$0xff]   ;;  %v1822_v2 = vunpack.c.h.bf16 %v1862_v58  ;;  %v1821_v5 = vunpack.c.l.bf16 %v1862_v58  ;;  %v1847_v58 = vld [vmem:[%s2880_s3 + $0x68] sm:$0xff]  }
 0x118   :  { %vm1100_vm10 = vcmp.ge.f32.partialorder %v1036_v48, 0.0  ;;  %v1164_v33 = vmul.f32 0.2, %v1036_v48  ;;  %vm1099_vm11 = vcmp.ge.f32.partialorder %v1035_v18, 0.0  ;;  %v1163_v7 = vmul.f32 0.2, %v1035_v18 }
 0x119   :  { %v699_v4 = vpop.permute.xlu1 %698  ;;  %1872 = vmatprep.subr.bf16.mxu0 %v1248_v3  ;;  %v694_v8 = vpop.permute.xlu0 %693  ;;  %v558_v6 = vmul.f32 %v1758_v36, %v2329_v51  ;;  %v557_v10 = vmul.f32 %v1757_v57, %v2331_v52  ;;  %v1726_v47 = vunpack.c.h.bf16 %v1838_v1  ;;  %v1725_v11 = vunpack.c.l.bf16 %v1838_v1 }
 0x11a   :  { %v988_v14 = vadd.f32 %v699_v4, %v540_v12  ;;  %v987_v17 = vadd.f32 %v694_v8, %v539_v25  ;;  %v1227_v34 = vsel %vm1099_vm11, %v1035_v18, %v1163_v7  ;;  %v1228_v37 = vsel %vm1100_vm10, %v1036_v48, %v1164_v33 }
 0x11b   :  { %v1264_v42 = vpack.c.bf16 %v1228_v37, %v1227_v34  ;;  %v542_v51 = vmul.f32 %v1726_v47, %v2249_v19  ;;  %v541_v34 = vmul.f32 %v1725_v11, %v2251_v20  ;;  %v1790_v37 = vunpack.c.h.bf16 %v1854_v26  ;;  %v1863_v47 = vld [vmem:[%s2880_s3 + $0xe8] sm:$0xff]  }
 0x11c   :  { %vm1052_vm12 = vcmp.ge.f32.partialorder %v988_v14, 0.0  ;;  %v1116_v15 = vmul.f32 0.2, %v988_v14  ;;  %vm1051_vm13 = vcmp.ge.f32.partialorder %v987_v17, 0.0  ;;  %v1115_v16 = vmul.f32 0.2, %v987_v17 }
 0x11d   :  { %v859_v45 = vpop.permute.xlu1 %858  ;;  %1912 = vmatprep.subr.bf16.mxu1 %v1264_v42  ;;  %v854_v46 = vpop.permute.xlu0 %853  ;;  %v1825_v11 = vunpack.c.l.bf16 %v1863_v47 }
 0x11e   :  { %v1020_v43 = vadd.f32 %v859_v45, %v572_v38  ;;  %v1019_v44 = vadd.f32 %v854_v46, %v571_v41  ;;  %v1179_v49 = vsel %vm1051_vm13, %v987_v17, %v1115_v16  ;;  %v1180_v50 = vsel %vm1052_vm12, %v988_v14, %v1116_v15 }
 0x11f   :  { %v1240_v30 = vpack.c.bf16 %v1180_v50, %v1179_v49  ;;  %v1789_v38 = vunpack.c.l.bf16 %v1854_v26 }
 0x120   :  { %vm1084_vm14 = vcmp.ge.f32.partialorder %v1020_v43, 0.0  ;;  %v1148_v54 = vmul.f32 0.2, %v1020_v43  ;;  %vm1083_vm15 = vcmp.ge.f32.partialorder %v1019_v44, 0.0  ;;  %v1147_v35 = vmul.f32 0.2, %v1019_v44 }
 0x121   :  { %v501_v29 = vpop.permute.xlu1 %500  ;;  %1873 = vmatpush3.bf16.msra.mxu0 %v1240_v30  ;;  %v496_v9 = vpop.permute.xlu0 %495 }
 0x122   :  { %v1211_v39 = vsel %vm1083_vm15, %v1019_v44, %v1147_v35  ;;  %v1212_v40 = vsel %vm1084_vm14, %v1020_v43, %v1148_v54  ;;  %v590_v12 = vmul.f32 %v1822_v2, %v501_v29  ;;  %v589_v25 = vmul.f32 %v1821_v5, %v496_v9 }
 0x123   :  { %v1256_v21 = vpack.c.bf16 %v1212_v40, %v1211_v39 }
 0x125   :  { %v421_v61 = vpop.permute.xlu1 %420  ;;  %1913 = vmatpush3.bf16.msra.mxu1 %v1256_v21  ;;  %v416_v62 = vpop.permute.xlu0 %415 }
 0x126   :  { %v574_v49 = vmul.f32 %v1790_v37, %v421_v61  ;;  %v573_v50 = vmul.f32 %v1789_v38, %v416_v62 }
 0x129   :  { %v789_v13 = vpop.permute.xlu1 %788  ;;  %v784_v48 = vpop.permute.xlu0 %783 }
 0x12a   :  { %v1006_v18 = vadd.f32 %v789_v13, %v558_v6  ;;  %v1005_v22 = vadd.f32 %v784_v48, %v557_v10  ;;  %v1762_v6 = vunpack.c.h.bf16 %v1847_v58  ;;  %v1761_v10 = vunpack.c.l.bf16 %v1847_v58 }
 0x12c   :  { %vm1070_vm0 = vcmp.ge.f32.partialorder %v1006_v18, 0.0  ;;  %v1134_v3 = vmul.f32 0.2, %v1006_v18  ;;  %vm1069_vm1 = vcmp.ge.f32.partialorder %v1005_v22, 0.0  ;;  %v1133_v33 = vmul.f32 0.2, %v1005_v22 }
 0x12d   :  { %v949_v7 = vpop.permute.xlu1 %948  ;;  %v944_v52 = vpop.permute.xlu0 %943 }
 0x12e   :  { %v1038_v4 = vadd.f32 %v949_v7, %v590_v12  ;;  %v1037_v8 = vadd.f32 %v944_v52, %v589_v25  ;;  %v1197_v14 = vsel %vm1069_vm1, %v1005_v22, %v1133_v33  ;;  %v1198_v17 = vsel %vm1070_vm0, %v1006_v18, %v1134_v3  ;;  %v1839_v18 = vld [vmem:[%s2880_s3 + $0x28] sm:$0xff]  }
 0x12f   :  { %v1249_v41 = vpack.c.bf16 %v1198_v17, %v1197_v14  ;;  %v1826_v22 = vunpack.c.h.bf16 %v1863_v47  ;;  %v560_v12 = vmul.f32 %v1762_v6, %v2339_v55  ;;  %v559_v25 = vmul.f32 %v1761_v10, %v2341_v56  ;;  %v1855_v14 = vld [vmem:[%s2880_s3 + $0xa8] sm:$0xff]  }
 0x130   :  { %vm1102_vm2 = vcmp.ge.f32.partialorder %v1038_v4, 0.0  ;;  %v1166_v42 = vmul.f32 0.2, %v1038_v4  ;;  %vm1101_vm3 = vcmp.ge.f32.partialorder %v1037_v8, 0.0  ;;  %v1165_v15 = vmul.f32 0.2, %v1037_v8 }
 0x131   :  { %v709_v16 = vpop.permute.xlu1 %708  ;;  %1874 = vmatprep.subr.bf16.mxu0 %v1249_v41  ;;  %v704_v45 = vpop.permute.xlu0 %703  ;;  %v1730_v26 = vunpack.c.h.bf16 %v1839_v18  ;;  %v1729_v52 = vunpack.c.l.bf16 %v1839_v18 }
 0x132   :  { %v990_v46 = vadd.f32 %v709_v16, %v542_v51  ;;  %v989_v19 = vadd.f32 %v704_v45, %v541_v34  ;;  %v1229_v43 = vsel %vm1101_vm3, %v1037_v8, %v1165_v15  ;;  %v1230_v44 = vsel %vm1102_vm2, %v1038_v4, %v1166_v42 }
 0x133   :  { %v1265_v30 = vpack.c.bf16 %v1230_v44, %v1229_v43  ;;  %v544_v55 = vmul.f32 %v1730_v26, %v2259_v23  ;;  %v543_v16 = vmul.f32 %v1729_v52, %v2261_v24  ;;  %v1794_v45 = vunpack.c.h.bf16 %v1855_v14 }
 0x134   :  { %vm1054_vm4 = vcmp.ge.f32.partialorder %v990_v46, 0.0  ;;  %v1118_v54 = vmul.f32 0.2, %v990_v46  ;;  %vm1053_vm5 = vcmp.ge.f32.partialorder %v989_v19, 0.0  ;;  %v1117_v20 = vmul.f32 0.2, %v989_v19 }
 0x135   :  { %v869_v35 = vpop.permute.xlu1 %868  ;;  %1914 = vmatprep.subr.bf16.mxu1 %v1265_v30  ;;  %v864_v53 = vpop.permute.xlu0 %863 }
 0x136   :  { %v1022_v29 = vadd.f32 %v869_v35, %v574_v49  ;;  %v1021_v9 = vadd.f32 %v864_v53, %v573_v50  ;;  %v1181_v39 = vsel %vm1053_vm5, %v989_v19, %v1117_v20  ;;  %v1182_v40 = vsel %vm1054_vm4, %v990_v46, %v1118_v54 }
 0x137   :  { %v1241_v21 = vpack.c.bf16 %v1182_v40, %v1181_v39  ;;  %v1793_v46 = vunpack.c.l.bf16 %v1855_v14 }
 0x138   :  { %vm1086_vm6 = vcmp.ge.f32.partialorder %v1022_v29, 0.0  ;;  %v1150_v36 = vmul.f32 0.2, %v1022_v29  ;;  %vm1085_vm7 = vcmp.ge.f32.partialorder %v1021_v9, 0.0  ;;  %v1149_v57 = vmul.f32 0.2, %v1021_v9 }
 0x139   :  { %v511_v61 = vpop.permute.xlu1 %510  ;;  %1875 = vmatpush3.bf16.msra.mxu0 %v1241_v21  ;;  %v506_v62 = vpop.permute.xlu0 %505 }
 0x13a   :  { %v1213_v1 = vsel %vm1085_vm7, %v1021_v9, %v1149_v57  ;;  %v1214_v2 = vsel %vm1086_vm6, %v1022_v29, %v1150_v36  ;;  %v592_v4 = vmul.f32 %v1826_v22, %v511_v61  ;;  %v591_v8 = vmul.f32 %v1825_v11, %v506_v62  ;;  %v1864_v22 = vld [vmem:[%s2880_s3 + $0xf0] sm:$0xff]  }
 0x13b   :  { %v1257_v5 = vpack.c.bf16 %v1214_v2, %v1213_v1  ;;  %v1848_v2 = vld [vmem:[%s2880_s3 + $0x70] sm:$0xff]  }
 0x13c   :  { %v1765_v18 = vunpack.c.l.bf16 %v1848_v2 }
 0x13d   :  { %v431_v13 = vpop.permute.xlu1 %430  ;;  %1915 = vmatpush3.bf16.msra.mxu1 %v1257_v5  ;;  %v426_v48 = vpop.permute.xlu0 %425 }
 0x13e   :  { %v576_v35 = vmul.f32 %v1794_v45, %v431_v13  ;;  %v575_v53 = vmul.f32 %v1793_v46, %v426_v48  ;;  %v1766_v48 = vunpack.c.h.bf16 %v1848_v2 }
 0x140   :  { %v562_v26 = vmul.f32 %v1766_v48, %v2349_v59 }
 0x141   :  { %v799_v3 = vpop.permute.xlu1 %798  ;;  %v794_v33 = vpop.permute.xlu0 %793 }
 0x142   :  { %v1008_v51 = vadd.f32 %v799_v3, %v560_v12  ;;  %v1007_v7 = vadd.f32 %v794_v33, %v559_v25  ;;  %v1840_v25 = vld [vmem:[%s2880_s3 + $0x30] sm:$0xff]   ;;  %v1830_v3 = vunpack.c.h.bf16 %v1864_v22  ;;  %v561_v33 = vmul.f32 %v1765_v18, %v2351_v60 }
 0x144   :  { %vm1072_vm8 = vcmp.ge.f32.partialorder %v1008_v51, 0.0  ;;  %v1136_v17 = vmul.f32 0.2, %v1008_v51  ;;  %vm1071_vm9 = vcmp.ge.f32.partialorder %v1007_v7, 0.0  ;;  %v1135_v34 = vmul.f32 0.2, %v1007_v7 }
 0x145   :  { %v959_v37 = vpop.permute.xlu1 %958  ;;  %v954_v56 = vpop.permute.xlu0 %953 }
 0x146   :  { %v1040_v38 = vadd.f32 %v959_v37, %v592_v4  ;;  %v1039_v41 = vadd.f32 %v954_v56, %v591_v8  ;;  %v1199_v42 = vsel %vm1071_vm9, %v1007_v7, %v1135_v34  ;;  %v1200_v15 = vsel %vm1072_vm8, %v1008_v51, %v1136_v17  ;;  %v1856_v56 = vld [vmem:[%s2880_s3 + $0xb0] sm:$0xff]  }
 0x147   :  { %v1250_v19 = vpack.c.bf16 %v1200_v15, %v1199_v42  ;;  %v1829_v51 = vunpack.c.l.bf16 %v1864_v22  ;;  %v1734_v8 = vunpack.c.h.bf16 %v1840_v25  ;;  %v1798_v46 = vunpack.c.h.bf16 %v1856_v56  ;;  %v1865_v22 = vld [vmem:[%s2880_s3 + $0xf8] sm:$0xff]  }
 0x148   :  { %vm1104_vm10 = vcmp.ge.f32.partialorder %v1040_v38, 0.0  ;;  %v1168_v43 = vmul.f32 0.2, %v1040_v38  ;;  %vm1103_vm11 = vcmp.ge.f32.partialorder %v1039_v41, 0.0  ;;  %v1167_v44 = vmul.f32 0.2, %v1039_v41 }
 0x149   :  { %v719_v49 = vpop.permute.xlu1 %718  ;;  %1876 = vmatprep.subr.bf16.mxu0 %v1250_v19  ;;  %v714_v50 = vpop.permute.xlu0 %713  ;;  %v546_v15 = vmul.f32 %v1734_v8, %v2269_v27 }
 0x14a   :  { %v992_v30 = vadd.f32 %v719_v49, %v544_v55  ;;  %v991_v23 = vadd.f32 %v714_v50, %v543_v16  ;;  %v1231_v54 = vsel %vm1103_vm11, %v1039_v41, %v1167_v44  ;;  %v1232_v20 = vsel %vm1104_vm10, %v1040_v38, %v1168_v43 }
 0x14b   :  { %v1266_v29 = vpack.c.bf16 %v1232_v20, %v1231_v54  ;;  %v1733_v55 = vunpack.c.l.bf16 %v1840_v25  ;;  %v1797_v49 = vunpack.c.l.bf16 %v1856_v56  ;;  %v1841_v25 = vld [vmem:[%s2880_s3 + $0x38] sm:$0xff]  }
 0x14c   :  { %vm1056_vm12 = vcmp.ge.f32.partialorder %v992_v30, 0.0  ;;  %v1120_v9 = vmul.f32 0.2, %v992_v30  ;;  %vm1055_vm13 = vcmp.ge.f32.partialorder %v991_v23, 0.0  ;;  %v1119_v24 = vmul.f32 0.2, %v991_v23 }
 0x14d   :  { %v879_v39 = vpop.permute.xlu1 %878  ;;  %1916 = vmatprep.subr.bf16.mxu1 %v1266_v29  ;;  %v874_v40 = vpop.permute.xlu0 %873  ;;  %v545_v44 = vmul.f32 %v1733_v55, %v2271_v28  ;;  %v1738_v8 = vunpack.c.h.bf16 %v1841_v25  ;;  %v1737_v55 = vunpack.c.l.bf16 %v1841_v25  ;;  %v1857_v56 = vld [vmem:[%s2880_s3 + $0xb8] sm:$0xff]   ;;  %v1970_v25 = vld [vmem:[%s2881_s2 + $0x60] ss:$16 sps:$4 sm:$0xff]  }
 0x14e   :  { %v1024_v21 = vadd.f32 %v879_v39, %v576_v35  ;;  %v1023_v36 = vadd.f32 %v874_v40, %v575_v53  ;;  %v1183_v57 = vsel %vm1055_vm13, %v991_v23, %v1119_v24  ;;  %v1184_v58 = vsel %vm1056_vm12, %v992_v30, %v1120_v9 }
 0x14f   :  { %v1242_v61 = vpack.c.bf16 %v1184_v58, %v1183_v57 }
 0x150   :  { %vm1088_vm14 = vcmp.ge.f32.partialorder %v1024_v21, 0.0  ;;  %v1152_v62 = vmul.f32 0.2, %v1024_v21  ;;  %vm1087_vm15 = vcmp.ge.f32.partialorder %v1023_v36, 0.0  ;;  %v1151_v1 = vmul.f32 0.2, %v1023_v36 }
 0x151   :  { %v521_v5 = vpop.permute.xlu1 %520  ;;  %1877 = vmatpush3.bf16.msra.mxu0 %v1242_v61 }
 0x152   :  { %v516_v6 = vpop.permute.xlu0 %515  ;;  %v1215_v10 = vsel %vm1087_vm15, %v1023_v36, %v1151_v1  ;;  %v1216_v47 = vsel %vm1088_vm14, %v1024_v21, %v1152_v62  ;;  %v594_v17 = vmul.f32 %v1830_v3, %v521_v5  ;;  %v1849_v1 = vld [vmem:[%s2880_s3 + $0x78] sm:$0xff]   ;;  %v1834_v3 = vunpack.c.h.bf16 %v1865_v22 }
 0x153   :  { %v1258_v13 = vpack.c.bf16 %v1216_v47, %v1215_v10  ;;  %v593_v37 = vmul.f32 %v1829_v51, %v516_v6  ;;  %v1769_v18 = vunpack.c.l.bf16 %v1849_v1  ;;  %v1833_v51 = vunpack.c.l.bf16 %v1865_v22  ;;  %v1968_v22 = vld [vmem:[%s2881_s2 + $0x64] ss:$16 sps:$4 sm:$0xff]  }
 0x155   :  { %v441_v11 = vpop.permute.xlu1 %440  ;;  %1917 = vmatpush3.bf16.msra.mxu1 %v1258_v13  ;;  %v1770_v13 = vunpack.c.h.bf16 %v1849_v1 }
 0x156   :  { %v436_v12 = vpop.permute.xlu0 %435  ;;  %v578_v29 = vmul.f32 %v1798_v46, %v441_v11 }
 0x157   :  { %v577_v24 = vmul.f32 %v1797_v49, %v436_v12 }
 0x159   :  { %v809_v7 = vpop.permute.xlu1 %808 }
 0x15a   :  { %v1010_v52 = vadd.f32 %v809_v7, %v562_v26  ;;  %v804_v4 = vpop.permute.xlu0 %803  ;;  %v564_v26 = vmul.f32 %v1770_v13, %v2359_v63  ;;  %v1961_v13 = vld [vmem:[%s2881_s2 + $0x28] ss:$16 sps:$4 sm:$0xff]  }
 0x15b   :  { %v1009_v14 = vadd.f32 %v804_v4, %v561_v33  ;;  %v563_v33 = vmul.f32 %v1769_v18, %v2361_v0  ;;  %v1964_v18 = vld [vmem:[%s2881_s2 + $0x40] ss:$16 sps:$4 sm:$0xff]  }
 0x15c   :  { %vm1074_vm0 = vcmp.ge.f32.partialorder %v1010_v52, 0.0  ;;  %v1138_v34 = vmul.f32 0.2, %v1010_v52 }
 0x15d   :  { %vm1073_vm1 = vcmp.ge.f32.partialorder %v1009_v14, 0.0  ;;  %v1137_v59 = vmul.f32 0.2, %v1009_v14  ;;  %v969_v38 = vpop.permute.xlu1 %968 }
 0x15e   :  { %v1042_v41 = vadd.f32 %v969_v38, %v594_v17  ;;  %v964_v60 = vpop.permute.xlu0 %963  ;;  %v1202_v42 = vsel %vm1074_vm0, %v1010_v52, %v1138_v34  ;;  %vm1540_vm0 = vcmask 7168  }
 0x15f   :  { %v1041_v16 = vadd.f32 %v964_v60, %v593_v37  ;;  %v1201_v45 = vsel %vm1073_vm1, %v1009_v14, %v1137_v59  ;;  %v548_v60 = vmul.f32 %v1738_v8, %v2279_v31  ;;  %vm1565_vm1 = vcmask 261120  }
 0x160   :  { %vm1106_vm2 = vcmp.ge.f32.partialorder %v1042_v41, 0.0  ;;  %v1170_v19 = vmul.f32 0.2, %v1042_v41  ;;  %v1251_v43 = vpack.c.bf16 %v1202_v42, %v1201_v45 }
 0x161   :  { %vm1105_vm3 = vcmp.ge.f32.partialorder %v1041_v16, 0.0  ;;  %v1169_v50 = vmul.f32 0.2, %v1041_v16  ;;  %v729_v30 = vpop.permute.xlu1 %728 }
 0x162   :  { %v994_v23 = vadd.f32 %v729_v30, %v546_v15  ;;  %1878 = vmatprep.subr.bf16.mxu0 %v1251_v43  ;;  %v724_v54 = vpop.permute.xlu0 %723  ;;  %v1234_v20 = vsel %vm1106_vm2, %v1042_v41, %v1170_v19  ;;  %v547_v19 = vmul.f32 %v1737_v55, %v2281_v32  ;;  %v1801_v43 = vunpack.c.l.bf16 %v1857_v56 }
 0x163   :  { %v993_v35 = vadd.f32 %v724_v54, %v545_v44  ;;  %v1233_v53 = vsel %vm1105_vm3, %v1041_v16, %v1169_v50  ;;  %v1802_v16 = vunpack.c.h.bf16 %v1857_v56  ;;  %vm1527_vm2 = vcmask 257024  }
 0x164   :  { %vm1058_vm4 = vcmp.ge.f32.partialorder %v994_v23, 0.0  ;;  %v1122_v27 = vmul.f32 0.2, %v994_v23  ;;  %v1267_v9 = vpack.c.bf16 %v1234_v20, %v1233_v53 }
 0x165   :  { %vm1057_vm5 = vcmp.ge.f32.partialorder %v993_v35, 0.0  ;;  %v1121_v39 = vmul.f32 0.2, %v993_v35  ;;  %v889_v40 = vpop.permute.xlu1 %888 }
 0x166   :  { %v1026_v21 = vadd.f32 %v889_v40, %v578_v29  ;;  %1918 = vmatprep.subr.bf16.mxu1 %v1267_v9  ;;  %v884_v28 = vpop.permute.xlu0 %883  ;;  %v1186_v36 = vsel %vm1058_vm4, %v994_v23, %v1122_v27 }
 0x167   :  { %v1025_v57 = vadd.f32 %v884_v28, %v577_v24  ;;  %v1185_v58 = vsel %vm1057_vm5, %v993_v35, %v1121_v39 }
 0x168   :  { %vm1090_vm6 = vcmp.ge.f32.partialorder %v1026_v21, 0.0  ;;  %v1154_v61 = vmul.f32 0.2, %v1026_v21  ;;  %v1243_v62 = vpack.c.bf16 %v1186_v36, %v1185_v58  ;;  %v1950_v58 = vld [vmem:[%s2881_s2] ss:$16 sps:$4 sm:$0xff]  }
 0x169   :  { %vm1089_vm7 = vcmp.ge.f32.partialorder %v1025_v57, 0.0  ;;  %v1153_v2 = vmul.f32 0.2, %v1025_v57  ;;  %v531_v5 = vpop.permute.xlu1 %530 }
 0x16a   :  { %1879 = vmatpush3.bf16.msra.mxu0 %v1243_v62  ;;  %v526_v6 = vpop.permute.xlu0 %525  ;;  %v1218_v10 = vsel %vm1090_vm6, %v1026_v21, %v1154_v61  ;;  %v596_v17 = vmul.f32 %v1834_v3, %v531_v5  ;;  %v1956_v62 = vld [vmem:[%s2881_s2 + $0x24] ss:$16 sps:$4 sm:$0xff]   ;;  %v1953_v5 = vld [vmem:[%s2881_s2 + $0x8] ss:$16 sps:$4 sm:$0xff]   ;;  %v1975_v3 = vmov 0.0  }
 0x16b   :  { %v1217_v47 = vsel %vm1089_vm7, %v1025_v57, %v1153_v2  ;;  %v595_v37 = vmul.f32 %v1833_v51, %v526_v6  ;;  %v1959_v6 = vld [vmem:[%s2881_s2 + $0x2c] ss:$16 sps:$4 sm:$0xff]   ;;  %1541 = vst.msk [vmem:[%s2882_s5] sm:$0xff] %vm1540_vm0, %v1975_v3  ;;  %1542 = vst.msk [vmem:[%s2882_s5 + $0x8] sm:$0xff] %vm1540_vm0, %v1975_v3 }
 0x16c   :  { %v1259_v48 = vpack.c.bf16 %v1218_v10, %v1217_v47  ;;  %v1958_v10 = vld [vmem:[%s2881_s2 + $0x20] ss:$16 sps:$4 sm:$0xff]   ;;  %v1962_v47 = vld [vmem:[%s2881_s2 + $0x44] ss:$16 sps:$4 sm:$0xff]   ;;  %1543 = vst.msk [vmem:[%s2882_s5 + $0x10] sm:$0xff] %vm1540_vm0, %v1975_v3  ;;  %1544 = vst.msk [vmem:[%s2882_s5 + $0x18] sm:$0xff] %vm1540_vm0, %v1975_v3 }
 0x16d   :  { %v451_v11 = vpop.permute.xlu1 %450  ;;  %1545 = vst.msk [vmem:[%s2882_s5 + $0x20] sm:$0xff] %vm1540_vm0, %v1975_v3  ;;  %1546 = vst.msk [vmem:[%s2882_s5 + $0x28] sm:$0xff] %vm1540_vm0, %v1975_v3 }
 0x16e   :  { %1919 = vmatpush3.bf16.msra.mxu1 %v1259_v48  ;;  %v446_v12 = vpop.permute.xlu0 %445  ;;  %v580_v35 = vmul.f32 %v1802_v16, %v451_v11  ;;  %v1965_v48 = vld [vmem:[%s2881_s2 + $0x4c] ss:$16 sps:$4 sm:$0xff]   ;;  %v1967_v11 = vld [vmem:[%s2881_s2 + $0x48] ss:$16 sps:$4 sm:$0xff]   ;;  %1547 = vst.msk [vmem:[%s2882_s5 + $0x30] sm:$0xff] %vm1540_vm0, %v1975_v3  ;;  %1548 = vst.msk [vmem:[%s2882_s5 + $0x38] sm:$0xff] %vm1540_vm0, %v1975_v3 }
 0x16f   :  { %v579_v29 = vmul.f32 %v1801_v43, %v446_v12  ;;  %v1971_v12 = vld [vmem:[%s2881_s2 + $0x6c] ss:$16 sps:$4 sm:$0xff]   ;;  %1550 = vst.msk [vmem:[%s2884_s6 + $0x8] sm:$0xff] %vm1540_vm0, %v1975_v3  ;;  %1549 = vst.msk [vmem:[%s2884_s6] sm:$0xff] %vm1540_vm0, %v1975_v3 }
 0x170   :  { %1551 = vst.msk [vmem:[%s2884_s6 + $0x10] sm:$0xff] %vm1540_vm0, %v1975_v3  ;;  %1552 = vst.msk [vmem:[%s2884_s6 + $0x18] sm:$0xff] %vm1540_vm0, %v1975_v3 }
 0x171   :  { %v819_v7 = vpop.permute.xlu1 %818  ;;  %1553 = vst.msk [vmem:[%s2884_s6 + $0x20] sm:$0xff] %vm1540_vm0, %v1975_v3  ;;  %1554 = vst.msk [vmem:[%s2884_s6 + $0x28] sm:$0xff] %vm1540_vm0, %v1975_v3 }
 0x172   :  { %v1012_v52 = vadd.f32 %v819_v7, %v564_v26  ;;  %v814_v4 = vpop.permute.xlu0 %813  ;;  %v1973_v26 = vld [vmem:[%s2881_s2 + $0x68] ss:$16 sps:$4 sm:$0xff]   ;;  %1555 = vst.msk [vmem:[%s2884_s6 + $0x30] sm:$0xff] %vm1540_vm0, %v1975_v3  ;;  %1556 = vst.msk [vmem:[%s2884_s6 + $0x38] sm:$0xff] %vm1540_vm0, %v1975_v3 }
 0x173   :  { %v1011_v14 = vadd.f32 %v814_v4, %v563_v33 }
 0x174   :  { %vm1076_vm8 = vcmp.ge.f32.partialorder %v1012_v52, 0.0  ;;  %v1140_v34 = vmul.f32 0.2, %v1012_v52 }
 0x175   :  { %vm1075_vm9 = vcmp.ge.f32.partialorder %v1011_v14, 0.0  ;;  %v1139_v63 = vmul.f32 0.2, %v1011_v14  ;;  %v979_v59 = vpop.permute.xlu1 %978 }
 0x176   :  { %v1044_v38 = vadd.f32 %v979_v59, %v596_v17  ;;  %v974_v0 = vpop.permute.xlu0 %973  ;;  %v1204_v41 = vsel %vm1076_vm8, %v1012_v52, %v1140_v34 }
 0x177   :  { %v1043_v42 = vadd.f32 %v974_v0, %v595_v37  ;;  %v1203_v15 = vsel %vm1075_vm9, %v1011_v14, %v1139_v63 }
 0x178   :  { %vm1108_vm10 = vcmp.ge.f32.partialorder %v1044_v38, 0.0  ;;  %v1172_v45 = vmul.f32 0.2, %v1044_v38  ;;  %v1252_v46 = vpack.c.bf16 %v1204_v41, %v1203_v15 }
 0x179   :  { %vm1107_vm11 = vcmp.ge.f32.partialorder %v1043_v42, 0.0  ;;  %v1171_v44 = vmul.f32 0.2, %v1043_v42  ;;  %v739_v49 = vpop.permute.xlu1 %738 }
 0x17a   :  { %v996_v50 = vadd.f32 %v739_v49, %v548_v60  ;;  %1880 = vmatprep.subr.bf16.mxu0 %v1252_v46  ;;  %v734_v30 = vpop.permute.xlu0 %733  ;;  %v1236_v23 = vsel %vm1108_vm10, %v1044_v38, %v1172_v45 }
 0x17b   :  { %v995_v54 = vadd.f32 %v734_v30, %v547_v19  ;;  %v1235_v20 = vsel %vm1107_vm11, %v1043_v42, %v1171_v44 }
 0x17c   :  { %vm1060_vm12 = vcmp.ge.f32.partialorder %v996_v50, 0.0  ;;  %v1124_v31 = vmul.f32 0.2, %v996_v50  ;;  %v1268_v53 = vpack.c.bf16 %v1236_v23, %v1235_v20 }
 0x17d   :  { %vm1059_vm13 = vcmp.ge.f32.partialorder %v995_v54, 0.0  ;;  %v1123_v27 = vmul.f32 0.2, %v995_v54  ;;  %v899_v9 = vpop.permute.xlu1 %898 }
 0x17e   :  { %v1028_v24 = vadd.f32 %v899_v9, %v580_v35  ;;  %1920 = vmatprep.subr.bf16.mxu1 %v1268_v53  ;;  %v894_v32 = vpop.permute.xlu0 %893  ;;  %v1188_v39 = vsel %vm1060_vm12, %v996_v50, %v1124_v31 }
 0x17f   :  { %v1027_v40 = vadd.f32 %v894_v32, %v579_v29  ;;  %v1187_v21 = vsel %vm1059_vm13, %v995_v54, %v1123_v27 }
 0x180   :  { %vm1092_vm14 = vcmp.ge.f32.partialorder %v1028_v24, 0.0  ;;  %v1156_v28 = vmul.f32 0.2, %v1028_v24  ;;  %v1244_v36 = vpack.c.bf16 %v1188_v39, %v1187_v21 }
 0x181   :  { %vm1091_vm15 = vcmp.ge.f32.partialorder %v1027_v40, 0.0  ;;  %v1155_v57 = vmul.f32 0.2, %v1027_v40 }
 0x182   :  { %1881 = vmatpush3.bf16.msra.mxu0 %v1244_v36  ;;  %v1220_v61 = vsel %vm1092_vm14, %v1028_v24, %v1156_v28 }
 0x183   :  { %v1219_v1 = vsel %vm1091_vm15, %v1027_v40, %v1155_v57 }
 0x184   :  { %v1260_v2 = vpack.c.bf16 %v1220_v61, %v1219_v1 }
 0x185   :  { %1398 = vmatmul.mubr.bf16.vlgmr.msra.gmra.mrb[0].mxu0 %v1950_v58 }
 0x186   :  { %1921 = vmatpush3.bf16.msra.mxu1 %v1260_v2  ;;  %1405 = vmatprep.mubr.bf16.mxu0 %v1956_v62 }
 0x189   :  { %1463 = vmatmul.mubr.bf16.vlgmr.msra.gmra.mrb[0].mxu1 %v1953_v5 }
 0x18a   :  { %1470 = vmatprep.mubr.bf16.mxu1 %v1959_v6 }
 0x18d   :  { %1406 = vmatmul.mubr.bf16.gmra.mrb[4].mxu0 %v1958_v10 }
 0x18e   :  { %1413 = vmatprep.mubr.bf16.mxu0 %v1962_v47 }
 0x191   :  { %1471 = vmatmul.mubr.bf16.gmra.mrb[4].mxu1 %v1961_v13 }
 0x192   :  { %1478 = vmatprep.mubr.bf16.mxu1 %v1965_v48 }
 0x195   :  { %1414 = vmatmul.mubr.bf16.gmra.mrb[8].mxu0 %v1964_v18 }
 0x196   :  { %1421 = vmatprep.mubr.bf16.mxu0 %v1968_v22 }
 0x199   :  { %1479 = vmatmul.mubr.bf16.gmra.mrb[8].mxu1 %v1967_v11 }
 0x19a   :  { %1486 = vmatprep.mubr.bf16.mxu1 %v1971_v12 }
 0x19d   :  { %1422 = vmatmul.mubr.bf16.gmra.mrb[12].mxu0 %v1970_v25 }
 0x1a1   :  { %1487 = vmatmul.mubr.bf16.gmra.mrb[12].mxu1 %v1973_v26 }
 0x258   :  { %v1882_v33 = vpop.f32.mrb[0].mxu0 }
 0x259   :  { %v1883_v51 = vpop.f32.mrb[1].mxu0 }
 0x25a   :  { %v1884_v7 = vadd.f32 %v1883_v51, %v1882_v33  ;;  %v1885_v52 = vpop.f32.mrb[2].mxu0 }
 0x25b   :  { %v1886_v4 = vpop.f32.mrb[3].mxu0 }
 0x25c   :  { %v1887_v8 = vadd.f32 %v1886_v4, %v1885_v52  ;;  %v1922_v14 = vpop.f32.mrb[0].mxu1 }
 0x25d   :  { %v1923_v17 = vpop.f32.mrb[1].mxu1 }
 0x25e   :  { %v1924_v34 = vadd.f32 %v1923_v17, %v1922_v14  ;;  %v1925_v55 = vpop.f32.mrb[2].mxu1 }
 0x25f   :  { %v1926_v37 = vpop.f32.mrb[3].mxu1 }
 0x260   :  { %v1465_v56 = vadd.f32 %v1924_v34, %v1884_v7  ;;  %v1927_v63 = vadd.f32 %v1926_v37, %v1925_v55  ;;  %v1888_v59 = vpop.f32.mrb[4].mxu0 }
 0x261   :  { %v1889_v38 = vpop.f32.mrb[5].mxu0 }
 0x262   :  { %v1699_v0 = vpack.c.bf16 %v1465_v56, %v1465_v56  ;;  %v1468_v41 = vadd.f32 %v1927_v63, %v1887_v8  ;;  %v1890_v60 = vadd.f32 %v1889_v38, %v1888_v59  ;;  %v1891_v42 = vpop.f32.mrb[6].mxu0  ;;  %v1566_v15 = vsel %vm1565_vm1, %v1465_v56, 0.0 }
 0x263   :  { %1567 = vadd.xlane.f32.xlu0 %v1566_v15  ;;  %v1892_v16 = vpop.f32.mrb[7].mxu0  ;;  %v1615_v45 = vmul.f32 %v1465_v56, %v1465_v56 }
 0x264   :  { %1528 = vst.msk [vmem:[%s2883_s4] sm:$0xf] %vm1527_vm2, %v1699_v0  ;;  %v1700_v46 = vpack.c.bf16 %v1468_v41, %v1468_v41  ;;  %v1893_v19 = vadd.f32 %v1892_v16, %v1891_v42  ;;  %v1928_v43 = vpop.f32.mrb[4].mxu1  ;;  %v1569_v44 = vsel %vm1565_vm1, %v1468_v41, 0.0  ;;  %v1616_v49 = vmul.f32 %v1468_v41, %v1468_v41 }
 0x265   :  { %v1929_v50 = vpop.f32.mrb[5].mxu1  ;;  %1570 = vadd.xlane.f32.xlu1 %v1569_v44  ;;  %v1623_v53 = vsel %vm1565_vm1, %v1615_v45, 0.0 }
 0x266   :  { %1529 = vst.msk [vmem:[%s2883_s4 + $0x4] sm:$0xf] %vm1527_vm2, %v1700_v46  ;;  %v1930_v30 = vadd.f32 %v1929_v50, %v1928_v43  ;;  %v1931_v23 = vpop.f32.mrb[6].mxu1  ;;  %v1626_v54 = vsel %vm1565_vm1, %v1616_v49, 0.0  ;;  %v1557_v43 = vld [vmem:[%s2882_s5] sm:$0xff]  ;;  %v1558_v49 = vld [vmem:[%s2882_s5 + $0x8] sm:$0xff] }
 0x267   :  { %v1932_v20 = vpop.f32.mrb[7].mxu1  ;;  %1627 = vadd.xlane.f32.xlu0 %v1626_v54 }
 0x268   :  { %v1473_v35 = vadd.f32 %v1930_v30, %v1890_v60  ;;  %v1933_v31 = vadd.f32 %v1932_v20, %v1931_v23  ;;  %v1894_v29 = vpop.f32.mrb[8].mxu0  ;;  %v1608_v23 = vld [vmem:[%s2884_s6 + $0x8] sm:$0xff] }
 0x269   :  { %1624 = vadd.xlane.f32.xlu1 %v1623_v53  ;;  %v1895_v27 = vpop.f32.mrb[9].mxu0 }
 0x26a   :  { %v1701_v9 = vpack.c.bf16 %v1473_v35, %v1473_v35  ;;  %v1476_v24 = vadd.f32 %v1933_v31, %v1893_v19  ;;  %v1572_v32 = vsel %vm1565_vm1, %v1473_v35, 0.0  ;;  %v1896_v39 = vadd.f32 %v1895_v27, %v1894_v29  ;;  %v1897_v40 = vpop.f32.mrb[10].mxu0  ;;  %v1559_v29 = vld [vmem:[%s2882_s5 + $0x10] sm:$0xff] }
 0x26b   :  { %1573 = vadd.xlane.f32.xlu0 %v1572_v32  ;;  %v1617_v21 = vmul.f32 %v1473_v35, %v1473_v35  ;;  %v1898_v28 = vpop.f32.mrb[11].mxu0  ;;  %v1607_v35 = vld [vmem:[%s2884_s6] sm:$0xff]  ;;  %v1609_v32 = vld [vmem:[%s2884_s6 + $0x10] sm:$0xff] }
 0x26c   :  { %1530 = vst.msk [vmem:[%s2883_s4 + $0x8] sm:$0xf] %vm1527_vm2, %v1701_v9  ;;  %v1702_v36 = vpack.c.bf16 %v1476_v24, %v1476_v24  ;;  %v1934_v57 = vpop.f32.mrb[8].mxu1  ;;  %v1899_v58 = vadd.f32 %v1898_v28, %v1897_v40  ;;  %v1618_v1 = vmul.f32 %v1476_v24, %v1476_v24  ;;  %v1575_v6 = vsel %vm1565_vm1, %v1476_v24, 0.0 }
 0x26d   :  { %v1935_v61 = vpop.f32.mrb[9].mxu1  ;;  %v1629_v62 = vsel %vm1565_vm1, %v1617_v21, 0.0 }
 0x26e   :  { %1531 = vst.msk [vmem:[%s2883_s4 + $0xc] sm:$0xf] %vm1527_vm2, %v1702_v36  ;;  %v1936_v2 = vadd.f32 %v1935_v61, %v1934_v57  ;;  %1630 = vadd.xlane.f32.xlu1 %v1629_v62  ;;  %v1937_v5 = vpop.f32.mrb[10].mxu1  ;;  %v1632_v18 = vsel %vm1565_vm1, %v1618_v1, 0.0  ;;  %v1561_v57 = vld [vmem:[%s2882_s5 + $0x20] sm:$0xff] }
 0x26f   :  { %v1938_v10 = vpop.f32.mrb[11].mxu1  ;;  %1576 = vadd.xlane.f32.xlu0 %v1575_v6  ;;  %v1562_v6 = vld [vmem:[%s2882_s5 + $0x28] sm:$0xff] }
 0x270   :  { %v1481_v47 = vadd.f32 %v1936_v2, %v1896_v39  ;;  %v1939_v13 = vadd.f32 %v1938_v10, %v1937_v5  ;;  %v1900_v48 = vpop.f32.mrb[12].mxu0  ;;  %v1560_v39 = vld [vmem:[%s2882_s5 + $0x18] sm:$0xff]  ;;  %v1611_v5 = vld [vmem:[%s2884_s6 + $0x20] sm:$0xff] }
 0x271   :  { %v1901_v22 = vpop.f32.mrb[13].mxu0 }
 0x272   :  { %v1703_v11 = vpack.c.bf16 %v1481_v47, %v1481_v47  ;;  %v1484_v12 = vadd.f32 %v1939_v13, %v1899_v58  ;;  %v1578_v25 = vsel %vm1565_vm1, %v1481_v47, 0.0  ;;  %v1902_v26 = vadd.f32 %v1901_v22, %v1900_v48  ;;  %v1903_v33 = vpop.f32.mrb[14].mxu0  ;;  %v1610_v58 = vld [vmem:[%s2884_s6 + $0x18] sm:$0xff]  ;;  %v1612_v22 = vld [vmem:[%s2884_s6 + $0x28] sm:$0xff] }
 0x273   :  { %1579 = vadd.xlane.f32.xlu1 %v1578_v25  ;;  %1633 = vadd.xlane.f32.xlu0 %v1632_v18  ;;  %v1904_v51 = vpop.f32.mrb[15].mxu0  ;;  %v1619_v7 = vmul.f32 %v1481_v47, %v1481_v47  ;;  %v1563_v18 = vld [vmem:[%s2882_s5 + $0x30] sm:$0xff] }
 0x274   :  { %1532 = vst.msk [vmem:[%s2883_s4 + $0x10] sm:$0xf] %vm1527_vm2, %v1703_v11  ;;  %v1704_v3 = vpack.c.bf16 %v1484_v12, %v1484_v12  ;;  %v1940_v52 = vpop.f32.mrb[12].mxu1  ;;  %v1905_v4 = vadd.f32 %v1904_v51, %v1903_v33  ;;  %v1620_v17 = vmul.f32 %v1484_v12, %v1484_v12  ;;  %v1581_v37 = vsel %vm1565_vm1, %v1484_v12, 0.0  ;;  %v1613_v33 = vld [vmem:[%s2884_s6 + $0x30] sm:$0xff]  ;;  %v1564_v51 = vld [vmem:[%s2882_s5 + $0x38] sm:$0xff] }
 0x275   :  { %v1941_v8 = vpop.f32.mrb[13].mxu1  ;;  %v1635_v14 = vsel %vm1565_vm1, %v1619_v7, 0.0 }
 0x276   :  { %1533 = vst.msk [vmem:[%s2883_s4 + $0x14] sm:$0xf] %vm1527_vm2, %v1704_v3  ;;  %v1942_v34 = vadd.f32 %v1941_v8, %v1940_v52  ;;  %v1943_v55 = vpop.f32.mrb[14].mxu1  ;;  %v1638_v38 = vsel %vm1565_vm1, %v1620_v17, 0.0  ;;  %v1614_v8 = vld [vmem:[%s2884_s6 + $0x38] sm:$0xff] }
 0x277   :  { %v1944_v56 = vpop.f32.mrb[15].mxu1  ;;  %1636 = vadd.xlane.f32.xlu1 %v1635_v14  ;;  %1582 = vadd.xlane.f32.xlu0 %v1581_v37 }
 0x278   :  { %v1489_v63 = vadd.f32 %v1942_v34, %v1902_v26  ;;  %v1945_v59 = vadd.f32 %v1944_v56, %v1943_v55 }
 0x27a   :  { %v1705_v0 = vpack.c.bf16 %v1489_v63, %v1489_v63  ;;  %v1492_v41 = vadd.f32 %v1945_v59, %v1905_v4  ;;  %v1584_v60 = vsel %vm1565_vm1, %v1489_v63, 0.0  ;;  %v1621_v42 = vmul.f32 %v1489_v63, %v1489_v63 }
 0x27b   :  { %1585 = vadd.xlane.f32.xlu1 %v1584_v60  ;;  %1639 = vadd.xlane.f32.xlu0 %v1638_v38 }
 0x27c   :  { %1534 = vst.msk [vmem:[%s2883_s4 + $0x18] sm:$0xf] %vm1527_vm2, %v1705_v0  ;;  %v1706_v15 = vpack.c.bf16 %v1492_v41, %v1492_v41  ;;  %v1641_v16 = vsel %vm1565_vm1, %v1621_v42, 0.0  ;;  %v1587_v45 = vsel %vm1565_vm1, %v1492_v41, 0.0  ;;  %v1622_v46 = vmul.f32 %v1492_v41, %v1492_v41 }
 0x27e   :  { %1535 = vst.msk [vmem:[%s2883_s4 + $0x1c] sm:$0xf] %vm1527_vm2, %v1706_v15  ;;  %v1644_v19 = vsel %vm1565_vm1, %v1622_v46, 0.0 }
 0x27f   :  { %1642 = vadd.xlane.f32.xlu1 %v1641_v16  ;;  %1588 = vadd.xlane.f32.xlu0 %v1587_v45 }
 0x283   :  { %1645 = vadd.xlane.f32.xlu0 %v1644_v19 }
 0x2f0   :  { %v1568_v44 = vpop.xlane.xlu0 %1567 }
 0x2f1   :  { %v1590_v50 = vadd.f32 %v1568_v44, %v1557_v43 }
 0x2f2   :  { %v1571_v30 = vpop.xlane.xlu1 %1570 }
 0x2f3   :  { %1599 = vst.msk [vmem:[%s2882_s5] sm:$0xff] %vm1540_vm0, %v1590_v50  ;;  %v1591_v54 = vadd.f32 %v1571_v30, %v1558_v49 }
 0x2f4   :  { %v1628_v20 = vpop.xlane.xlu0 %1627 }
 0x2f5   :  { %1600 = vst.msk [vmem:[%s2882_s5 + $0x8] sm:$0xff] %vm1540_vm0, %v1591_v54  ;;  %v1648_v31 = vadd.f32 %v1628_v20, %v1608_v23 }
 0x2f6   :  { %v1625_v53 = vpop.xlane.xlu1 %1624 }
 0x2f7   :  { %1656 = vst.msk [vmem:[%s2884_s6 + $0x8] sm:$0xff] %vm1540_vm0, %v1648_v31  ;;  %v1647_v27 = vadd.f32 %v1625_v53, %v1607_v35 }
 0x2f8   :  { %v1574_v9 = vpop.xlane.xlu0 %1573 }
 0x2f9   :  { %1655 = vst.msk [vmem:[%s2884_s6] sm:$0xff] %vm1540_vm0, %v1647_v27  ;;  %v1592_v24 = vadd.f32 %v1574_v9, %v1559_v29 }
 0x2fb   :  { %1601 = vst.msk [vmem:[%s2882_s5 + $0x10] sm:$0xff] %vm1540_vm0, %v1592_v24  ;;  %v1631_v40 = vpop.xlane.xlu1 %1630 }
 0x2fc   :  { %v1649_v21 = vadd.f32 %v1631_v40, %v1609_v32  ;;  %v1577_v28 = vpop.xlane.xlu0 %1576 }
 0x2fd   :  { %v1593_v36 = vadd.f32 %v1577_v28, %v1560_v39 }
 0x2fe   :  { %1657 = vst.msk [vmem:[%s2884_s6 + $0x10] sm:$0xff] %vm1540_vm0, %v1649_v21 }
 0x2ff   :  { %1602 = vst.msk [vmem:[%s2882_s5 + $0x18] sm:$0xff] %vm1540_vm0, %v1593_v36 }
 0x300   :  { %v1580_v61 = vpop.xlane.xlu1 %1579  ;;  %v1634_v62 = vpop.xlane.xlu0 %1633 }
 0x301   :  { %v1594_v1 = vadd.f32 %v1580_v61, %v1561_v57  ;;  %v1650_v2 = vadd.f32 %v1634_v62, %v1610_v58 }
 0x303   :  { %1603 = vst.msk [vmem:[%s2882_s5 + $0x20] sm:$0xff] %vm1540_vm0, %v1594_v1  ;;  %1658 = vst.msk [vmem:[%s2884_s6 + $0x18] sm:$0xff] %vm1540_vm0, %v1650_v2 }
 0x304   :  { %v1637_v10 = vpop.xlane.xlu1 %1636  ;;  %v1583_v47 = vpop.xlane.xlu0 %1582 }
 0x305   :  { %v1651_v13 = vadd.f32 %v1637_v10, %v1611_v5  ;;  %v1595_v48 = vadd.f32 %v1583_v47, %v1562_v6 }
 0x307   :  { %1659 = vst.msk [vmem:[%s2884_s6 + $0x20] sm:$0xff] %vm1540_vm0, %v1651_v13  ;;  %1604 = vst.msk [vmem:[%s2882_s5 + $0x28] sm:$0xff] %vm1540_vm0, %v1595_v48 }
 0x308   :  { %v1586_v11 = vpop.xlane.xlu1 %1585  ;;  %v1640_v12 = vpop.xlane.xlu0 %1639 }
 0x309   :  { %v1596_v25 = vadd.f32 %v1586_v11, %v1563_v18  ;;  %v1652_v26 = vadd.f32 %v1640_v12, %v1612_v22 }
 0x30b   :  { %1605 = vst.msk [vmem:[%s2882_s5 + $0x30] sm:$0xff] %vm1540_vm0, %v1596_v25  ;;  %1660 = vst.msk [vmem:[%s2884_s6 + $0x28] sm:$0xff] %vm1540_vm0, %v1652_v26 }
 0x30c   :  { %v1643_v7 = vpop.xlane.xlu1 %1642  ;;  %v1589_v3 = vpop.xlane.xlu0 %1588 }
 0x30d   :  { %v1653_v52 = vadd.f32 %v1643_v7, %v1613_v33  ;;  %v1597_v4 = vadd.f32 %v1589_v3, %v1564_v51 }
 0x30f   :  { %1661 = vst.msk [vmem:[%s2884_s6 + $0x30] sm:$0xff] %vm1540_vm0, %v1653_v52  ;;  %1606 = vst.msk [vmem:[%s2882_s5 + $0x38] sm:$0xff] %vm1540_vm0, %v1597_v4 }
 0x310   :  { %v1646_v14 = vpop.xlane.xlu0 %1645 }
 0x311   :  { %v1654_v17 = vadd.f32 %v1646_v14, %v1614_v8 }
 0x313   :  { %1662 = vst.msk [vmem:[%s2884_s6 + $0x38] sm:$0xff] %vm1540_vm0, %v1654_v17 }

// kernel: discriminator_forward.9
= control target key start
LH: loop header
LB: loop body
LE: loop exit
PB: predicated region body
PF: predicated region fallthrough
CT: control target
= control target key end

     0   :  { %v3200_v2 = vmov 0   ;;  %s4891_s0 = inlined_call_operand.vmem [shape: f32[1024,1], index: 0, kind: input, shape index: {}]   ;;  %s4892_s1 = inlined_call_operand.vmem [shape: f32[1024,1], index: 1, kind: input, shape index: {}]   ;;  %s4893_s2 = inlined_call_operand.vmem [shape: bf16[1,1024], index: 2, kind: input, shape index: {}]   ;;  %s4894_s3 = inlined_call_operand.vmem [shape: bf16[1024,2], index: 3, kind: input, shape index: {}]   ;;  %s4895_s4 = inlined_call_operand.hbm [shape: f32[1,2], index: 4, kind: output, shape index: {}]  }
   0x1   :  { %v277_v0 = vld [vmem:[%s4891_s0 + $0x10] sm:$0xff]  ;;  %v275_v1 = vld [vmem:[%s4891_s0] sm:$0xff]  ;;  %3168 = vset.pattern.permute.xlu1 %v3200_v2  ;;  %3167 = vset.pattern.permute.xlu0 %v3200_v2  ;;  %v278_v3 = vld [vmem:[%s4891_s0 + $0x18] sm:$0xff] }
   0x2   :  { %415 = vperm.xlu1 %3168, %v277_v0   ;;  %405 = vperm.xlu0 %3167, %v275_v1   ;;  %v276_v4 = vld [vmem:[%s4891_s0 + $0x8] sm:$0xff]  ;;  %v279_v6 = vld [vmem:[%s4891_s0 + $0x20] sm:$0xff]  ;;  %v282_v7 = vld [vmem:[%s4891_s0 + $0x38] sm:$0xff] }
   0x3   :  { %v280_v5 = vld [vmem:[%s4891_s0 + $0x28] sm:$0xff]  ;;  %v281_v8 = vld [vmem:[%s4891_s0 + $0x30] sm:$0xff]  ;;  %v283_v10 = vld [vmem:[%s4891_s0 + $0x40] sm:$0xff] }
   0x4   :  { %v284_v9 = vld [vmem:[%s4891_s0 + $0x48] sm:$0xff]  ;;  %v286_v11 = vld [vmem:[%s4891_s0 + $0x58] sm:$0xff]  ;;  %v285_v12 = vld [vmem:[%s4891_s0 + $0x50] sm:$0xff] }
   0x5   :  { %v288_v13 = vld [vmem:[%s4891_s0 + $0x68] sm:$0xff]  ;;  %v287_v14 = vld [vmem:[%s4891_s0 + $0x60] sm:$0xff]  ;;  %v290_v15 = vld [vmem:[%s4891_s0 + $0x78] sm:$0xff] }
   0x6   :  { %420 = vperm.xlu1 %3168, %v278_v3   ;;  %410 = vperm.xlu0 %3167, %v276_v4   ;;  %v289_v16 = vld [vmem:[%s4891_s0 + $0x70] sm:$0xff] }
   0xa   :  { %430 = vperm.xlu1 %3168, %v280_v5   ;;  %425 = vperm.xlu0 %3167, %v279_v6  }
   0xe   :  { %440 = vperm.xlu1 %3168, %v282_v7   ;;  %435 = vperm.xlu0 %3167, %v281_v8  }
  0x12   :  { %450 = vperm.xlu1 %3168, %v284_v9   ;;  %445 = vperm.xlu0 %3167, %v283_v10  }
  0x16   :  { %460 = vperm.xlu1 %3168, %v286_v11   ;;  %455 = vperm.xlu0 %3167, %v285_v12  }
  0x1a   :  { %470 = vperm.xlu1 %3168, %v288_v13   ;;  %465 = vperm.xlu0 %3167, %v287_v14  }
  0x1b   :  { %9 = vsyncpa [#allocation3], 0  ;;  %v292_v17 = vld [vmem:[%s4891_s0 + $0x88] sm:$0xff]  ;;  %v291_v18 = vld [vmem:[%s4891_s0 + $0x80] sm:$0xff] }
  0x1c   :  { %v294_v19 = vld [vmem:[%s4891_s0 + $0x98] sm:$0xff]  ;;  %v293_v20 = vld [vmem:[%s4891_s0 + $0x90] sm:$0xff]  ;;  %v296_v21 = vld [vmem:[%s4891_s0 + $0xa8] sm:$0xff] }
  0x1d   :  { %v295_v22 = vld [vmem:[%s4891_s0 + $0xa0] sm:$0xff]  ;;  %v298_v23 = vld [vmem:[%s4891_s0 + $0xb8] sm:$0xff]  ;;  %v297_v24 = vld [vmem:[%s4891_s0 + $0xb0] sm:$0xff] }
  0x1e   :  { %480 = vperm.xlu1 %3168, %v290_v15   ;;  %475 = vperm.xlu0 %3167, %v289_v16   ;;  %v300_v25 = vld [vmem:[%s4891_s0 + $0xc8] sm:$0xff]  ;;  %v299_v26 = vld [vmem:[%s4891_s0 + $0xc0] sm:$0xff]  ;;  %v302_v27 = vld [vmem:[%s4891_s0 + $0xd8] sm:$0xff] }
  0x1f   :  { %v301_v28 = vld [vmem:[%s4891_s0 + $0xd0] sm:$0xff]  ;;  %v304_v29 = vld [vmem:[%s4891_s0 + $0xe8] sm:$0xff]  ;;  %v303_v30 = vld [vmem:[%s4891_s0 + $0xe0] sm:$0xff] }
  0x20   :  { %v306_v31 = vld [vmem:[%s4891_s0 + $0xf8] sm:$0xff]  ;;  %v305_v32 = vld [vmem:[%s4891_s0 + $0xf0] sm:$0xff]  ;;  %v308_v33 = vld [vmem:[%s4891_s0 + $0x108] sm:$0xff] }
  0x21   :  { %v307_v34 = vld [vmem:[%s4891_s0 + $0x100] sm:$0xff]  ;;  %v310_v35 = vld [vmem:[%s4891_s0 + $0x118] sm:$0xff]  ;;  %v309_v36 = vld [vmem:[%s4891_s0 + $0x110] sm:$0xff] }
  0x22   :  { %490 = vperm.xlu1 %3168, %v292_v17   ;;  %485 = vperm.xlu0 %3167, %v291_v18   ;;  %v312_v37 = vld [vmem:[%s4891_s0 + $0x128] sm:$0xff]  ;;  %v311_v38 = vld [vmem:[%s4891_s0 + $0x120] sm:$0xff]  ;;  %v314_v39 = vld [vmem:[%s4891_s0 + $0x138] sm:$0xff] }
  0x23   :  { %v313_v40 = vld [vmem:[%s4891_s0 + $0x130] sm:$0xff]  ;;  %v316_v41 = vld [vmem:[%s4891_s0 + $0x148] sm:$0xff]  ;;  %v315_v42 = vld [vmem:[%s4891_s0 + $0x140] sm:$0xff] }
  0x24   :  { %v318_v43 = vld [vmem:[%s4891_s0 + $0x158] sm:$0xff]  ;;  %v317_v44 = vld [vmem:[%s4891_s0 + $0x150] sm:$0xff]  ;;  %v320_v45 = vld [vmem:[%s4891_s0 + $0x168] sm:$0xff] }
  0x25   :  { %v319_v46 = vld [vmem:[%s4891_s0 + $0x160] sm:$0xff]  ;;  %v322_v47 = vld [vmem:[%s4891_s0 + $0x178] sm:$0xff]  ;;  %v321_v48 = vld [vmem:[%s4891_s0 + $0x170] sm:$0xff] }
  0x26   :  { %500 = vperm.xlu1 %3168, %v294_v19   ;;  %495 = vperm.xlu0 %3167, %v293_v20   ;;  %v324_v49 = vld [vmem:[%s4891_s0 + $0x188] sm:$0xff]  ;;  %v323_v50 = vld [vmem:[%s4891_s0 + $0x180] sm:$0xff]  ;;  %v326_v51 = vld [vmem:[%s4891_s0 + $0x198] sm:$0xff] }
  0x27   :  { %v325_v52 = vld [vmem:[%s4891_s0 + $0x190] sm:$0xff]  ;;  %v328_v53 = vld [vmem:[%s4891_s0 + $0x1a8] sm:$0xff]  ;;  %v327_v54 = vld [vmem:[%s4891_s0 + $0x1a0] sm:$0xff] }
  0x28   :  { %v330_v55 = vld [vmem:[%s4891_s0 + $0x1b8] sm:$0xff]  ;;  %v329_v56 = vld [vmem:[%s4891_s0 + $0x1b0] sm:$0xff]  ;;  %v332_v57 = vld [vmem:[%s4891_s0 + $0x1c8] sm:$0xff] }
  0x29   :  { %v331_v58 = vld [vmem:[%s4891_s0 + $0x1c0] sm:$0xff]  ;;  %v334_v59 = vld [vmem:[%s4891_s0 + $0x1d8] sm:$0xff]  ;;  %v333_v60 = vld [vmem:[%s4891_s0 + $0x1d0] sm:$0xff] }
  0x2a   :  { %510 = vperm.xlu1 %3168, %v296_v21   ;;  %505 = vperm.xlu0 %3167, %v295_v22   ;;  %v336_v61 = vld [vmem:[%s4891_s0 + $0x1e8] sm:$0xff]  ;;  %v335_v62 = vld [vmem:[%s4891_s0 + $0x1e0] sm:$0xff]  ;;  %v338_v63 = vld [vmem:[%s4891_s0 + $0x1f8] sm:$0xff] }
  0x2b   :  { %v337_v0 = vld [vmem:[%s4891_s0 + $0x1f0] sm:$0xff]  ;;  %v340_v1 = vld [vmem:[%s4891_s0 + $0x208] sm:$0xff]  ;;  %v339_v2 = vld [vmem:[%s4891_s0 + $0x200] sm:$0xff] }
  0x2c   :  { %v342_v5 = vld [vmem:[%s4891_s0 + $0x218] sm:$0xff]  ;;  %v341_v6 = vld [vmem:[%s4891_s0 + $0x210] sm:$0xff]  ;;  %v344_v9 = vld [vmem:[%s4891_s0 + $0x228] sm:$0xff] }
  0x2d   :  { %v343_v10 = vld [vmem:[%s4891_s0 + $0x220] sm:$0xff]  ;;  %v346_v13 = vld [vmem:[%s4891_s0 + $0x238] sm:$0xff]  ;;  %v345_v14 = vld [vmem:[%s4891_s0 + $0x230] sm:$0xff] }
  0x2e   :  { %520 = vperm.xlu1 %3168, %v298_v23   ;;  %515 = vperm.xlu0 %3167, %v297_v24   ;;  %v348_v17 = vld [vmem:[%s4891_s0 + $0x248] sm:$0xff]  ;;  %v347_v18 = vld [vmem:[%s4891_s0 + $0x240] sm:$0xff]  ;;  %v350_v21 = vld [vmem:[%s4891_s0 + $0x258] sm:$0xff] }
  0x2f   :  { %v349_v22 = vld [vmem:[%s4891_s0 + $0x250] sm:$0xff] }
  0x32   :  { %530 = vperm.xlu1 %3168, %v300_v25   ;;  %525 = vperm.xlu0 %3167, %v299_v26   ;;  %v352_v25 = vld [vmem:[%s4891_s0 + $0x268] sm:$0xff]  ;;  %v351_v26 = vld [vmem:[%s4891_s0 + $0x260] sm:$0xff] }
  0x36   :  { %540 = vperm.xlu1 %3168, %v302_v27   ;;  %535 = vperm.xlu0 %3167, %v301_v28  }
  0x3a   :  { %550 = vperm.xlu1 %3168, %v304_v29   ;;  %545 = vperm.xlu0 %3167, %v303_v30   ;;  %v354_v29 = vld [vmem:[%s4891_s0 + $0x278] sm:$0xff]  ;;  %v353_v30 = vld [vmem:[%s4891_s0 + $0x270] sm:$0xff] }
  0x3e   :  { %560 = vperm.xlu1 %3168, %v306_v31   ;;  %555 = vperm.xlu0 %3167, %v305_v32  }
  0x42   :  { %570 = vperm.xlu1 %3168, %v308_v33   ;;  %565 = vperm.xlu0 %3167, %v307_v34   ;;  %v356_v33 = vld [vmem:[%s4891_s0 + $0x288] sm:$0xff]  ;;  %v355_v34 = vld [vmem:[%s4891_s0 + $0x280] sm:$0xff] }
  0x46   :  { %580 = vperm.xlu1 %3168, %v310_v35   ;;  %575 = vperm.xlu0 %3167, %v309_v36  }
  0x4a   :  { %590 = vperm.xlu1 %3168, %v312_v37   ;;  %585 = vperm.xlu0 %3167, %v311_v38   ;;  %v358_v37 = vld [vmem:[%s4891_s0 + $0x298] sm:$0xff]  ;;  %v357_v38 = vld [vmem:[%s4891_s0 + $0x290] sm:$0xff] }
  0x4e   :  { %600 = vperm.xlu1 %3168, %v314_v39   ;;  %595 = vperm.xlu0 %3167, %v313_v40  }
  0x52   :  { %610 = vperm.xlu1 %3168, %v316_v41   ;;  %605 = vperm.xlu0 %3167, %v315_v42   ;;  %v360_v41 = vld [vmem:[%s4891_s0 + $0x2a8] sm:$0xff]  ;;  %v359_v42 = vld [vmem:[%s4891_s0 + $0x2a0] sm:$0xff] }
  0x56   :  { %620 = vperm.xlu1 %3168, %v318_v43   ;;  %615 = vperm.xlu0 %3167, %v317_v44  }
  0x5a   :  { %630 = vperm.xlu1 %3168, %v320_v45   ;;  %625 = vperm.xlu0 %3167, %v319_v46   ;;  %v362_v45 = vld [vmem:[%s4891_s0 + $0x2b8] sm:$0xff]  ;;  %v361_v46 = vld [vmem:[%s4891_s0 + $0x2b0] sm:$0xff] }
  0x5e   :  { %640 = vperm.xlu1 %3168, %v322_v47   ;;  %635 = vperm.xlu0 %3167, %v321_v48  }
  0x62   :  { %650 = vperm.xlu1 %3168, %v324_v49   ;;  %645 = vperm.xlu0 %3167, %v323_v50   ;;  %v364_v49 = vld [vmem:[%s4891_s0 + $0x2c8] sm:$0xff]  ;;  %v363_v50 = vld [vmem:[%s4891_s0 + $0x2c0] sm:$0xff] }
  0x66   :  { %660 = vperm.xlu1 %3168, %v326_v51   ;;  %655 = vperm.xlu0 %3167, %v325_v52  }
  0x6a   :  { %670 = vperm.xlu1 %3168, %v328_v53   ;;  %665 = vperm.xlu0 %3167, %v327_v54   ;;  %v366_v53 = vld [vmem:[%s4891_s0 + $0x2d8] sm:$0xff]  ;;  %v365_v54 = vld [vmem:[%s4891_s0 + $0x2d0] sm:$0xff] }
  0x6e   :  { %680 = vperm.xlu1 %3168, %v330_v55   ;;  %675 = vperm.xlu0 %3167, %v329_v56  }
  0x72   :  { %690 = vperm.xlu1 %3168, %v332_v57   ;;  %685 = vperm.xlu0 %3167, %v331_v58   ;;  %v368_v57 = vld [vmem:[%s4891_s0 + $0x2e8] sm:$0xff]  ;;  %v367_v58 = vld [vmem:[%s4891_s0 + $0x2e0] sm:$0xff] }
  0x76   :  { %700 = vperm.xlu1 %3168, %v334_v59   ;;  %695 = vperm.xlu0 %3167, %v333_v60  }
  0x7a   :  { %710 = vperm.xlu1 %3168, %v336_v61   ;;  %705 = vperm.xlu0 %3167, %v335_v62   ;;  %v370_v61 = vld [vmem:[%s4891_s0 + $0x2f8] sm:$0xff]  ;;  %v369_v62 = vld [vmem:[%s4891_s0 + $0x2f0] sm:$0xff] }
  0x7e   :  { %720 = vperm.xlu1 %3168, %v338_v63   ;;  %715 = vperm.xlu0 %3167, %v337_v0  }
  0x81   :  { %v3426_v3 = vpop.permute.xlu1 %415  ;;  %v3428_v4 = vpop.permute.xlu0 %405 }
  0x82   :  { %730 = vperm.xlu1 %3168, %v340_v1   ;;  %725 = vperm.xlu0 %3167, %v339_v2   ;;  %v372_v1 = vld [vmem:[%s4891_s0 + $0x308] sm:$0xff]  ;;  %v371_v2 = vld [vmem:[%s4891_s0 + $0x300] sm:$0xff] }
  0x85   :  { %v3436_v7 = vpop.permute.xlu1 %420  ;;  %v3438_v8 = vpop.permute.xlu0 %410 }
  0x86   :  { %740 = vperm.xlu1 %3168, %v342_v5   ;;  %735 = vperm.xlu0 %3167, %v341_v6  }
  0x89   :  { %v3446_v11 = vpop.permute.xlu1 %430  ;;  %v3448_v12 = vpop.permute.xlu0 %425 }
  0x8a   :  { %750 = vperm.xlu1 %3168, %v344_v9   ;;  %745 = vperm.xlu0 %3167, %v343_v10   ;;  %v374_v9 = vld [vmem:[%s4891_s0 + $0x318] sm:$0xff]  ;;  %v373_v10 = vld [vmem:[%s4891_s0 + $0x310] sm:$0xff] }
  0x8d   :  { %v3456_v15 = vpop.permute.xlu1 %440  ;;  %v3458_v16 = vpop.permute.xlu0 %435 }
  0x8e   :  { %760 = vperm.xlu1 %3168, %v346_v13   ;;  %755 = vperm.xlu0 %3167, %v345_v14  }
  0x91   :  { %v3466_v19 = vpop.permute.xlu1 %450  ;;  %v3468_v20 = vpop.permute.xlu0 %445 }
  0x92   :  { %770 = vperm.xlu1 %3168, %v348_v17   ;;  %765 = vperm.xlu0 %3167, %v347_v18   ;;  %v376_v17 = vld [vmem:[%s4891_s0 + $0x328] sm:$0xff]  ;;  %v375_v18 = vld [vmem:[%s4891_s0 + $0x320] sm:$0xff] }
  0x95   :  { %v3476_v23 = vpop.permute.xlu1 %460  ;;  %v3478_v24 = vpop.permute.xlu0 %455 }
  0x96   :  { %780 = vperm.xlu1 %3168, %v350_v21   ;;  %775 = vperm.xlu0 %3167, %v349_v22  }
  0x99   :  { %v3486_v27 = vpop.permute.xlu1 %470  ;;  %v3488_v28 = vpop.permute.xlu0 %465 }
  0x9a   :  { %790 = vperm.xlu1 %3168, %v352_v25   ;;  %785 = vperm.xlu0 %3167, %v351_v26   ;;  %v378_v25 = vld [vmem:[%s4891_s0 + $0x338] sm:$0xff]  ;;  %v377_v26 = vld [vmem:[%s4891_s0 + $0x330] sm:$0xff] }
  0x9d   :  { %v3496_v31 = vpop.permute.xlu1 %480  ;;  %v3498_v32 = vpop.permute.xlu0 %475 }
  0x9e   :  { %800 = vperm.xlu1 %3168, %v354_v29   ;;  %795 = vperm.xlu0 %3167, %v353_v30  }
  0xa1   :  { %v3506_v35 = vpop.permute.xlu1 %490  ;;  %v3508_v36 = vpop.permute.xlu0 %485 }
  0xa2   :  { %810 = vperm.xlu1 %3168, %v356_v33   ;;  %805 = vperm.xlu0 %3167, %v355_v34   ;;  %v380_v33 = vld [vmem:[%s4891_s0 + $0x348] sm:$0xff]  ;;  %v379_v34 = vld [vmem:[%s4891_s0 + $0x340] sm:$0xff] }
  0xa5   :  { %v3516_v39 = vpop.permute.xlu1 %500  ;;  %v3518_v40 = vpop.permute.xlu0 %495 }
  0xa6   :  { %4899 = vst [vmem:[#allocation5_spill] sm:$0xff] %v3516_v39  ;;  %4900 = vst [vmem:[#allocation6_spill] sm:$0xff] %v3518_v40  ;;  %820 = vperm.xlu1 %3168, %v358_v37   ;;  %815 = vperm.xlu0 %3167, %v357_v38  }
  0xa9   :  { %v3526_v43 = vpop.permute.xlu1 %510  ;;  %v3528_v44 = vpop.permute.xlu0 %505 }
  0xaa   :  { %4901 = vst [vmem:[#allocation7_spill] sm:$0xff] %v3526_v43  ;;  %4902 = vst [vmem:[#allocation8_spill] sm:$0xff] %v3528_v44  ;;  %830 = vperm.xlu1 %3168, %v360_v41   ;;  %825 = vperm.xlu0 %3167, %v359_v42   ;;  %v382_v41 = vld [vmem:[%s4891_s0 + $0x358] sm:$0xff]  ;;  %v381_v42 = vld [vmem:[%s4891_s0 + $0x350] sm:$0xff] }
  0xad   :  { %v3536_v47 = vpop.permute.xlu1 %520  ;;  %v3538_v48 = vpop.permute.xlu0 %515 }
  0xae   :  { %4903 = vst [vmem:[#allocation9_spill] sm:$0xff] %v3536_v47  ;;  %4904 = vst [vmem:[#allocation10_spill] sm:$0xff] %v3538_v48  ;;  %840 = vperm.xlu1 %3168, %v362_v45   ;;  %835 = vperm.xlu0 %3167, %v361_v46  }
  0xb1   :  { %v3546_v51 = vpop.permute.xlu1 %530  ;;  %v3548_v52 = vpop.permute.xlu0 %525 }
  0xb2   :  { %4905 = vst [vmem:[#allocation11_spill] sm:$0xff] %v3546_v51  ;;  %4906 = vst [vmem:[#allocation12_spill] sm:$0xff] %v3548_v52  ;;  %850 = vperm.xlu1 %3168, %v364_v49   ;;  %845 = vperm.xlu0 %3167, %v363_v50   ;;  %v384_v49 = vld [vmem:[%s4891_s0 + $0x368] sm:$0xff]  ;;  %v383_v50 = vld [vmem:[%s4891_s0 + $0x360] sm:$0xff] }
  0xb5   :  { %v3556_v55 = vpop.permute.xlu1 %540  ;;  %v3558_v56 = vpop.permute.xlu0 %535 }
  0xb6   :  { %4907 = vst [vmem:[#allocation13_spill] sm:$0xff] %v3556_v55  ;;  %4908 = vst [vmem:[#allocation14_spill] sm:$0xff] %v3558_v56  ;;  %860 = vperm.xlu1 %3168, %v366_v53   ;;  %855 = vperm.xlu0 %3167, %v365_v54   ;;  %v4216_v56 = vld [vmem:[%s4894_s3 + $0x78] sm:$0xff]  }
  0xb9   :  { %v3566_v59 = vpop.permute.xlu1 %550  ;;  %v3568_v60 = vpop.permute.xlu0 %545 }
  0xba   :  { %4909 = vst [vmem:[#allocation15_spill] sm:$0xff] %v3566_v59  ;;  %4910 = vst [vmem:[#allocation16_spill] sm:$0xff] %v3568_v60  ;;  %870 = vperm.xlu1 %3168, %v368_v57   ;;  %865 = vperm.xlu0 %3167, %v367_v58   ;;  %v386_v57 = vld [vmem:[%s4891_s0 + $0x378] sm:$0xff]  ;;  %v385_v58 = vld [vmem:[%s4891_s0 + $0x370] sm:$0xff] }
  0xbb   :  { %v4211_v59 = vld [vmem:[%s4894_s3 + $0x70] sm:$0xff]  }
  0xbd   :  { %v3576_v63 = vpop.permute.xlu1 %560  ;;  %v3578_v0 = vpop.permute.xlu0 %555 }
  0xbe   :  { %4911 = vst [vmem:[#allocation17_spill] sm:$0xff] %v3576_v63  ;;  %4912 = vst [vmem:[#allocation18_spill] sm:$0xff] %v3578_v0  ;;  %880 = vperm.xlu1 %3168, %v370_v61   ;;  %875 = vperm.xlu0 %3167, %v369_v62   ;;  %v4202_v0 = vld [vmem:[%s4894_s3 + $0x68] sm:$0xff]  }
  0xc1   :  { %v3586_v5 = vpop.permute.xlu1 %570  ;;  %v3588_v6 = vpop.permute.xlu0 %565 }
  0xc2   :  { %4913 = vst [vmem:[#allocation19_spill] sm:$0xff] %v3586_v5  ;;  %4914 = vst [vmem:[#allocation20_spill] sm:$0xff] %v3588_v6  ;;  %890 = vperm.xlu1 %3168, %v372_v1   ;;  %885 = vperm.xlu0 %3167, %v371_v2   ;;  %v388_v1 = vld [vmem:[%s4891_s0 + $0x388] sm:$0xff]  ;;  %v387_v2 = vld [vmem:[%s4891_s0 + $0x380] sm:$0xff] }
  0xc3   :  { %v1254_v6 = vld [vmem:[%s4892_s1 + $0x298] sm:$0xff] }
  0xc5   :  { %v3596_v13 = vpop.permute.xlu1 %580  ;;  %v3598_v14 = vpop.permute.xlu0 %575 }
  0xc6   :  { %4915 = vst [vmem:[#allocation21_spill] sm:$0xff] %v3596_v13  ;;  %4916 = vst [vmem:[#allocation22_spill] sm:$0xff] %v3598_v14  ;;  %900 = vperm.xlu1 %3168, %v374_v9   ;;  %895 = vperm.xlu0 %3167, %v373_v10  }
  0xc9   :  { %v3606_v21 = vpop.permute.xlu1 %590  ;;  %v3608_v22 = vpop.permute.xlu0 %585 }
  0xca   :  { %4917 = vst [vmem:[#allocation23_spill] sm:$0xff] %v3606_v21  ;;  %4918 = vst [vmem:[#allocation24_spill] sm:$0xff] %v3608_v22  ;;  %910 = vperm.xlu1 %3168, %v376_v17   ;;  %905 = vperm.xlu0 %3167, %v375_v18   ;;  %v390_v17 = vld [vmem:[%s4891_s0 + $0x398] sm:$0xff]  ;;  %v389_v18 = vld [vmem:[%s4891_s0 + $0x390] sm:$0xff] }
  0xcb   :  { %v4141_v22 = vld [vmem:[%s4894_s3 + $0x30] sm:$0xff]   ;;  %v4146_v21 = vld [vmem:[%s4894_s3 + $0x38] sm:$0xff]  }
  0xcc   :  { %v2787_v63 = vunpack.c.l.bf16 %v4146_v21 }
  0xcd   :  { %v3616_v29 = vpop.permute.xlu1 %600  ;;  %v3618_v30 = vpop.permute.xlu0 %595 }
  0xce   :  { %4919 = vst [vmem:[#allocation25_spill] sm:$0xff] %v3616_v29  ;;  %4920 = vst [vmem:[#allocation26_spill] sm:$0xff] %v3618_v30  ;;  %920 = vperm.xlu1 %3168, %v378_v25   ;;  %915 = vperm.xlu0 %3167, %v377_v26  }
  0xd1   :  { %v3626_v37 = vpop.permute.xlu1 %610  ;;  %v3628_v38 = vpop.permute.xlu0 %605 }
  0xd2   :  { %4921 = vst [vmem:[#allocation27_spill] sm:$0xff] %v3626_v37  ;;  %4922 = vst [vmem:[#allocation28_spill] sm:$0xff] %v3628_v38  ;;  %930 = vperm.xlu1 %3168, %v380_v33   ;;  %925 = vperm.xlu0 %3167, %v379_v34   ;;  %v392_v33 = vld [vmem:[%s4891_s0 + $0x3a8] sm:$0xff]  ;;  %v391_v34 = vld [vmem:[%s4891_s0 + $0x3a0] sm:$0xff] }
  0xd5   :  { %v3636_v45 = vpop.permute.xlu1 %620  ;;  %v3638_v46 = vpop.permute.xlu0 %615 }
  0xd6   :  { %4923 = vst [vmem:[#allocation29_spill] sm:$0xff] %v3636_v45  ;;  %4924 = vst [vmem:[#allocation30_spill] sm:$0xff] %v3638_v46  ;;  %940 = vperm.xlu1 %3168, %v382_v41   ;;  %935 = vperm.xlu0 %3167, %v381_v42   ;;  %v3201_v46 = vmov 1966171168   ;;  %v2521_v45 = vlaneseq }
  0xd8   :  { %v2522_v38 = vshrl.u32 %v2521_v45, 7 }
  0xd9   :  { %v3646_v53 = vpop.permute.xlu1 %630  ;;  %v3648_v54 = vpop.permute.xlu0 %625 }
  0xda   :  { %4925 = vst [vmem:[#allocation31_spill] sm:$0xff] %v3646_v53  ;;  %4926 = vst [vmem:[#allocation32_spill] sm:$0xff] %v3648_v54  ;;  %950 = vperm.xlu1 %3168, %v384_v49   ;;  %945 = vperm.xlu0 %3167, %v383_v50   ;;  %v394_v49 = vld [vmem:[%s4891_s0 + $0x3b8] sm:$0xff]  ;;  %v393_v50 = vld [vmem:[%s4891_s0 + $0x3b0] sm:$0xff] }
  0xdb   :  { %v402_v54 = vld [vmem:[%s4891_s0 + $0x3f8] sm:$0xff] }
  0xdd   :  { %v3656_v61 = vpop.permute.xlu1 %640  ;;  %v3658_v62 = vpop.permute.xlu0 %635 }
  0xde   :  { %4927 = vst [vmem:[#allocation33_spill] sm:$0xff] %v3656_v61  ;;  %4928 = vst [vmem:[#allocation34_spill] sm:$0xff] %v3658_v62  ;;  %960 = vperm.xlu1 %3168, %v386_v57   ;;  %955 = vperm.xlu0 %3167, %v385_v58   ;;  %v400_v62 = vld [vmem:[%s4891_s0 + $0x3e8] sm:$0xff] }
  0xe1   :  { %v3666_v9 = vpop.permute.xlu1 %650  ;;  %v3668_v10 = vpop.permute.xlu0 %645 }
  0xe2   :  { %4929 = vst [vmem:[#allocation35_spill] sm:$0xff] %v3666_v9  ;;  %4930 = vst [vmem:[#allocation36_spill] sm:$0xff] %v3668_v10  ;;  %970 = vperm.xlu1 %3168, %v388_v1   ;;  %965 = vperm.xlu0 %3167, %v387_v2   ;;  %v396_v1 = vld [vmem:[%s4891_s0 + $0x3c8] sm:$0xff]  ;;  %v395_v2 = vld [vmem:[%s4891_s0 + $0x3c0] sm:$0xff] }
  0xe3   :  { %v4167_v9 = vld [vmem:[%s4894_s3 + $0x48] sm:$0xff]   ;;  %v4181_v10 = vld [vmem:[%s4894_s3 + $0x58] sm:$0xff]  }
  0xe4   :  { %v2803_v51 = vunpack.c.l.bf16 %v4181_v10 }
  0xe5   :  { %v3676_v25 = vpop.permute.xlu1 %660  ;;  %v3678_v26 = vpop.permute.xlu0 %655 }
  0xe6   :  { %4931 = vst [vmem:[#allocation37_spill] sm:$0xff] %v3676_v25  ;;  %4932 = vst [vmem:[#allocation38_spill] sm:$0xff] %v3678_v26  ;;  %980 = vperm.xlu1 %3168, %v390_v17   ;;  %975 = vperm.xlu0 %3167, %v389_v18   ;;  %v4162_v25 = vld [vmem:[%s4894_s3 + $0x40] sm:$0xff]  }
  0xe7   :  { %v2791_v60 = vunpack.c.l.bf16 %v4162_v25 }
  0xe9   :  { %v3686_v41 = vpop.permute.xlu1 %670  ;;  %v3688_v42 = vpop.permute.xlu0 %665 }
  0xea   :  { %4933 = vst [vmem:[#allocation39_spill] sm:$0xff] %v3686_v41  ;;  %4934 = vst [vmem:[#allocation40_spill] sm:$0xff] %v3688_v42  ;;  %990 = vperm.xlu1 %3168, %v392_v33   ;;  %985 = vperm.xlu0 %3167, %v391_v34   ;;  %v398_v33 = vld [vmem:[%s4891_s0 + $0x3d8] sm:$0xff]  ;;  %v397_v34 = vld [vmem:[%s4891_s0 + $0x3d0] sm:$0xff] }
  0xed   :  { %v3696_v57 = vpop.permute.xlu1 %680  ;;  %v3698_v58 = vpop.permute.xlu0 %675 }
  0xee   :  { %4935 = vst [vmem:[#allocation41_spill] sm:$0xff] %v3696_v57  ;;  %4936 = vst [vmem:[#allocation42_spill] sm:$0xff] %v3698_v58  ;;  %1000 = vperm.xlu1 %3168, %v394_v49   ;;  %995 = vperm.xlu0 %3167, %v393_v50  }
  0xf1   :  { %v3706_v17 = vpop.permute.xlu1 %690  ;;  %v3708_v18 = vpop.permute.xlu0 %685 }
  0xf2   :  { %4937 = vst [vmem:[#allocation43_spill] sm:$0xff] %v3706_v17  ;;  %4938 = vst [vmem:[#allocation44_spill] sm:$0xff] %v3708_v18  ;;  %1010 = vperm.xlu1 %3168, %v396_v1   ;;  %1005 = vperm.xlu0 %3167, %v395_v2   ;;  %v399_v1 = vld [vmem:[%s4891_s0 + $0x3e0] sm:$0xff] }
  0xf3   :  { %v1267_v17 = vld [vmem:[%s4892_s1 + $0x300] sm:$0xff] }
  0xf5   :  { %v3716_v49 = vpop.permute.xlu1 %700  ;;  %v3718_v50 = vpop.permute.xlu0 %695 }
  0xf6   :  { %4939 = vst [vmem:[#allocation45_spill] sm:$0xff] %v3716_v49  ;;  %4940 = vst [vmem:[#allocation46_spill] sm:$0xff] %v3718_v50  ;;  %1020 = vperm.xlu1 %3168, %v398_v33   ;;  %1015 = vperm.xlu0 %3167, %v397_v34   ;;  %v401_v33 = vld [vmem:[%s4891_s0 + $0x3f0] sm:$0xff] }
  0xf9   :  { %v3726_v2 = vpop.permute.xlu1 %710  ;;  %v3728_v61 = vpop.permute.xlu0 %705 }
  0xfa   :  { %4941 = vst [vmem:[#allocation47_spill] sm:$0xff] %v3726_v2  ;;  %4942 = vst [vmem:[#allocation48_spill] sm:$0xff] %v3728_v61  ;;  %1030 = vperm.xlu1 %3168, %v400_v62   ;;  %1025 = vperm.xlu0 %3167, %v399_v1   ;;  %v1172_v61 = vld [vmem:[%s4892_s1 + $0x8] sm:$0xff]  ;;  %v1171_v62 = vld [vmem:[%s4892_s1] sm:$0xff] }
  0xfd   :  { %v3736_v34 = vpop.permute.xlu1 %720  ;;  %v3738_v53 = vpop.permute.xlu0 %715 }
  0xfe   :  { %4943 = vst [vmem:[#allocation49_spill] sm:$0xff] %v3736_v34  ;;  %4944 = vst [vmem:[#allocation50_spill] sm:$0xff] %v3738_v53  ;;  %1040 = vperm.xlu1 %3168, %v402_v54   ;;  %1035 = vperm.xlu0 %3167, %v401_v33   ;;  %v1174_v53 = vld [vmem:[%s4892_s1 + $0x18] sm:$0xff]  ;;  %v1173_v54 = vld [vmem:[%s4892_s1 + $0x10] sm:$0xff] }
 0x101   :  { %v3746_v1 = vpop.permute.xlu1 %730  ;;  %v3748_v2 = vpop.permute.xlu0 %725 }
 0x102   :  { %4945 = vst [vmem:[#allocation51_spill] sm:$0xff] %v3746_v1  ;;  %4946 = vst [vmem:[#allocation52_spill] sm:$0xff] %v3748_v2  ;;  %1306 = vperm.xlu1 %3168, %v1172_v61   ;;  %1301 = vperm.xlu0 %3167, %v1171_v62   ;;  %v1176_v2 = vld [vmem:[%s4892_s1 + $0x28] sm:$0xff]  ;;  %v1175_v61 = vld [vmem:[%s4892_s1 + $0x20] sm:$0xff] }
 0x105   :  { %v3756_v33 = vpop.permute.xlu1 %740  ;;  %v3758_v34 = vpop.permute.xlu0 %735 }
 0x106   :  { %4947 = vst [vmem:[#allocation53_spill] sm:$0xff] %v3756_v33  ;;  %4948 = vst [vmem:[#allocation54_spill] sm:$0xff] %v3758_v34  ;;  %1316 = vperm.xlu1 %3168, %v1174_v53   ;;  %1311 = vperm.xlu0 %3167, %v1173_v54   ;;  %v1178_v34 = vld [vmem:[%s4892_s1 + $0x38] sm:$0xff]  ;;  %v1177_v53 = vld [vmem:[%s4892_s1 + $0x30] sm:$0xff] }
 0x109   :  { %v3766_v62 = vpop.permute.xlu1 %750  ;;  %v3768_v1 = vpop.permute.xlu0 %745 }
 0x10a   :  { %4949 = vst [vmem:[#allocation55_spill] sm:$0xff] %v3766_v62  ;;  %4950 = vst [vmem:[#allocation56_spill] sm:$0xff] %v3768_v1  ;;  %1326 = vperm.xlu1 %3168, %v1176_v2   ;;  %1321 = vperm.xlu0 %3167, %v1175_v61   ;;  %v1180_v1 = vld [vmem:[%s4892_s1 + $0x48] sm:$0xff]  ;;  %v1179_v2 = vld [vmem:[%s4892_s1 + $0x40] sm:$0xff] }
 0x10d   :  { %v3776_v54 = vpop.permute.xlu1 %760  ;;  %v3778_v33 = vpop.permute.xlu0 %755 }
 0x10e   :  { %4951 = vst [vmem:[#allocation57_spill] sm:$0xff] %v3776_v54  ;;  %4952 = vst [vmem:[#allocation58_spill] sm:$0xff] %v3778_v33  ;;  %1336 = vperm.xlu1 %3168, %v1178_v34   ;;  %1331 = vperm.xlu0 %3167, %v1177_v53   ;;  %v1182_v33 = vld [vmem:[%s4892_s1 + $0x58] sm:$0xff]  ;;  %v1181_v34 = vld [vmem:[%s4892_s1 + $0x50] sm:$0xff] }
 0x111   :  { %v3786_v61 = vpop.permute.xlu1 %770  ;;  %v3788_v62 = vpop.permute.xlu0 %765 }
 0x112   :  { %4953 = vst [vmem:[#allocation59_spill] sm:$0xff] %v3786_v61  ;;  %4954 = vst [vmem:[#allocation60_spill] sm:$0xff] %v3788_v62  ;;  %1346 = vperm.xlu1 %3168, %v1180_v1   ;;  %1341 = vperm.xlu0 %3167, %v1179_v2   ;;  %v1184_v62 = vld [vmem:[%s4892_s1 + $0x68] sm:$0xff]  ;;  %v1183_v1 = vld [vmem:[%s4892_s1 + $0x60] sm:$0xff] }
 0x115   :  { %v3796_v53 = vpop.permute.xlu1 %780  ;;  %v3798_v54 = vpop.permute.xlu0 %775 }
 0x116   :  { %4955 = vst [vmem:[#allocation61_spill] sm:$0xff] %v3796_v53  ;;  %4956 = vst [vmem:[#allocation62_spill] sm:$0xff] %v3798_v54  ;;  %1356 = vperm.xlu1 %3168, %v1182_v33   ;;  %1351 = vperm.xlu0 %3167, %v1181_v34   ;;  %v1186_v54 = vld [vmem:[%s4892_s1 + $0x78] sm:$0xff]  ;;  %v1185_v33 = vld [vmem:[%s4892_s1 + $0x70] sm:$0xff] }
 0x119   :  { %v3806_v2 = vpop.permute.xlu1 %790  ;;  %v3808_v61 = vpop.permute.xlu0 %785 }
 0x11a   :  { %4957 = vst [vmem:[#allocation63_spill] sm:$0xff] %v3806_v2  ;;  %4958 = vst [vmem:[#allocation64_spill] sm:$0xff] %v3808_v61  ;;  %1366 = vperm.xlu1 %3168, %v1184_v62   ;;  %1361 = vperm.xlu0 %3167, %v1183_v1   ;;  %v1188_v61 = vld [vmem:[%s4892_s1 + $0x88] sm:$0xff]  ;;  %v1187_v62 = vld [vmem:[%s4892_s1 + $0x80] sm:$0xff] }
 0x11d   :  { %v3816_v34 = vpop.permute.xlu1 %800  ;;  %v3818_v53 = vpop.permute.xlu0 %795 }
 0x11e   :  { %4959 = vst [vmem:[#allocation65_spill] sm:$0xff] %v3816_v34  ;;  %4960 = vst [vmem:[#allocation66_spill] sm:$0xff] %v3818_v53  ;;  %1376 = vperm.xlu1 %3168, %v1186_v54   ;;  %1371 = vperm.xlu0 %3167, %v1185_v33   ;;  %v1190_v53 = vld [vmem:[%s4892_s1 + $0x98] sm:$0xff]  ;;  %v1189_v54 = vld [vmem:[%s4892_s1 + $0x90] sm:$0xff] }
 0x121   :  { %v3826_v1 = vpop.permute.xlu1 %810  ;;  %v3828_v2 = vpop.permute.xlu0 %805 }
 0x122   :  { %4961 = vst [vmem:[#allocation67_spill] sm:$0xff] %v3826_v1  ;;  %4962 = vst [vmem:[#allocation68_spill] sm:$0xff] %v3828_v2  ;;  %1386 = vperm.xlu1 %3168, %v1188_v61   ;;  %1381 = vperm.xlu0 %3167, %v1187_v62   ;;  %v1192_v2 = vld [vmem:[%s4892_s1 + $0xa8] sm:$0xff]  ;;  %v1191_v61 = vld [vmem:[%s4892_s1 + $0xa0] sm:$0xff] }
 0x125   :  { %v3836_v33 = vpop.permute.xlu1 %820  ;;  %v3838_v34 = vpop.permute.xlu0 %815 }
 0x126   :  { %4963 = vst [vmem:[#allocation69_spill] sm:$0xff] %v3836_v33  ;;  %4964 = vst [vmem:[#allocation70_spill] sm:$0xff] %v3838_v34  ;;  %1396 = vperm.xlu1 %3168, %v1190_v53   ;;  %1391 = vperm.xlu0 %3167, %v1189_v54   ;;  %v1194_v34 = vld [vmem:[%s4892_s1 + $0xb8] sm:$0xff]  ;;  %v1193_v53 = vld [vmem:[%s4892_s1 + $0xb0] sm:$0xff] }
 0x129   :  { %v3846_v62 = vpop.permute.xlu1 %830  ;;  %v3848_v1 = vpop.permute.xlu0 %825 }
 0x12a   :  { %4965 = vst [vmem:[#allocation71_spill] sm:$0xff] %v3846_v62  ;;  %4966 = vst [vmem:[#allocation72_spill] sm:$0xff] %v3848_v1  ;;  %1406 = vperm.xlu1 %3168, %v1192_v2   ;;  %1401 = vperm.xlu0 %3167, %v1191_v61   ;;  %v1196_v1 = vld [vmem:[%s4892_s1 + $0xc8] sm:$0xff]  ;;  %v1195_v2 = vld [vmem:[%s4892_s1 + $0xc0] sm:$0xff] }
 0x12d   :  { %v3856_v54 = vpop.permute.xlu1 %840  ;;  %v3858_v33 = vpop.permute.xlu0 %835 }
 0x12e   :  { %4967 = vst [vmem:[#allocation73_spill] sm:$0xff] %v3856_v54  ;;  %4968 = vst [vmem:[#allocation74_spill] sm:$0xff] %v3858_v33  ;;  %1416 = vperm.xlu1 %3168, %v1194_v34   ;;  %1411 = vperm.xlu0 %3167, %v1193_v53   ;;  %v1198_v33 = vld [vmem:[%s4892_s1 + $0xd8] sm:$0xff]  ;;  %v1197_v34 = vld [vmem:[%s4892_s1 + $0xd0] sm:$0xff] }
 0x131   :  { %v3866_v61 = vpop.permute.xlu1 %850  ;;  %v3868_v62 = vpop.permute.xlu0 %845 }
 0x132   :  { %4969 = vst [vmem:[#allocation75_spill] sm:$0xff] %v3866_v61  ;;  %4970 = vst [vmem:[#allocation76_spill] sm:$0xff] %v3868_v62  ;;  %1426 = vperm.xlu1 %3168, %v1196_v1   ;;  %1421 = vperm.xlu0 %3167, %v1195_v2   ;;  %v1200_v62 = vld [vmem:[%s4892_s1 + $0xe8] sm:$0xff]  ;;  %v1199_v1 = vld [vmem:[%s4892_s1 + $0xe0] sm:$0xff] }
 0x135   :  { %v3876_v53 = vpop.permute.xlu1 %860  ;;  %v3878_v54 = vpop.permute.xlu0 %855 }
 0x136   :  { %4971 = vst [vmem:[#allocation77_spill] sm:$0xff] %v3876_v53  ;;  %4972 = vst [vmem:[#allocation78_spill] sm:$0xff] %v3878_v54  ;;  %1436 = vperm.xlu1 %3168, %v1198_v33   ;;  %1431 = vperm.xlu0 %3167, %v1197_v34   ;;  %v1202_v54 = vld [vmem:[%s4892_s1 + $0xf8] sm:$0xff]  ;;  %v1201_v33 = vld [vmem:[%s4892_s1 + $0xf0] sm:$0xff] }
 0x139   :  { %v3886_v2 = vpop.permute.xlu1 %870  ;;  %v3888_v61 = vpop.permute.xlu0 %865 }
 0x13a   :  { %4973 = vst [vmem:[#allocation79_spill] sm:$0xff] %v3886_v2  ;;  %4974 = vst [vmem:[#allocation80_spill] sm:$0xff] %v3888_v61  ;;  %1446 = vperm.xlu1 %3168, %v1200_v62   ;;  %1441 = vperm.xlu0 %3167, %v1199_v1   ;;  %v1219_v61 = vld [vmem:[%s4892_s1 + $0x180] sm:$0xff] }
 0x13b   :  { %v1203_v62 = vld [vmem:[%s4892_s1 + $0x100] sm:$0xff] }
 0x13d   :  { %v3896_v34 = vpop.permute.xlu1 %880  ;;  %v3898_v53 = vpop.permute.xlu0 %875 }
 0x13e   :  { %4975 = vst [vmem:[#allocation81_spill] sm:$0xff] %v3896_v34  ;;  %4976 = vst [vmem:[#allocation82_spill] sm:$0xff] %v3898_v53  ;;  %1456 = vperm.xlu1 %3168, %v1202_v54   ;;  %1451 = vperm.xlu0 %3167, %v1201_v33   ;;  %v1204_v53 = vld [vmem:[%s4892_s1 + $0x108] sm:$0xff] }
 0x13f   :  { %v1220_v54 = vld [vmem:[%s4892_s1 + $0x188] sm:$0xff] }
 0x141   :  { %v3906_v1 = vpop.permute.xlu1 %890  ;;  %v3908_v2 = vpop.permute.xlu0 %885 }
 0x142   :  { %4977 = vst [vmem:[#allocation83_spill] sm:$0xff] %v3906_v1  ;;  %4978 = vst [vmem:[#allocation84_spill] sm:$0xff] %v3908_v2  ;;  %1541 = vperm.xlu1 %3168, %v1219_v61   ;;  %1461 = vperm.xlu0 %3167, %v1203_v62   ;;  %v1222_v2 = vld [vmem:[%s4892_s1 + $0x198] sm:$0xff]  ;;  %v1221_v61 = vld [vmem:[%s4892_s1 + $0x190] sm:$0xff] }
 0x145   :  { %v3916_v33 = vpop.permute.xlu1 %900  ;;  %v3918_v34 = vpop.permute.xlu0 %895 }
 0x146   :  { %4979 = vst [vmem:[#allocation85_spill] sm:$0xff] %v3916_v33  ;;  %4980 = vst [vmem:[#allocation86_spill] sm:$0xff] %v3918_v34  ;;  %1466 = vperm.xlu1 %3168, %v1204_v53   ;;  %1546 = vperm.xlu0 %3167, %v1220_v54   ;;  %v1206_v34 = vld [vmem:[%s4892_s1 + $0x118] sm:$0xff]  ;;  %v1205_v53 = vld [vmem:[%s4892_s1 + $0x110] sm:$0xff] }
 0x149   :  { %v3926_v62 = vpop.permute.xlu1 %910  ;;  %v3928_v1 = vpop.permute.xlu0 %905 }
 0x14a   :  { %4981 = vst [vmem:[#allocation87_spill] sm:$0xff] %v3926_v62  ;;  %4982 = vst [vmem:[#allocation88_spill] sm:$0xff] %v3928_v1  ;;  %1556 = vperm.xlu1 %3168, %v1222_v2   ;;  %1551 = vperm.xlu0 %3167, %v1221_v61   ;;  %v1224_v1 = vld [vmem:[%s4892_s1 + $0x1a8] sm:$0xff]  ;;  %v1223_v2 = vld [vmem:[%s4892_s1 + $0x1a0] sm:$0xff] }
 0x14d   :  { %v3936_v54 = vpop.permute.xlu1 %920  ;;  %v3938_v33 = vpop.permute.xlu0 %915 }
 0x14e   :  { %4983 = vst [vmem:[#allocation89_spill] sm:$0xff] %v3936_v54  ;;  %4984 = vst [vmem:[#allocation90_spill] sm:$0xff] %v3938_v33  ;;  %1476 = vperm.xlu1 %3168, %v1206_v34   ;;  %1471 = vperm.xlu0 %3167, %v1205_v53   ;;  %v1208_v33 = vld [vmem:[%s4892_s1 + $0x128] sm:$0xff]  ;;  %v1207_v34 = vld [vmem:[%s4892_s1 + $0x120] sm:$0xff] }
 0x151   :  { %v3946_v61 = vpop.permute.xlu1 %930  ;;  %v3948_v62 = vpop.permute.xlu0 %925 }
 0x152   :  { %4985 = vst [vmem:[#allocation91_spill] sm:$0xff] %v3946_v61  ;;  %4986 = vst [vmem:[#allocation92_spill] sm:$0xff] %v3948_v62  ;;  %1566 = vperm.xlu1 %3168, %v1224_v1   ;;  %1561 = vperm.xlu0 %3167, %v1223_v2   ;;  %v1226_v62 = vld [vmem:[%s4892_s1 + $0x1b8] sm:$0xff]  ;;  %v1225_v1 = vld [vmem:[%s4892_s1 + $0x1b0] sm:$0xff] }
 0x155   :  { %v3956_v53 = vpop.permute.xlu1 %940  ;;  %v3958_v54 = vpop.permute.xlu0 %935 }
 0x156   :  { %4987 = vst [vmem:[#allocation93_spill] sm:$0xff] %v3956_v53  ;;  %4988 = vst [vmem:[#allocation94_spill] sm:$0xff] %v3958_v54  ;;  %1486 = vperm.xlu1 %3168, %v1208_v33   ;;  %1481 = vperm.xlu0 %3167, %v1207_v34   ;;  %v1210_v54 = vld [vmem:[%s4892_s1 + $0x138] sm:$0xff]  ;;  %v1209_v33 = vld [vmem:[%s4892_s1 + $0x130] sm:$0xff] }
 0x159   :  { %v3966_v2 = vpop.permute.xlu1 %950  ;;  %v3968_v61 = vpop.permute.xlu0 %945 }
 0x15a   :  { %4989 = vst [vmem:[#allocation95_spill] sm:$0xff] %v3966_v2  ;;  %4990 = vst [vmem:[#allocation96_spill] sm:$0xff] %v3968_v61  ;;  %1576 = vperm.xlu1 %3168, %v1226_v62   ;;  %1571 = vperm.xlu0 %3167, %v1225_v1   ;;  %v1228_v61 = vld [vmem:[%s4892_s1 + $0x1c8] sm:$0xff]  ;;  %v1227_v62 = vld [vmem:[%s4892_s1 + $0x1c0] sm:$0xff] }
 0x15d   :  { %v3976_v34 = vpop.permute.xlu1 %960  ;;  %v3978_v53 = vpop.permute.xlu0 %955 }
 0x15e   :  { %4991 = vst [vmem:[#allocation97_spill] sm:$0xff] %v3976_v34  ;;  %4992 = vst [vmem:[#allocation98_spill] sm:$0xff] %v3978_v53  ;;  %1496 = vperm.xlu1 %3168, %v1210_v54   ;;  %1491 = vperm.xlu0 %3167, %v1209_v33   ;;  %v1212_v53 = vld [vmem:[%s4892_s1 + $0x148] sm:$0xff]  ;;  %v1211_v54 = vld [vmem:[%s4892_s1 + $0x140] sm:$0xff] }
 0x161   :  { %v3986_v1 = vpop.permute.xlu1 %970  ;;  %v3988_v2 = vpop.permute.xlu0 %965 }
 0x162   :  { %4993 = vst [vmem:[#allocation99_spill] sm:$0xff] %v3986_v1  ;;  %4994 = vst [vmem:[#allocation100_spill] sm:$0xff] %v3988_v2  ;;  %1586 = vperm.xlu1 %3168, %v1228_v61   ;;  %1581 = vperm.xlu0 %3167, %v1227_v62   ;;  %v1230_v2 = vld [vmem:[%s4892_s1 + $0x1d8] sm:$0xff]  ;;  %v1229_v61 = vld [vmem:[%s4892_s1 + $0x1d0] sm:$0xff] }
 0x165   :  { %v3996_v33 = vpop.permute.xlu1 %980  ;;  %v3998_v34 = vpop.permute.xlu0 %975 }
 0x166   :  { %4995 = vst [vmem:[#allocation101_spill] sm:$0xff] %v3996_v33  ;;  %4996 = vst [vmem:[#allocation102_spill] sm:$0xff] %v3998_v34  ;;  %1506 = vperm.xlu1 %3168, %v1212_v53   ;;  %1501 = vperm.xlu0 %3167, %v1211_v54   ;;  %v1214_v34 = vld [vmem:[%s4892_s1 + $0x158] sm:$0xff]  ;;  %v1213_v53 = vld [vmem:[%s4892_s1 + $0x150] sm:$0xff] }
 0x169   :  { %v4006_v62 = vpop.permute.xlu1 %990  ;;  %v4008_v1 = vpop.permute.xlu0 %985 }
 0x16a   :  { %4997 = vst [vmem:[#allocation103_spill] sm:$0xff] %v4006_v62  ;;  %4998 = vst [vmem:[#allocation104_spill] sm:$0xff] %v4008_v1  ;;  %1596 = vperm.xlu1 %3168, %v1230_v2   ;;  %1591 = vperm.xlu0 %3167, %v1229_v61   ;;  %v1232_v1 = vld [vmem:[%s4892_s1 + $0x1e8] sm:$0xff]  ;;  %v1231_v2 = vld [vmem:[%s4892_s1 + $0x1e0] sm:$0xff] }
 0x16d   :  { %v4016_v54 = vpop.permute.xlu1 %1000  ;;  %v4018_v33 = vpop.permute.xlu0 %995 }
 0x16e   :  { %4999 = vst [vmem:[#allocation105_spill] sm:$0xff] %v4016_v54  ;;  %5000 = vst [vmem:[#allocation106_spill] sm:$0xff] %v4018_v33  ;;  %1516 = vperm.xlu1 %3168, %v1214_v34   ;;  %1511 = vperm.xlu0 %3167, %v1213_v53   ;;  %v1216_v33 = vld [vmem:[%s4892_s1 + $0x168] sm:$0xff]  ;;  %v1215_v34 = vld [vmem:[%s4892_s1 + $0x160] sm:$0xff] }
 0x171   :  { %v4026_v61 = vpop.permute.xlu1 %1010  ;;  %v4028_v62 = vpop.permute.xlu0 %1005 }
 0x172   :  { %5001 = vst [vmem:[#allocation107_spill] sm:$0xff] %v4026_v61  ;;  %5002 = vst [vmem:[#allocation108_spill] sm:$0xff] %v4028_v62  ;;  %1606 = vperm.xlu1 %3168, %v1232_v1   ;;  %1601 = vperm.xlu0 %3167, %v1231_v2   ;;  %v1234_v62 = vld [vmem:[%s4892_s1 + $0x1f8] sm:$0xff]  ;;  %v1233_v1 = vld [vmem:[%s4892_s1 + $0x1f0] sm:$0xff] }
 0x175   :  { %v4036_v53 = vpop.permute.xlu1 %1020  ;;  %v4038_v54 = vpop.permute.xlu0 %1015 }
 0x176   :  { %5003 = vst [vmem:[#allocation109_spill] sm:$0xff] %v4036_v53  ;;  %5004 = vst [vmem:[#allocation110_spill] sm:$0xff] %v4038_v54  ;;  %1526 = vperm.xlu1 %3168, %v1216_v33   ;;  %1521 = vperm.xlu0 %3167, %v1215_v34   ;;  %v1218_v54 = vld [vmem:[%s4892_s1 + $0x178] sm:$0xff]  ;;  %v1217_v33 = vld [vmem:[%s4892_s1 + $0x170] sm:$0xff] }
 0x179   :  { %v4046_v2 = vpop.permute.xlu1 %1030  ;;  %v4048_v61 = vpop.permute.xlu0 %1025 }
 0x17a   :  { %5005 = vst [vmem:[#allocation111_spill] sm:$0xff] %v4046_v2  ;;  %5006 = vst [vmem:[#allocation112_spill] sm:$0xff] %v4048_v61  ;;  %1616 = vperm.xlu1 %3168, %v1234_v62   ;;  %1611 = vperm.xlu0 %3167, %v1233_v1   ;;  %v1252_v61 = vld [vmem:[%s4892_s1 + $0x288] sm:$0xff]  ;;  %v1251_v62 = vld [vmem:[%s4892_s1 + $0x280] sm:$0xff] }
 0x17d   :  { %v4056_v34 = vpop.permute.xlu1 %1040  ;;  %v4058_v53 = vpop.permute.xlu0 %1035 }
 0x17e   :  { %5007 = vst [vmem:[#allocation113_spill] sm:$0xff] %v4056_v34  ;;  %5008 = vst [vmem:[#allocation114_spill] sm:$0xff] %v4058_v53  ;;  %1536 = vperm.xlu1 %3168, %v1218_v54   ;;  %1531 = vperm.xlu0 %3167, %v1217_v33   ;;  %v2519_v34 = vunpack.c.l.s4 %v3201_v46  ;;  %v1236_v54 = vld [vmem:[%s4892_s1 + $0x208] sm:$0xff]  ;;  %v1235_v33 = vld [vmem:[%s4892_s1 + $0x200] sm:$0xff] }
 0x17f   :  { %v1284_v46 = vld [vmem:[%s4892_s1 + $0x388] sm:$0xff] }
 0x180   :  { %v2520_v49 = vunpack.c.0.s8 %v2519_v34  ;;  %v4100_v34 = vld [vmem:[%s4894_s3 + $0x8] sm:$0xff]  }
 0x181   :  { %v4066_v1 = vpop.permute.xlu1 %1306  ;;  %v4068_v2 = vpop.permute.xlu0 %1301  ;;  %v2763_v29 = vunpack.c.l.bf16 %v4100_v34  ;;  %v2764_v57 = vunpack.c.h.bf16 %v4100_v34 }
 0x182   :  { %1706 = vperm.xlu1 %3168, %v1252_v61   ;;  %1701 = vperm.xlu0 %3167, %v1251_v62   ;;  %v1283_v61 = vld [vmem:[%s4892_s1 + $0x380] sm:$0xff]  ;;  %v4091_v37 = vsub.s32 %v2520_v49, %v2522_v38  ;;  %v4115_v38 = vld [vmem:[%s4894_s3 + $0x18] sm:$0xff]   ;;  %v1268_v49 = vld [vmem:[%s4892_s1 + $0x308] sm:$0xff] }
 0x183   :  { %v4089_v62 = vld.sshfl [vmem:[%s4893_s2] sm:$0xff pattern:$0x75316420]  ;;  %v2772_v26 = vunpack.c.h.bf16 %v4115_v38 }
 0x184   :  { %5011 = vst [vmem:[#allocation117_spill] sm:$0xff] %v4089_v62  ;;  %5012 = vst [vmem:[#allocation118_spill] sm:$0xff] %v4091_v37  ;;  %v2532_v30 = vcombine.high %v4089_v62, %v4089_v62 }
 0x185   :  { %v4076_v53 = vpop.permute.xlu1 %1316  ;;  %v4078_v50 = vpop.permute.xlu0 %1311 }
 0x186   :  { %5009 = vst [vmem:[#allocation115_spill] sm:$0xff] %v4076_v53  ;;  %5010 = vst [vmem:[#allocation116_spill] sm:$0xff] %v4078_v50  ;;  %1626 = vperm.xlu1 %3168, %v1236_v54   ;;  %1621 = vperm.xlu0 %3167, %v1235_v33   ;;  %v4105_v54 = vld [vmem:[%s4894_s3] sm:$0xff]   ;;  %v4110_v33 = vld [vmem:[%s4894_s3 + $0x10] sm:$0xff]   ;;  %v4153_v14 = vrot.slane %v2532_v30, %v4091_v37  ;;  %v1046_v50 = vmul.f32 %v2764_v57, %v3436_v7 }
 0x187   :  { %v2759_v58 = vunpack.c.l.bf16 %v4105_v54  ;;  %v2760_v13 = vunpack.c.h.bf16 %v4105_v54  ;;  %v2768_v34 = vunpack.c.h.bf16 %v4110_v33  ;;  %v2767_v62 = vunpack.c.l.bf16 %v4110_v33  ;;  %v4172_v30 = vld [vmem:[%s4894_s3 + $0x50] sm:$0xff]  }
 0x188   :  { %v2771_v54 = vunpack.c.l.bf16 %v4115_v38  ;;  %2606 = vmatprep.mubr.bf16.mxu0 %v4153_v14  ;;  %v2564_v40 = vcombine.high %v4153_v14, %v4153_v14 }
 0x189   :  { %v4093_v18 = vpop.permute.xlu1 %1326  ;;  %v4095_v45 = vpop.permute.xlu0 %1321  ;;  %v1043_v44 = vmul.f32 %v2759_v58, %v3428_v4  ;;  %v1048_v39 = vmul.f32 %v2768_v34, %v3446_v11  ;;  %v1286_v11 = vld [vmem:[%s4892_s1 + $0x398] sm:$0xff]  ;;  %v5025_v34 = vld [vmem:[#allocation9_spill] sm:$0xff] }
 0x18a   :  { %5013 = vst [vmem:[#allocation119_spill] sm:$0xff] %v4093_v18  ;;  %5014 = vst [vmem:[#allocation120_spill] sm:$0xff] %v4095_v45  ;;  %1866 = vperm.xlu1 %3168, %v1284_v46   ;;  %1861 = vperm.xlu0 %3167, %v1283_v61   ;;  %v4128_v46 = vld [vmem:[%s4894_s3 + $0x20] sm:$0xff]   ;;  %v4133_v61 = vld [vmem:[%s4894_s3 + $0x28] sm:$0xff]   ;;  %v2799_v45 = vunpack.c.l.bf16 %v4172_v30  ;;  %v2804_v18 = vunpack.c.h.bf16 %v4181_v10  ;;  %v1047_v10 = vmul.f32 %v2767_v62, %v3448_v12 }
 0x18b   :  { %v2776_v33 = vunpack.c.h.bf16 %v4128_v46  ;;  %v2775_v37 = vunpack.c.l.bf16 %v4128_v46  ;;  %v2780_v5 = vunpack.c.h.bf16 %v4133_v61  ;;  %v2779_v38 = vunpack.c.l.bf16 %v4133_v61  ;;  %v1285_v12 = vld [vmem:[%s4892_s1 + $0x390] sm:$0xff]  ;;  %2646 = vmatprep.mubr.bf16.mxu1 %v2564_v40 }
 0x18c   :  { %v2783_v46 = vunpack.c.l.bf16 %v4141_v22  ;;  %v2792_v61 = vunpack.c.h.bf16 %v4162_v25  ;;  %v2800_v25 = vunpack.c.h.bf16 %v4172_v30  ;;  %v1237_v30 = vld [vmem:[%s4892_s1 + $0x210] sm:$0xff]  ;;  %v4257_v4 = vmul.f32 %v2771_v54, %v3458_v16 }
 0x18d   :  { %v4148_v42 = vpop.permute.xlu1 %1336  ;;  %v4150_v41 = vpop.permute.xlu0 %1331  ;;  %v4260_v7 = vmul.f32 %v2776_v33, %v3466_v19  ;;  %v4263_v14 = vmul.f32 %v2775_v37, %v3468_v20  ;;  %v4280_v16 = vmul.f32 %v2779_v38, %v3478_v24  ;;  %v1059_v37 = vmul.f32 %v2791_v60, %v3508_v36  ;;  %v1269_v36 = vld [vmem:[%s4892_s1 + $0x310] sm:$0xff]  ;;  %v5024_v60 = vld [vmem:[#allocation8_spill] sm:$0xff] }
 0x18e   :  { %5015 = vst [vmem:[#allocation121_spill] sm:$0xff] %v4148_v42  ;;  %5016 = vst [vmem:[#allocation122_spill] sm:$0xff] %v4150_v41  ;;  %1786 = vperm.xlu1 %3168, %v1268_v49   ;;  %1781 = vperm.xlu0 %3167, %v1267_v17   ;;  %v1253_v17 = vld [vmem:[%s4892_s1 + $0x290] sm:$0xff]  ;;  %v2784_v49 = vunpack.c.h.bf16 %v4141_v22  ;;  %v2788_v42 = vunpack.c.h.bf16 %v4146_v21  ;;  %v4197_v41 = vld [vmem:[%s4894_s3 + $0x60] sm:$0xff]   ;;  %v2796_v22 = vunpack.c.h.bf16 %v4167_v9  ;;  %v2795_v21 = vunpack.c.l.bf16 %v4167_v9 }
 0x18f   :  { %v2808_v48 = vunpack.c.h.bf16 %v4197_v41  ;;  %v2807_v47 = vunpack.c.l.bf16 %v4197_v41  ;;  %v1238_v9 = vld [vmem:[%s4892_s1 + $0x218] sm:$0xff]  ;;  %v1045_v41 = vmul.f32 %v2763_v29, %v3426_v3  ;;  %v4254_v3 = vmul.f32 %v2772_v26, %v3456_v15  ;;  %v5026_v33 = vld [vmem:[#allocation10_spill] sm:$0xff] }
 0x190   :  { %v4277_v15 = vmul.f32 %v2780_v5, %v3476_v23  ;;  %v4283_v19 = vmul.f32 %v2784_v49, %v3486_v27  ;;  %v4286_v20 = vmul.f32 %v2783_v46, %v3488_v28  ;;  %v4292_v29 = vmul.f32 %v2787_v63, %v3498_v32  ;;  %v5019_v28 = vld [vmem:[#allocation5_spill] sm:$0xff]  ;;  %v5020_v32 = vld [vmem:[#allocation6_spill] sm:$0xff] }
 0x191   :  { %v4218_v55 = vpop.permute.xlu1 %1346  ;;  %v4220_v52 = vpop.permute.xlu0 %1341  ;;  %v1939_v23 = vadd.f32 %v4068_v2, %v1043_v44  ;;  %v1060_v27 = vmul.f32 %v2792_v61, %v3506_v35  ;;  %v4303_v26 = vmul.f32 %v2796_v22, %v5019_v28  ;;  %v1061_v63 = vmul.f32 %v2795_v21, %v5020_v32  ;;  %v5022_v44 = vld [vmem:[#allocation115_spill] sm:$0xff]  ;;  %v5023_v2 = vld [vmem:[#allocation116_spill] sm:$0xff] }
 0x192   :  { %5017 = vst [vmem:[#allocation123_spill] sm:$0xff] %v4218_v55  ;;  %5018 = vst [vmem:[#allocation124_spill] sm:$0xff] %v4220_v52  ;;  %1716 = vperm.xlu1 %3168, %v1254_v6   ;;  %1711 = vperm.xlu0 %3167, %v1253_v17   ;;  %v2812_v55 = vunpack.c.h.bf16 %v4202_v0  ;;  %v2811_v52 = vunpack.c.l.bf16 %v4202_v0  ;;  %v2816_v6 = vunpack.c.h.bf16 %v4211_v59  ;;  %v1044_v0 = vmul.f32 %v2760_v13, %v3438_v8  ;;  %v4268_v8 = vld [vmem:[%s4894_s3 + $0x80] sm:$0xff]   ;;  %v1270_v35 = vld [vmem:[%s4892_s1 + $0x318] sm:$0xff] }
 0x193   :  { %v2819_v17 = vunpack.c.l.bf16 %v4216_v56  ;;  %v4289_v13 = vmul.f32 %v2788_v42, %v3496_v31  ;;  %v2824_v31 = vunpack.c.h.bf16 %v4268_v8  ;;  %v5021_v42 = vld [vmem:[#allocation7_spill] sm:$0xff]  ;;  %v1942_v58 = vadd.f32 %v5022_v44, %v1046_v50  ;;  %v5034_v32 = vld [vmem:[#allocation16_spill] sm:$0xff] }
 0x194   :  { %v1940_v40 = vadd.f32 %v4066_v1, %v1044_v0  ;;  %v4308_v57 = vmul.f32 %v2800_v25, %v5021_v42  ;;  %v1941_v1 = vadd.f32 %v5023_v2, %v1045_v41  ;;  %v4319_v62 = vmul.f32 %v2799_v45, %v5024_v60  ;;  %v5027_v50 = vld [vmem:[#allocation11_spill] sm:$0xff]  ;;  %v5029_v25 = vld [vmem:[#allocation120_spill] sm:$0xff] }
 0x195   :  { %v4243_v53 = vpop.permute.xlu1 %1356  ;;  %v4245_v43 = vpop.permute.xlu0 %1351  ;;  %v4322_v54 = vmul.f32 %v2804_v18, %v5025_v34  ;;  %v4325_v38 = vmul.f32 %v2803_v51, %v5026_v33  ;;  %v4328_v49 = vmul.f32 %v2808_v48, %v5027_v50  ;;  %v2195_v61 = vmul.f32 0.2, %v1939_v23  ;;  %v5028_v22 = vld [vmem:[#allocation119_spill] sm:$0xff]  ;;  %v5030_v45 = vld [vmem:[#allocation12_spill] sm:$0xff]  ;;  %v5031_v18 = vld [vmem:[#allocation13_spill] sm:$0xff] }
 0x196   :  { %1636 = vperm.xlu1 %3168, %v1238_v9   ;;  %1631 = vperm.xlu0 %3167, %v1237_v30   ;;  %v2196_v46 = vmul.f32 0.2, %v1940_v40  ;;  %v1944_v21 = vadd.f32 %v5028_v22, %v1048_v39  ;;  %v1943_v9 = vadd.f32 %v5029_v25, %v1047_v10  ;;  %v4337_v0 = vmul.f32 %v2807_v47, %v5030_v45  ;;  %v5032_v48 = vld [vmem:[#allocation14_spill] sm:$0xff]  ;;  %v5033_v39 = vld [vmem:[#allocation15_spill] sm:$0xff] }
 0x197   :  { %vm2067_vm0 = vcmp.ge.f32.partialorder %v1939_v23, 0.0  ;;  %vm2068_vm1 = vcmp.ge.f32.partialorder %v1940_v40, 0.0  ;;  %v4343_v51 = vmul.f32 %v2811_v52, %v5032_v48  ;;  %v2198_v10 = vmul.f32 0.2, %v1942_v58  ;;  %v1256_v47 = vld [vmem:[%s4892_s1 + $0x2a8] sm:$0xff] }
 0x198   :  { %v2197_v28 = vmul.f32 0.2, %v1941_v1  ;;  %v5035_v42 = vunpack.c.l.bf16 %v4211_v59  ;;  %v5036_v52 = vld [vmem:[#allocation17_spill] sm:$0xff]  ;;  %v5037_v2 = vunpack.c.h.bf16 %v4216_v56  ;;  %vm2070_vm2 = vcmp.ge.f32.partialorder %v1942_v58, 0.0  ;;  %v5038_v25 = vld [vmem:[#allocation18_spill] sm:$0xff] }
 0x199   :  { %v4296_v5 = vpop.permute.xlu1 %1366  ;;  %v4298_v24 = vpop.permute.xlu0 %1361  ;;  %vm2069_vm3 = vcmp.ge.f32.partialorder %v1941_v1, 0.0  ;;  %v4365_v33 = vsel %vm2067_vm0, %v1939_v23, %v2195_v61  ;;  %v2324_v50 = vsel %vm2068_vm1, %v1940_v40, %v2196_v46  ;;  %vm2072_vm4 = vcmp.ge.f32.partialorder %v1944_v21, 0.0  ;;  %v1240_v23 = vld [vmem:[%s4892_s1 + $0x228] sm:$0xff]  ;;  %v1239_v40 = vld [vmem:[%s4892_s1 + $0x220] sm:$0xff] }
 0x19a   :  { %1876 = vperm.xlu1 %3168, %v1286_v11   ;;  %1871 = vperm.xlu0 %3167, %v1285_v12   ;;  %v4340_v11 = vmul.f32 %v2812_v55, %v5031_v18  ;;  %v4346_v12 = vmul.f32 %v2816_v6, %v5033_v39  ;;  %v1255_v55 = vld [vmem:[%s4892_s1 + $0x2a0] sm:$0xff]  ;;  %v4357_v44 = vmul.f32 %v5035_v42, %v5034_v32  ;;  %vm2071_vm5 = vcmp.ge.f32.partialorder %v1943_v9, 0.0  ;;  %v5039_v18 = vld [vmem:[#allocation122_spill] sm:$0xff] }
 0x19b   :  { %v4362_v6 = vmul.f32 %v5037_v2, %v5036_v52  ;;  %v4371_v45 = vmul.f32 %v2819_v17, %v5038_v25  ;;  %v1945_v48 = vadd.f32 %v5039_v18, %v4257_v4  ;;  %v5040_v4 = vld [vmem:[#allocation121_spill] sm:$0xff]  ;;  %v5042_v18 = vld [vmem:[#allocation124_spill] sm:$0xff] }
 0x19c   :  { %v1946_v46 = vadd.f32 %v5040_v4, %v4254_v3 }
 0x19d   :  { %v4332_v30 = vpop.permute.xlu1 %1376  ;;  %v4334_v41 = vpop.permute.xlu0 %1371  ;;  %vm2073_vm8 = vcmp.ge.f32.partialorder %v1945_v48, 0.0  ;;  %v2201_v3 = vmul.f32 0.2, %v1945_v48 }
 0x19e   :  { %1796 = vperm.xlu1 %3168, %v1270_v35   ;;  %1791 = vperm.xlu0 %3167, %v1269_v36   ;;  %v2200_v35 = vmul.f32 0.2, %v1944_v21  ;;  %v2199_v36 = vmul.f32 0.2, %v1943_v9  ;;  %v2202_v2 = vmul.f32 0.2, %v1946_v46 }
 0x19f   :  { %vm2074_vm11 = vcmp.ge.f32.partialorder %v1946_v46, 0.0 }
 0x1a0   :  { %v4435_v4 = vsel %vm2074_vm11, %v1946_v46, %v2202_v2 }
 0x1a1   :  { %v1387_v60 = vpop.permute.xlu1 %1386  ;;  %v1382_v34 = vpop.permute.xlu0 %1381 }
 0x1a2   :  { %v1956_v59 = vadd.f32 %v1387_v60, %v1060_v27  ;;  %v1955_v22 = vadd.f32 %v1382_v34, %v1059_v37  ;;  %1726 = vperm.xlu1 %3168, %v1256_v47   ;;  %1721 = vperm.xlu0 %3167, %v1255_v55   ;;  %v4382_v27 = vsel %vm2069_vm3, %v1941_v1, %v2197_v28 }
 0x1a3   :  { %v4385_v37 = vsel %vm2070_vm2, %v1942_v58, %v2198_v10  ;;  %v2451_v47 = vpack.c.bf16 %v2324_v50, %v4365_v33  ;;  %v4391_v55 = vsel %vm2071_vm5, %v1943_v9, %v2199_v36  ;;  %v4394_v1 = vsel %vm2072_vm4, %v1944_v21, %v2200_v35  ;;  %v1288_v9 = vld [vmem:[%s4892_s1 + $0x3a8] sm:$0xff]  ;;  %v1287_v21 = vld [vmem:[%s4892_s1 + $0x3a0] sm:$0xff]  ;;  %v5041_v35 = vld [vmem:[#allocation123_spill] sm:$0xff] }
 0x1a4   :  { %vm2083_vm6 = vcmp.ge.f32.partialorder %v1955_v22, 0.0  ;;  %vm2084_vm7 = vcmp.ge.f32.partialorder %v1956_v59, 0.0  ;;  %v2211_v56 = vmul.f32 0.2, %v1955_v22  ;;  %v2212_v17 = vmul.f32 0.2, %v1956_v59 }
 0x1a5   :  { %v1397_v61 = vpop.permute.xlu1 %1396  ;;  %v1392_v39 = vpop.permute.xlu0 %1391  ;;  %v2823_v58 = vunpack.c.l.bf16 %v4268_v8  ;;  %v2452_v52 = vpack.c.bf16 %v4385_v37, %v4382_v27  ;;  %v4409_v36 = vadd.f32 %v5041_v35, %v4260_v7  ;;  %v2453_v50 = vpack.c.bf16 %v4394_v1, %v4391_v55  ;;  %v1272_v27 = vld [vmem:[%s4892_s1 + $0x328] sm:$0xff]  ;;  %v4484_v55 = vld [vmem:[%s4894_s3 + $0xc0] sm:$0xff]  }
 0x1a6   :  { %v1958_v10 = vadd.f32 %v1397_v61, %v4303_v26  ;;  %v1957_v28 = vadd.f32 %v1392_v39, %v1061_v63  ;;  %1646 = vperm.xlu1 %3168, %v1240_v23   ;;  %1641 = vperm.xlu0 %3167, %v1239_v40   ;;  %v2339_v32 = vsel %vm2083_vm6, %v1955_v22, %v2211_v56 }
 0x1a7   :  { %v2340_v42 = vsel %vm2084_vm7, %v1956_v59, %v2212_v17  ;;  %v1947_v23 = vadd.f32 %v5042_v18, %v4263_v14  ;;  %v4419_v7 = vadd.f32 %v4243_v53, %v4277_v15  ;;  %vm2076_vm14 = vcmp.ge.f32.partialorder %v4409_v36, 0.0  ;;  %v1290_v18 = vld [vmem:[%s4892_s1 + $0x3b8] sm:$0xff] }
 0x1a8   :  { %vm2086_vm9 = vcmp.ge.f32.partialorder %v1958_v10, 0.0  ;;  %v2214_v26 = vmul.f32 0.2, %v1958_v10  ;;  %vm2085_vm10 = vcmp.ge.f32.partialorder %v1957_v28, 0.0  ;;  %v2213_v63 = vmul.f32 0.2, %v1957_v28 }
 0x1a9   :  { %v1407_v60 = vpop.permute.xlu1 %1406  ;;  %v1402_v34 = vpop.permute.xlu0 %1401  ;;  %v2459_v33 = vpack.c.bf16 %v2340_v42, %v2339_v32  ;;  %v1949_v53 = vadd.f32 %v4245_v43, %v4280_v16  ;;  %v2204_v61 = vmul.f32 0.2, %v4409_v36  ;;  %vm2075_vm15 = vcmp.ge.f32.partialorder %v1947_v23, 0.0  ;;  %v1258_v16 = vld [vmem:[%s4892_s1 + $0x2b8] sm:$0xff] }
 0x1aa   :  { %v1960_v59 = vadd.f32 %v1407_v60, %v4308_v57  ;;  %v1959_v22 = vadd.f32 %v1402_v34, %v4319_v62  ;;  %1886 = vperm.xlu1 %3168, %v1288_v9   ;;  %1881 = vperm.xlu0 %3167, %v1287_v21   ;;  %v2341_v25 = vsel %vm2085_vm10, %v1957_v28, %v2213_v63  ;;  %v1271_v57 = vld [vmem:[%s4892_s1 + $0x320] sm:$0xff]  ;;  %vm2078_vm0 = vcmp.ge.f32.partialorder %v4419_v7, 0.0 }
 0x1ab   :  { %3076 = vmatprep.subr.bf16.mxu0 %v2459_v33  ;;  %v2342_v40 = vsel %vm2086_vm9, %v1958_v10, %v2214_v26  ;;  %v4429_v62 = vsel %vm2073_vm8, %v1945_v48, %v2201_v3  ;;  %v2203_v10 = vmul.f32 0.2, %v1947_v23  ;;  %v2206_v28 = vmul.f32 0.2, %v4419_v7 }
 0x1ac   :  { %vm2088_vm12 = vcmp.ge.f32.partialorder %v1960_v59, 0.0  ;;  %v2216_v14 = vmul.f32 0.2, %v1960_v59  ;;  %vm2087_vm13 = vcmp.ge.f32.partialorder %v1959_v22, 0.0  ;;  %v2215_v37 = vmul.f32 0.2, %v1959_v22  ;;  %3077 = vmatpush3.bf16.msra.mxu0 %v2451_v47 }
 0x1ad   :  { %v1417_v15 = vpop.permute.xlu1 %1416  ;;  %v1412_v56 = vpop.permute.xlu0 %1411  ;;  %v2460_v17 = vpack.c.bf16 %v2342_v40, %v2341_v25  ;;  %v2205_v32 = vmul.f32 0.2, %v1949_v53  ;;  %v4451_v3 = vadd.f32 %v4296_v5, %v4283_v19  ;;  %vm2077_vm3 = vcmp.ge.f32.partialorder %v1949_v53, 0.0  ;;  %v1242_v19 = vld [vmem:[%s4892_s1 + $0x238] sm:$0xff]  ;;  %v1241_v5 = vld [vmem:[%s4892_s1 + $0x230] sm:$0xff] }
 0x1ae   :  { %v1962_v48 = vadd.f32 %v1417_v15, %v4322_v54  ;;  %v1961_v39 = vadd.f32 %v1412_v56, %v4325_v38  ;;  %1806 = vperm.xlu1 %3168, %v1272_v27   ;;  %1801 = vperm.xlu0 %3167, %v1271_v57   ;;  %v2343_v47 = vsel %vm2087_vm13, %v1959_v22, %v2215_v37  ;;  %v1257_v54 = vld [vmem:[%s4892_s1 + $0x2b0] sm:$0xff]  ;;  %v2855_v56 = vunpack.c.l.bf16 %v4484_v55 }
 0x1af   :  { %3078 = vmatprep.subr.bf16.mxu0 %v2460_v17  ;;  %v2344_v43 = vsel %vm2088_vm12, %v1960_v59, %v2216_v14  ;;  %v2332_v59 = vsel %vm2076_vm14, %v4409_v36, %v2204_v61  ;;  %v4474_v22 = vsel %vm2077_vm3, %v1949_v53, %v2205_v32  ;;  %v4479_v25 = vsel %vm2078_vm0, %v4419_v7, %v2206_v28  ;;  %v5043_v32 = vld [vmem:[#allocation20_spill] sm:$0xff] }
 0x1b0   :  { %vm2090_vm1 = vcmp.ge.f32.partialorder %v1962_v48, 0.0  ;;  %v2218_v38 = vmul.f32 0.2, %v1962_v48  ;;  %vm2089_vm2 = vcmp.ge.f32.partialorder %v1961_v39, 0.0  ;;  %v2217_v46 = vmul.f32 0.2, %v1961_v39  ;;  %3079 = vmatpush3.bf16.msra.mxu0 %v2452_v52 }
 0x1b1   :  { %v1427_v42 = vpop.permute.xlu1 %1426  ;;  %v1422_v9 = vpop.permute.xlu0 %1421  ;;  %v2461_v21 = vpack.c.bf16 %v2344_v43, %v2343_v47  ;;  %v1951_v52 = vadd.f32 %v4298_v24, %v4286_v20  ;;  %vm2080_vm6 = vcmp.ge.f32.partialorder %v4451_v3, 0.0  ;;  %v1954_v57 = vadd.f32 %v4332_v30, %v4289_v13  ;;  %v1274_v13 = vld [vmem:[%s4892_s1 + $0x338] sm:$0xff] }
 0x1b2   :  { %v1964_v26 = vadd.f32 %v1427_v42, %v4328_v49  ;;  %v1963_v63 = vadd.f32 %v1422_v9, %v4337_v0  ;;  %1736 = vperm.xlu1 %3168, %v1258_v16   ;;  %1731 = vperm.xlu0 %3167, %v1257_v54   ;;  %v2345_v2 = vsel %vm2089_vm2, %v1961_v39, %v2217_v46  ;;  %v2856_v42 = vunpack.c.h.bf16 %v4484_v55  ;;  %v5044_v9 = vld [vmem:[#allocation36_spill] sm:$0xff]  ;;  %v5045_v55 = vld [vmem:[#allocation19_spill] sm:$0xff] }
 0x1b3   :  { %3080 = vmatprep.subr.bf16.mxu0 %v2461_v21  ;;  %v2346_v35 = vsel %vm2090_vm1, %v1962_v48, %v2218_v38  ;;  %v2454_v49 = vpack.c.bf16 %v4435_v4, %v4429_v62  ;;  %v2331_v0 = vsel %vm2075_vm15, %v1947_v23, %v2203_v10  ;;  %v2208_v23 = vmul.f32 0.2, %v4451_v3 }
 0x1b4   :  { %vm2092_vm4 = vcmp.ge.f32.partialorder %v1964_v26, 0.0  ;;  %v2220_v60 = vmul.f32 0.2, %v1964_v26  ;;  %vm2091_vm5 = vcmp.ge.f32.partialorder %v1963_v63, 0.0  ;;  %v2219_v20 = vmul.f32 0.2, %v1963_v63  ;;  %3081 = vmatpush3.bf16.msra.mxu0 %v2453_v50 }
 0x1b5   :  { %v1437_v24 = vpop.permute.xlu1 %1436  ;;  %v1432_v34 = vpop.permute.xlu0 %1431  ;;  %v2462_v33 = vpack.c.bf16 %v2346_v35, %v2345_v2  ;;  %vm2079_vm7 = vcmp.ge.f32.partialorder %v1951_v52, 0.0  ;;  %v2207_v7 = vmul.f32 0.2, %v1951_v52  ;;  %v1953_v62 = vadd.f32 %v4334_v41, %v4292_v29  ;;  %v1273_v29 = vld [vmem:[%s4892_s1 + $0x330] sm:$0xff] }
 0x1b6   :  { %v1966_v1 = vadd.f32 %v1437_v24, %v4340_v11  ;;  %v1965_v50 = vadd.f32 %v1432_v34, %v4343_v51  ;;  %1656 = vperm.xlu1 %3168, %v1242_v19   ;;  %1651 = vperm.xlu0 %3167, %v1241_v5   ;;  %v2347_v36 = vsel %vm2091_vm5, %v1963_v63, %v2219_v20  ;;  %v1289_v11 = vld [vmem:[%s4892_s1 + $0x3b0] sm:$0xff]  ;;  %vm2082_vm12 = vcmp.ge.f32.partialorder %v1954_v57, 0.0  ;;  %v1259_v63 = vld [vmem:[%s4892_s1 + $0x2c0] sm:$0xff] }
 0x1b7   :  { %3082 = vmatprep.subr.bf16.mxu0 %v2462_v33  ;;  %v2348_v40 = vsel %vm2092_vm4, %v1964_v26, %v2220_v60  ;;  %v2455_v15 = vpack.c.bf16 %v2332_v59, %v2331_v0  ;;  %v2456_v30 = vpack.c.bf16 %v4479_v25, %v4474_v22  ;;  %v2335_v41 = vsel %vm2079_vm7, %v1951_v52, %v2207_v7  ;;  %v3037_v26 = vld [vmem:[%s4894_s3 + $0xc8] sm:$0xff]  }
 0x1b8   :  { %vm2094_vm8 = vcmp.ge.f32.partialorder %v1966_v1, 0.0  ;;  %v2222_v51 = vmul.f32 0.2, %v1966_v1  ;;  %vm2093_vm9 = vcmp.ge.f32.partialorder %v1965_v50, 0.0  ;;  %v2221_v27 = vmul.f32 0.2, %v1965_v50  ;;  %3083 = vmatpush3.bf16.msra.mxu0 %v2454_v49 }
 0x1b9   :  { %v1447_v14 = vpop.permute.xlu1 %1446  ;;  %v1442_v37 = vpop.permute.xlu0 %1441  ;;  %v2463_v53 = vpack.c.bf16 %v2348_v40, %v2347_v36  ;;  %v2210_v47 = vmul.f32 0.2, %v1954_v57  ;;  %v2209_v10 = vmul.f32 0.2, %v1953_v62  ;;  %vm2081_vm13 = vcmp.ge.f32.partialorder %v1953_v62, 0.0  ;;  %v3029_v60 = vld [vmem:[%s4894_s3 + $0x88] sm:$0xff]  }
 0x1ba   :  { %v1968_v17 = vadd.f32 %v1447_v14, %v4346_v12  ;;  %v1967_v4 = vadd.f32 %v1442_v37, %v4357_v44  ;;  %1896 = vperm.xlu1 %3168, %v1290_v18   ;;  %1891 = vperm.xlu0 %3167, %v1289_v11   ;;  %v2349_v61 = vsel %vm2093_vm9, %v1965_v50, %v2221_v27  ;;  %v2860_v33 = vunpack.c.h.bf16 %v3037_v26  ;;  %v1244_v25 = vld [vmem:[%s4892_s1 + $0x248] sm:$0xff]  ;;  %v5046_v50 = vld [vmem:[#allocation35_spill] sm:$0xff] }
 0x1bb   :  { %3084 = vmatprep.subr.bf16.mxu0 %v2463_v53  ;;  %v2350_v48 = vsel %vm2094_vm8, %v1966_v1, %v2222_v51  ;;  %v2336_v12 = vsel %vm2080_vm6, %v4451_v3, %v2208_v23  ;;  %v1075_v3 = vmul.f32 %v2823_v58, %v5043_v32  ;;  %v1091_v21 = vmul.f32 %v2855_v56, %v5044_v9  ;;  %v1243_v23 = vld [vmem:[%s4892_s1 + $0x240] sm:$0xff] }
 0x1bc   :  { %vm2096_vm10 = vcmp.ge.f32.partialorder %v1968_v17, 0.0  ;;  %v2224_v44 = vmul.f32 0.2, %v1968_v17  ;;  %vm2095_vm11 = vcmp.ge.f32.partialorder %v1967_v4, 0.0  ;;  %v2223_v39 = vmul.f32 0.2, %v1967_v4  ;;  %3085 = vmatpush3.bf16.msra.mxu0 %v2455_v15 }
 0x1bd   :  { %v1457_v43 = vpop.permute.xlu1 %1456  ;;  %v1452_v16 = vpop.permute.xlu0 %1451  ;;  %v2464_v54 = vpack.c.bf16 %v2350_v48, %v2349_v61  ;;  %v2457_v5 = vpack.c.bf16 %v2336_v12, %v2335_v41  ;;  %v2337_v49 = vsel %vm2081_vm13, %v1953_v62, %v2209_v10  ;;  %v2338_v0 = vsel %vm2082_vm12, %v1954_v57, %v2210_v47  ;;  %v3038_v62 = vld [vmem:[%s4894_s3 + $0xd0] sm:$0xff]   ;;  %v5047_v37 = vld [vmem:[#allocation37_spill] sm:$0xff] }
 0x1be   :  { %v1970_v38 = vadd.f32 %v1457_v43, %v4362_v6  ;;  %v1969_v46 = vadd.f32 %v1452_v16, %v4371_v45  ;;  %1816 = vperm.xlu1 %3168, %v1274_v13   ;;  %1811 = vperm.xlu0 %3167, %v1273_v29   ;;  %v2351_v28 = vsel %vm2095_vm11, %v1967_v4, %v2223_v39  ;;  %v1260_v45 = vld [vmem:[%s4892_s1 + $0x2c8] sm:$0xff]  ;;  %v2859_v59 = vunpack.c.l.bf16 %v3037_v26  ;;  %v1291_v4 = vld [vmem:[%s4892_s1 + $0x3c0] sm:$0xff] }
 0x1bf   :  { %3086 = vmatprep.subr.bf16.mxu0 %v2464_v54  ;;  %v2352_v6 = vsel %vm2096_vm10, %v1968_v17, %v2224_v44  ;;  %v1076_v1 = vmul.f32 %v2824_v31, %v5045_v55  ;;  %v1092_v36 = vmul.f32 %v2856_v42, %v5046_v50  ;;  %v2828_v7 = vunpack.c.h.bf16 %v3029_v60  ;;  %v5048_v15 = vld [vmem:[#allocation38_spill] sm:$0xff]  ;;  %v5050_v48 = vld [vmem:[#allocation117_spill] sm:$0xff] }
 0x1c0   :  { %vm2098_vm14 = vcmp.ge.f32.partialorder %v1970_v38, 0.0  ;;  %v2226_v58 = vmul.f32 0.2, %v1970_v38  ;;  %vm2097_vm15 = vcmp.ge.f32.partialorder %v1969_v46, 0.0  ;;  %v2225_v2 = vmul.f32 0.2, %v1969_v46  ;;  %3087 = vmatpush3.bf16.msra.mxu0 %v2456_v30 }
 0x1c1   :  { %v1542_v52 = vpop.permute.xlu1 %1541  ;;  %v1462_v35 = vpop.permute.xlu0 %1461  ;;  %v2465_v19 = vpack.c.bf16 %v2352_v6, %v2351_v28  ;;  %v2458_v57 = vpack.c.bf16 %v2338_v0, %v2337_v49  ;;  %v2827_v14 = vunpack.c.l.bf16 %v3029_v60  ;;  %v1094_v53 = vmul.f32 %v2860_v33, %v5047_v37  ;;  %v1292_v17 = vld [vmem:[%s4892_s1 + $0x3c8] sm:$0xff]  ;;  %v1275_v26 = vld [vmem:[%s4892_s1 + $0x340] sm:$0xff]  ;;  %v5053_v60 = vld [vmem:[#allocation39_spill] sm:$0xff] }
 0x1c2   :  { %v1987_v20 = vadd.f32 %v1542_v52, %v1091_v21  ;;  %v1971_v24 = vadd.f32 %v1462_v35, %v1075_v3  ;;  %1746 = vperm.xlu1 %3168, %v1260_v45   ;;  %1741 = vperm.xlu0 %3167, %v1259_v63   ;;  %v2353_v34 = vsel %vm2097_vm15, %v1969_v46, %v2225_v2  ;;  %v5049_v61 = vld [vmem:[#allocation118_spill] sm:$0xff]  ;;  %v5051_v41 = vld [vmem:[#allocation21_spill] sm:$0xff]  ;;  %v2864_v44 = vunpack.c.h.bf16 %v3038_v62  ;;  %v3039_v35 = vld [vmem:[%s4894_s3 + $0xd8] sm:$0xff]  }
 0x1c3   :  { %3088 = vmatprep.subr.bf16.mxu0 %v2465_v19  ;;  %v2354_v22 = vsel %vm2098_vm14, %v1970_v38, %v2226_v58  ;;  %v1093_v56 = vmul.f32 %v2859_v59, %v5048_v15  ;;  %v4563_v13 = vrot.slane %v5050_v48, %v5049_v61  ;;  %v1078_v12 = vmul.f32 %v2828_v7, %v5051_v41  ;;  %v5052_v28 = vld [vmem:[#allocation22_spill] sm:$0xff]  ;;  %v1262_v59 = vld [vmem:[%s4892_s1 + $0x2d8] sm:$0xff] }
 0x1c4   :  { %3089 = vmatpush3.bf16.msra.mxu0 %v2457_v5  ;;  %v2466_v18 = vpack.c.bf16 %v2354_v22, %v2353_v34  ;;  %v2243_v40 = vmul.f32 0.2, %v1987_v20  ;;  %v2227_v11 = vmul.f32 0.2, %v1971_v24  ;;  %vm2115_vm0 = vcmp.ge.f32.partialorder %v1987_v20, 0.0  ;;  %v3030_v3 = vld [vmem:[%s4894_s3 + $0x90] sm:$0xff]  }
 0x1c5   :  { %v1467_v51 = vpop.permute.xlu1 %1466  ;;  %v1547_v27 = vpop.permute.xlu0 %1546  ;;  %vm2099_vm1 = vcmp.ge.f32.partialorder %v1971_v24, 0.0  ;;  %v1077_v32 = vmul.f32 %v2827_v14, %v5052_v28  ;;  %v2863_v42 = vunpack.c.l.bf16 %v3038_v62  ;;  %v1276_v21 = vld [vmem:[%s4892_s1 + $0x348] sm:$0xff]  ;;  %v2832_v52 = vunpack.c.h.bf16 %v3030_v3  ;;  %v1261_v22 = vld [vmem:[%s4892_s1 + $0x2d0] sm:$0xff]  ;;  %v5056_v62 = vld [vmem:[#allocation24_spill] sm:$0xff] }
 0x1c6   :  { %v1972_v8 = vadd.f32 %v1467_v51, %v1076_v1  ;;  %v1988_v31 = vadd.f32 %v1547_v27, %v1092_v36  ;;  %3090 = vmatprep.subr.bf16.mxu0 %v2466_v18  ;;  %1666 = vperm.xlu1 %3168, %v1244_v25   ;;  %v2371_v10 = vsel %vm2115_vm0, %v1987_v20, %v2243_v40  ;;  %v2831_v0 = vunpack.c.l.bf16 %v3030_v3  ;;  %v5055_v27 = vld [vmem:[#allocation23_spill] sm:$0xff] }
 0x1c7   :  { %1661 = vperm.xlu0 %3167, %v1243_v23   ;;  %v2355_v43 = vsel %vm2099_vm1, %v1971_v24, %v2227_v11  ;;  %v1096_v20 = vmul.f32 %v2864_v44, %v5053_v60  ;;  %v5054_v24 = vld [vmem:[#allocation40_spill] sm:$0xff]  ;;  %v2868_v1 = vunpack.c.h.bf16 %v3039_v35 }
 0x1c8   :  { %v2228_v29 = vmul.f32 0.2, %v1972_v8  ;;  %v2244_v30 = vmul.f32 0.2, %v1988_v31  ;;  %3091 = vmatpush3.bf16.msra.mxu0 %v2458_v57  ;;  %vm2116_vm2 = vcmp.ge.f32.partialorder %v1988_v31, 0.0  ;;  %vm2100_vm3 = vcmp.ge.f32.partialorder %v1972_v8, 0.0 }
 0x1c9   :  { %v1557_v39 = vpop.permute.xlu1 %1556  ;;  %v1552_v47 = vpop.permute.xlu0 %1551  ;;  %v1095_v34 = vmul.f32 %v2863_v42, %v5054_v24  ;;  %v3031_v23 = vld [vmem:[%s4894_s3 + $0x98] sm:$0xff]   ;;  %v1080_v57 = vmul.f32 %v2832_v52, %v5055_v27  ;;  %v5060_v52 = vld [vmem:[#allocation26_spill] sm:$0xff] }
 0x1ca   :  { %v1990_v16 = vadd.f32 %v1557_v39, %v1094_v53  ;;  %v1989_v54 = vadd.f32 %v1552_v47, %v1093_v56  ;;  %1906 = vperm.xlu1 %3168, %v1292_v17   ;;  %v2372_v38 = vsel %vm2116_vm2, %v1988_v31, %v2244_v30  ;;  %v2356_v46 = vsel %vm2100_vm3, %v1972_v8, %v2228_v29  ;;  %v1246_v37 = vld [vmem:[%s4892_s1 + $0x258] sm:$0xff]  ;;  %v1245_v53 = vld [vmem:[%s4892_s1 + $0x250] sm:$0xff]  ;;  %v3040_v29 = vld [vmem:[%s4894_s3 + $0xe0] sm:$0xff]  }
 0x1cb   :  { %1901 = vperm.xlu0 %3167, %v1291_v4   ;;  %v2475_v9 = vpack.c.bf16 %v2372_v38, %v2371_v10  ;;  %v2467_v6 = vpack.c.bf16 %v2356_v46, %v2355_v43  ;;  %2607 = vmatmul.mubr.bf16.vlgmr.msra.gmra.mrb[0].mxu0 %v4563_v13  ;;  %v1079_v8 = vmul.f32 %v2831_v0, %v5056_v62  ;;  %v2867_v31 = vunpack.c.l.bf16 %v3039_v35  ;;  %v5057_v47 = vld [vmem:[#allocation41_spill] sm:$0xff]  ;;  %v5058_v43 = vld [vmem:[#allocation42_spill] sm:$0xff]  ;;  %v1294_v38 = vld [vmem:[%s4892_s1 + $0x3d8] sm:$0xff] }
 0x1cc   :  { %vm2118_vm4 = vcmp.ge.f32.partialorder %v1990_v16, 0.0  ;;  %v2246_v45 = vmul.f32 0.2, %v1990_v16  ;;  %vm2117_vm5 = vcmp.ge.f32.partialorder %v1989_v54, 0.0  ;;  %v2245_v63 = vmul.f32 0.2, %v1989_v54 }
 0x1cd   :  { %v1477_v58 = vpop.permute.xlu1 %1476  ;;  %v1472_v2 = vpop.permute.xlu0 %1471  ;;  %3098 = vmatprep.subr.bf16.mxu1 %v2475_v9  ;;  %v2836_v17 = vunpack.c.h.bf16 %v3031_v23  ;;  %v2835_v39 = vunpack.c.l.bf16 %v3031_v23  ;;  %v1098_v10 = vmul.f32 %v2868_v1, %v5057_v47  ;;  %v1293_v46 = vld [vmem:[%s4892_s1 + $0x3d0] sm:$0xff]  ;;  %v2872_v3 = vunpack.c.h.bf16 %v3040_v29  ;;  %v5062_v23 = vld [vmem:[#allocation44_spill] sm:$0xff] }
 0x1ce   :  { %v1974_v19 = vadd.f32 %v1477_v58, %v1078_v12  ;;  %v1973_v5 = vadd.f32 %v1472_v2, %v1077_v32  ;;  %1826 = vperm.xlu1 %3168, %v1276_v21   ;;  %3099 = vmatpush3.bf16.msra.mxu1 %v2467_v6  ;;  %v2373_v49 = vsel %vm2117_vm5, %v1989_v54, %v2245_v63  ;;  %v3032_v21 = vld [vmem:[%s4894_s3 + $0xa0] sm:$0xff]   ;;  %v1277_v0 = vld [vmem:[%s4892_s1 + $0x350] sm:$0xff] }
 0x1cf   :  { %1821 = vperm.xlu0 %3167, %v1275_v26   ;;  %v2374_v33 = vsel %vm2118_vm4, %v1990_v16, %v2246_v45  ;;  %v1097_v16 = vmul.f32 %v2867_v31, %v5058_v43  ;;  %v5059_v58 = vld [vmem:[#allocation25_spill] sm:$0xff]  ;;  %v1081_v35 = vmul.f32 %v2835_v39, %v5060_v52  ;;  %v2840_v24 = vunpack.c.h.bf16 %v3032_v21 }
 0x1d0   :  { %vm2102_vm6 = vcmp.ge.f32.partialorder %v1974_v19, 0.0  ;;  %v2230_v25 = vmul.f32 0.2, %v1974_v19  ;;  %vm2101_vm7 = vcmp.ge.f32.partialorder %v1973_v5, 0.0  ;;  %v2229_v55 = vmul.f32 0.2, %v1973_v5 }
 0x1d1   :  { %v1567_v50 = vpop.permute.xlu1 %1566  ;;  %v1562_v36 = vpop.permute.xlu0 %1561  ;;  %v2476_v18 = vpack.c.bf16 %v2374_v33, %v2373_v49  ;;  %v1082_v2 = vmul.f32 %v2836_v17, %v5059_v58  ;;  %v1278_v49 = vld [vmem:[%s4892_s1 + $0x358] sm:$0xff] }
 0x1d2   :  { %v1992_v7 = vadd.f32 %v1567_v50, %v1096_v20  ;;  %v1991_v40 = vadd.f32 %v1562_v36, %v1095_v34  ;;  %1756 = vperm.xlu1 %3168, %v1262_v59   ;;  %v2357_v11 = vsel %vm2101_vm7, %v1973_v5, %v2229_v55  ;;  %v2358_v51 = vsel %vm2102_vm6, %v1974_v19, %v2230_v25  ;;  %v3041_v59 = vld [vmem:[%s4894_s3 + $0xe8] sm:$0xff]   ;;  %v5061_v36 = vld [vmem:[#allocation43_spill] sm:$0xff] }
 0x1d3   :  { %3100 = vmatprep.subr.bf16.mxu1 %v2476_v18  ;;  %1751 = vperm.xlu0 %3167, %v1261_v22   ;;  %v2468_v14 = vpack.c.bf16 %v2358_v51, %v2357_v11  ;;  %v2871_v19 = vunpack.c.l.bf16 %v3040_v29  ;;  %v2839_v50 = vunpack.c.l.bf16 %v3032_v21  ;;  %v1100_v18 = vmul.f32 %v2872_v3, %v5061_v36  ;;  %v1264_v11 = vld [vmem:[%s4892_s1 + $0x2e8] sm:$0xff]  ;;  %v1263_v51 = vld [vmem:[%s4892_s1 + $0x2e0] sm:$0xff]  ;;  %v5063_v17 = vld [vmem:[#allocation27_spill] sm:$0xff] }
 0x1d4   :  { %vm2120_vm8 = vcmp.ge.f32.partialorder %v1992_v7, 0.0  ;;  %v2248_v15 = vmul.f32 0.2, %v1992_v7  ;;  %vm2119_vm9 = vcmp.ge.f32.partialorder %v1991_v40, 0.0  ;;  %v2247_v56 = vmul.f32 0.2, %v1991_v40 }
 0x1d5   :  { %v1487_v4 = vpop.permute.xlu1 %1486  ;;  %v1482_v48 = vpop.permute.xlu0 %1481  ;;  %3101 = vmatpush3.bf16.msra.mxu1 %v2468_v14  ;;  %v2876_v62 = vunpack.c.h.bf16 %v3041_v59  ;;  %v3033_v14 = vld [vmem:[%s4894_s3 + $0xa8] sm:$0xff]  }
 0x1d6   :  { %v1976_v30 = vadd.f32 %v1487_v4, %v1080_v57  ;;  %v1975_v41 = vadd.f32 %v1482_v48, %v1079_v8  ;;  %1676 = vperm.xlu1 %3168, %v1246_v37   ;;  %v2375_v12 = vsel %vm2119_vm9, %v1991_v40, %v2247_v56  ;;  %v2376_v44 = vsel %vm2120_vm8, %v1992_v7, %v2248_v15  ;;  %v5064_v48 = vld [vmem:[#allocation28_spill] sm:$0xff]  ;;  %v5066_v21 = vld [vmem:[#allocation46_spill] sm:$0xff] }
 0x1d7   :  { %1671 = vperm.xlu0 %3167, %v1245_v53   ;;  %v2477_v54 = vpack.c.bf16 %v2376_v44, %v2375_v12  ;;  %v1099_v7 = vmul.f32 %v2871_v19, %v5062_v23  ;;  %v1084_v4 = vmul.f32 %v2840_v24, %v5063_v17  ;;  %v1083_v29 = vmul.f32 %v2839_v50, %v5064_v48  ;;  %v1248_v12 = vld [vmem:[%s4892_s1 + $0x268] sm:$0xff]  ;;  %v1247_v44 = vld [vmem:[%s4892_s1 + $0x260] sm:$0xff] }
 0x1d8   :  { %vm2104_vm10 = vcmp.ge.f32.partialorder %v1976_v30, 0.0  ;;  %v2232_v28 = vmul.f32 0.2, %v1976_v30  ;;  %vm2103_vm11 = vcmp.ge.f32.partialorder %v1975_v41, 0.0  ;;  %v2231_v32 = vmul.f32 0.2, %v1975_v41 }
 0x1d9   :  { %v1577_v42 = vpop.permute.xlu1 %1576  ;;  %v1572_v9 = vpop.permute.xlu0 %1571  ;;  %3102 = vmatprep.subr.bf16.mxu1 %v2477_v54  ;;  %v3042_v54 = vld [vmem:[%s4894_s3 + $0xf0] sm:$0xff]   ;;  %v2843_v3 = vunpack.c.l.bf16 %v3033_v14  ;;  %v5067_v24 = vld [vmem:[#allocation29_spill] sm:$0xff] }
 0x1da   :  { %v1994_v26 = vadd.f32 %v1577_v42, %v1098_v10  ;;  %v1993_v6 = vadd.f32 %v1572_v9, %v1097_v16  ;;  %1916 = vperm.xlu1 %3168, %v1294_v38   ;;  %v2359_v45 = vsel %vm2103_vm11, %v1975_v41, %v2231_v32  ;;  %v2360_v63 = vsel %vm2104_vm10, %v1976_v30, %v2232_v28  ;;  %v5065_v42 = vld [vmem:[#allocation45_spill] sm:$0xff] }
 0x1db   :  { %1911 = vperm.xlu0 %3167, %v1293_v46   ;;  %v2469_v5 = vpack.c.bf16 %v2360_v63, %v2359_v45  ;;  %v2875_v30 = vunpack.c.l.bf16 %v3041_v59  ;;  %v2844_v10 = vunpack.c.h.bf16 %v3033_v14  ;;  %v1102_v9 = vmul.f32 %v2876_v62, %v5065_v42  ;;  %v1296_v45 = vld [vmem:[%s4892_s1 + $0x3e8] sm:$0xff]  ;;  %v1295_v63 = vld [vmem:[%s4892_s1 + $0x3e0] sm:$0xff] }
 0x1dc   :  { %vm2122_vm12 = vcmp.ge.f32.partialorder %v1994_v26, 0.0  ;;  %v2250_v60 = vmul.f32 0.2, %v1994_v26  ;;  %vm2121_vm13 = vcmp.ge.f32.partialorder %v1993_v6, 0.0  ;;  %v2249_v20 = vmul.f32 0.2, %v1993_v6 }
 0x1dd   :  { %v1497_v34 = vpop.permute.xlu1 %1496  ;;  %v1492_v33 = vpop.permute.xlu0 %1491  ;;  %3103 = vmatpush3.bf16.msra.mxu1 %v2469_v5  ;;  %v2880_v52 = vunpack.c.h.bf16 %v3042_v54  ;;  %v3034_v5 = vld [vmem:[%s4894_s3 + $0xb0] sm:$0xff]   ;;  %v5070_v14 = vld [vmem:[#allocation48_spill] sm:$0xff] }
 0x1de   :  { %v1978_v22 = vadd.f32 %v1497_v34, %v1082_v2  ;;  %v1977_v25 = vadd.f32 %v1492_v33, %v1081_v35  ;;  %1836 = vperm.xlu1 %3168, %v1278_v49   ;;  %v2377_v55 = vsel %vm2121_vm13, %v1993_v6, %v2249_v20  ;;  %v2378_v1 = vsel %vm2122_vm12, %v1994_v26, %v2250_v60  ;;  %v5068_v33 = vld [vmem:[#allocation30_spill] sm:$0xff] }
 0x1df   :  { %1831 = vperm.xlu0 %3167, %v1277_v0   ;;  %v2478_v40 = vpack.c.bf16 %v2378_v1, %v2377_v55  ;;  %v1101_v26 = vmul.f32 %v2875_v30, %v5066_v21  ;;  %v1086_v34 = vmul.f32 %v2844_v10, %v5067_v24  ;;  %v1085_v59 = vmul.f32 %v2843_v3, %v5068_v33  ;;  %v1280_v55 = vld [vmem:[%s4892_s1 + $0x368] sm:$0xff]  ;;  %v1279_v1 = vld [vmem:[%s4892_s1 + $0x360] sm:$0xff]  ;;  %v5071_v10 = vld [vmem:[#allocation31_spill] sm:$0xff] }
 0x1e0   :  { %vm2106_vm14 = vcmp.ge.f32.partialorder %v1978_v22, 0.0  ;;  %v2234_v27 = vmul.f32 0.2, %v1978_v22  ;;  %vm2105_vm15 = vcmp.ge.f32.partialorder %v1977_v25, 0.0  ;;  %v2233_v57 = vmul.f32 0.2, %v1977_v25 }
 0x1e1   :  { %v1587_v8 = vpop.permute.xlu1 %1586  ;;  %v1582_v31 = vpop.permute.xlu0 %1581  ;;  %3104 = vmatprep.subr.bf16.mxu1 %v2478_v40  ;;  %v3043_v40 = vld [vmem:[%s4894_s3 + $0xf8] sm:$0xff]   ;;  %v2847_v62 = vunpack.c.l.bf16 %v3034_v5  ;;  %v3174_v24 = vld [vmem:[%s4893_s2] sm:$0xff] }
 0x1e2   :  { %v1996_v37 = vadd.f32 %v1587_v8, %v1100_v18  ;;  %v1995_v53 = vadd.f32 %v1582_v31, %v1099_v7  ;;  %1766 = vperm.xlu1 %3168, %v1264_v11   ;;  %v2361_v15 = vsel %vm2105_vm15, %v1977_v25, %v2233_v57  ;;  %v2362_v56 = vsel %vm2106_vm14, %v1978_v22, %v2234_v27  ;;  %v5069_v8 = vld [vmem:[#allocation47_spill] sm:$0xff] }
 0x1e3   :  { %1761 = vperm.xlu0 %3167, %v1263_v51   ;;  %v2470_v41 = vpack.c.bf16 %v2362_v56, %v2361_v15  ;;  %v2879_v22 = vunpack.c.l.bf16 %v3042_v54  ;;  %v2848_v18 = vunpack.c.h.bf16 %v3034_v5  ;;  %v1104_v31 = vmul.f32 %v2880_v52, %v5069_v8  ;;  %v1266_v15 = vld [vmem:[%s4892_s1 + $0x2f8] sm:$0xff]  ;;  %v1265_v56 = vld [vmem:[%s4892_s1 + $0x2f0] sm:$0xff] }
 0x1e4   :  { %vm2124_vm0 = vcmp.ge.f32.partialorder %v1996_v37, 0.0  ;;  %v2252_v39 = vmul.f32 0.2, %v1996_v37  ;;  %vm2123_vm1 = vcmp.ge.f32.partialorder %v1995_v53, 0.0  ;;  %v2251_v47 = vmul.f32 0.2, %v1995_v53 }
 0x1e5   :  { %v1507_v43 = vpop.permute.xlu1 %1506  ;;  %v1502_v16 = vpop.permute.xlu0 %1501  ;;  %3105 = vmatpush3.bf16.msra.mxu1 %v2470_v41  ;;  %v2884_v48 = vunpack.c.h.bf16 %v3043_v40  ;;  %v3035_v41 = vld [vmem:[%s4894_s3 + $0xb8] sm:$0xff]   ;;  %v5074_v5 = vld [vmem:[#allocation50_spill] sm:$0xff] }
 0x1e6   :  { %v1980_v38 = vadd.f32 %v1507_v43, %v1084_v4  ;;  %v1979_v46 = vadd.f32 %v1502_v16, %v1083_v29  ;;  %1686 = vperm.xlu1 %3168, %v1248_v12   ;;  %v2379_v28 = vsel %vm2123_vm1, %v1995_v53, %v2251_v47  ;;  %v2380_v32 = vsel %vm2124_vm0, %v1996_v37, %v2252_v39  ;;  %v5072_v16 = vld [vmem:[#allocation32_spill] sm:$0xff]  ;;  %v1281_v8 = vld [vmem:[%s4892_s1 + $0x370] sm:$0xff] }
 0x1e7   :  { %1681 = vperm.xlu0 %3167, %v1247_v44   ;;  %v2479_v6 = vpack.c.bf16 %v2380_v32, %v2379_v28  ;;  %v1103_v37 = vmul.f32 %v2879_v22, %v5070_v14  ;;  %v1088_v43 = vmul.f32 %v2848_v18, %v5071_v10  ;;  %v1087_v54 = vmul.f32 %v2847_v62, %v5072_v16  ;;  %v1250_v28 = vld [vmem:[%s4892_s1 + $0x278] sm:$0xff]  ;;  %v1249_v32 = vld [vmem:[%s4892_s1 + $0x270] sm:$0xff] }
 0x1e8   :  { %vm2108_vm2 = vcmp.ge.f32.partialorder %v1980_v38, 0.0  ;;  %v2236_v58 = vmul.f32 0.2, %v1980_v38  ;;  %vm2107_vm3 = vcmp.ge.f32.partialorder %v1979_v46, 0.0  ;;  %v2235_v2 = vmul.f32 0.2, %v1979_v46 }
 0x1e9   :  { %v1597_v35 = vpop.permute.xlu1 %1596  ;;  %v1592_v19 = vpop.permute.xlu0 %1591  ;;  %3106 = vmatprep.subr.bf16.mxu1 %v2479_v6  ;;  %v2851_v21 = vunpack.c.l.bf16 %v3035_v41  ;;  %v1282_v62 = vld [vmem:[%s4892_s1 + $0x378] sm:$0xff] }
 0x1ea   :  { %v1998_v49 = vadd.f32 %v1597_v35, %v1102_v9  ;;  %v1997_v0 = vadd.f32 %v1592_v19, %v1101_v26  ;;  %1926 = vperm.xlu1 %3168, %v1296_v45   ;;  %v2363_v60 = vsel %vm2107_vm3, %v1979_v46, %v2235_v2  ;;  %v2364_v20 = vsel %vm2108_vm2, %v1980_v38, %v2236_v58  ;;  %v3052_v45 = vld [vmem:[%s4894_s3 + $0x140] sm:$0xff]  }
 0x1eb   :  { %1921 = vperm.xlu0 %3167, %v1295_v63   ;;  %v2471_v25 = vpack.c.bf16 %v2364_v20, %v2363_v60  ;;  %v2883_v38 = vunpack.c.l.bf16 %v3043_v40  ;;  %v2852_v9 = vunpack.c.h.bf16 %v3035_v41  ;;  %v5073_v35 = vld [vmem:[#allocation49_spill] sm:$0xff]  ;;  %v1298_v60 = vld [vmem:[%s4892_s1 + $0x3f8] sm:$0xff]  ;;  %v1297_v20 = vld [vmem:[%s4892_s1 + $0x3f0] sm:$0xff]  ;;  %v2920_v22 = vunpack.c.h.bf16 %v3052_v45 }
 0x1ec   :  { %vm2126_vm4 = vcmp.ge.f32.partialorder %v1998_v49, 0.0  ;;  %v2254_v50 = vmul.f32 0.2, %v1998_v49  ;;  %vm2125_vm5 = vcmp.ge.f32.partialorder %v1997_v0, 0.0  ;;  %v2253_v36 = vmul.f32 0.2, %v1997_v0 }
 0x1ed   :  { %v1517_v23 = vpop.permute.xlu1 %1516  ;;  %v1512_v7 = vpop.permute.xlu0 %1511  ;;  %3107 = vmatpush3.bf16.msra.mxu1 %v2471_v25  ;;  %v1106_v19 = vmul.f32 %v2884_v48, %v5073_v35  ;;  %v2919_v25 = vunpack.c.l.bf16 %v3052_v45  ;;  %v5075_v40 = vld [vmem:[#allocation33_spill] sm:$0xff]  ;;  %v5079_v45 = vld [vmem:[#allocation51_spill] sm:$0xff]  ;;  %v2562_v35 = vcombine.high %v4563_v13, %v4563_v13  ;;  %v5082_v13 = vld [vmem:[#allocation100_spill] sm:$0xff] }
 0x1ee   :  { %v1982_v11 = vadd.f32 %v1517_v23, %v1086_v34  ;;  %v1981_v51 = vadd.f32 %v1512_v7, %v1085_v59  ;;  %1846 = vperm.xlu1 %3168, %v1280_v55   ;;  %v2381_v27 = vsel %vm2125_vm5, %v1997_v0, %v2253_v36  ;;  %v2382_v57 = vsel %vm2126_vm4, %v1998_v49, %v2254_v50  ;;  %v3044_v50 = vld [vmem:[%s4894_s3 + $0x100] sm:$0xff]  }
 0x1ef   :  { %1841 = vperm.xlu0 %3167, %v1279_v1   ;;  %v2480_v53 = vpack.c.bf16 %v2382_v57, %v2381_v27  ;;  %v1105_v49 = vmul.f32 %v2883_v38, %v5074_v5  ;;  %v2517_v34 = vcombine.high %v3174_v24, %v3174_v24  ;;  %v3068_v48 = vld [vmem:[%s4894_s3 + $0x1c0] sm:$0xff]   ;;  %v3053_v24 = vld [vmem:[%s4894_s3 + $0x148] sm:$0xff]  }
 0x1f0   :  { %vm2110_vm6 = vcmp.ge.f32.partialorder %v1982_v11, 0.0  ;;  %v2238_v17 = vmul.f32 0.2, %v1982_v11  ;;  %vm2109_vm7 = vcmp.ge.f32.partialorder %v1981_v51, 0.0  ;;  %v2237_v4 = vmul.f32 0.2, %v1981_v51 }
 0x1f1   :  { %v1607_v29 = vpop.permute.xlu1 %1606  ;;  %v1602_v30 = vpop.permute.xlu0 %1601  ;;  %3108 = vmatprep.subr.bf16.mxu1 %v2480_v53  ;;  %v2888_v53 = vunpack.c.h.bf16 %v3044_v50 }
 0x1f2   :  { %v2000_v12 = vadd.f32 %v1607_v29, %v1104_v31  ;;  %v1999_v44 = vadd.f32 %v1602_v30, %v1103_v37  ;;  %1776 = vperm.xlu1 %3168, %v1266_v15   ;;  %v2365_v39 = vsel %vm2109_vm7, %v1981_v51, %v2237_v4  ;;  %v2366_v47 = vsel %vm2110_vm6, %v1982_v11, %v2238_v17  ;;  %v5076_v51 = vld [vmem:[#allocation34_spill] sm:$0xff] }
 0x1f3   :  { %1771 = vperm.xlu0 %3167, %v1265_v56   ;;  %v2472_v46 = vpack.c.bf16 %v2366_v47, %v2365_v39  ;;  %v1090_v11 = vmul.f32 %v2852_v9, %v5075_v40  ;;  %v1089_v27 = vmul.f32 %v2851_v21, %v5076_v51  ;;  %v4716_v31 = vrot.slane %v2517_v34, %v5049_v61  ;;  %v5078_v47 = vld [vmem:[#allocation68_spill] sm:$0xff]  ;;  %v3045_v51 = vld [vmem:[%s4894_s3 + $0x108] sm:$0xff]  }
 0x1f4   :  { %vm2128_vm8 = vcmp.ge.f32.partialorder %v2000_v12, 0.0  ;;  %v2256_v3 = vmul.f32 0.2, %v2000_v12  ;;  %vm2127_vm9 = vcmp.ge.f32.partialorder %v1999_v44, 0.0  ;;  %v2255_v42 = vmul.f32 0.2, %v1999_v44 }
 0x1f5   :  { %v1527_v26 = vpop.permute.xlu1 %1526  ;;  %v1522_v6 = vpop.permute.xlu0 %1521  ;;  %3109 = vmatpush3.bf16.msra.mxu1 %v2472_v46  ;;  %v2887_v15 = vunpack.c.l.bf16 %v3044_v50  ;;  %v2533_v4 = vcombine.high %v4716_v31, %v4716_v31  ;;  %v1123_v10 = vmul.f32 %v2919_v25, %v5078_v47  ;;  %v2984_v46 = vunpack.c.h.bf16 %v3068_v48  ;;  %v5081_v25 = vld [vmem:[#allocation99_spill] sm:$0xff] }
 0x1f6   :  { %v1984_v63 = vadd.f32 %v1527_v26, %v1088_v43  ;;  %v1983_v58 = vadd.f32 %v1522_v6, %v1087_v54  ;;  %1696 = vperm.xlu1 %3168, %v1250_v28   ;;  %v2383_v2 = vsel %vm2127_vm9, %v1999_v44, %v2255_v42  ;;  %v2384_v52 = vsel %vm2128_vm8, %v2000_v12, %v2256_v3  ;;  %v5077_v44 = vld [vmem:[#allocation67_spill] sm:$0xff]  ;;  %v3060_v42 = vld [vmem:[%s4894_s3 + $0x180] sm:$0xff]  }
 0x1f7   :  { %1691 = vperm.xlu0 %3167, %v1249_v32   ;;  %v2481_v0 = vpack.c.bf16 %v2384_v52, %v2383_v2  ;;  %v1124_v39 = vmul.f32 %v2920_v22, %v5077_v44  ;;  %v2561_v16 = vrot.slane %v2533_v4, %v5049_v61  ;;  %v2983_v28 = vunpack.c.l.bf16 %v3068_v48 }
 0x1f8   :  { %vm2112_vm10 = vcmp.ge.f32.partialorder %v1984_v63, 0.0  ;;  %v2240_v33 = vmul.f32 0.2, %v1984_v63  ;;  %vm2111_vm11 = vcmp.ge.f32.partialorder %v1983_v58, 0.0  ;;  %v2239_v59 = vmul.f32 0.2, %v1983_v58 }
 0x1f9   :  { %v1617_v55 = vpop.permute.xlu1 %1616  ;;  %v1612_v1 = vpop.permute.xlu0 %1611  ;;  %3110 = vmatprep.subr.bf16.mxu1 %v2481_v0  ;;  %2686 = vmatprep.mubr.bf16.mxu0 %v2561_v16  ;;  %v2951_v0 = vunpack.c.l.bf16 %v3060_v42 }
 0x1fa   :  { %v2002_v36 = vadd.f32 %v1617_v55, %v1106_v19  ;;  %v2001_v18 = vadd.f32 %v1612_v1, %v1105_v49  ;;  %1936 = vperm.xlu1 %3168, %v1298_v60   ;;  %v2367_v23 = vsel %vm2111_vm11, %v1983_v58, %v2239_v59  ;;  %v2368_v7 = vsel %vm2112_vm10, %v1984_v63, %v2240_v33  ;;  %v5080_v58 = vld [vmem:[#allocation52_spill] sm:$0xff] }
 0x1fb   :  { %1931 = vperm.xlu0 %3167, %v1297_v20   ;;  %v2473_v57 = vpack.c.bf16 %v2368_v7, %v2367_v23  ;;  %v1108_v63 = vmul.f32 %v2888_v53, %v5079_v45  ;;  %v1107_v2 = vmul.f32 %v2887_v15, %v5080_v58  ;;  %v2952_v49 = vunpack.c.h.bf16 %v3060_v42  ;;  %v5084_v15 = vld [vmem:[#allocation84_spill] sm:$0xff] }
 0x1fc   :  { %vm2130_vm12 = vcmp.ge.f32.partialorder %v2002_v36, 0.0  ;;  %v2258_v14 = vmul.f32 0.2, %v2002_v36  ;;  %vm2129_vm13 = vcmp.ge.f32.partialorder %v2001_v18, 0.0  ;;  %v2257_v37 = vmul.f32 0.2, %v2001_v18 }
 0x1fd   :  { %v1537_v56 = vpop.permute.xlu1 %1536  ;;  %v1532_v17 = vpop.permute.xlu0 %1531  ;;  %3111 = vmatpush3.bf16.msra.mxu1 %v2473_v57  ;;  %v1156_v55 = vmul.f32 %v2984_v46, %v5081_v25  ;;  %v1155_v1 = vmul.f32 %v2983_v28, %v5082_v13  ;;  %v2924_v7 = vunpack.c.h.bf16 %v3053_v24 }
 0x1fe   :  { %v1986_v29 = vadd.f32 %v1537_v56, %v1090_v11  ;;  %v1985_v30 = vadd.f32 %v1532_v17, %v1089_v27  ;;  %1856 = vperm.xlu1 %3168, %v1282_v62   ;;  %v2385_v41 = vsel %vm2129_vm13, %v2001_v18, %v2257_v37  ;;  %v2386_v12 = vsel %vm2130_vm12, %v2002_v36, %v2258_v14  ;;  %v5083_v37 = vld [vmem:[#allocation83_spill] sm:$0xff] }
 0x1ff   :  { %1851 = vperm.xlu0 %3167, %v1281_v8   ;;  %v2482_v43 = vpack.c.bf16 %v2386_v12, %v2385_v41  ;;  %v2565_v36 = vcombine.high %v2561_v16, %v2561_v16  ;;  %v2923_v14 = vunpack.c.l.bf16 %v3053_v24  ;;  %v1140_v53 = vmul.f32 %v2952_v49, %v5083_v37  ;;  %v3069_v12 = vld [vmem:[%s4894_s3 + $0x1c8] sm:$0xff]  }
 0x200   :  { %vm2114_vm14 = vcmp.ge.f32.partialorder %v1986_v29, 0.0  ;;  %v2242_v54 = vmul.f32 0.2, %v1986_v29  ;;  %vm2113_vm15 = vcmp.ge.f32.partialorder %v1985_v30, 0.0  ;;  %v2241_v38 = vmul.f32 0.2, %v1985_v30 }
 0x201   :  { %v1707_v32 = vpop.permute.xlu1 %1706  ;;  %v1702_v3 = vpop.permute.xlu0 %1701  ;;  %3112 = vmatprep.subr.bf16.mxu1 %v2482_v43  ;;  %v1139_v56 = vmul.f32 %v2951_v0, %v5084_v15  ;;  %v2891_v43 = vunpack.c.l.bf16 %v3045_v51  ;;  %v5085_v16 = vld [vmem:[#allocation69_spill] sm:$0xff]  ;;  %v2988_v42 = vunpack.c.h.bf16 %v3069_v12 }
 0x202   :  { %v2020_v9 = vadd.f32 %v1707_v32, %v1124_v39  ;;  %v2019_v21 = vadd.f32 %v1702_v3, %v1123_v10  ;;  %v2369_v26 = vsel %vm2113_vm15, %v1985_v30, %v2241_v38  ;;  %v2370_v6 = vsel %vm2114_vm14, %v1986_v29, %v2242_v54  ;;  %v5086_v38 = vld [vmem:[#allocation70_spill] sm:$0xff]  ;;  %v5091_v15 = vld [vmem:[#allocation85_spill] sm:$0xff] }
 0x203   :  { %v2474_v52 = vpack.c.bf16 %v2370_v6, %v2369_v26  ;;  %v2892_v29 = vunpack.c.h.bf16 %v3045_v51  ;;  %v1126_v54 = vmul.f32 %v2924_v7, %v5085_v16  ;;  %v1125_v46 = vmul.f32 %v2923_v14, %v5086_v38  ;;  %v3061_v26 = vld [vmem:[%s4894_s3 + $0x188] sm:$0xff]   ;;  %v5093_v38 = vld [vmem:[#allocation71_spill] sm:$0xff] }
 0x204   :  { %vm2148_vm0 = vcmp.ge.f32.partialorder %v2020_v9, 0.0  ;;  %v2276_v19 = vmul.f32 0.2, %v2020_v9  ;;  %vm2147_vm1 = vcmp.ge.f32.partialorder %v2019_v21, 0.0  ;;  %v2275_v5 = vmul.f32 0.2, %v2019_v21 }
 0x205   :  { %v1627_v60 = vpop.permute.xlu1 %1626  ;;  %v1622_v20 = vpop.permute.xlu0 %1621  ;;  %3113 = vmatpush3.bf16.msra.mxu1 %v2474_v52  ;;  %v2955_v13 = vunpack.c.l.bf16 %v3061_v26 }
 0x206   :  { %v2004_v34 = vadd.f32 %v1627_v60, %v1108_v63  ;;  %v2003_v33 = vadd.f32 %v1622_v20, %v1107_v2  ;;  %v2403_v59 = vsel %vm2147_vm1, %v2019_v21, %v2275_v5  ;;  %v2404_v22 = vsel %vm2148_vm0, %v2020_v9, %v2276_v19  ;;  %v5087_v2 = vld [vmem:[#allocation53_spill] sm:$0xff] }
 0x207   :  { %v2491_v50 = vpack.c.bf16 %v2404_v22, %v2403_v59  ;;  %v1110_v52 = vmul.f32 %v2892_v29, %v5087_v2  ;;  %v2987_v5 = vunpack.c.l.bf16 %v3069_v12  ;;  %v2956_v20 = vunpack.c.h.bf16 %v3061_v26 }
 0x208   :  { %vm2132_vm2 = vcmp.ge.f32.partialorder %v2004_v34, 0.0  ;;  %v2260_v18 = vmul.f32 0.2, %v2004_v34  ;;  %vm2131_vm3 = vcmp.ge.f32.partialorder %v2003_v33, 0.0  ;;  %v2259_v23 = vmul.f32 0.2, %v2003_v33  ;;  %2647 = vmatmul.mubr.bf16.vlgmr.msra.gmra.mrb[0].mxu1 %v2562_v35 }
 0x209   :  { %v1867_v40 = vpop.permute.xlu1 %1866  ;;  %v1862_v11 = vpop.permute.xlu0 %1861  ;;  %3120 = vmatprep.subr.bf16.mxu0 %v2491_v50  ;;  %2726 = vmatprep.mubr.bf16.mxu1 %v2565_v36  ;;  %v5088_v35 = vld [vmem:[#allocation54_spill] sm:$0xff] }
 0x20a   :  { %v2388_v27 = vsel %vm2132_vm2, %v2004_v34, %v2260_v18  ;;  %v2387_v57 = vsel %vm2131_vm3, %v2003_v33, %v2259_v23  ;;  %v2052_v62 = vadd.f32 %v1867_v40, %v1156_v55  ;;  %v2051_v8 = vadd.f32 %v1862_v11, %v1155_v1  ;;  %v3054_v33 = vld [vmem:[%s4894_s3 + $0x150] sm:$0xff]   ;;  %v5089_v1 = vld [vmem:[#allocation101_spill] sm:$0xff] }
 0x20b   :  { %v2483_v17 = vpack.c.bf16 %v2388_v27, %v2387_v57  ;;  %v1109_v19 = vmul.f32 %v2891_v43, %v5088_v35  ;;  %v1158_v50 = vmul.f32 %v2988_v42, %v5089_v1  ;;  %v5090_v36 = vld [vmem:[#allocation102_spill] sm:$0xff]  ;;  %v2928_v11 = vunpack.c.h.bf16 %v3054_v33  ;;  %v5095_v35 = vld [vmem:[#allocation55_spill] sm:$0xff] }
 0x20c   :  { %vm2180_vm4 = vcmp.ge.f32.partialorder %v2052_v62, 0.0  ;;  %v2308_v4 = vmul.f32 0.2, %v2052_v62  ;;  %vm2179_vm5 = vcmp.ge.f32.partialorder %v2051_v8, 0.0  ;;  %v2307_v48 = vmul.f32 0.2, %v2051_v8 }
 0x20d   :  { %v1787_v30 = vpop.permute.xlu1 %1786  ;;  %v1782_v41 = vpop.permute.xlu0 %1781  ;;  %3121 = vmatpush3.bf16.msra.mxu0 %v2483_v17  ;;  %v1157_v18 = vmul.f32 %v2987_v5, %v5090_v36  ;;  %v3046_v57 = vld [vmem:[%s4894_s3 + $0x110] sm:$0xff]   ;;  %v5096_v5 = vld [vmem:[#allocation56_spill] sm:$0xff] }
 0x20e   :  { %v2036_v44 = vadd.f32 %v1787_v30, %v1140_v53  ;;  %v2035_v39 = vadd.f32 %v1782_v41, %v1139_v56  ;;  %v2435_v47 = vsel %vm2179_vm5, %v2051_v8, %v2307_v48  ;;  %v2436_v10 = vsel %vm2180_vm4, %v2052_v62, %v2308_v4  ;;  %v5092_v17 = vld [vmem:[#allocation86_spill] sm:$0xff]  ;;  %v5097_v36 = vld [vmem:[#allocation103_spill] sm:$0xff] }
 0x20f   :  { %v2507_v28 = vpack.c.bf16 %v2436_v10, %v2435_v47  ;;  %v2927_v53 = vunpack.c.l.bf16 %v3054_v33  ;;  %v1142_v56 = vmul.f32 %v2956_v20, %v5091_v15  ;;  %v1141_v4 = vmul.f32 %v2955_v13, %v5092_v17  ;;  %v5099_v17 = vld [vmem:[#allocation87_spill] sm:$0xff] }
 0x210   :  { %vm2164_vm6 = vcmp.ge.f32.partialorder %v2036_v44, 0.0  ;;  %v2292_v32 = vmul.f32 0.2, %v2036_v44  ;;  %vm2163_vm7 = vcmp.ge.f32.partialorder %v2035_v39, 0.0  ;;  %v2291_v3 = vmul.f32 0.2, %v2035_v39 }
 0x211   :  { %v1717_v9 = vpop.permute.xlu1 %1716  ;;  %v1712_v21 = vpop.permute.xlu0 %1711  ;;  %3142 = vmatprep.subr.bf16.mxu1 %v2507_v28  ;;  %v2896_v41 = vunpack.c.h.bf16 %v3046_v57  ;;  %v5094_v28 = vld [vmem:[#allocation72_spill] sm:$0xff] }
 0x212   :  { %v2420_v6 = vsel %vm2164_vm6, %v2036_v44, %v2292_v32  ;;  %v2419_v45 = vsel %vm2163_vm7, %v2035_v39, %v2291_v3  ;;  %v2022_v63 = vadd.f32 %v1717_v9, %v1126_v54  ;;  %v2021_v58 = vadd.f32 %v1712_v21, %v1125_v46  ;;  %v3070_v39 = vld [vmem:[%s4894_s3 + $0x1d0] sm:$0xff]  }
 0x213   :  { %v2499_v49 = vpack.c.bf16 %v2420_v6, %v2419_v45  ;;  %v2895_v54 = vunpack.c.l.bf16 %v3046_v57  ;;  %v1128_v46 = vmul.f32 %v2928_v11, %v5093_v38  ;;  %v1127_v32 = vmul.f32 %v2927_v53, %v5094_v28  ;;  %v3062_v45 = vld [vmem:[%s4894_s3 + $0x190] sm:$0xff]   ;;  %v5101_v28 = vld [vmem:[#allocation73_spill] sm:$0xff] }
 0x214   :  { %vm2150_vm8 = vcmp.ge.f32.partialorder %v2022_v63, 0.0  ;;  %v2278_v0 = vmul.f32 0.2, %v2022_v63  ;;  %vm2149_vm9 = vcmp.ge.f32.partialorder %v2021_v58, 0.0  ;;  %v2277_v60 = vmul.f32 0.2, %v2021_v58 }
 0x215   :  { %v1637_v24 = vpop.permute.xlu1 %1636  ;;  %v1632_v34 = vpop.permute.xlu0 %1631  ;;  %3143 = vmatpush3.bf16.msra.mxu1 %v2499_v49  ;;  %v2992_v21 = vunpack.c.h.bf16 %v3070_v39  ;;  %v1111_v49 = vmul.f32 %v2895_v54, %v5096_v5  ;;  %v5103_v5 = vld [vmem:[#allocation57_spill] sm:$0xff] }
 0x216   :  { %v2006_v59 = vadd.f32 %v1637_v24, %v1110_v52  ;;  %v2005_v22 = vadd.f32 %v1632_v34, %v1109_v19  ;;  %v2405_v25 = vsel %vm2149_vm9, %v2021_v58, %v2277_v60  ;;  %v2406_v55 = vsel %vm2150_vm8, %v2022_v63, %v2278_v0 }
 0x217   :  { %v2492_v23 = vpack.c.bf16 %v2406_v55, %v2405_v25  ;;  %v1112_v19 = vmul.f32 %v2896_v41, %v5095_v35  ;;  %v2991_v0 = vunpack.c.l.bf16 %v3070_v39  ;;  %v2960_v34 = vunpack.c.h.bf16 %v3062_v45 }
 0x218   :  { %vm2134_vm10 = vcmp.ge.f32.partialorder %v2006_v59, 0.0  ;;  %v2262_v7 = vmul.f32 0.2, %v2006_v59  ;;  %vm2133_vm11 = vcmp.ge.f32.partialorder %v2005_v22, 0.0  ;;  %v2261_v40 = vmul.f32 0.2, %v2005_v22 }
 0x219   :  { %v1877_v51 = vpop.permute.xlu1 %1876  ;;  %v1872_v27 = vpop.permute.xlu0 %1871  ;;  %3122 = vmatprep.subr.bf16.mxu0 %v2492_v23  ;;  %v5098_v23 = vld [vmem:[#allocation104_spill] sm:$0xff] }
 0x21a   :  { %v2390_v62 = vsel %vm2134_vm10, %v2006_v59, %v2262_v7  ;;  %v2389_v8 = vsel %vm2133_vm11, %v2005_v22, %v2261_v40  ;;  %v2054_v14 = vadd.f32 %v1877_v51, %v1158_v50  ;;  %v2053_v37 = vadd.f32 %v1872_v27, %v1157_v18  ;;  %v3055_v22 = vld [vmem:[%s4894_s3 + $0x158] sm:$0xff]  }
 0x21b   :  { %v2484_v48 = vpack.c.bf16 %v2390_v62, %v2389_v8  ;;  %v2959_v50 = vunpack.c.l.bf16 %v3062_v45  ;;  %v1160_v18 = vmul.f32 %v2992_v21, %v5097_v36  ;;  %v1159_v7 = vmul.f32 %v2991_v0, %v5098_v23  ;;  %v3047_v8 = vld [vmem:[%s4894_s3 + $0x118] sm:$0xff]   ;;  %v5104_v0 = vld [vmem:[#allocation58_spill] sm:$0xff]  ;;  %v5105_v23 = vld [vmem:[#allocation105_spill] sm:$0xff] }
 0x21c   :  { %vm2182_vm12 = vcmp.ge.f32.partialorder %v2054_v14, 0.0  ;;  %v2310_v29 = vmul.f32 0.2, %v2054_v14  ;;  %vm2181_vm13 = vcmp.ge.f32.partialorder %v2053_v37, 0.0  ;;  %v2309_v30 = vmul.f32 0.2, %v2053_v37 }
 0x21d   :  { %v1797_v12 = vpop.permute.xlu1 %1796  ;;  %v1792_v44 = vpop.permute.xlu0 %1791  ;;  %3123 = vmatpush3.bf16.msra.mxu0 %v2484_v48  ;;  %v2932_v27 = vunpack.c.h.bf16 %v3055_v22  ;;  %v5100_v48 = vld [vmem:[#allocation88_spill] sm:$0xff] }
 0x21e   :  { %v2038_v47 = vadd.f32 %v1797_v12, %v1142_v56  ;;  %v2037_v10 = vadd.f32 %v1792_v44, %v1141_v4  ;;  %v2437_v43 = vsel %vm2181_vm13, %v2053_v37, %v2309_v30  ;;  %v2438_v16 = vsel %vm2182_vm12, %v2054_v14, %v2310_v29 }
 0x21f   :  { %v2508_v3 = vpack.c.bf16 %v2438_v16, %v2437_v43  ;;  %v2931_v56 = vunpack.c.l.bf16 %v3055_v22  ;;  %v1144_v4 = vmul.f32 %v2960_v34, %v5099_v17  ;;  %v1143_v29 = vmul.f32 %v2959_v50, %v5100_v48  ;;  %v3048_v17 = vld [vmem:[%s4894_s3 + $0x120] sm:$0xff]  }
 0x220   :  { %vm2166_vm14 = vcmp.ge.f32.partialorder %v2038_v47, 0.0  ;;  %v2294_v42 = vmul.f32 0.2, %v2038_v47  ;;  %vm2165_vm15 = vcmp.ge.f32.partialorder %v2037_v10, 0.0  ;;  %v2293_v9 = vmul.f32 0.2, %v2037_v10 }
 0x221   :  { %v1727_v26 = vpop.permute.xlu1 %1726  ;;  %v1722_v6 = vpop.permute.xlu0 %1721  ;;  %3144 = vmatprep.subr.bf16.mxu1 %v2508_v3  ;;  %v2900_v44 = vunpack.c.h.bf16 %v3047_v8  ;;  %v5102_v3 = vld [vmem:[#allocation74_spill] sm:$0xff]  ;;  %v5107_v48 = vld [vmem:[#allocation89_spill] sm:$0xff] }
 0x222   :  { %v2422_v63 = vsel %vm2166_vm14, %v2038_v47, %v2294_v42  ;;  %v2421_v58 = vsel %vm2165_vm15, %v2037_v10, %v2293_v9  ;;  %v2024_v2 = vadd.f32 %v1727_v26, %v1128_v46  ;;  %v2023_v52 = vadd.f32 %v1722_v6, %v1127_v32  ;;  %v3071_v10 = vld [vmem:[%s4894_s3 + $0x1d8] sm:$0xff]  }
 0x223   :  { %v2500_v60 = vpack.c.bf16 %v2422_v63, %v2421_v58  ;;  %v2899_v46 = vunpack.c.l.bf16 %v3047_v8  ;;  %v1130_v32 = vmul.f32 %v2932_v27, %v5101_v28  ;;  %v1129_v42 = vmul.f32 %v2931_v56, %v5102_v3  ;;  %v3063_v58 = vld [vmem:[%s4894_s3 + $0x198] sm:$0xff]  }
 0x224   :  { %vm2152_vm0 = vcmp.ge.f32.partialorder %v2024_v2, 0.0  ;;  %v2280_v20 = vmul.f32 0.2, %v2024_v2  ;;  %vm2151_vm1 = vcmp.ge.f32.partialorder %v2023_v52, 0.0  ;;  %v2279_v24 = vmul.f32 0.2, %v2023_v52 }
 0x225   :  { %v1647_v33 = vpop.permute.xlu1 %1646  ;;  %v1642_v59 = vpop.permute.xlu0 %1641  ;;  %3145 = vmatpush3.bf16.msra.mxu1 %v2500_v60  ;;  %v2996_v6 = vunpack.c.h.bf16 %v3071_v10  ;;  %v1113_v60 = vmul.f32 %v2899_v46, %v5104_v0  ;;  %v2904_v46 = vunpack.c.h.bf16 %v3048_v17  ;;  %v5109_v28 = vld [vmem:[#allocation75_spill] sm:$0xff]  ;;  %v5110_v3 = vld [vmem:[#allocation76_spill] sm:$0xff] }
 0x226   :  { %v2008_v25 = vadd.f32 %v1647_v33, %v1112_v19  ;;  %v2007_v55 = vadd.f32 %v1642_v59, %v1111_v49  ;;  %v2407_v13 = vsel %vm2151_vm1, %v2023_v52, %v2279_v24  ;;  %v2408_v1 = vsel %vm2152_vm0, %v2024_v2, %v2280_v20 }
 0x227   :  { %v2493_v40 = vpack.c.bf16 %v2408_v1, %v2407_v13  ;;  %v1114_v49 = vmul.f32 %v2900_v44, %v5103_v5  ;;  %v2995_v20 = vunpack.c.l.bf16 %v3071_v10  ;;  %v2964_v59 = vunpack.c.h.bf16 %v3063_v58  ;;  %v5111_v5 = vld [vmem:[#allocation59_spill] sm:$0xff] }
 0x228   :  { %vm2136_vm2 = vcmp.ge.f32.partialorder %v2008_v25, 0.0  ;;  %v2264_v11 = vmul.f32 0.2, %v2008_v25  ;;  %vm2135_vm3 = vcmp.ge.f32.partialorder %v2007_v55, 0.0  ;;  %v2263_v51 = vmul.f32 0.2, %v2007_v55 }
 0x229   :  { %v1887_v57 = vpop.permute.xlu1 %1886  ;;  %v1882_v62 = vpop.permute.xlu0 %1881  ;;  %3124 = vmatprep.subr.bf16.mxu0 %v2493_v40  ;;  %v5106_v40 = vld [vmem:[#allocation106_spill] sm:$0xff] }
 0x22a   :  { %v2392_v14 = vsel %vm2136_vm2, %v2008_v25, %v2264_v11  ;;  %v2391_v37 = vsel %vm2135_vm3, %v2007_v55, %v2263_v51  ;;  %v2056_v53 = vadd.f32 %v1887_v57, %v1160_v18  ;;  %v2055_v15 = vadd.f32 %v1882_v62, %v1159_v7  ;;  %v3056_v55 = vld [vmem:[%s4894_s3 + $0x160] sm:$0xff]  }
 0x22b   :  { %v2485_v30 = vpack.c.bf16 %v2392_v14, %v2391_v37  ;;  %v2963_v18 = vunpack.c.l.bf16 %v3063_v58  ;;  %v1162_v7 = vmul.f32 %v2996_v6, %v5105_v23  ;;  %v1161_v11 = vmul.f32 %v2995_v20, %v5106_v40  ;;  %v3057_v23 = vld [vmem:[%s4894_s3 + $0x168] sm:$0xff]   ;;  %v5113_v40 = vld [vmem:[#allocation107_spill] sm:$0xff] }
 0x22c   :  { %vm2184_vm4 = vcmp.ge.f32.partialorder %v2056_v53, 0.0  ;;  %v2312_v41 = vmul.f32 0.2, %v2056_v53  ;;  %vm2183_vm5 = vcmp.ge.f32.partialorder %v2055_v15, 0.0  ;;  %v2311_v12 = vmul.f32 0.2, %v2055_v15 }
 0x22d   :  { %v1807_v39 = vpop.permute.xlu1 %1806  ;;  %v1802_v47 = vpop.permute.xlu0 %1801  ;;  %3125 = vmatpush3.bf16.msra.mxu0 %v2485_v30  ;;  %v2936_v62 = vunpack.c.h.bf16 %v3056_v55  ;;  %v5108_v30 = vld [vmem:[#allocation90_spill] sm:$0xff] }
 0x22e   :  { %v2040_v43 = vadd.f32 %v1807_v39, %v1144_v4  ;;  %v2039_v16 = vadd.f32 %v1802_v47, %v1143_v29  ;;  %v2439_v54 = vsel %vm2183_vm5, %v2055_v15, %v2311_v12  ;;  %v2440_v38 = vsel %vm2184_vm4, %v2056_v53, %v2312_v41 }
 0x22f   :  { %v2509_v9 = vpack.c.bf16 %v2440_v38, %v2439_v54  ;;  %v2935_v4 = vunpack.c.l.bf16 %v3056_v55  ;;  %v1146_v29 = vmul.f32 %v2964_v59, %v5107_v48  ;;  %v1145_v41 = vmul.f32 %v2963_v18, %v5108_v30  ;;  %v3064_v59 = vld [vmem:[%s4894_s3 + $0x1a0] sm:$0xff]   ;;  %v3049_v48 = vld [vmem:[%s4894_s3 + $0x128] sm:$0xff]  }
 0x230   :  { %vm2168_vm6 = vcmp.ge.f32.partialorder %v2040_v43, 0.0  ;;  %v2296_v21 = vmul.f32 0.2, %v2040_v43  ;;  %vm2167_vm7 = vcmp.ge.f32.partialorder %v2039_v16, 0.0  ;;  %v2295_v26 = vmul.f32 0.2, %v2039_v16 }
 0x231   :  { %v1737_v45 = vpop.permute.xlu1 %1736  ;;  %v1732_v63 = vpop.permute.xlu0 %1731  ;;  %3146 = vmatprep.subr.bf16.mxu1 %v2509_v9  ;;  %v3072_v9 = vld [vmem:[%s4894_s3 + $0x1e0] sm:$0xff]  }
 0x232   :  { %v2424_v2 = vsel %vm2168_vm6, %v2040_v43, %v2296_v21  ;;  %v2423_v52 = vsel %vm2167_vm7, %v2039_v16, %v2295_v26  ;;  %v2026_v35 = vadd.f32 %v1737_v45, %v1130_v32  ;;  %v2025_v19 = vadd.f32 %v1732_v63, %v1129_v42 }
 0x233   :  { %v2501_v24 = vpack.c.bf16 %v2424_v2, %v2423_v52  ;;  %v1132_v32 = vmul.f32 %v2936_v62, %v5109_v28  ;;  %v1131_v42 = vmul.f32 %v2935_v4, %v5110_v3  ;;  %v2903_v45 = vunpack.c.l.bf16 %v3048_v17  ;;  %v5117_v3 = vld [vmem:[#allocation77_spill] sm:$0xff] }
 0x234   :  { %vm2154_vm8 = vcmp.ge.f32.partialorder %v2026_v35, 0.0  ;;  %v2282_v34 = vmul.f32 0.2, %v2026_v35  ;;  %vm2153_vm9 = vcmp.ge.f32.partialorder %v2025_v19, 0.0  ;;  %v2281_v33 = vmul.f32 0.2, %v2025_v19 }
 0x235   :  { %v1657_v22 = vpop.permute.xlu1 %1656  ;;  %v1652_v25 = vpop.permute.xlu0 %1651  ;;  %3147 = vmatpush3.bf16.msra.mxu1 %v2501_v24  ;;  %v3000_v0 = vunpack.c.h.bf16 %v3072_v9 }
 0x236   :  { %v2010_v13 = vadd.f32 %v1657_v22, %v1114_v49  ;;  %v2009_v1 = vadd.f32 %v1652_v25, %v1113_v60  ;;  %v2409_v50 = vsel %vm2153_vm9, %v2025_v19, %v2281_v33  ;;  %v2410_v36 = vsel %vm2154_vm8, %v2026_v35, %v2282_v34  ;;  %v5112_v34 = vld [vmem:[#allocation60_spill] sm:$0xff] }
 0x237   :  { %v2494_v51 = vpack.c.bf16 %v2410_v36, %v2409_v50  ;;  %v1116_v49 = vmul.f32 %v2904_v46, %v5111_v5  ;;  %v1115_v33 = vmul.f32 %v2903_v45, %v5112_v34  ;;  %v2999_v22 = vunpack.c.l.bf16 %v3072_v9  ;;  %v3073_v9 = vld [vmem:[%s4894_s3 + $0x1e8] sm:$0xff]  }
 0x238   :  { %vm2138_vm10 = vcmp.ge.f32.partialorder %v2010_v13, 0.0  ;;  %v2266_v27 = vmul.f32 0.2, %v2010_v13  ;;  %vm2137_vm11 = vcmp.ge.f32.partialorder %v2009_v1, 0.0  ;;  %v2265_v57 = vmul.f32 0.2, %v2009_v1 }
 0x239   :  { %v1897_v8 = vpop.permute.xlu1 %1896  ;;  %v1892_v14 = vpop.permute.xlu0 %1891  ;;  %3126 = vmatprep.subr.bf16.mxu0 %v2494_v51  ;;  %v2908_v46 = vunpack.c.h.bf16 %v3049_v48  ;;  %v5118_v45 = vld [vmem:[#allocation78_spill] sm:$0xff]  ;;  %v3004_v5 = vunpack.c.h.bf16 %v3073_v9 }
 0x23a   :  { %v2394_v37 = vsel %vm2138_vm10, %v2010_v13, %v2266_v27  ;;  %v2393_v53 = vsel %vm2137_vm11, %v2009_v1, %v2265_v57  ;;  %v2058_v15 = vadd.f32 %v1897_v8, %v1162_v7  ;;  %v2057_v56 = vadd.f32 %v1892_v14, %v1161_v11  ;;  %v5114_v57 = vld [vmem:[#allocation108_spill] sm:$0xff] }
 0x23b   :  { %v2486_v12 = vpack.c.bf16 %v2394_v37, %v2393_v53  ;;  %v2968_v7 = vunpack.c.h.bf16 %v3064_v59  ;;  %v1164_v11 = vmul.f32 %v3000_v0, %v5113_v40  ;;  %v2967_v27 = vunpack.c.l.bf16 %v3064_v59  ;;  %v5120_v59 = vld [vmem:[#allocation62_spill] sm:$0xff] }
 0x23c   :  { %vm2186_vm12 = vcmp.ge.f32.partialorder %v2058_v15, 0.0  ;;  %v2314_v44 = vmul.f32 0.2, %v2058_v15  ;;  %vm2185_vm13 = vcmp.ge.f32.partialorder %v2057_v56, 0.0  ;;  %v2313_v39 = vmul.f32 0.2, %v2057_v56 }
 0x23d   :  { %v1817_v47 = vpop.permute.xlu1 %1816  ;;  %v1812_v10 = vpop.permute.xlu0 %1811  ;;  %3127 = vmatpush3.bf16.msra.mxu0 %v2486_v12  ;;  %v1163_v62 = vmul.f32 %v2999_v22, %v5114_v57  ;;  %v3058_v40 = vld [vmem:[%s4894_s3 + $0x170] sm:$0xff]  }
 0x23e   :  { %v2042_v43 = vadd.f32 %v1817_v47, %v1146_v29  ;;  %v2041_v16 = vadd.f32 %v1812_v10, %v1145_v41  ;;  %v2441_v54 = vsel %vm2185_vm13, %v2057_v56, %v2313_v39  ;;  %v2442_v38 = vsel %vm2186_vm12, %v2058_v15, %v2314_v44  ;;  %v5115_v29 = vld [vmem:[#allocation91_spill] sm:$0xff]  ;;  %v5116_v39 = vld [vmem:[#allocation92_spill] sm:$0xff] }
 0x23f   :  { %v2510_v21 = vpack.c.bf16 %v2442_v38, %v2441_v54  ;;  %v2940_v56 = vunpack.c.h.bf16 %v3057_v23  ;;  %v1148_v30 = vmul.f32 %v2968_v7, %v5115_v29  ;;  %v2939_v44 = vunpack.c.l.bf16 %v3057_v23 }
 0x240   :  { %vm2170_vm14 = vcmp.ge.f32.partialorder %v2042_v43, 0.0  ;;  %v2298_v26 = vmul.f32 0.2, %v2042_v43  ;;  %vm2169_vm15 = vcmp.ge.f32.partialorder %v2041_v16, 0.0  ;;  %v2297_v6 = vmul.f32 0.2, %v2041_v16 }
 0x241   :  { %v1747_v63 = vpop.permute.xlu1 %1746  ;;  %v1742_v58 = vpop.permute.xlu0 %1741  ;;  %3148 = vmatprep.subr.bf16.mxu1 %v2510_v21  ;;  %v1147_v47 = vmul.f32 %v2967_v27, %v5116_v39 }
 0x242   :  { %v2426_v2 = vsel %vm2170_vm14, %v2042_v43, %v2298_v26  ;;  %v2425_v52 = vsel %vm2169_vm15, %v2041_v16, %v2297_v6  ;;  %v2028_v35 = vadd.f32 %v1747_v63, %v1132_v32  ;;  %v2027_v19 = vadd.f32 %v1742_v58, %v1131_v42 }
 0x243   :  { %v2502_v60 = vpack.c.bf16 %v2426_v2, %v2425_v52  ;;  %v1134_v42 = vmul.f32 %v2940_v56, %v5117_v3  ;;  %v2907_v6 = vunpack.c.l.bf16 %v3049_v48  ;;  %v1133_v63 = vmul.f32 %v2939_v44, %v5118_v45 }
 0x244   :  { %vm2156_vm0 = vcmp.ge.f32.partialorder %v2028_v35, 0.0  ;;  %v2284_v20 = vmul.f32 0.2, %v2028_v35  ;;  %vm2155_vm1 = vcmp.ge.f32.partialorder %v2027_v19, 0.0  ;;  %v2283_v24 = vmul.f32 0.2, %v2027_v19 }
 0x245   :  { %v1667_v25 = vpop.permute.xlu1 %1666  ;;  %3149 = vmatpush3.bf16.msra.mxu1 %v2502_v60  ;;  %v5119_v60 = vld [vmem:[#allocation61_spill] sm:$0xff]  ;;  %v1117_v22 = vmul.f32 %v2907_v6, %v5120_v59 }
 0x246   :  { %v2012_v55 = vadd.f32 %v1667_v25, %v1116_v49  ;;  %v1662_v13 = vpop.permute.xlu0 %1661  ;;  %v2411_v1 = vsel %vm2155_vm1, %v2027_v19, %v2283_v24  ;;  %v2412_v50 = vsel %vm2156_vm0, %v2028_v35, %v2284_v20  ;;  %v1118_v20 = vmul.f32 %v2908_v46, %v5119_v60  ;;  %v3065_v24 = vld [vmem:[%s4894_s3 + $0x1a8] sm:$0xff]  }
 0x247   :  { %v2011_v36 = vadd.f32 %v1662_v13, %v1115_v33  ;;  %v2495_v18 = vpack.c.bf16 %v2412_v50, %v2411_v1  ;;  %v3003_v25 = vunpack.c.l.bf16 %v3073_v9  ;;  %v5125_v9 = vld [vmem:[#allocation79_spill] sm:$0xff] }
 0x248   :  { %vm2140_vm2 = vcmp.ge.f32.partialorder %v2012_v55, 0.0  ;;  %v2268_v51 = vmul.f32 0.2, %v2012_v55 }
 0x249   :  { %vm2139_vm3 = vcmp.ge.f32.partialorder %v2011_v36, 0.0  ;;  %v2267_v8 = vmul.f32 0.2, %v2011_v36  ;;  %v1907_v14 = vpop.permute.xlu1 %1906  ;;  %3128 = vmatprep.subr.bf16.mxu0 %v2495_v18  ;;  %v2972_v18 = vunpack.c.h.bf16 %v3065_v24 }
 0x24a   :  { %v2396_v37 = vsel %vm2140_vm2, %v2012_v55, %v2268_v51  ;;  %v2060_v53 = vadd.f32 %v1907_v14, %v1164_v11  ;;  %v1902_v15 = vpop.permute.xlu0 %1901  ;;  %v5121_v11 = vld [vmem:[#allocation109_spill] sm:$0xff] }
 0x24b   :  { %v2395_v17 = vsel %vm2139_vm3, %v2011_v36, %v2267_v8  ;;  %v2059_v4 = vadd.f32 %v1902_v15, %v1163_v62  ;;  %v1166_v51 = vmul.f32 %v3004_v5, %v5121_v11  ;;  %v2971_v62 = vunpack.c.l.bf16 %v3065_v24  ;;  %v5122_v8 = vld [vmem:[#allocation110_spill] sm:$0xff]  ;;  %v5127_v24 = vld [vmem:[#allocation63_spill] sm:$0xff] }
 0x24c   :  { %v2487_v41 = vpack.c.bf16 %v2396_v37, %v2395_v17  ;;  %vm2188_vm4 = vcmp.ge.f32.partialorder %v2060_v53, 0.0  ;;  %v2316_v12 = vmul.f32 0.2, %v2060_v53  ;;  %v1165_v14 = vmul.f32 %v3003_v25, %v5122_v8  ;;  %v5128_v25 = vld [vmem:[#allocation64_spill] sm:$0xff] }
 0x24d   :  { %vm2187_vm5 = vcmp.ge.f32.partialorder %v2059_v4, 0.0  ;;  %v2315_v10 = vmul.f32 0.2, %v2059_v4  ;;  %v1827_v43 = vpop.permute.xlu1 %1826 }
 0x24e   :  { %v2044_v16 = vadd.f32 %v1827_v43, %v1148_v30  ;;  %v1822_v54 = vpop.permute.xlu0 %1821  ;;  %3129 = vmatpush3.bf16.msra.mxu0 %v2487_v41  ;;  %v2444_v38 = vsel %vm2188_vm4, %v2060_v53, %v2316_v12  ;;  %v3050_v30 = vld [vmem:[%s4894_s3 + $0x130] sm:$0xff]   ;;  %v5123_v41 = vld [vmem:[#allocation93_spill] sm:$0xff] }
 0x24f   :  { %v2043_v28 = vadd.f32 %v1822_v54, %v1147_v47  ;;  %v2443_v32 = vsel %vm2187_vm5, %v2059_v4, %v2315_v10  ;;  %v2944_v4 = vunpack.c.h.bf16 %v3058_v40  ;;  %v1150_v12 = vmul.f32 %v2972_v18, %v5123_v41  ;;  %v5124_v10 = vld [vmem:[#allocation94_spill] sm:$0xff] }
 0x250   :  { %vm2172_vm6 = vcmp.ge.f32.partialorder %v2044_v16, 0.0  ;;  %v2300_v21 = vmul.f32 0.2, %v2044_v16  ;;  %v2511_v26 = vpack.c.bf16 %v2444_v38, %v2443_v32  ;;  %v2943_v47 = vunpack.c.l.bf16 %v3058_v40 }
 0x251   :  { %vm2171_vm7 = vcmp.ge.f32.partialorder %v2043_v28, 0.0  ;;  %v2299_v58 = vmul.f32 0.2, %v2043_v28  ;;  %v1757_v2 = vpop.permute.xlu1 %1756  ;;  %v1149_v43 = vmul.f32 %v2971_v62, %v5124_v10  ;;  %v2912_v32 = vunpack.c.h.bf16 %v3050_v30 }
 0x252   :  { %v2428_v52 = vsel %vm2172_vm6, %v2044_v16, %v2300_v21  ;;  %v2030_v35 = vadd.f32 %v1757_v2, %v1134_v42  ;;  %v1752_v19 = vpop.permute.xlu0 %1751  ;;  %3150 = vmatprep.subr.bf16.mxu1 %v2511_v26  ;;  %v1136_v21 = vmul.f32 %v2944_v4, %v5125_v9  ;;  %v3074_v26 = vld [vmem:[%s4894_s3 + $0x1f0] sm:$0xff]  }
 0x253   :  { %v2427_v49 = vsel %vm2171_vm7, %v2043_v28, %v2299_v58  ;;  %v2029_v0 = vadd.f32 %v1752_v19, %v1133_v63  ;;  %v2911_v63 = vunpack.c.l.bf16 %v3050_v30  ;;  %v5126_v58 = vld [vmem:[#allocation80_spill] sm:$0xff] }
 0x254   :  { %v2503_v34 = vpack.c.bf16 %v2428_v52, %v2427_v49  ;;  %vm2158_vm8 = vcmp.ge.f32.partialorder %v2030_v35, 0.0  ;;  %v2286_v33 = vmul.f32 0.2, %v2030_v35  ;;  %v1135_v2 = vmul.f32 %v2943_v47, %v5126_v58 }
 0x255   :  { %vm2157_vm9 = vcmp.ge.f32.partialorder %v2029_v0, 0.0  ;;  %v2285_v55 = vmul.f32 0.2, %v2029_v0  ;;  %v1677_v13 = vpop.permute.xlu1 %1676 }
 0x256   :  { %v2014_v1 = vadd.f32 %v1677_v13, %v1118_v20  ;;  %v1672_v50 = vpop.permute.xlu0 %1671  ;;  %3151 = vmatpush3.bf16.msra.mxu1 %v2503_v34  ;;  %v2414_v36 = vsel %vm2158_vm8, %v2030_v35, %v2286_v33  ;;  %v1120_v34 = vmul.f32 %v2912_v32, %v5127_v24  ;;  %v3066_v33 = vld [vmem:[%s4894_s3 + $0x1b0] sm:$0xff]   ;;  %v3007_v13 = vunpack.c.l.bf16 %v3074_v26 }
 0x257   :  { %v2013_v23 = vadd.f32 %v1672_v50, %v1117_v22  ;;  %v2413_v7 = vsel %vm2157_vm9, %v2029_v0, %v2285_v55  ;;  %v3008_v0 = vunpack.c.h.bf16 %v3074_v26  ;;  %v1119_v55 = vmul.f32 %v2911_v63, %v5128_v25  ;;  %v5133_v26 = vld [vmem:[#allocation81_spill] sm:$0xff] }
 0x258   :  { %vm2142_vm10 = vcmp.ge.f32.partialorder %v2014_v1, 0.0  ;;  %v2270_v27 = vmul.f32 0.2, %v2014_v1  ;;  %v2496_v57 = vpack.c.bf16 %v2414_v36, %v2413_v7  ;;  %v2976_v7 = vunpack.c.h.bf16 %v3066_v33 }
 0x259   :  { %vm2141_vm11 = vcmp.ge.f32.partialorder %v2013_v23, 0.0  ;;  %v2269_v37 = vmul.f32 0.2, %v2013_v23  ;;  %v1917_v53 = vpop.permute.xlu1 %1916 }
 0x25a   :  { %v2398_v15 = vsel %vm2142_vm10, %v2014_v1, %v2270_v27  ;;  %v2062_v56 = vadd.f32 %v1917_v53, %v1166_v51  ;;  %v1912_v17 = vpop.permute.xlu0 %1911  ;;  %3130 = vmatprep.subr.bf16.mxu0 %v2496_v57  ;;  %v3059_v51 = vld [vmem:[%s4894_s3 + $0x178] sm:$0xff]  }
 0x25b   :  { %v2397_v48 = vsel %vm2141_vm11, %v2013_v23, %v2269_v37  ;;  %v2061_v29 = vadd.f32 %v1912_v17, %v1165_v14  ;;  %v5129_v27 = vld [vmem:[#allocation111_spill] sm:$0xff]  ;;  %v2975_v14 = vunpack.c.l.bf16 %v3066_v33  ;;  %v5130_v37 = vld [vmem:[#allocation112_spill] sm:$0xff]  ;;  %v5135_v33 = vld [vmem:[#allocation65_spill] sm:$0xff] }
 0x25c   :  { %v2488_v44 = vpack.c.bf16 %v2398_v15, %v2397_v48  ;;  %vm2190_vm12 = vcmp.ge.f32.partialorder %v2062_v56, 0.0  ;;  %v2318_v39 = vmul.f32 0.2, %v2062_v56  ;;  %v1168_v57 = vmul.f32 %v3008_v0, %v5129_v27 }
 0x25d   :  { %vm2189_vm13 = vcmp.ge.f32.partialorder %v2061_v29, 0.0  ;;  %v2317_v16 = vmul.f32 0.2, %v2061_v29  ;;  %v1837_v54 = vpop.permute.xlu1 %1836  ;;  %v1167_v53 = vmul.f32 %v3007_v13, %v5130_v37  ;;  %v5136_v13 = vld [vmem:[#allocation66_spill] sm:$0xff] }
 0x25e   :  { %v2046_v38 = vadd.f32 %v1837_v54, %v1150_v12  ;;  %v1832_v46 = vpop.permute.xlu0 %1831  ;;  %3131 = vmatpush3.bf16.msra.mxu0 %v2488_v44  ;;  %v2446_v28 = vsel %vm2190_vm12, %v2062_v56, %v2318_v39  ;;  %v3051_v12 = vld [vmem:[%s4894_s3 + $0x138] sm:$0xff]  }
 0x25f   :  { %v2045_v3 = vadd.f32 %v1832_v46, %v1149_v43  ;;  %v2445_v42 = vsel %vm2189_vm13, %v2061_v29, %v2317_v16  ;;  %v2948_v29 = vunpack.c.h.bf16 %v3059_v51  ;;  %v5131_v44 = vld [vmem:[#allocation95_spill] sm:$0xff]  ;;  %v2947_v43 = vunpack.c.l.bf16 %v3059_v51  ;;  %v5132_v16 = vld [vmem:[#allocation96_spill] sm:$0xff] }
 0x260   :  { %vm2174_vm14 = vcmp.ge.f32.partialorder %v2046_v38, 0.0  ;;  %v2302_v6 = vmul.f32 0.2, %v2046_v38  ;;  %v2512_v45 = vpack.c.bf16 %v2446_v28, %v2445_v42  ;;  %v1152_v39 = vmul.f32 %v2976_v7, %v5131_v44 }
 0x261   :  { %vm2173_vm15 = vcmp.ge.f32.partialorder %v2045_v3, 0.0  ;;  %v2301_v52 = vmul.f32 0.2, %v2045_v3  ;;  %v1767_v35 = vpop.permute.xlu1 %1766  ;;  %v1151_v54 = vmul.f32 %v2975_v14, %v5132_v16  ;;  %v2916_v42 = vunpack.c.h.bf16 %v3051_v12 }
 0x262   :  { %v2430_v19 = vsel %vm2174_vm14, %v2046_v38, %v2302_v6  ;;  %v2032_v5 = vadd.f32 %v1767_v35, %v1136_v21  ;;  %v1762_v49 = vpop.permute.xlu0 %1761  ;;  %3152 = vmatprep.subr.bf16.mxu1 %v2512_v45  ;;  %v1138_v6 = vmul.f32 %v2948_v29, %v5133_v26  ;;  %v3075_v45 = vld [vmem:[%s4894_s3 + $0x1f8] sm:$0xff]  }
 0x263   :  { %v2429_v60 = vsel %vm2173_vm15, %v2045_v3, %v2301_v52  ;;  %v2031_v20 = vadd.f32 %v1762_v49, %v1135_v2  ;;  %v2915_v2 = vunpack.c.l.bf16 %v3051_v12  ;;  %v5134_v52 = vld [vmem:[#allocation82_spill] sm:$0xff]  ;;  %v5139_v12 = vld [vmem:[#allocation97_spill] sm:$0xff] }
 0x264   :  { %v2504_v59 = vpack.c.bf16 %v2430_v19, %v2429_v60  ;;  %vm2160_vm0 = vcmp.ge.f32.partialorder %v2032_v5, 0.0  ;;  %v2288_v22 = vmul.f32 0.2, %v2032_v5  ;;  %v1137_v35 = vmul.f32 %v2947_v43, %v5134_v52 }
 0x265   :  { %vm2159_vm1 = vcmp.ge.f32.partialorder %v2031_v20, 0.0  ;;  %v2287_v1 = vmul.f32 0.2, %v2031_v20  ;;  %v1687_v50 = vpop.permute.xlu1 %1686 }
 0x266   :  { %v2016_v36 = vadd.f32 %v1687_v50, %v1120_v34  ;;  %v1682_v18 = vpop.permute.xlu0 %1681  ;;  %3153 = vmatpush3.bf16.msra.mxu1 %v2504_v59  ;;  %v2416_v23 = vsel %vm2160_vm0, %v2032_v5, %v2288_v22  ;;  %v1122_v59 = vmul.f32 %v2916_v42, %v5135_v33  ;;  %v3067_v22 = vld [vmem:[%s4894_s3 + $0x1b8] sm:$0xff]   ;;  %v3011_v50 = vunpack.c.l.bf16 %v3075_v45  ;;  %s3202_s3 = smov [#allocation2]  }
 0x267   :  { %v2015_v40 = vadd.f32 %v1682_v18, %v1119_v55  ;;  %v2415_v11 = vsel %vm2159_vm1, %v2031_v20, %v2287_v1  ;;  %v3012_v20 = vunpack.c.h.bf16 %v3075_v45  ;;  %v1121_v1 = vmul.f32 %v2915_v2, %v5136_v13  ;;  %s2748_s1 = sshll.u32 %s3202_s3, 4  ;;  %s2749_s1 = int_to_ptr.vmem [resolvable:$true] %s2748_s1 }
 0x268   :  { %vm2144_vm2 = vcmp.ge.f32.partialorder %v2016_v36, 0.0  ;;  %v2272_v62 = vmul.f32 0.2, %v2016_v36  ;;  %v2497_v8 = vpack.c.bf16 %v2416_v23, %v2415_v11  ;;  %v2980_v11 = vunpack.c.h.bf16 %v3067_v22  ;;  %s3176_s15 = scalar_lea.vmem %s2749_s1, 16  ;;  %s3180_s16 = scalar_lea.vmem %s2749_s1, 32 }
 0x269   :  { %vm2143_vm3 = vcmp.ge.f32.partialorder %v2015_v40, 0.0  ;;  %v2271_v15 = vmul.f32 0.2, %v2015_v40  ;;  %v1927_v56 = vpop.permute.xlu1 %1926  ;;  %v2979_v37 = vunpack.c.l.bf16 %v3067_v22  ;;  %vm2740_vm0 = vcmask 8192   ;;  %p3177_p0 = scmp.ne.s32.totalorder %s2749_s1, %s3176_s15  ;;  %p3181_p1 = scmp.lt.s32.totalorder %s2749_s1, %s2749_s1 }
 0x26a   :  { %v2400_v17 = vsel %vm2144_vm2, %v2016_v36, %v2272_v62  ;;  %v2064_v4 = vadd.f32 %v1927_v56, %v1168_v57  ;;  %v1922_v48 = vpop.permute.xlu0 %1921  ;;  %3132 = vmatprep.subr.bf16.mxu0 %v2497_v8  ;;  %v5137_v57 = vld [vmem:[#allocation113_spill] sm:$0xff]  ;;  %v1154_v44 = vmul.f32 %v2980_v11, %v5139_v12  ;;  %p3182_p2 = scmp.lt.s32.totalorder %s3180_s16, %s3176_s15 }
 0x26b   :  { %v2399_v30 = vsel %vm2143_vm3, %v2015_v40, %v2271_v15  ;;  %v2063_v41 = vadd.f32 %v1922_v48, %v1167_v53  ;;  %v1170_v62 = vmul.f32 %v3012_v20, %v5137_v57  ;;  %v5138_v53 = vld [vmem:[#allocation114_spill] sm:$0xff] }
 0x26c   :  { %v2489_v47 = vpack.c.bf16 %v2400_v17, %v2399_v30  ;;  %vm2192_vm4 = vcmp.ge.f32.partialorder %v2064_v4, 0.0  ;;  %v2320_v10 = vmul.f32 0.2, %v2064_v4  ;;  %v1169_v15 = vmul.f32 %v3011_v50, %v5138_v53  ;;  %p3183_p3 = por %p3182_p2, %p3181_p1 }
 0x26d   :  { %vm2191_vm5 = vcmp.ge.f32.partialorder %v2063_v41, 0.0  ;;  %v2319_v38 = vmul.f32 0.2, %v2063_v41  ;;  %v1847_v46 = vpop.permute.xlu1 %1846 }
 0x26e   :  { %v2048_v28 = vadd.f32 %v1847_v46, %v1152_v39  ;;  %v1842_v32 = vpop.permute.xlu0 %1841  ;;  %3133 = vmatpush3.bf16.msra.mxu0 %v2489_v47  ;;  %v2448_v3 = vsel %vm2192_vm4, %v2064_v4, %v2320_v10  ;;  %v5140_v10 = vld [vmem:[#allocation98_spill] sm:$0xff]  ;;  %p3184_p4 = pnand %p3183_p3, %p3177_p0 }
 0x26f   :  { %v2047_v9 = vadd.f32 %v1842_v32, %v1151_v54  ;;  %v2447_v21 = vsel %vm2191_vm5, %v2063_v41, %v2319_v38  ;;  %v1153_v43 = vmul.f32 %v2979_v37, %v5140_v10  ;;  %v2547_v38 = vrot.slane %v4716_v31, %v5049_v61 }
 0x270   :  { %vm2176_vm6 = vcmp.ge.f32.partialorder %v2048_v28, 0.0  ;;  %v2304_v63 = vmul.f32 0.2, %v2048_v28  ;;  %v2513_v58 = vpack.c.bf16 %v2448_v3, %v2447_v21 }
 0x271   :  { %vm2175_vm7 = vcmp.ge.f32.partialorder %v2047_v9, 0.0  ;;  %v2303_v19 = vmul.f32 0.2, %v2047_v9  ;;  %v1777_v5 = vpop.permute.xlu1 %1776 }
 0x272   :  { %v2432_v49 = vsel %vm2176_vm6, %v2048_v28, %v2304_v63  ;;  %v2034_v0 = vadd.f32 %v1777_v5, %v1138_v6  ;;  %v1772_v60 = vpop.permute.xlu0 %1771  ;;  %3154 = vmatprep.subr.bf16.mxu1 %v2513_v58  ;;  %v2563_v58 = vcombine.high %v2547_v38, %v2547_v38 }
 0x273   :  { %v2431_v24 = vsel %vm2175_vm7, %v2047_v9, %v2303_v19  ;;  %v2033_v34 = vadd.f32 %v1772_v60, %v1137_v35 }
 0x274   :  { %v2505_v25 = vpack.c.bf16 %v2432_v49, %v2431_v24  ;;  %vm2162_vm8 = vcmp.ge.f32.partialorder %v2034_v0, 0.0  ;;  %v2290_v55 = vmul.f32 0.2, %v2034_v0 }
 0x275   :  { %vm2161_vm9 = vcmp.ge.f32.partialorder %v2033_v34, 0.0  ;;  %v2289_v36 = vmul.f32 0.2, %v2033_v34  ;;  %v1697_v18 = vpop.permute.xlu1 %1696 }
 0x276   :  { %v2018_v23 = vadd.f32 %v1697_v18, %v1122_v59  ;;  %v1692_v7 = vpop.permute.xlu0 %1691  ;;  %3155 = vmatpush3.bf16.msra.mxu1 %v2505_v25  ;;  %v2418_v40 = vsel %vm2162_vm8, %v2034_v0, %v2290_v55 }
 0x277   :  { %v2017_v51 = vadd.f32 %v1692_v7, %v1121_v1  ;;  %v2417_v27 = vsel %vm2161_vm9, %v2033_v34, %v2289_v36 }
 0x278   :  { %vm2146_vm10 = vcmp.ge.f32.partialorder %v2018_v23, 0.0  ;;  %v2274_v8 = vmul.f32 0.2, %v2018_v23  ;;  %v2498_v14 = vpack.c.bf16 %v2418_v40, %v2417_v27 }
 0x279   :  { %vm2145_vm11 = vcmp.ge.f32.partialorder %v2017_v51, 0.0  ;;  %v2273_v56 = vmul.f32 0.2, %v2017_v51  ;;  %v1937_v17 = vpop.permute.xlu1 %1936 }
 0x27a   :  { %v2402_v4 = vsel %vm2146_vm10, %v2018_v23, %v2274_v8  ;;  %v2066_v48 = vadd.f32 %v1937_v17, %v1170_v62  ;;  %v1932_v29 = vpop.permute.xlu0 %1931  ;;  %3134 = vmatprep.subr.bf16.mxu0 %v2498_v14 }
 0x27b   :  { %v2401_v30 = vsel %vm2145_vm11, %v2017_v51, %v2273_v56  ;;  %v2065_v41 = vadd.f32 %v1932_v29, %v1169_v15 }
 0x27c   :  { %v2490_v39 = vpack.c.bf16 %v2402_v4, %v2401_v30  ;;  %vm2194_vm12 = vcmp.ge.f32.partialorder %v2066_v48, 0.0  ;;  %v2322_v47 = vmul.f32 0.2, %v2066_v48 }
 0x27d   :  { %vm2193_vm13 = vcmp.ge.f32.partialorder %v2065_v41, 0.0  ;;  %v2321_v16 = vmul.f32 0.2, %v2065_v41  ;;  %v1857_v54 = vpop.permute.xlu1 %1856 }
 0x27e   :  { %v2050_v46 = vadd.f32 %v1857_v54, %v1154_v44  ;;  %v1852_v28 = vpop.permute.xlu0 %1851  ;;  %3135 = vmatpush3.bf16.msra.mxu0 %v2490_v39  ;;  %v2450_v32 = vsel %vm2194_vm12, %v2066_v48, %v2322_v47 }
 0x27f   :  { %v2049_v3 = vadd.f32 %v1852_v28, %v1153_v43  ;;  %v2449_v42 = vsel %vm2193_vm13, %v2065_v41, %v2321_v16 }
 0x280   :  { %vm2178_vm14 = vcmp.ge.f32.partialorder %v2050_v46, 0.0  ;;  %v2306_v9 = vmul.f32 0.2, %v2050_v46  ;;  %v2514_v21 = vpack.c.bf16 %v2450_v32, %v2449_v42 }
 0x281   :  { %vm2177_vm15 = vcmp.ge.f32.partialorder %v2049_v3, 0.0  ;;  %v2305_v26 = vmul.f32 0.2, %v2049_v3  ;;  %2687 = vmatmul.mubr.bf16.vlgmr.msra.gmra.mrb[4].mxu0 %v2547_v38 }
 0x282   :  { %v2434_v6 = vsel %vm2178_vm14, %v2050_v46, %v2306_v9  ;;  %3156 = vmatprep.subr.bf16.mxu1 %v2514_v21 }
 0x283   :  { %v2433_v45 = vsel %vm2177_vm15, %v2049_v3, %v2305_v26 }
 0x284   :  { %v2506_v63 = vpack.c.bf16 %v2434_v6, %v2433_v45 }
 0x286   :  { %3157 = vmatpush3.bf16.msra.mxu1 %v2506_v63 }
 0x289   :  { %2727 = vmatmul.mubr.bf16.vlgmr.msra.gmra.mrb[4].mxu1 %v2563_v58 }
 0x29e   :  { %v3092_v61 = vpop.f32.mrb[0].mxu0 }
 0x29f   :  { %v3093_v31 = vpop.f32.mrb[1].mxu0 }
 0x2a0   :  { %v3094_v2 = vadd.f32 %v3093_v31, %v3092_v61  ;;  %v3095_v52 = vpop.f32.mrb[2].mxu0 }
 0x2a1   :  { %v3096_v35 = vpop.f32.mrb[3].mxu0 }
 0x2db   :  { %v3114_v19 = vpop.f32.mrb[0].mxu1 }
 0x2dc   :  { %v3115_v5 = vpop.f32.mrb[1].mxu1 }
 0x2dd   :  { %v3116_v49 = vadd.f32 %v3115_v5, %v3114_v19  ;;  %v3117_v0 = vpop.f32.mrb[2].mxu1 }
 0x2de   :  { %v3118_v60 = vpop.f32.mrb[3].mxu1 }
 0x2df   :  { %v2649_v20 = vadd.f32 %v3116_v49, %v3094_v2 }
 0x354   :  { %v3136_v24 = vpop.f32.mrb[4].mxu0 }
 0x355   :  { %v3137_v34 = vpop.f32.mrb[5].mxu0 }
 0x356   :  { %v3138_v33 = vadd.f32 %v3137_v34, %v3136_v24  ;;  %v3139_v59 = vpop.f32.mrb[6].mxu0 }
 0x357   :  { %v3140_v22 = vpop.f32.mrb[7].mxu0 }
 0x358   :  { %v2689_v25 = vadd.f32 %v3138_v33, %v2649_v20 }
 0x35c   :  { %v3158_v55 = vpop.f32.mrb[4].mxu1 }
 0x35d   :  { %v3159_v13 = vpop.f32.mrb[5].mxu1 }
 0x35e   :  { %v3160_v1 = vadd.f32 %v3159_v13, %v3158_v55  ;;  %v3161_v50 = vpop.f32.mrb[6].mxu1 }
 0x35f   :  { %v3162_v36 = vpop.f32.mrb[7].mxu1 }
 0x360   :  { %v2729_v18 = vadd.f32 %v3160_v1, %v2689_v25 }
 0x362   :  { %v2756_v23 = vmul.f32 -1.442695, %v2729_v18 }
 0x364   :  { %3170 = vpow2.f32 %v2756_v23 }
 0x36e   :  { %v3171_v7 = vpop.eup %3170 }
 0x36f   :  { %v2737_v40 = vadd.f32 1.0, %v3171_v7 }
 0x371   :  { %3172 = vrcp.f32 %v2737_v40 }
 0x37b   :  { %v3173_v11 = vpop.eup %3172 }
 0x37c   :  { %2741 = vst.msk [vmem:[#allocation2] sm:$0x1] %vm2740_vm0, %v3173_v11 }
 0x37d   :  { %3187 = shalt.err (!%p3184_p4)
}
 0x37e   :  { %s3188_s19 = scalar_lea.hbm %s4895_s4, 16 }
 0x37f   :  { %p3189_p5 = scmp.ne.s32.totalorder %s4895_s4, %s3188_s19  ;;  %p3192_p6 = scmp.lt.u32.totalorder %s3188_s19, %s4895_s4 }
 0x381   :  { %p3194_p7 = pnand %p3192_p6, %p3189_p5 }
 0x383   :  { %3197 = shalt.err (!%p3194_p7)
}
 0x384   :  { %2751 = dma.vmem_to_hbm [thread:$0]  %s2749_s1, 16, %s4895_s4, [#allocation3]  }
 0x385   :  { %3198 = dma.done.wait [#allocation3], 16  }
 0x386   :  { %3199 = vsyncadd [#allocation3], 4294967280 }
 0x387   :  { %2755 = vsyncpa [#allocation3], 1 }

</bundles_post_ra>
